<compile_context>
chip_gen: v7x
topology: tpu7x:2x2x1
jax: 0.10.0
libtpu: 0.0.40
codegen_flags: <defaults>
</compile_context>

<pallas_src>
import functools
from collections import OrderedDict

import jax
import jax.numpy as jnp
from jax.experimental import pallas as pl
from jax.experimental.pallas import tpu as pltpu

_BN_EPS = 1e-5
_VMEM_FULL = pl.BlockSpec(memory_space=pltpu.MemorySpace.VMEM)


# ------------------------------- helpers ----------------------------------- #

def _round_up(x, m):
    return ((x + m - 1) // m) * m


def _largest_tile(dim, unit, cap):
    """Largest multiple of `unit` that divides `dim` and is <= cap (dim % unit == 0)."""
    best = unit
    t = unit
    limit = min(dim, cap)
    while t <= limit:
        if dim % t == 0:
            best = t
        t += unit
    return best


# ----------------------------- Pallas kernels ------------------------------ #

def _matmul_bn_kernel(x_ref, w_ref, shift_ref, o_ref, acc_ref, *, relu):
    # Tiled (TM,TK)@(TK,TN) with f32 VMEM accumulator; BN shift (+ReLU) fused epilogue.
    k = pl.program_id(2)

    @pl.when(k == 0)
    def _():
        acc_ref[...] = jnp.zeros_like(acc_ref)

    acc_ref[...] += jnp.dot(x_ref[...], w_ref[...],
                            preferred_element_type=jnp.float32)

    @pl.when(k == pl.num_programs(2) - 1)
    def _():
        y = acc_ref[...] + shift_ref[...]
        if relu:
            y = jnp.maximum(y, 0.0)
        o_ref[...] = y.astype(o_ref.dtype)


def _matmul_bn_add_relu_kernel(x_ref, w_ref, shift_ref, res_ref, o_ref, acc_ref):
    # conv + BN + residual add + ReLU (BasicBlock tail), fully fused.
    k = pl.program_id(2)

    @pl.when(k == 0)
    def _():
        acc_ref[...] = jnp.zeros_like(acc_ref)

    acc_ref[...] += jnp.dot(x_ref[...], w_ref[...],
                            preferred_element_type=jnp.float32)

    @pl.when(k == pl.num_programs(2) - 1)
    def _():
        y = acc_ref[...] + shift_ref[...] + res_ref[...]
        o_ref[...] = jnp.maximum(y, 0.0).astype(o_ref.dtype)


def _max9_kernel(v0, v1, v2, v3, v4, v5, v6, v7, v8, o_ref):
    # Pure-VPU elementwise max tree over the 9 shifted window views.
    m01 = jnp.maximum(v0[...], v1[...])
    m23 = jnp.maximum(v2[...], v3[...])
    m45 = jnp.maximum(v4[...], v5[...])
    m67 = jnp.maximum(v6[...], v7[...])
    m = jnp.maximum(jnp.maximum(m01, m23), jnp.maximum(m45, m67))
    o_ref[...] = jnp.maximum(m, v8[...])


def _avgpool_kernel(x_ref, o_ref):
    # (N, H*W, C) -> global spatial mean (AdaptiveAvgPool2d((1,1))).
    o_ref[...] = jnp.mean(x_ref[...], axis=1)


# ------------------------------ JAX glue ----------------------------------- #

def _im2col(x_nhwc, kh, kw, stride, pad):
    """Window extraction -> (M, K) patch matrix, K = kh*kw*Cin (weight-compatible order)."""
    N, H, W, C = x_nhwc.shape
    Ho = (H + 2 * pad - kh) // stride + 1
    Wo = (W + 2 * pad - kw) // stride + 1
    if kh == 1 and kw == 1 and pad == 0:
        # 1x1 conv: no window expansion at all, just a strided slice + reshape.
        patches = x_nhwc[:, ::stride, ::stride, :]
        return patches.reshape(N * Ho * Wo, C), (N, Ho, Wo)
    xp = jnp.pad(x_nhwc, ((0, 0), (pad, pad), (pad, pad), (0, 0)))
    cols = []
    for i in range(kh):
        for j in range(kw):
            cols.append(xp[:, i:i + stride * Ho:stride, j:j + stride * Wo:stride, :])
    patches = jnp.stack(cols, axis=-2)          # (N, Ho, Wo, kh*kw, C)
    return patches.reshape(N * Ho * Wo, kh * kw * C), (N, Ho, Wo)


def conv_bn(x_nhwc, conv, stride, pad, relu=True, residual=None):
    """Conv2d(bias=False) + BatchNorm2d(eval) [+ residual] [+ ReLU], tiled Pallas matmul."""
    kh, kw = conv['kh'], conv['kw']
    Cout, K, Kpad, Npad = conv['cout'], conv['k'], conv['kpad'], conv['npad']

    lhs, (N, Ho, Wo) = _im2col(x_nhwc, kh, kw, stride, pad)
    M = N * Ho * Wo
    lhs = lhs.astype(jnp.bfloat16)                         # bf16 feed for the MXU

    TM = _largest_tile(_round_up(M, 8), 8, 512)
    TN = _largest_tile(Npad, 128, 256)
    TK = _largest_tile(Kpad, 128, 768)
    Mpad = _round_up(M, TM)

    lhs = jnp.pad(lhs, ((0, Mpad - M), (0, Kpad - K)))
    grid = (Mpad // TM, Npad // TN, Kpad // TK)

    x_spec = pl.BlockSpec((TM, TK), lambda i, j, k: (i, k))
    w_spec = pl.BlockSpec((TK, TN), lambda i, j, k: (k, j))
    s_spec = pl.BlockSpec((1, TN), lambda i, j, k: (0, j))
    o_spec = pl.BlockSpec((TM, TN), lambda i, j, k: (i, j))

    nbytes = (Mpad * Kpad * 2 + Kpad * Npad * 2 + Npad * 4
              + Mpad * Npad * 4 * (2 if residual is not None else 1))
    cost = pl.CostEstimate(flops=2 * Mpad * Kpad * Npad, transcendentals=0,
                           bytes_accessed=nbytes)
    cparams = pltpu.CompilerParams(
        dimension_semantics=("parallel", "parallel", "arbitrary"))
    out_shape = jax.ShapeDtypeStruct((Mpad, Npad), jnp.float32)
    scratch = [pltpu.VMEM((TM, TN), jnp.float32)]

    if residual is None:
        out = pl.pallas_call(
            functools.partial(_matmul_bn_kernel, relu=relu),
            out_shape=out_shape,
            grid_spec=pltpu.PrefetchScalarGridSpec(
                num_scalar_prefetch=0, grid=grid,
                in_specs=[x_spec, w_spec, s_spec],
                out_specs=o_spec, scratch_shapes=scratch),
            compiler_params=cparams, cost_estimate=cost,
        )(lhs, conv['w'], conv['shift'])
    else:
        res = residual.reshape(M, Cout).astype(jnp.float32)
        res = jnp.pad(res, ((0, Mpad - M), (0, Npad - Cout)))
        out = pl.pallas_call(
            _matmul_bn_add_relu_kernel,
            out_shape=out_shape,
            grid_spec=pltpu.PrefetchScalarGridSpec(
                num_scalar_prefetch=0, grid=grid,
                in_specs=[x_spec, w_spec, s_spec, o_spec],
                out_specs=o_spec, scratch_shapes=scratch),
            compiler_params=cparams, cost_estimate=cost,
        )(lhs, conv['w'], conv['shift'], res)

    return out[:M, :Cout].reshape(N, Ho, Wo, Cout)


def maxpool_3x3_s2_p1(x_nhwc):
    """nn.MaxPool2d(kernel_size=3, stride=2, padding=1): VPU max tree over 9 views."""
    N, H, W, C = x_nhwc.shape
    Ho = (H + 2 - 3) // 2 + 1
    Wo = (W + 2 - 3) // 2 + 1
    xp = jnp.pad(x_nhwc, ((0, 0), (1, 1), (1, 1), (0, 0)),
                 constant_values=-jnp.inf)

    rows, cols = N * Ho, Wo * C                 # lane-dense last dim (Wo*C)
    TR = _largest_tile(_round_up(rows, 8), 8, 512)
    rows_pad = _round_up(rows, TR)

    views = []
    for i in range(3):
        for j in range(3):
            v = xp[:, i:i + 2 * Ho:2, j:j + 2 * Wo:2, :].reshape(rows, cols)
            views.append(jnp.pad(v, ((0, rows_pad - rows), (0, 0))))

    spec = pl.BlockSpec((TR, cols), lambda r: (r, 0))
    out = pl.pallas_call(
        _max9_kernel,
        out_shape=jax.ShapeDtypeStruct((rows_pad, cols), jnp.float32),
        grid_spec=pltpu.PrefetchScalarGridSpec(
            num_scalar_prefetch=0, grid=(rows_pad // TR,),
            in_specs=[spec] * 9, out_specs=spec),
        compiler_params=pltpu.CompilerParams(dimension_semantics=("parallel",)),
    )(*views)
    return out[:rows].reshape(N, Ho, Wo, C)


def adaptive_avgpool_1x1_flatten(x_nhwc):
    """AdaptiveAvgPool2d((1,1)) + flatten(1) via a tiny Pallas reduction."""
    N, H, W, C = x_nhwc.shape
    xf = x_nhwc.reshape(N, H * W, C)
    return pl.pallas_call(
        _avgpool_kernel,
        out_shape=jax.ShapeDtypeStruct((N, C), jnp.float32),
        in_specs=[_VMEM_FULL], out_specs=_VMEM_FULL,
    )(xf)


def basic_block(x, p, stride):
    """torchvision resnet BasicBlock (expansion=1)."""
    identity = x
    out = conv_bn(x, p['c1'], stride=stride, pad=1, relu=True)
    if 'down' in p:
        identity = conv_bn(x, p['down'], stride=stride, pad=0, relu=False)
    out = conv_bn(out, p['c2'], stride=1, pad=1, relu=True, residual=identity)
    return out


# --------------------------- parameter creation ----------------------------- #

def _conv_w(key, cout, cin, k):
    fan_in = cin * k * k
    return (jax.random.normal(key, (cout, cin, k, k), jnp.float32)
            * (2.0 / fan_in) ** 0.5)


def _bn_p(key, c):
    k1, k2, k3, k4 = jax.random.split(key, 4)
    gamma = 1.0 + 0.1 * jax.random.normal(k1, (c,), jnp.float32)
    beta = 0.1 * jax.random.normal(k2, (c,), jnp.float32)
    mean = 0.1 * jax.random.normal(k3, (c,), jnp.float32)
    var = jnp.abs(1.0 + 0.1 * jax.random.normal(k4, (c,), jnp.float32))
    return (gamma, beta, mean, var)


def make_resnet18_params(key):
    keys = iter(jax.random.split(key, 128))
    params = {'conv1': _conv_w(next(keys), 64, 3, 7), 'bn1': _bn_p(next(keys), 64)}
    layers = []
    inplanes = 64
    for planes, stride, blocks in [(64, 1, 2), (128, 2, 2), (256, 2, 2), (512, 2, 2)]:
        blk_list = []
        for b in range(blocks):
            s = stride if b == 0 else 1
            p = {
                'conv1': _conv_w(next(keys), planes, inplanes, 3),
                'bn1': _bn_p(next(keys), planes),
                'conv2': _conv_w(next(keys), planes, planes, 3),
                'bn2': _bn_p(next(keys), planes),
            }
            if s != 1 or inplanes != planes:
                p['down_conv'] = _conv_w(next(keys), planes, inplanes, 1)
                p['down_bn'] = _bn_p(next(keys), planes)
            blk_list.append(p)
            inplanes = planes
        layers.append(blk_list)
    params['layers'] = layers
    return params


def _prepare_conv(w, bn):
    """Fold eval-mode BN scale into the weights, pad K/Cout to 128 multiples, bf16."""
    Cout, Cin, kh, kw = w.shape
    gamma, beta, mean, var = bn
    inv_std = 1.0 / jnp.sqrt(var + _BN_EPS)
    scale = gamma * inv_std
    shift = beta - mean * scale
    K = kh * kw * Cin
    w_mat = jnp.transpose(w, (2, 3, 1, 0)).reshape(K, Cout) * scale[None, :]
    Kpad = _round_up(K, 128)
    Npad = _round_up(Cout, 128)
    w_pad = jnp.pad(w_mat, ((0, Kpad - K), (0, Npad - Cout))).astype(jnp.bfloat16)
    shift_pad = jnp.pad(shift[None, :], ((0, 0), (0, Npad - Cout))).astype(jnp.float32)
    return {'w': w_pad, 'shift': shift_pad, 'kh': kh, 'kw': kw,
            'cin': Cin, 'cout': Cout, 'k': K, 'kpad': Kpad, 'npad': Npad}


def prepare_resnet18_params(raw):
    """One-time conversion of raw conv/BN params into matmul-ready (BN-folded) form."""
    prepared = {'conv1': _prepare_conv(raw['conv1'], raw['bn1']), 'layers': []}
    for blk_list in raw['layers']:
        blks = []
        for p in blk_list:
            b = {'c1': _prepare_conv(p['conv1'], p['bn1']),
                 'c2': _prepare_conv(p['conv2'], p['bn2'])}
            if 'down_conv' in p:
                b['down'] = _prepare_conv(p['down_conv'], p['down_bn'])
            blks.append(b)
        prepared['layers'].append(blks)
    return prepared


# ------------------------------ forward pass -------------------------------- #

def backbone_forward(x_nchw, params):
    """Backbone.preset_forward for resnet18 (insert_layer=None, return_layer=[1..5])."""
    x = jnp.transpose(x_nchw, (0, 2, 3, 1))            # NCHW -> NHWC
    result = OrderedDict()

    # layer0 = conv1(7x7,s2,p3) -> bn1 -> relu -> maxpool(3x3,s2,p1)
    x = conv_bn(x, params['conv1'], stride=2, pad=3, relu=True)
    x = maxpool_3x3_s2_p1(x)
    result['feats_1_map'] = jnp.transpose(x, (0, 3, 1, 2))

    for li, blk_list in enumerate(params['layers']):   # layer1..layer4
        first_stride = 1 if li == 0 else 2
        for bi, p in enumerate(blk_list):
            x = basic_block(x, p, first_stride if bi == 0 else 1)
        if li < 3:
            result['feats_{}_map'.format(li + 2)] = jnp.transpose(x, (0, 3, 1, 2))

    result['feats_last_map'] = jnp.transpose(x, (0, 3, 1, 2))
    result['feats_pooled'] = adaptive_avgpool_1x1_flatten(x)
    return result


def make_forward_fn(params):
    """Jit the whole backbone once; params captured by closure (metadata stays static)."""
    return jax.jit(functools.partial(backbone_forward, params=params))


if __name__ == "__main__":
    key = jax.random.PRNGKey(0)
    kp, kx = jax.random.split(key)
    raw_params = make_resnet18_params(kp)
    params = prepare_resnet18_params(raw_params)
    x = jax.random.normal(kx, (2, 3, 32, 32), jnp.float32)   # NCHW like PyTorch

    forward = make_forward_fn(params)
    out = forward(x)
    jax.block_until_ready(out)

    # light sanity checks on shapes (resnet18 strides: /4, /4, /8, /16, /32)
    assert out['feats_1_map'].shape == (2, 64, 8, 8)
    assert out['feats_2_map'].shape == (2, 64, 8, 8)
    assert out['feats_3_map'].shape == (2, 128, 4, 4)
    assert out['feats_4_map'].shape == (2, 256, 2, 2)
    assert out['feats_last_map'].shape == (2, 512, 1, 1)
    assert out['feats_pooled'].shape == (2, 512)
    print("KERNEL_OK")
</pallas_src>

<mosaic_0001>
module attributes {stable_mosaic.version = 11 : i64} {
  func.func @_matmul_bn_kernel(%arg0: i32, %arg1: i32, %arg2: i32, %arg3: memref<512x256xbf16, #tpu.memory_space<vmem>>, %arg4: memref<256x128xbf16, #tpu.memory_space<vmem>>, %arg5: memref<1x128xf32, #tpu.memory_space<vmem>>, %arg6: memref<512x128xf32, #tpu.memory_space<vmem>>, %arg7: memref<512x128xf32, #tpu.memory_space<vmem>>) attributes {dimension_semantics = [#tpu.dimension_semantics<parallel>, #tpu.dimension_semantics<parallel>, #tpu.dimension_semantics<arbitrary>], iteration_bounds = array<i64: 1, 1, 1>, scalar_prefetch = 0 : i64, scratch_operands = 1 : i64, tpu.core_type = #tpu.core_type<tc>, window_params = [{transform_indices = @transform_0, window_bounds = array<i64: 512, 256>}, {transform_indices = @transform_1, window_bounds = array<i64: 256, 128>}, {transform_indices = @transform_2, window_bounds = array<i64: 1, 128>}, {transform_indices = @transform_3, window_bounds = array<i64: 512, 128>}]} {
    %c0_i32 = arith.constant 0 : i32
    %0 = arith.cmpi eq, %arg2, %c0_i32 : i32
    %1 = arith.extui %0 : i1 to i32
    %c0_i32_0 = arith.constant 0 : i32
    %2 = arith.cmpi ne, %1, %c0_i32_0 : i32
    scf.if %2 {
      %cst_10 = arith.constant 0.000000e+00 : f32
      %12 = vector.broadcast %cst_10 : f32 to vector<512x128xf32>
      %c0_11 = arith.constant 0 : index
      %c0_12 = arith.constant 0 : index
      %13 = vector.load %arg7[%c0_11, %c0_12] : memref<512x128xf32, #tpu.memory_space<vmem>>, vector<512x128xf32>
      tpu.vector_store %arg7[%c0_11, %c0_12], %12 {strides = array<i32>} : memref<512x128xf32, #tpu.memory_space<vmem>>, vector<512x128xf32>,
    } else {
    }
    %c0 = arith.constant 0 : index
    %c0_1 = arith.constant 0 : index
    %3 = vector.load %arg7[%c0, %c0_1] : memref<512x128xf32, #tpu.memory_space<vmem>>, vector<512x128xf32>
    %c0_2 = arith.constant 0 : index
    %c0_3 = arith.constant 0 : index
    %4 = vector.load %arg3[%c0_2, %c0_3] : memref<512x256xbf16, #tpu.memory_space<vmem>>, vector<512x256xbf16>
    %c0_4 = arith.constant 0 : index
    %c0_5 = arith.constant 0 : index
    %5 = vector.load %arg4[%c0_4, %c0_5] : memref<256x128xbf16, #tpu.memory_space<vmem>>, vector<256x128xbf16>
    %cst = arith.constant dense<0.000000e+00> : vector<512x128xf32>
    %6 = tpu.matmul %4, %5, %cst {dimension_numbers = #tpu.dot_dimension_numbers<[1], [0], [0], [1], [0, 0, 1, 1], [], []>} : vector<512x256xbf16>, vector<256x128xbf16>, vector<512x128xf32> -> vector<512x128xf32>
    %7 = arith.addf %3, %6 : vector<512x128xf32>
    %c0_6 = arith.constant 0 : index
    %c0_7 = arith.constant 0 : index
    %8 = vector.load %arg7[%c0_6, %c0_7] : memref<512x128xf32, #tpu.memory_space<vmem>>, vector<512x128xf32>
    tpu.vector_store %arg7[%c0_6, %c0_7], %7 {strides = array<i32>} : memref<512x128xf32, #tpu.memory_space<vmem>>, vector<512x128xf32>,
    %c0_i32_8 = arith.constant 0 : i32
    %9 = arith.cmpi eq, %arg2, %c0_i32_8 : i32
    %10 = arith.extui %9 : i1 to i32
    %c0_i32_9 = arith.constant 0 : i32
    %11 = arith.cmpi ne, %10, %c0_i32_9 : i32
    scf.if %11 {
      %c0_10 = arith.constant 0 : index
      %c0_11 = arith.constant 0 : index
      %12 = vector.load %arg7[%c0_10, %c0_11] : memref<512x128xf32, #tpu.memory_space<vmem>>, vector<512x128xf32>
      %c0_12 = arith.constant 0 : index
      %c0_13 = arith.constant 0 : index
      %13 = vector.load %arg5[%c0_12, %c0_13] : memref<1x128xf32, #tpu.memory_space<vmem>>, vector<1x128xf32>
      %14 = vector.broadcast %13 : vector<1x128xf32> to vector<512x128xf32>
      %15 = arith.addf %12, %14 : vector<512x128xf32>
      %cst_14 = arith.constant 0.000000e+00 : f32
      %16 = vector.broadcast %cst_14 : f32 to vector<512x128xf32>
      %17 = arith.maximumf %15, %16 : vector<512x128xf32>
      %c0_15 = arith.constant 0 : index
      %c0_16 = arith.constant 0 : index
      %18 = vector.load %arg6[%c0_15, %c0_16] : memref<512x128xf32, #tpu.memory_space<vmem>>, vector<512x128xf32>
      tpu.vector_store %arg6[%c0_15, %c0_16], %17 {strides = array<i32>} : memref<512x128xf32, #tpu.memory_space<vmem>>, vector<512x128xf32>,
    } else {
    }
    return
  }
  func.func @transform_0(%arg0: i32, %arg1: i32, %arg2: i32) -> (i32, i32) {
    %c0_i32 = arith.constant 0 : i32
    return %arg0, %arg2 : i32, i32
  }
  func.func @transform_1(%arg0: i32, %arg1: i32, %arg2: i32) -> (i32, i32) {
    %c0_i32 = arith.constant 0 : i32
    return %arg2, %arg1 : i32, i32
  }
  func.func @transform_2(%arg0: i32, %arg1: i32, %arg2: i32) -> (i32, i32) {
    %c0_i32 = arith.constant 0 : i32
    %c0_i32_0 = arith.constant 0 : i32
    return %c0_i32, %arg1 : i32, i32
  }
  func.func @transform_3(%arg0: i32, %arg1: i32, %arg2: i32) -> (i32, i32) {
    %c0_i32 = arith.constant 0 : i32
    return %arg0, %arg1 : i32, i32
  }
}

module attributes {stable_mosaic.version = 11 : i64} {
  func.func @_max9_kernel(%arg0: i32, %arg1: memref<16x512xf32, #tpu.memory_space<vmem>>, %arg2: memref<16x512xf32, #tpu.memory_space<vmem>>, %arg3: memref<16x512xf32, #tpu.memory_space<vmem>>, %arg4: memref<16x512xf32, #tpu.memory_space<vmem>>, %arg5: memref<16x512xf32, #tpu.memory_space<vmem>>, %arg6: memref<16x512xf32, #tpu.memory_space<vmem>>, %arg7: memref<16x512xf32, #tpu.memory_space<vmem>>, %arg8: memref<16x512xf32, #tpu.memory_space<vmem>>, %arg9: memref<16x512xf32, #tpu.memory_space<vmem>>, %arg10: memref<16x512xf32, #tpu.memory_space<vmem>>) attributes {dimension_semantics = [#tpu.dimension_semantics<parallel>], iteration_bounds = array<i64: 1>, scalar_prefetch = 0 : i64, scratch_operands = 0 : i64, tpu.core_type = #tpu.core_type<tc>, window_params = [{transform_indices = @transform_0, window_bounds = array<i64: 16, 512>}, {transform_indices = @transform_1, window_bounds = array<i64: 16, 512>}, {transform_indices = @transform_2, window_bounds = array<i64: 16, 512>}, {transform_indices = @transform_3, window_bounds = array<i64: 16, 512>}, {transform_indices = @transform_4, window_bounds = array<i64: 16, 512>}, {transform_indices = @transform_5, window_bounds = array<i64: 16, 512>}, {transform_indices = @transform_6, window_bounds = array<i64: 16, 512>}, {transform_indices = @transform_7, window_bounds = array<i64: 16, 512>}, {transform_indices = @transform_8, window_bounds = array<i64: 16, 512>}, {transform_indices = @transform_9, window_bounds = array<i64: 16, 512>}]} {
    %c0 = arith.constant 0 : index
    %c0_0 = arith.constant 0 : index
    %0 = vector.load %arg1[%c0, %c0_0] : memref<16x512xf32, #tpu.memory_space<vmem>>, vector<16x512xf32>
    %c0_1 = arith.constant 0 : index
    %c0_2 = arith.constant 0 : index
    %1 = vector.load %arg2[%c0_1, %c0_2] : memref<16x512xf32, #tpu.memory_space<vmem>>, vector<16x512xf32>
    %2 = arith.maximumf %0, %1 : vector<16x512xf32>
    %c0_3 = arith.constant 0 : index
    %c0_4 = arith.constant 0 : index
    %3 = vector.load %arg3[%c0_3, %c0_4] : memref<16x512xf32, #tpu.memory_space<vmem>>, vector<16x512xf32>
    %c0_5 = arith.constant 0 : index
    %c0_6 = arith.constant 0 : index
    %4 = vector.load %arg4[%c0_5, %c0_6] : memref<16x512xf32, #tpu.memory_space<vmem>>, vector<16x512xf32>
    %5 = arith.maximumf %3, %4 : vector<16x512xf32>
    %c0_7 = arith.constant 0 : index
    %c0_8 = arith.constant 0 : index
    %6 = vector.load %arg5[%c0_7, %c0_8] : memref<16x512xf32, #tpu.memory_space<vmem>>, vector<16x512xf32>
    %c0_9 = arith.constant 0 : index
    %c0_10 = arith.constant 0 : index
    %7 = vector.load %arg6[%c0_9, %c0_10] : memref<16x512xf32, #tpu.memory_space<vmem>>, vector<16x512xf32>
    %8 = arith.maximumf %6, %7 : vector<16x512xf32>
    %c0_11 = arith.constant 0 : index
    %c0_12 = arith.constant 0 : index
    %9 = vector.load %arg7[%c0_11, %c0_12] : memref<16x512xf32, #tpu.memory_space<vmem>>, vector<16x512xf32>
    %c0_13 = arith.constant 0 : index
    %c0_14 = arith.constant 0 : index
    %10 = vector.load %arg8[%c0_13, %c0_14] : memref<16x512xf32, #tpu.memory_space<vmem>>, vector<16x512xf32>
    %11 = arith.maximumf %9, %10 : vector<16x512xf32>
    %12 = arith.maximumf %2, %5 : vector<16x512xf32>
    %13 = arith.maximumf %8, %11 : vector<16x512xf32>
    %14 = arith.maximumf %12, %13 : vector<16x512xf32>
    %c0_15 = arith.constant 0 : index
    %c0_16 = arith.constant 0 : index
    %15 = vector.load %arg9[%c0_15, %c0_16] : memref<16x512xf32, #tpu.memory_space<vmem>>, vector<16x512xf32>
    %16 = arith.maximumf %14, %15 : vector<16x512xf32>
    %c0_17 = arith.constant 0 : index
    %c0_18 = arith.constant 0 : index
    %17 = vector.load %arg10[%c0_17, %c0_18] : memref<16x512xf32, #tpu.memory_space<vmem>>, vector<16x512xf32>
    tpu.vector_store %arg10[%c0_17, %c0_18], %16 {strides = array<i32>} : memref<16x512xf32, #tpu.memory_space<vmem>>, vector<16x512xf32>,
    return
  }
  func.func @transform_0(%arg0: i32) -> (i32, i32) {
    %c0_i32 = arith.constant 0 : i32
    %c0_i32_0 = arith.constant 0 : i32
    return %arg0, %c0_i32 : i32, i32
  }
  func.func @transform_1(%arg0: i32) -> (i32, i32) {
    %c0_i32 = arith.constant 0 : i32
    %c0_i32_0 = arith.constant 0 : i32
    return %arg0, %c0_i32 : i32, i32
  }
  func.func @transform_2(%arg0: i32) -> (i32, i32) {
    %c0_i32 = arith.constant 0 : i32
    %c0_i32_0 = arith.constant 0 : i32
    return %arg0, %c0_i32 : i32, i32
  }
  func.func @transform_3(%arg0: i32) -> (i32, i32) {
    %c0_i32 = arith.constant 0 : i32
    %c0_i32_0 = arith.constant 0 : i32
    return %arg0, %c0_i32 : i32, i32
  }
  func.func @transform_4(%arg0: i32) -> (i32, i32) {
    %c0_i32 = arith.constant 0 : i32
    %c0_i32_0 = arith.constant 0 : i32
    return %arg0, %c0_i32 : i32, i32
  }
  func.func @transform_5(%arg0: i32) -> (i32, i32) {
    %c0_i32 = arith.constant 0 : i32
    %c0_i32_0 = arith.constant 0 : i32
    return %arg0, %c0_i32 : i32, i32
  }
  func.func @transform_6(%arg0: i32) -> (i32, i32) {
    %c0_i32 = arith.constant 0 : i32
    %c0_i32_0 = arith.constant 0 : i32
    return %arg0, %c0_i32 : i32, i32
  }
  func.func @transform_7(%arg0: i32) -> (i32, i32) {
    %c0_i32 = arith.constant 0 : i32
    %c0_i32_0 = arith.constant 0 : i32
    return %arg0, %c0_i32 : i32, i32
  }
  func.func @transform_8(%arg0: i32) -> (i32, i32) {
    %c0_i32 = arith.constant 0 : i32
    %c0_i32_0 = arith.constant 0 : i32
    return %arg0, %c0_i32 : i32, i32
  }
  func.func @transform_9(%arg0: i32) -> (i32, i32) {
    %c0_i32 = arith.constant 0 : i32
    %c0_i32_0 = arith.constant 0 : i32
    return %arg0, %c0_i32 : i32, i32
  }
}

module attributes {stable_mosaic.version = 11 : i64} {
  func.func @_matmul_bn_kernel(%arg0: i32, %arg1: i32, %arg2: i32, %arg3: memref<128x640xbf16, #tpu.memory_space<vmem>>, %arg4: memref<640x128xbf16, #tpu.memory_space<vmem>>, %arg5: memref<1x128xf32, #tpu.memory_space<vmem>>, %arg6: memref<128x128xf32, #tpu.memory_space<vmem>>, %arg7: memref<128x128xf32, #tpu.memory_space<vmem>>) attributes {dimension_semantics = [#tpu.dimension_semantics<parallel>, #tpu.dimension_semantics<parallel>, #tpu.dimension_semantics<arbitrary>], iteration_bounds = array<i64: 1, 1, 1>, scalar_prefetch = 0 : i64, scratch_operands = 1 : i64, tpu.core_type = #tpu.core_type<tc>, window_params = [{transform_indices = @transform_0, window_bounds = array<i64: 128, 640>}, {transform_indices = @transform_1, window_bounds = array<i64: 640, 128>}, {transform_indices = @transform_2, window_bounds = array<i64: 1, 128>}, {transform_indices = @transform_3, window_bounds = array<i64: 128, 128>}]} {
    %c0_i32 = arith.constant 0 : i32
    %0 = arith.cmpi eq, %arg2, %c0_i32 : i32
    %1 = arith.extui %0 : i1 to i32
    %c0_i32_0 = arith.constant 0 : i32
    %2 = arith.cmpi ne, %1, %c0_i32_0 : i32
    scf.if %2 {
      %cst_10 = arith.constant 0.000000e+00 : f32
      %12 = vector.broadcast %cst_10 : f32 to vector<128x128xf32>
      %c0_11 = arith.constant 0 : index
      %c0_12 = arith.constant 0 : index
      %13 = vector.load %arg7[%c0_11, %c0_12] : memref<128x128xf32, #tpu.memory_space<vmem>>, vector<128x128xf32>
      tpu.vector_store %arg7[%c0_11, %c0_12], %12 {strides = array<i32>} : memref<128x128xf32, #tpu.memory_space<vmem>>, vector<128x128xf32>,
    } else {
    }
    %c0 = arith.constant 0 : index
    %c0_1 = arith.constant 0 : index
    %3 = vector.load %arg7[%c0, %c0_1] : memref<128x128xf32, #tpu.memory_space<vmem>>, vector<128x128xf32>
    %c0_2 = arith.constant 0 : index
    %c0_3 = arith.constant 0 : index
    %4 = vector.load %arg3[%c0_2, %c0_3] : memref<128x640xbf16, #tpu.memory_space<vmem>>, vector<128x640xbf16>
    %c0_4 = arith.constant 0 : index
    %c0_5 = arith.constant 0 : index
    %5 = vector.load %arg4[%c0_4, %c0_5] : memref<640x128xbf16, #tpu.memory_space<vmem>>, vector<640x128xbf16>
    %cst = arith.constant dense<0.000000e+00> : vector<128x128xf32>
    %6 = tpu.matmul %4, %5, %cst {dimension_numbers = #tpu.dot_dimension_numbers<[1], [0], [0], [1], [0, 0, 1, 1], [], []>} : vector<128x640xbf16>, vector<640x128xbf16>, vector<128x128xf32> -> vector<128x128xf32>
    %7 = arith.addf %3, %6 : vector<128x128xf32>
    %c0_6 = arith.constant 0 : index
    %c0_7 = arith.constant 0 : index
    %8 = vector.load %arg7[%c0_6, %c0_7] : memref<128x128xf32, #tpu.memory_space<vmem>>, vector<128x128xf32>
    tpu.vector_store %arg7[%c0_6, %c0_7], %7 {strides = array<i32>} : memref<128x128xf32, #tpu.memory_space<vmem>>, vector<128x128xf32>,
    %c0_i32_8 = arith.constant 0 : i32
    %9 = arith.cmpi eq, %arg2, %c0_i32_8 : i32
    %10 = arith.extui %9 : i1 to i32
    %c0_i32_9 = arith.constant 0 : i32
    %11 = arith.cmpi ne, %10, %c0_i32_9 : i32
    scf.if %11 {
      %c0_10 = arith.constant 0 : index
      %c0_11 = arith.constant 0 : index
      %12 = vector.load %arg7[%c0_10, %c0_11] : memref<128x128xf32, #tpu.memory_space<vmem>>, vector<128x128xf32>
      %c0_12 = arith.constant 0 : index
      %c0_13 = arith.constant 0 : index
      %13 = vector.load %arg5[%c0_12, %c0_13] : memref<1x128xf32, #tpu.memory_space<vmem>>, vector<1x128xf32>
      %14 = vector.broadcast %13 : vector<1x128xf32> to vector<128x128xf32>
      %15 = arith.addf %12, %14 : vector<128x128xf32>
      %cst_14 = arith.constant 0.000000e+00 : f32
      %16 = vector.broadcast %cst_14 : f32 to vector<128x128xf32>
      %17 = arith.maximumf %15, %16 : vector<128x128xf32>
      %c0_15 = arith.constant 0 : index
      %c0_16 = arith.constant 0 : index
      %18 = vector.load %arg6[%c0_15, %c0_16] : memref<128x128xf32, #tpu.memory_space<vmem>>, vector<128x128xf32>
      tpu.vector_store %arg6[%c0_15, %c0_16], %17 {strides = array<i32>} : memref<128x128xf32, #tpu.memory_space<vmem>>, vector<128x128xf32>,
    } else {
    }
    return
  }
  func.func @transform_0(%arg0: i32, %arg1: i32, %arg2: i32) -> (i32, i32) {
    %c0_i32 = arith.constant 0 : i32
    return %arg0, %arg2 : i32, i32
  }
  func.func @transform_1(%arg0: i32, %arg1: i32, %arg2: i32) -> (i32, i32) {
    %c0_i32 = arith.constant 0 : i32
    return %arg2, %arg1 : i32, i32
  }
  func.func @transform_2(%arg0: i32, %arg1: i32, %arg2: i32) -> (i32, i32) {
    %c0_i32 = arith.constant 0 : i32
    %c0_i32_0 = arith.constant 0 : i32
    return %c0_i32, %arg1 : i32, i32
  }
  func.func @transform_3(%arg0: i32, %arg1: i32, %arg2: i32) -> (i32, i32) {
    %c0_i32 = arith.constant 0 : i32
    return %arg0, %arg1 : i32, i32
  }
}

module attributes {stable_mosaic.version = 11 : i64} {
  func.func @_matmul_bn_add_relu_kernel(%arg0: i32, %arg1: i32, %arg2: i32, %arg3: memref<128x640xbf16, #tpu.memory_space<vmem>>, %arg4: memref<640x128xbf16, #tpu.memory_space<vmem>>, %arg5: memref<1x128xf32, #tpu.memory_space<vmem>>, %arg6: memref<128x128xf32, #tpu.memory_space<vmem>>, %arg7: memref<128x128xf32, #tpu.memory_space<vmem>>, %arg8: memref<128x128xf32, #tpu.memory_space<vmem>>) attributes {dimension_semantics = [#tpu.dimension_semantics<parallel>, #tpu.dimension_semantics<parallel>, #tpu.dimension_semantics<arbitrary>], iteration_bounds = array<i64: 1, 1, 1>, scalar_prefetch = 0 : i64, scratch_operands = 1 : i64, tpu.core_type = #tpu.core_type<tc>, window_params = [{transform_indices = @transform_0, window_bounds = array<i64: 128, 640>}, {transform_indices = @transform_1, window_bounds = array<i64: 640, 128>}, {transform_indices = @transform_2, window_bounds = array<i64: 1, 128>}, {transform_indices = @transform_3, window_bounds = array<i64: 128, 128>}, {transform_indices = @transform_4, window_bounds = array<i64: 128, 128>}]} {
    %c0_i32 = arith.constant 0 : i32
    %0 = arith.cmpi eq, %arg2, %c0_i32 : i32
    %1 = arith.extui %0 : i1 to i32
    %c0_i32_0 = arith.constant 0 : i32
    %2 = arith.cmpi ne, %1, %c0_i32_0 : i32
    scf.if %2 {
      %cst_10 = arith.constant 0.000000e+00 : f32
      %12 = vector.broadcast %cst_10 : f32 to vector<128x128xf32>
      %c0_11 = arith.constant 0 : index
      %c0_12 = arith.constant 0 : index
      %13 = vector.load %arg8[%c0_11, %c0_12] : memref<128x128xf32, #tpu.memory_space<vmem>>, vector<128x128xf32>
      tpu.vector_store %arg8[%c0_11, %c0_12], %12 {strides = array<i32>} : memref<128x128xf32, #tpu.memory_space<vmem>>, vector<128x128xf32>,
    } else {
    }
    %c0 = arith.constant 0 : index
    %c0_1 = arith.constant 0 : index
    %3 = vector.load %arg8[%c0, %c0_1] : memref<128x128xf32, #tpu.memory_space<vmem>>, vector<128x128xf32>
    %c0_2 = arith.constant 0 : index
    %c0_3 = arith.constant 0 : index
    %4 = vector.load %arg3[%c0_2, %c0_3] : memref<128x640xbf16, #tpu.memory_space<vmem>>, vector<128x640xbf16>
    %c0_4 = arith.constant 0 : index
    %c0_5 = arith.constant 0 : index
    %5 = vector.load %arg4[%c0_4, %c0_5] : memref<640x128xbf16, #tpu.memory_space<vmem>>, vector<640x128xbf16>
    %cst = arith.constant dense<0.000000e+00> : vector<128x128xf32>
    %6 = tpu.matmul %4, %5, %cst {dimension_numbers = #tpu.dot_dimension_numbers<[1], [0], [0], [1], [0, 0, 1, 1], [], []>} : vector<128x640xbf16>, vector<640x128xbf16>, vector<128x128xf32> -> vector<128x128xf32>
    %7 = arith.addf %3, %6 : vector<128x128xf32>
    %c0_6 = arith.constant 0 : index
    %c0_7 = arith.constant 0 : index
    %8 = vector.load %arg8[%c0_6, %c0_7] : memref<128x128xf32, #tpu.memory_space<vmem>>, vector<128x128xf32>
    tpu.vector_store %arg8[%c0_6, %c0_7], %7 {strides = array<i32>} : memref<128x128xf32, #tpu.memory_space<vmem>>, vector<128x128xf32>,
    %c0_i32_8 = arith.constant 0 : i32
    %9 = arith.cmpi eq, %arg2, %c0_i32_8 : i32
    %10 = arith.extui %9 : i1 to i32
    %c0_i32_9 = arith.constant 0 : i32
    %11 = arith.cmpi ne, %10, %c0_i32_9 : i32
    scf.if %11 {
      %c0_10 = arith.constant 0 : index
      %c0_11 = arith.constant 0 : index
      %12 = vector.load %arg8[%c0_10, %c0_11] : memref<128x128xf32, #tpu.memory_space<vmem>>, vector<128x128xf32>
      %c0_12 = arith.constant 0 : index
      %c0_13 = arith.constant 0 : index
      %13 = vector.load %arg5[%c0_12, %c0_13] : memref<1x128xf32, #tpu.memory_space<vmem>>, vector<1x128xf32>
      %14 = vector.broadcast %13 : vector<1x128xf32> to vector<128x128xf32>
      %15 = arith.addf %12, %14 : vector<128x128xf32>
      %c0_14 = arith.constant 0 : index
      %c0_15 = arith.constant 0 : index
      %16 = vector.load %arg6[%c0_14, %c0_15] : memref<128x128xf32, #tpu.memory_space<vmem>>, vector<128x128xf32>
      %17 = arith.addf %15, %16 : vector<128x128xf32>
      %cst_16 = arith.constant 0.000000e+00 : f32
      %18 = vector.broadcast %cst_16 : f32 to vector<128x128xf32>
      %19 = arith.maximumf %17, %18 : vector<128x128xf32>
      %c0_17 = arith.constant 0 : index
      %c0_18 = arith.constant 0 : index
      %20 = vector.load %arg7[%c0_17, %c0_18] : memref<128x128xf32, #tpu.memory_space<vmem>>, vector<128x128xf32>
      tpu.vector_store %arg7[%c0_17, %c0_18], %19 {strides = array<i32>} : memref<128x128xf32, #tpu.memory_space<vmem>>, vector<128x128xf32>,
    } else {
    }
    return
  }
  func.func @transform_0(%arg0: i32, %arg1: i32, %arg2: i32) -> (i32, i32) {
    %c0_i32 = arith.constant 0 : i32
    return %arg0, %arg2 : i32, i32
  }
  func.func @transform_1(%arg0: i32, %arg1: i32, %arg2: i32) -> (i32, i32) {
    %c0_i32 = arith.constant 0 : i32
    return %arg2, %arg1 : i32, i32
  }
  func.func @transform_2(%arg0: i32, %arg1: i32, %arg2: i32) -> (i32, i32) {
    %c0_i32 = arith.constant 0 : i32
    %c0_i32_0 = arith.constant 0 : i32
    return %c0_i32, %arg1 : i32, i32
  }
  func.func @transform_3(%arg0: i32, %arg1: i32, %arg2: i32) -> (i32, i32) {
    %c0_i32 = arith.constant 0 : i32
    return %arg0, %arg1 : i32, i32
  }
  func.func @transform_4(%arg0: i32, %arg1: i32, %arg2: i32) -> (i32, i32) {
    %c0_i32 = arith.constant 0 : i32
    return %arg0, %arg1 : i32, i32
  }
}

module attributes {stable_mosaic.version = 11 : i64} {
  func.func @_matmul_bn_kernel(%arg0: i32, %arg1: i32, %arg2: i32, %arg3: memref<32x640xbf16, #tpu.memory_space<vmem>>, %arg4: memref<640x128xbf16, #tpu.memory_space<vmem>>, %arg5: memref<1x128xf32, #tpu.memory_space<vmem>>, %arg6: memref<32x128xf32, #tpu.memory_space<vmem>>, %arg7: memref<32x128xf32, #tpu.memory_space<vmem>>) attributes {dimension_semantics = [#tpu.dimension_semantics<parallel>, #tpu.dimension_semantics<parallel>, #tpu.dimension_semantics<arbitrary>], iteration_bounds = array<i64: 1, 1, 1>, scalar_prefetch = 0 : i64, scratch_operands = 1 : i64, tpu.core_type = #tpu.core_type<tc>, window_params = [{transform_indices = @transform_0, window_bounds = array<i64: 32, 640>}, {transform_indices = @transform_1, window_bounds = array<i64: 640, 128>}, {transform_indices = @transform_2, window_bounds = array<i64: 1, 128>}, {transform_indices = @transform_3, window_bounds = array<i64: 32, 128>}]} {
    %c0_i32 = arith.constant 0 : i32
    %0 = arith.cmpi eq, %arg2, %c0_i32 : i32
    %1 = arith.extui %0 : i1 to i32
    %c0_i32_0 = arith.constant 0 : i32
    %2 = arith.cmpi ne, %1, %c0_i32_0 : i32
    scf.if %2 {
      %cst_10 = arith.constant 0.000000e+00 : f32
      %12 = vector.broadcast %cst_10 : f32 to vector<32x128xf32>
      %c0_11 = arith.constant 0 : index
      %c0_12 = arith.constant 0 : index
      %13 = vector.load %arg7[%c0_11, %c0_12] : memref<32x128xf32, #tpu.memory_space<vmem>>, vector<32x128xf32>
      tpu.vector_store %arg7[%c0_11, %c0_12], %12 {strides = array<i32>} : memref<32x128xf32, #tpu.memory_space<vmem>>, vector<32x128xf32>,
    } else {
    }
    %c0 = arith.constant 0 : index
    %c0_1 = arith.constant 0 : index
    %3 = vector.load %arg7[%c0, %c0_1] : memref<32x128xf32, #tpu.memory_space<vmem>>, vector<32x128xf32>
    %c0_2 = arith.constant 0 : index
    %c0_3 = arith.constant 0 : index
    %4 = vector.load %arg3[%c0_2, %c0_3] : memref<32x640xbf16, #tpu.memory_space<vmem>>, vector<32x640xbf16>
    %c0_4 = arith.constant 0 : index
    %c0_5 = arith.constant 0 : index
    %5 = vector.load %arg4[%c0_4, %c0_5] : memref<640x128xbf16, #tpu.memory_space<vmem>>, vector<640x128xbf16>
    %cst = arith.constant dense<0.000000e+00> : vector<32x128xf32>
    %6 = tpu.matmul %4, %5, %cst {dimension_numbers = #tpu.dot_dimension_numbers<[1], [0], [0], [1], [0, 0, 1, 1], [], []>} : vector<32x640xbf16>, vector<640x128xbf16>, vector<32x128xf32> -> vector<32x128xf32>
    %7 = arith.addf %3, %6 : vector<32x128xf32>
    %c0_6 = arith.constant 0 : index
    %c0_7 = arith.constant 0 : index
    %8 = vector.load %arg7[%c0_6, %c0_7] : memref<32x128xf32, #tpu.memory_space<vmem>>, vector<32x128xf32>
    tpu.vector_store %arg7[%c0_6, %c0_7], %7 {strides = array<i32>} : memref<32x128xf32, #tpu.memory_space<vmem>>, vector<32x128xf32>,
    %c0_i32_8 = arith.constant 0 : i32
    %9 = arith.cmpi eq, %arg2, %c0_i32_8 : i32
    %10 = arith.extui %9 : i1 to i32
    %c0_i32_9 = arith.constant 0 : i32
    %11 = arith.cmpi ne, %10, %c0_i32_9 : i32
    scf.if %11 {
      %c0_10 = arith.constant 0 : index
      %c0_11 = arith.constant 0 : index
      %12 = vector.load %arg7[%c0_10, %c0_11] : memref<32x128xf32, #tpu.memory_space<vmem>>, vector<32x128xf32>
      %c0_12 = arith.constant 0 : index
      %c0_13 = arith.constant 0 : index
      %13 = vector.load %arg5[%c0_12, %c0_13] : memref<1x128xf32, #tpu.memory_space<vmem>>, vector<1x128xf32>
      %14 = vector.broadcast %13 : vector<1x128xf32> to vector<32x128xf32>
      %15 = arith.addf %12, %14 : vector<32x128xf32>
      %cst_14 = arith.constant 0.000000e+00 : f32
      %16 = vector.broadcast %cst_14 : f32 to vector<32x128xf32>
      %17 = arith.maximumf %15, %16 : vector<32x128xf32>
      %c0_15 = arith.constant 0 : index
      %c0_16 = arith.constant 0 : index
      %18 = vector.load %arg6[%c0_15, %c0_16] : memref<32x128xf32, #tpu.memory_space<vmem>>, vector<32x128xf32>
      tpu.vector_store %arg6[%c0_15, %c0_16], %17 {strides = array<i32>} : memref<32x128xf32, #tpu.memory_space<vmem>>, vector<32x128xf32>,
    } else {
    }
    return
  }
  func.func @transform_0(%arg0: i32, %arg1: i32, %arg2: i32) -> (i32, i32) {
    %c0_i32 = arith.constant 0 : i32
    return %arg0, %arg2 : i32, i32
  }
  func.func @transform_1(%arg0: i32, %arg1: i32, %arg2: i32) -> (i32, i32) {
    %c0_i32 = arith.constant 0 : i32
    return %arg2, %arg1 : i32, i32
  }
  func.func @transform_2(%arg0: i32, %arg1: i32, %arg2: i32) -> (i32, i32) {
    %c0_i32 = arith.constant 0 : i32
    %c0_i32_0 = arith.constant 0 : i32
    return %c0_i32, %arg1 : i32, i32
  }
  func.func @transform_3(%arg0: i32, %arg1: i32, %arg2: i32) -> (i32, i32) {
    %c0_i32 = arith.constant 0 : i32
    return %arg0, %arg1 : i32, i32
  }
}

module attributes {stable_mosaic.version = 11 : i64} {
  func.func @_matmul_bn_kernel(%arg0: i32, %arg1: i32, %arg2: i32, %arg3: memref<32x128xbf16, #tpu.memory_space<vmem>>, %arg4: memref<128x128xbf16, #tpu.memory_space<vmem>>, %arg5: memref<1x128xf32, #tpu.memory_space<vmem>>, %arg6: memref<32x128xf32, #tpu.memory_space<vmem>>, %arg7: memref<32x128xf32, #tpu.memory_space<vmem>>) attributes {dimension_semantics = [#tpu.dimension_semantics<parallel>, #tpu.dimension_semantics<parallel>, #tpu.dimension_semantics<arbitrary>], iteration_bounds = array<i64: 1, 1, 1>, scalar_prefetch = 0 : i64, scratch_operands = 1 : i64, tpu.core_type = #tpu.core_type<tc>, window_params = [{transform_indices = @transform_0, window_bounds = array<i64: 32, 128>}, {transform_indices = @transform_1, window_bounds = array<i64: 128, 128>}, {transform_indices = @transform_2, window_bounds = array<i64: 1, 128>}, {transform_indices = @transform_3, window_bounds = array<i64: 32, 128>}]} {
    %c0_i32 = arith.constant 0 : i32
    %0 = arith.cmpi eq, %arg2, %c0_i32 : i32
    %1 = arith.extui %0 : i1 to i32
    %c0_i32_0 = arith.constant 0 : i32
    %2 = arith.cmpi ne, %1, %c0_i32_0 : i32
    scf.if %2 {
      %cst_10 = arith.constant 0.000000e+00 : f32
      %12 = vector.broadcast %cst_10 : f32 to vector<32x128xf32>
      %c0_11 = arith.constant 0 : index
      %c0_12 = arith.constant 0 : index
      %13 = vector.load %arg7[%c0_11, %c0_12] : memref<32x128xf32, #tpu.memory_space<vmem>>, vector<32x128xf32>
      tpu.vector_store %arg7[%c0_11, %c0_12], %12 {strides = array<i32>} : memref<32x128xf32, #tpu.memory_space<vmem>>, vector<32x128xf32>,
    } else {
    }
    %c0 = arith.constant 0 : index
    %c0_1 = arith.constant 0 : index
    %3 = vector.load %arg7[%c0, %c0_1] : memref<32x128xf32, #tpu.memory_space<vmem>>, vector<32x128xf32>
    %c0_2 = arith.constant 0 : index
    %c0_3 = arith.constant 0 : index
    %4 = vector.load %arg3[%c0_2, %c0_3] : memref<32x128xbf16, #tpu.memory_space<vmem>>, vector<32x128xbf16>
    %c0_4 = arith.constant 0 : index
    %c0_5 = arith.constant 0 : index
    %5 = vector.load %arg4[%c0_4, %c0_5] : memref<128x128xbf16, #tpu.memory_space<vmem>>, vector<128x128xbf16>
    %cst = arith.constant dense<0.000000e+00> : vector<32x128xf32>
    %6 = tpu.matmul %4, %5, %cst {dimension_numbers = #tpu.dot_dimension_numbers<[1], [0], [0], [1], [0, 0, 1, 1], [], []>} : vector<32x128xbf16>, vector<128x128xbf16>, vector<32x128xf32> -> vector<32x128xf32>
    %7 = arith.addf %3, %6 : vector<32x128xf32>
    %c0_6 = arith.constant 0 : index
    %c0_7 = arith.constant 0 : index
    %8 = vector.load %arg7[%c0_6, %c0_7] : memref<32x128xf32, #tpu.memory_space<vmem>>, vector<32x128xf32>
    tpu.vector_store %arg7[%c0_6, %c0_7], %7 {strides = array<i32>} : memref<32x128xf32, #tpu.memory_space<vmem>>, vector<32x128xf32>,
    %c0_i32_8 = arith.constant 0 : i32
    %9 = arith.cmpi eq, %arg2, %c0_i32_8 : i32
    %10 = arith.extui %9 : i1 to i32
    %c0_i32_9 = arith.constant 0 : i32
    %11 = arith.cmpi ne, %10, %c0_i32_9 : i32
    scf.if %11 {
      %c0_10 = arith.constant 0 : index
      %c0_11 = arith.constant 0 : index
      %12 = vector.load %arg7[%c0_10, %c0_11] : memref<32x128xf32, #tpu.memory_space<vmem>>, vector<32x128xf32>
      %c0_12 = arith.constant 0 : index
      %c0_13 = arith.constant 0 : index
      %13 = vector.load %arg5[%c0_12, %c0_13] : memref<1x128xf32, #tpu.memory_space<vmem>>, vector<1x128xf32>
      %14 = vector.broadcast %13 : vector<1x128xf32> to vector<32x128xf32>
      %15 = arith.addf %12, %14 : vector<32x128xf32>
      %c0_14 = arith.constant 0 : index
      %c0_15 = arith.constant 0 : index
      %16 = vector.load %arg6[%c0_14, %c0_15] : memref<32x128xf32, #tpu.memory_space<vmem>>, vector<32x128xf32>
      tpu.vector_store %arg6[%c0_14, %c0_15], %15 {strides = array<i32>} : memref<32x128xf32, #tpu.memory_space<vmem>>, vector<32x128xf32>,
    } else {
    }
    return
  }
  func.func @transform_0(%arg0: i32, %arg1: i32, %arg2: i32) -> (i32, i32) {
    %c0_i32 = arith.constant 0 : i32
    return %arg0, %arg2 : i32, i32
  }
  func.func @transform_1(%arg0: i32, %arg1: i32, %arg2: i32) -> (i32, i32) {
    %c0_i32 = arith.constant 0 : i32
    return %arg2, %arg1 : i32, i32
  }
  func.func @transform_2(%arg0: i32, %arg1: i32, %arg2: i32) -> (i32, i32) {
    %c0_i32 = arith.constant 0 : i32
    %c0_i32_0 = arith.constant 0 : i32
    return %c0_i32, %arg1 : i32, i32
  }
  func.func @transform_3(%arg0: i32, %arg1: i32, %arg2: i32) -> (i32, i32) {
    %c0_i32 = arith.constant 0 : i32
    return %arg0, %arg1 : i32, i32
  }
}

module attributes {stable_mosaic.version = 11 : i64} {
  func.func @_matmul_bn_add_relu_kernel(%arg0: i32, %arg1: i32, %arg2: i32, %arg3: memref<32x384xbf16, #tpu.memory_space<vmem>>, %arg4: memref<384x128xbf16, #tpu.memory_space<vmem>>, %arg5: memref<1x128xf32, #tpu.memory_space<vmem>>, %arg6: memref<32x128xf32, #tpu.memory_space<vmem>>, %arg7: memref<32x128xf32, #tpu.memory_space<vmem>>, %arg8: memref<32x128xf32, #tpu.memory_space<vmem>>) attributes {dimension_semantics = [#tpu.dimension_semantics<parallel>, #tpu.dimension_semantics<parallel>, #tpu.dimension_semantics<arbitrary>], iteration_bounds = array<i64: 1, 1, 3>, scalar_prefetch = 0 : i64, scratch_operands = 1 : i64, tpu.core_type = #tpu.core_type<tc>, window_params = [{transform_indices = @transform_0, window_bounds = array<i64: 32, 384>}, {transform_indices = @transform_1, window_bounds = array<i64: 384, 128>}, {transform_indices = @transform_2, window_bounds = array<i64: 1, 128>}, {transform_indices = @transform_3, window_bounds = array<i64: 32, 128>}, {transform_indices = @transform_4, window_bounds = array<i64: 32, 128>}]} {
    %c0_i32 = arith.constant 0 : i32
    %0 = arith.cmpi eq, %arg2, %c0_i32 : i32
    %1 = arith.extui %0 : i1 to i32
    %c0_i32_0 = arith.constant 0 : i32
    %2 = arith.cmpi ne, %1, %c0_i32_0 : i32
    scf.if %2 {
      %cst_9 = arith.constant 0.000000e+00 : f32
      %12 = vector.broadcast %cst_9 : f32 to vector<32x128xf32>
      %c0_10 = arith.constant 0 : index
      %c0_11 = arith.constant 0 : index
      %13 = vector.load %arg8[%c0_10, %c0_11] : memref<32x128xf32, #tpu.memory_space<vmem>>, vector<32x128xf32>
      tpu.vector_store %arg8[%c0_10, %c0_11], %12 {strides = array<i32>} : memref<32x128xf32, #tpu.memory_space<vmem>>, vector<32x128xf32>,
    } else {
    }
    %c0 = arith.constant 0 : index
    %c0_1 = arith.constant 0 : index
    %3 = vector.load %arg8[%c0, %c0_1] : memref<32x128xf32, #tpu.memory_space<vmem>>, vector<32x128xf32>
    %c0_2 = arith.constant 0 : index
    %c0_3 = arith.constant 0 : index
    %4 = vector.load %arg3[%c0_2, %c0_3] : memref<32x384xbf16, #tpu.memory_space<vmem>>, vector<32x384xbf16>
    %c0_4 = arith.constant 0 : index
    %c0_5 = arith.constant 0 : index
    %5 = vector.load %arg4[%c0_4, %c0_5] : memref<384x128xbf16, #tpu.memory_space<vmem>>, vector<384x128xbf16>
    %cst = arith.constant dense<0.000000e+00> : vector<32x128xf32>
    %6 = tpu.matmul %4, %5, %cst {dimension_numbers = #tpu.dot_dimension_numbers<[1], [0], [0], [1], [0, 0, 1, 1], [], []>} : vector<32x384xbf16>, vector<384x128xbf16>, vector<32x128xf32> -> vector<32x128xf32>
    %7 = arith.addf %3, %6 : vector<32x128xf32>
    %c0_6 = arith.constant 0 : index
    %c0_7 = arith.constant 0 : index
    %8 = vector.load %arg8[%c0_6, %c0_7] : memref<32x128xf32, #tpu.memory_space<vmem>>, vector<32x128xf32>
    tpu.vector_store %arg8[%c0_6, %c0_7], %7 {strides = array<i32>} : memref<32x128xf32, #tpu.memory_space<vmem>>, vector<32x128xf32>,
    %c2_i32 = arith.constant 2 : i32
    %9 = arith.cmpi eq, %arg2, %c2_i32 : i32
    %10 = arith.extui %9 : i1 to i32
    %c0_i32_8 = arith.constant 0 : i32
    %11 = arith.cmpi ne, %10, %c0_i32_8 : i32
    scf.if %11 {
      %c0_9 = arith.constant 0 : index
      %c0_10 = arith.constant 0 : index
      %12 = vector.load %arg8[%c0_9, %c0_10] : memref<32x128xf32, #tpu.memory_space<vmem>>, vector<32x128xf32>
      %c0_11 = arith.constant 0 : index
      %c0_12 = arith.constant 0 : index
      %13 = vector.load %arg5[%c0_11, %c0_12] : memref<1x128xf32, #tpu.memory_space<vmem>>, vector<1x128xf32>
      %14 = vector.broadcast %13 : vector<1x128xf32> to vector<32x128xf32>
      %15 = arith.addf %12, %14 : vector<32x128xf32>
      %c0_13 = arith.constant 0 : index
      %c0_14 = arith.constant 0 : index
      %16 = vector.load %arg6[%c0_13, %c0_14] : memref<32x128xf32, #tpu.memory_space<vmem>>, vector<32x128xf32>
      %17 = arith.addf %15, %16 : vector<32x128xf32>
      %cst_15 = arith.constant 0.000000e+00 : f32
      %18 = vector.broadcast %cst_15 : f32 to vector<32x128xf32>
      %19 = arith.maximumf %17, %18 : vector<32x128xf32>
      %c0_16 = arith.constant 0 : index
      %c0_17 = arith.constant 0 : index
      %20 = vector.load %arg7[%c0_16, %c0_17] : memref<32x128xf32, #tpu.memory_space<vmem>>, vector<32x128xf32>
      tpu.vector_store %arg7[%c0_16, %c0_17], %19 {strides = array<i32>} : memref<32x128xf32, #tpu.memory_space<vmem>>, vector<32x128xf32>,
    } else {
    }
    return
  }
  func.func @transform_0(%arg0: i32, %arg1: i32, %arg2: i32) -> (i32, i32) {
    %c0_i32 = arith.constant 0 : i32
    return %arg0, %arg2 : i32, i32
  }
  func.func @transform_1(%arg0: i32, %arg1: i32, %arg2: i32) -> (i32, i32) {
    %c0_i32 = arith.constant 0 : i32
    return %arg2, %arg1 : i32, i32
  }
  func.func @transform_2(%arg0: i32, %arg1: i32, %arg2: i32) -> (i32, i32) {
    %c0_i32 = arith.constant 0 : i32
    %c0_i32_0 = arith.constant 0 : i32
    return %c0_i32, %arg1 : i32, i32
  }
  func.func @transform_3(%arg0: i32, %arg1: i32, %arg2: i32) -> (i32, i32) {
    %c0_i32 = arith.constant 0 : i32
    return %arg0, %arg1 : i32, i32
  }
  func.func @transform_4(%arg0: i32, %arg1: i32, %arg2: i32) -> (i32, i32) {
    %c0_i32 = arith.constant 0 : i32
    return %arg0, %arg1 : i32, i32
  }
}

module attributes {stable_mosaic.version = 11 : i64} {
  func.func @_matmul_bn_kernel(%arg0: i32, %arg1: i32, %arg2: i32, %arg3: memref<32x384xbf16, #tpu.memory_space<vmem>>, %arg4: memref<384x128xbf16, #tpu.memory_space<vmem>>, %arg5: memref<1x128xf32, #tpu.memory_space<vmem>>, %arg6: memref<32x128xf32, #tpu.memory_space<vmem>>, %arg7: memref<32x128xf32, #tpu.memory_space<vmem>>) attributes {dimension_semantics = [#tpu.dimension_semantics<parallel>, #tpu.dimension_semantics<parallel>, #tpu.dimension_semantics<arbitrary>], iteration_bounds = array<i64: 1, 1, 3>, scalar_prefetch = 0 : i64, scratch_operands = 1 : i64, tpu.core_type = #tpu.core_type<tc>, window_params = [{transform_indices = @transform_0, window_bounds = array<i64: 32, 384>}, {transform_indices = @transform_1, window_bounds = array<i64: 384, 128>}, {transform_indices = @transform_2, window_bounds = array<i64: 1, 128>}, {transform_indices = @transform_3, window_bounds = array<i64: 32, 128>}]} {
    %c0_i32 = arith.constant 0 : i32
    %0 = arith.cmpi eq, %arg2, %c0_i32 : i32
    %1 = arith.extui %0 : i1 to i32
    %c0_i32_0 = arith.constant 0 : i32
    %2 = arith.cmpi ne, %1, %c0_i32_0 : i32
    scf.if %2 {
      %cst_9 = arith.constant 0.000000e+00 : f32
      %12 = vector.broadcast %cst_9 : f32 to vector<32x128xf32>
      %c0_10 = arith.constant 0 : index
      %c0_11 = arith.constant 0 : index
      %13 = vector.load %arg7[%c0_10, %c0_11] : memref<32x128xf32, #tpu.memory_space<vmem>>, vector<32x128xf32>
      tpu.vector_store %arg7[%c0_10, %c0_11], %12 {strides = array<i32>} : memref<32x128xf32, #tpu.memory_space<vmem>>, vector<32x128xf32>,
    } else {
    }
    %c0 = arith.constant 0 : index
    %c0_1 = arith.constant 0 : index
    %3 = vector.load %arg7[%c0, %c0_1] : memref<32x128xf32, #tpu.memory_space<vmem>>, vector<32x128xf32>
    %c0_2 = arith.constant 0 : index
    %c0_3 = arith.constant 0 : index
    %4 = vector.load %arg3[%c0_2, %c0_3] : memref<32x384xbf16, #tpu.memory_space<vmem>>, vector<32x384xbf16>
    %c0_4 = arith.constant 0 : index
    %c0_5 = arith.constant 0 : index
    %5 = vector.load %arg4[%c0_4, %c0_5] : memref<384x128xbf16, #tpu.memory_space<vmem>>, vector<384x128xbf16>
    %cst = arith.constant dense<0.000000e+00> : vector<32x128xf32>
    %6 = tpu.matmul %4, %5, %cst {dimension_numbers = #tpu.dot_dimension_numbers<[1], [0], [0], [1], [0, 0, 1, 1], [], []>} : vector<32x384xbf16>, vector<384x128xbf16>, vector<32x128xf32> -> vector<32x128xf32>
    %7 = arith.addf %3, %6 : vector<32x128xf32>
    %c0_6 = arith.constant 0 : index
    %c0_7 = arith.constant 0 : index
    %8 = vector.load %arg7[%c0_6, %c0_7] : memref<32x128xf32, #tpu.memory_space<vmem>>, vector<32x128xf32>
    tpu.vector_store %arg7[%c0_6, %c0_7], %7 {strides = array<i32>} : memref<32x128xf32, #tpu.memory_space<vmem>>, vector<32x128xf32>,
    %c2_i32 = arith.constant 2 : i32
    %9 = arith.cmpi eq, %arg2, %c2_i32 : i32
    %10 = arith.extui %9 : i1 to i32
    %c0_i32_8 = arith.constant 0 : i32
    %11 = arith.cmpi ne, %10, %c0_i32_8 : i32
    scf.if %11 {
      %c0_9 = arith.constant 0 : index
      %c0_10 = arith.constant 0 : index
      %12 = vector.load %arg7[%c0_9, %c0_10] : memref<32x128xf32, #tpu.memory_space<vmem>>, vector<32x128xf32>
      %c0_11 = arith.constant 0 : index
      %c0_12 = arith.constant 0 : index
      %13 = vector.load %arg5[%c0_11, %c0_12] : memref<1x128xf32, #tpu.memory_space<vmem>>, vector<1x128xf32>
      %14 = vector.broadcast %13 : vector<1x128xf32> to vector<32x128xf32>
      %15 = arith.addf %12, %14 : vector<32x128xf32>
      %cst_13 = arith.constant 0.000000e+00 : f32
      %16 = vector.broadcast %cst_13 : f32 to vector<32x128xf32>
      %17 = arith.maximumf %15, %16 : vector<32x128xf32>
      %c0_14 = arith.constant 0 : index
      %c0_15 = arith.constant 0 : index
      %18 = vector.load %arg6[%c0_14, %c0_15] : memref<32x128xf32, #tpu.memory_space<vmem>>, vector<32x128xf32>
      tpu.vector_store %arg6[%c0_14, %c0_15], %17 {strides = array<i32>} : memref<32x128xf32, #tpu.memory_space<vmem>>, vector<32x128xf32>,
    } else {
    }
    return
  }
  func.func @transform_0(%arg0: i32, %arg1: i32, %arg2: i32) -> (i32, i32) {
    %c0_i32 = arith.constant 0 : i32
    return %arg0, %arg2 : i32, i32
  }
  func.func @transform_1(%arg0: i32, %arg1: i32, %arg2: i32) -> (i32, i32) {
    %c0_i32 = arith.constant 0 : i32
    return %arg2, %arg1 : i32, i32
  }
  func.func @transform_2(%arg0: i32, %arg1: i32, %arg2: i32) -> (i32, i32) {
    %c0_i32 = arith.constant 0 : i32
    %c0_i32_0 = arith.constant 0 : i32
    return %c0_i32, %arg1 : i32, i32
  }
  func.func @transform_3(%arg0: i32, %arg1: i32, %arg2: i32) -> (i32, i32) {
    %c0_i32 = arith.constant 0 : i32
    return %arg0, %arg1 : i32, i32
  }
}

module attributes {stable_mosaic.version = 11 : i64} {
  func.func @_matmul_bn_kernel(%arg0: i32, %arg1: i32, %arg2: i32, %arg3: memref<8x384xbf16, #tpu.memory_space<vmem>>, %arg4: memref<384x256xbf16, #tpu.memory_space<vmem>>, %arg5: memref<1x256xf32, #tpu.memory_space<vmem>>, %arg6: memref<8x256xf32, #tpu.memory_space<vmem>>, %arg7: memref<8x256xf32, #tpu.memory_space<vmem>>) attributes {dimension_semantics = [#tpu.dimension_semantics<parallel>, #tpu.dimension_semantics<parallel>, #tpu.dimension_semantics<arbitrary>], iteration_bounds = array<i64: 1, 1, 3>, scalar_prefetch = 0 : i64, scratch_operands = 1 : i64, tpu.core_type = #tpu.core_type<tc>, window_params = [{transform_indices = @transform_0, window_bounds = array<i64: 8, 384>}, {transform_indices = @transform_1, window_bounds = array<i64: 384, 256>}, {transform_indices = @transform_2, window_bounds = array<i64: 1, 256>}, {transform_indices = @transform_3, window_bounds = array<i64: 8, 256>}]} {
    %c0_i32 = arith.constant 0 : i32
    %0 = arith.cmpi eq, %arg2, %c0_i32 : i32
    %1 = arith.extui %0 : i1 to i32
    %c0_i32_0 = arith.constant 0 : i32
    %2 = arith.cmpi ne, %1, %c0_i32_0 : i32
    scf.if %2 {
      %cst_9 = arith.constant 0.000000e+00 : f32
      %12 = vector.broadcast %cst_9 : f32 to vector<8x256xf32>
      %c0_10 = arith.constant 0 : index
      %c0_11 = arith.constant 0 : index
      %13 = vector.load %arg7[%c0_10, %c0_11] : memref<8x256xf32, #tpu.memory_space<vmem>>, vector<8x256xf32>
      tpu.vector_store %arg7[%c0_10, %c0_11], %12 {strides = array<i32>} : memref<8x256xf32, #tpu.memory_space<vmem>>, vector<8x256xf32>,
    } else {
    }
    %c0 = arith.constant 0 : index
    %c0_1 = arith.constant 0 : index
    %3 = vector.load %arg7[%c0, %c0_1] : memref<8x256xf32, #tpu.memory_space<vmem>>, vector<8x256xf32>
    %c0_2 = arith.constant 0 : index
    %c0_3 = arith.constant 0 : index
    %4 = vector.load %arg3[%c0_2, %c0_3] : memref<8x384xbf16, #tpu.memory_space<vmem>>, vector<8x384xbf16>
    %c0_4 = arith.constant 0 : index
    %c0_5 = arith.constant 0 : index
    %5 = vector.load %arg4[%c0_4, %c0_5] : memref<384x256xbf16, #tpu.memory_space<vmem>>, vector<384x256xbf16>
    %cst = arith.constant dense<0.000000e+00> : vector<8x256xf32>
    %6 = tpu.matmul %4, %5, %cst {dimension_numbers = #tpu.dot_dimension_numbers<[1], [0], [0], [1], [0, 0, 1, 1], [], []>} : vector<8x384xbf16>, vector<384x256xbf16>, vector<8x256xf32> -> vector<8x256xf32>
    %7 = arith.addf %3, %6 : vector<8x256xf32>
    %c0_6 = arith.constant 0 : index
    %c0_7 = arith.constant 0 : index
    %8 = vector.load %arg7[%c0_6, %c0_7] : memref<8x256xf32, #tpu.memory_space<vmem>>, vector<8x256xf32>
    tpu.vector_store %arg7[%c0_6, %c0_7], %7 {strides = array<i32>} : memref<8x256xf32, #tpu.memory_space<vmem>>, vector<8x256xf32>,
    %c2_i32 = arith.constant 2 : i32
    %9 = arith.cmpi eq, %arg2, %c2_i32 : i32
    %10 = arith.extui %9 : i1 to i32
    %c0_i32_8 = arith.constant 0 : i32
    %11 = arith.cmpi ne, %10, %c0_i32_8 : i32
    scf.if %11 {
      %c0_9 = arith.constant 0 : index
      %c0_10 = arith.constant 0 : index
      %12 = vector.load %arg7[%c0_9, %c0_10] : memref<8x256xf32, #tpu.memory_space<vmem>>, vector<8x256xf32>
      %c0_11 = arith.constant 0 : index
      %c0_12 = arith.constant 0 : index
      %13 = vector.load %arg5[%c0_11, %c0_12] : memref<1x256xf32, #tpu.memory_space<vmem>>, vector<1x256xf32>
      %14 = vector.broadcast %13 : vector<1x256xf32> to vector<8x256xf32>
      %15 = arith.addf %12, %14 : vector<8x256xf32>
      %cst_13 = arith.constant 0.000000e+00 : f32
      %16 = vector.broadcast %cst_13 : f32 to vector<8x256xf32>
      %17 = arith.maximumf %15, %16 : vector<8x256xf32>
      %c0_14 = arith.constant 0 : index
      %c0_15 = arith.constant 0 : index
      %18 = vector.load %arg6[%c0_14, %c0_15] : memref<8x256xf32, #tpu.memory_space<vmem>>, vector<8x256xf32>
      tpu.vector_store %arg6[%c0_14, %c0_15], %17 {strides = array<i32>} : memref<8x256xf32, #tpu.memory_space<vmem>>, vector<8x256xf32>,
    } else {
    }
    return
  }
  func.func @transform_0(%arg0: i32, %arg1: i32, %arg2: i32) -> (i32, i32) {
    %c0_i32 = arith.constant 0 : i32
    return %arg0, %arg2 : i32, i32
  }
  func.func @transform_1(%arg0: i32, %arg1: i32, %arg2: i32) -> (i32, i32) {
    %c0_i32 = arith.constant 0 : i32
    return %arg2, %arg1 : i32, i32
  }
  func.func @transform_2(%arg0: i32, %arg1: i32, %arg2: i32) -> (i32, i32) {
    %c0_i32 = arith.constant 0 : i32
    %c0_i32_0 = arith.constant 0 : i32
    return %c0_i32, %arg1 : i32, i32
  }
  func.func @transform_3(%arg0: i32, %arg1: i32, %arg2: i32) -> (i32, i32) {
    %c0_i32 = arith.constant 0 : i32
    return %arg0, %arg1 : i32, i32
  }
}

module attributes {stable_mosaic.version = 11 : i64} {
  func.func @_matmul_bn_kernel(%arg0: i32, %arg1: i32, %arg2: i32, %arg3: memref<8x128xbf16, #tpu.memory_space<vmem>>, %arg4: memref<128x256xbf16, #tpu.memory_space<vmem>>, %arg5: memref<1x256xf32, #tpu.memory_space<vmem>>, %arg6: memref<8x256xf32, #tpu.memory_space<vmem>>, %arg7: memref<8x256xf32, #tpu.memory_space<vmem>>) attributes {dimension_semantics = [#tpu.dimension_semantics<parallel>, #tpu.dimension_semantics<parallel>, #tpu.dimension_semantics<arbitrary>], iteration_bounds = array<i64: 1, 1, 1>, scalar_prefetch = 0 : i64, scratch_operands = 1 : i64, tpu.core_type = #tpu.core_type<tc>, window_params = [{transform_indices = @transform_0, window_bounds = array<i64: 8, 128>}, {transform_indices = @transform_1, window_bounds = array<i64: 128, 256>}, {transform_indices = @transform_2, window_bounds = array<i64: 1, 256>}, {transform_indices = @transform_3, window_bounds = array<i64: 8, 256>}]} {
    %c0_i32 = arith.constant 0 : i32
    %0 = arith.cmpi eq, %arg2, %c0_i32 : i32
    %1 = arith.extui %0 : i1 to i32
    %c0_i32_0 = arith.constant 0 : i32
    %2 = arith.cmpi ne, %1, %c0_i32_0 : i32
    scf.if %2 {
      %cst_10 = arith.constant 0.000000e+00 : f32
      %12 = vector.broadcast %cst_10 : f32 to vector<8x256xf32>
      %c0_11 = arith.constant 0 : index
      %c0_12 = arith.constant 0 : index
      %13 = vector.load %arg7[%c0_11, %c0_12] : memref<8x256xf32, #tpu.memory_space<vmem>>, vector<8x256xf32>
      tpu.vector_store %arg7[%c0_11, %c0_12], %12 {strides = array<i32>} : memref<8x256xf32, #tpu.memory_space<vmem>>, vector<8x256xf32>,
    } else {
    }
    %c0 = arith.constant 0 : index
    %c0_1 = arith.constant 0 : index
    %3 = vector.load %arg7[%c0, %c0_1] : memref<8x256xf32, #tpu.memory_space<vmem>>, vector<8x256xf32>
    %c0_2 = arith.constant 0 : index
    %c0_3 = arith.constant 0 : index
    %4 = vector.load %arg3[%c0_2, %c0_3] : memref<8x128xbf16, #tpu.memory_space<vmem>>, vector<8x128xbf16>
    %c0_4 = arith.constant 0 : index
    %c0_5 = arith.constant 0 : index
    %5 = vector.load %arg4[%c0_4, %c0_5] : memref<128x256xbf16, #tpu.memory_space<vmem>>, vector<128x256xbf16>
    %cst = arith.constant dense<0.000000e+00> : vector<8x256xf32>
    %6 = tpu.matmul %4, %5, %cst {dimension_numbers = #tpu.dot_dimension_numbers<[1], [0], [0], [1], [0, 0, 1, 1], [], []>} : vector<8x128xbf16>, vector<128x256xbf16>, vector<8x256xf32> -> vector<8x256xf32>
    %7 = arith.addf %3, %6 : vector<8x256xf32>
    %c0_6 = arith.constant 0 : index
    %c0_7 = arith.constant 0 : index
    %8 = vector.load %arg7[%c0_6, %c0_7] : memref<8x256xf32, #tpu.memory_space<vmem>>, vector<8x256xf32>
    tpu.vector_store %arg7[%c0_6, %c0_7], %7 {strides = array<i32>} : memref<8x256xf32, #tpu.memory_space<vmem>>, vector<8x256xf32>,
    %c0_i32_8 = arith.constant 0 : i32
    %9 = arith.cmpi eq, %arg2, %c0_i32_8 : i32
    %10 = arith.extui %9 : i1 to i32
    %c0_i32_9 = arith.constant 0 : i32
    %11 = arith.cmpi ne, %10, %c0_i32_9 : i32
    scf.if %11 {
      %c0_10 = arith.constant 0 : index
      %c0_11 = arith.constant 0 : index
      %12 = vector.load %arg7[%c0_10, %c0_11] : memref<8x256xf32, #tpu.memory_space<vmem>>, vector<8x256xf32>
      %c0_12 = arith.constant 0 : index
      %c0_13 = arith.constant 0 : index
      %13 = vector.load %arg5[%c0_12, %c0_13] : memref<1x256xf32, #tpu.memory_space<vmem>>, vector<1x256xf32>
      %14 = vector.broadcast %13 : vector<1x256xf32> to vector<8x256xf32>
      %15 = arith.addf %12, %14 : vector<8x256xf32>
      %c0_14 = arith.constant 0 : index
      %c0_15 = arith.constant 0 : index
      %16 = vector.load %arg6[%c0_14, %c0_15] : memref<8x256xf32, #tpu.memory_space<vmem>>, vector<8x256xf32>
      tpu.vector_store %arg6[%c0_14, %c0_15], %15 {strides = array<i32>} : memref<8x256xf32, #tpu.memory_space<vmem>>, vector<8x256xf32>,
    } else {
    }
    return
  }
  func.func @transform_0(%arg0: i32, %arg1: i32, %arg2: i32) -> (i32, i32) {
    %c0_i32 = arith.constant 0 : i32
    return %arg0, %arg2 : i32, i32
  }
  func.func @transform_1(%arg0: i32, %arg1: i32, %arg2: i32) -> (i32, i32) {
    %c0_i32 = arith.constant 0 : i32
    return %arg2, %arg1 : i32, i32
  }
  func.func @transform_2(%arg0: i32, %arg1: i32, %arg2: i32) -> (i32, i32) {
    %c0_i32 = arith.constant 0 : i32
    %c0_i32_0 = arith.constant 0 : i32
    return %c0_i32, %arg1 : i32, i32
  }
  func.func @transform_3(%arg0: i32, %arg1: i32, %arg2: i32) -> (i32, i32) {
    %c0_i32 = arith.constant 0 : i32
    return %arg0, %arg1 : i32, i32
  }
}

module attributes {stable_mosaic.version = 11 : i64} {
  func.func @_matmul_bn_add_relu_kernel(%arg0: i32, %arg1: i32, %arg2: i32, %arg3: memref<8x768xbf16, #tpu.memory_space<vmem>>, %arg4: memref<768x256xbf16, #tpu.memory_space<vmem>>, %arg5: memref<1x256xf32, #tpu.memory_space<vmem>>, %arg6: memref<8x256xf32, #tpu.memory_space<vmem>>, %arg7: memref<8x256xf32, #tpu.memory_space<vmem>>, %arg8: memref<8x256xf32, #tpu.memory_space<vmem>>) attributes {dimension_semantics = [#tpu.dimension_semantics<parallel>, #tpu.dimension_semantics<parallel>, #tpu.dimension_semantics<arbitrary>], iteration_bounds = array<i64: 1, 1, 3>, scalar_prefetch = 0 : i64, scratch_operands = 1 : i64, tpu.core_type = #tpu.core_type<tc>, window_params = [{transform_indices = @transform_0, window_bounds = array<i64: 8, 768>}, {transform_indices = @transform_1, window_bounds = array<i64: 768, 256>}, {transform_indices = @transform_2, window_bounds = array<i64: 1, 256>}, {transform_indices = @transform_3, window_bounds = array<i64: 8, 256>}, {transform_indices = @transform_4, window_bounds = array<i64: 8, 256>}]} {
    %c0_i32 = arith.constant 0 : i32
    %0 = arith.cmpi eq, %arg2, %c0_i32 : i32
    %1 = arith.extui %0 : i1 to i32
    %c0_i32_0 = arith.constant 0 : i32
    %2 = arith.cmpi ne, %1, %c0_i32_0 : i32
    scf.if %2 {
      %cst_9 = arith.constant 0.000000e+00 : f32
      %12 = vector.broadcast %cst_9 : f32 to vector<8x256xf32>
      %c0_10 = arith.constant 0 : index
      %c0_11 = arith.constant 0 : index
      %13 = vector.load %arg8[%c0_10, %c0_11] : memref<8x256xf32, #tpu.memory_space<vmem>>, vector<8x256xf32>
      tpu.vector_store %arg8[%c0_10, %c0_11], %12 {strides = array<i32>} : memref<8x256xf32, #tpu.memory_space<vmem>>, vector<8x256xf32>,
    } else {
    }
    %c0 = arith.constant 0 : index
    %c0_1 = arith.constant 0 : index
    %3 = vector.load %arg8[%c0, %c0_1] : memref<8x256xf32, #tpu.memory_space<vmem>>, vector<8x256xf32>
    %c0_2 = arith.constant 0 : index
    %c0_3 = arith.constant 0 : index
    %4 = vector.load %arg3[%c0_2, %c0_3] : memref<8x768xbf16, #tpu.memory_space<vmem>>, vector<8x768xbf16>
    %c0_4 = arith.constant 0 : index
    %c0_5 = arith.constant 0 : index
    %5 = vector.load %arg4[%c0_4, %c0_5] : memref<768x256xbf16, #tpu.memory_space<vmem>>, vector<768x256xbf16>
    %cst = arith.constant dense<0.000000e+00> : vector<8x256xf32>
    %6 = tpu.matmul %4, %5, %cst {dimension_numbers = #tpu.dot_dimension_numbers<[1], [0], [0], [1], [0, 0, 1, 1], [], []>} : vector<8x768xbf16>, vector<768x256xbf16>, vector<8x256xf32> -> vector<8x256xf32>
    %7 = arith.addf %3, %6 : vector<8x256xf32>
    %c0_6 = arith.constant 0 : index
    %c0_7 = arith.constant 0 : index
    %8 = vector.load %arg8[%c0_6, %c0_7] : memref<8x256xf32, #tpu.memory_space<vmem>>, vector<8x256xf32>
    tpu.vector_store %arg8[%c0_6, %c0_7], %7 {strides = array<i32>} : memref<8x256xf32, #tpu.memory_space<vmem>>, vector<8x256xf32>,
    %c2_i32 = arith.constant 2 : i32
    %9 = arith.cmpi eq, %arg2, %c2_i32 : i32
    %10 = arith.extui %9 : i1 to i32
    %c0_i32_8 = arith.constant 0 : i32
    %11 = arith.cmpi ne, %10, %c0_i32_8 : i32
    scf.if %11 {
      %c0_9 = arith.constant 0 : index
      %c0_10 = arith.constant 0 : index
      %12 = vector.load %arg8[%c0_9, %c0_10] : memref<8x256xf32, #tpu.memory_space<vmem>>, vector<8x256xf32>
      %c0_11 = arith.constant 0 : index
      %c0_12 = arith.constant 0 : index
      %13 = vector.load %arg5[%c0_11, %c0_12] : memref<1x256xf32, #tpu.memory_space<vmem>>, vector<1x256xf32>
      %14 = vector.broadcast %13 : vector<1x256xf32> to vector<8x256xf32>
      %15 = arith.addf %12, %14 : vector<8x256xf32>
      %c0_13 = arith.constant 0 : index
      %c0_14 = arith.constant 0 : index
      %16 = vector.load %arg6[%c0_13, %c0_14] : memref<8x256xf32, #tpu.memory_space<vmem>>, vector<8x256xf32>
      %17 = arith.addf %15, %16 : vector<8x256xf32>
      %cst_15 = arith.constant 0.000000e+00 : f32
      %18 = vector.broadcast %cst_15 : f32 to vector<8x256xf32>
      %19 = arith.maximumf %17, %18 : vector<8x256xf32>
      %c0_16 = arith.constant 0 : index
      %c0_17 = arith.constant 0 : index
      %20 = vector.load %arg7[%c0_16, %c0_17] : memref<8x256xf32, #tpu.memory_space<vmem>>, vector<8x256xf32>
      tpu.vector_store %arg7[%c0_16, %c0_17], %19 {strides = array<i32>} : memref<8x256xf32, #tpu.memory_space<vmem>>, vector<8x256xf32>,
    } else {
    }
    return
  }
  func.func @transform_0(%arg0: i32, %arg1: i32, %arg2: i32) -> (i32, i32) {
    %c0_i32 = arith.constant 0 : i32
    return %arg0, %arg2 : i32, i32
  }
  func.func @transform_1(%arg0: i32, %arg1: i32, %arg2: i32) -> (i32, i32) {
    %c0_i32 = arith.constant 0 : i32
    return %arg2, %arg1 : i32, i32
  }
  func.func @transform_2(%arg0: i32, %arg1: i32, %arg2: i32) -> (i32, i32) {
    %c0_i32 = arith.constant 0 : i32
    %c0_i32_0 = arith.constant 0 : i32
    return %c0_i32, %arg1 : i32, i32
  }
  func.func @transform_3(%arg0: i32, %arg1: i32, %arg2: i32) -> (i32, i32) {
    %c0_i32 = arith.constant 0 : i32
    return %arg0, %arg1 : i32, i32
  }
  func.func @transform_4(%arg0: i32, %arg1: i32, %arg2: i32) -> (i32, i32) {
    %c0_i32 = arith.constant 0 : i32
    return %arg0, %arg1 : i32, i32
  }
}

module attributes {stable_mosaic.version = 11 : i64} {
  func.func @_matmul_bn_kernel(%arg0: i32, %arg1: i32, %arg2: i32, %arg3: memref<8x768xbf16, #tpu.memory_space<vmem>>, %arg4: memref<768x256xbf16, #tpu.memory_space<vmem>>, %arg5: memref<1x256xf32, #tpu.memory_space<vmem>>, %arg6: memref<8x256xf32, #tpu.memory_space<vmem>>, %arg7: memref<8x256xf32, #tpu.memory_space<vmem>>) attributes {dimension_semantics = [#tpu.dimension_semantics<parallel>, #tpu.dimension_semantics<parallel>, #tpu.dimension_semantics<arbitrary>], iteration_bounds = array<i64: 1, 1, 3>, scalar_prefetch = 0 : i64, scratch_operands = 1 : i64, tpu.core_type = #tpu.core_type<tc>, window_params = [{transform_indices = @transform_0, window_bounds = array<i64: 8, 768>}, {transform_indices = @transform_1, window_bounds = array<i64: 768, 256>}, {transform_indices = @transform_2, window_bounds = array<i64: 1, 256>}, {transform_indices = @transform_3, window_bounds = array<i64: 8, 256>}]} {
    %c0_i32 = arith.constant 0 : i32
    %0 = arith.cmpi eq, %arg2, %c0_i32 : i32
    %1 = arith.extui %0 : i1 to i32
    %c0_i32_0 = arith.constant 0 : i32
    %2 = arith.cmpi ne, %1, %c0_i32_0 : i32
    scf.if %2 {
      %cst_9 = arith.constant 0.000000e+00 : f32
      %12 = vector.broadcast %cst_9 : f32 to vector<8x256xf32>
      %c0_10 = arith.constant 0 : index
      %c0_11 = arith.constant 0 : index
      %13 = vector.load %arg7[%c0_10, %c0_11] : memref<8x256xf32, #tpu.memory_space<vmem>>, vector<8x256xf32>
      tpu.vector_store %arg7[%c0_10, %c0_11], %12 {strides = array<i32>} : memref<8x256xf32, #tpu.memory_space<vmem>>, vector<8x256xf32>,
    } else {
    }
    %c0 = arith.constant 0 : index
    %c0_1 = arith.constant 0 : index
    %3 = vector.load %arg7[%c0, %c0_1] : memref<8x256xf32, #tpu.memory_space<vmem>>, vector<8x256xf32>
    %c0_2 = arith.constant 0 : index
    %c0_3 = arith.constant 0 : index
    %4 = vector.load %arg3[%c0_2, %c0_3] : memref<8x768xbf16, #tpu.memory_space<vmem>>, vector<8x768xbf16>
    %c0_4 = arith.constant 0 : index
    %c0_5 = arith.constant 0 : index
    %5 = vector.load %arg4[%c0_4, %c0_5] : memref<768x256xbf16, #tpu.memory_space<vmem>>, vector<768x256xbf16>
    %cst = arith.constant dense<0.000000e+00> : vector<8x256xf32>
    %6 = tpu.matmul %4, %5, %cst {dimension_numbers = #tpu.dot_dimension_numbers<[1], [0], [0], [1], [0, 0, 1, 1], [], []>} : vector<8x768xbf16>, vector<768x256xbf16>, vector<8x256xf32> -> vector<8x256xf32>
    %7 = arith.addf %3, %6 : vector<8x256xf32>
    %c0_6 = arith.constant 0 : index
    %c0_7 = arith.constant 0 : index
    %8 = vector.load %arg7[%c0_6, %c0_7] : memref<8x256xf32, #tpu.memory_space<vmem>>, vector<8x256xf32>
    tpu.vector_store %arg7[%c0_6, %c0_7], %7 {strides = array<i32>} : memref<8x256xf32, #tpu.memory_space<vmem>>, vector<8x256xf32>,
    %c2_i32 = arith.constant 2 : i32
    %9 = arith.cmpi eq, %arg2, %c2_i32 : i32
    %10 = arith.extui %9 : i1 to i32
    %c0_i32_8 = arith.constant 0 : i32
    %11 = arith.cmpi ne, %10, %c0_i32_8 : i32
    scf.if %11 {
      %c0_9 = arith.constant 0 : index
      %c0_10 = arith.constant 0 : index
      %12 = vector.load %arg7[%c0_9, %c0_10] : memref<8x256xf32, #tpu.memory_space<vmem>>, vector<8x256xf32>
      %c0_11 = arith.constant 0 : index
      %c0_12 = arith.constant 0 : index
      %13 = vector.load %arg5[%c0_11, %c0_12] : memref<1x256xf32, #tpu.memory_space<vmem>>, vector<1x256xf32>
      %14 = vector.broadcast %13 : vector<1x256xf32> to vector<8x256xf32>
      %15 = arith.addf %12, %14 : vector<8x256xf32>
      %cst_13 = arith.constant 0.000000e+00 : f32
      %16 = vector.broadcast %cst_13 : f32 to vector<8x256xf32>
      %17 = arith.maximumf %15, %16 : vector<8x256xf32>
      %c0_14 = arith.constant 0 : index
      %c0_15 = arith.constant 0 : index
      %18 = vector.load %arg6[%c0_14, %c0_15] : memref<8x256xf32, #tpu.memory_space<vmem>>, vector<8x256xf32>
      tpu.vector_store %arg6[%c0_14, %c0_15], %17 {strides = array<i32>} : memref<8x256xf32, #tpu.memory_space<vmem>>, vector<8x256xf32>,
    } else {
    }
    return
  }
  func.func @transform_0(%arg0: i32, %arg1: i32, %arg2: i32) -> (i32, i32) {
    %c0_i32 = arith.constant 0 : i32
    return %arg0, %arg2 : i32, i32
  }
  func.func @transform_1(%arg0: i32, %arg1: i32, %arg2: i32) -> (i32, i32) {
    %c0_i32 = arith.constant 0 : i32
    return %arg2, %arg1 : i32, i32
  }
  func.func @transform_2(%arg0: i32, %arg1: i32, %arg2: i32) -> (i32, i32) {
    %c0_i32 = arith.constant 0 : i32
    %c0_i32_0 = arith.constant 0 : i32
    return %c0_i32, %arg1 : i32, i32
  }
  func.func @transform_3(%arg0: i32, %arg1: i32, %arg2: i32) -> (i32, i32) {
    %c0_i32 = arith.constant 0 : i32
    return %arg0, %arg1 : i32, i32
  }
}

module attributes {stable_mosaic.version = 11 : i64} {
  func.func @_matmul_bn_kernel(%arg0: i32, %arg1: i32, %arg2: i32, %arg3: memref<8x768xbf16, #tpu.memory_space<vmem>>, %arg4: memref<768x256xbf16, #tpu.memory_space<vmem>>, %arg5: memref<1x256xf32, #tpu.memory_space<vmem>>, %arg6: memref<8x256xf32, #tpu.memory_space<vmem>>, %arg7: memref<8x256xf32, #tpu.memory_space<vmem>>) attributes {dimension_semantics = [#tpu.dimension_semantics<parallel>, #tpu.dimension_semantics<parallel>, #tpu.dimension_semantics<arbitrary>], iteration_bounds = array<i64: 1, 2, 3>, scalar_prefetch = 0 : i64, scratch_operands = 1 : i64, tpu.core_type = #tpu.core_type<tc>, window_params = [{transform_indices = @transform_0, window_bounds = array<i64: 8, 768>}, {transform_indices = @transform_1, window_bounds = array<i64: 768, 256>}, {transform_indices = @transform_2, window_bounds = array<i64: 1, 256>}, {transform_indices = @transform_3, window_bounds = array<i64: 8, 256>}]} {
    %c0_i32 = arith.constant 0 : i32
    %0 = arith.cmpi eq, %arg2, %c0_i32 : i32
    %1 = arith.extui %0 : i1 to i32
    %c0_i32_0 = arith.constant 0 : i32
    %2 = arith.cmpi ne, %1, %c0_i32_0 : i32
    scf.if %2 {
      %cst_9 = arith.constant 0.000000e+00 : f32
      %12 = vector.broadcast %cst_9 : f32 to vector<8x256xf32>
      %c0_10 = arith.constant 0 : index
      %c0_11 = arith.constant 0 : index
      %13 = vector.load %arg7[%c0_10, %c0_11] : memref<8x256xf32, #tpu.memory_space<vmem>>, vector<8x256xf32>
      tpu.vector_store %arg7[%c0_10, %c0_11], %12 {strides = array<i32>} : memref<8x256xf32, #tpu.memory_space<vmem>>, vector<8x256xf32>,
    } else {
    }
    %c0 = arith.constant 0 : index
    %c0_1 = arith.constant 0 : index
    %3 = vector.load %arg7[%c0, %c0_1] : memref<8x256xf32, #tpu.memory_space<vmem>>, vector<8x256xf32>
    %c0_2 = arith.constant 0 : index
    %c0_3 = arith.constant 0 : index
    %4 = vector.load %arg3[%c0_2, %c0_3] : memref<8x768xbf16, #tpu.memory_space<vmem>>, vector<8x768xbf16>
    %c0_4 = arith.constant 0 : index
    %c0_5 = arith.constant 0 : index
    %5 = vector.load %arg4[%c0_4, %c0_5] : memref<768x256xbf16, #tpu.memory_space<vmem>>, vector<768x256xbf16>
    %cst = arith.constant dense<0.000000e+00> : vector<8x256xf32>
    %6 = tpu.matmul %4, %5, %cst {dimension_numbers = #tpu.dot_dimension_numbers<[1], [0], [0], [1], [0, 0, 1, 1], [], []>} : vector<8x768xbf16>, vector<768x256xbf16>, vector<8x256xf32> -> vector<8x256xf32>
    %7 = arith.addf %3, %6 : vector<8x256xf32>
    %c0_6 = arith.constant 0 : index
    %c0_7 = arith.constant 0 : index
    %8 = vector.load %arg7[%c0_6, %c0_7] : memref<8x256xf32, #tpu.memory_space<vmem>>, vector<8x256xf32>
    tpu.vector_store %arg7[%c0_6, %c0_7], %7 {strides = array<i32>} : memref<8x256xf32, #tpu.memory_space<vmem>>, vector<8x256xf32>,
    %c2_i32 = arith.constant 2 : i32
    %9 = arith.cmpi eq, %arg2, %c2_i32 : i32
    %10 = arith.extui %9 : i1 to i32
    %c0_i32_8 = arith.constant 0 : i32
    %11 = arith.cmpi ne, %10, %c0_i32_8 : i32
    scf.if %11 {
      %c0_9 = arith.constant 0 : index
      %c0_10 = arith.constant 0 : index
      %12 = vector.load %arg7[%c0_9, %c0_10] : memref<8x256xf32, #tpu.memory_space<vmem>>, vector<8x256xf32>
      %c0_11 = arith.constant 0 : index
      %c0_12 = arith.constant 0 : index
      %13 = vector.load %arg5[%c0_11, %c0_12] : memref<1x256xf32, #tpu.memory_space<vmem>>, vector<1x256xf32>
      %14 = vector.broadcast %13 : vector<1x256xf32> to vector<8x256xf32>
      %15 = arith.addf %12, %14 : vector<8x256xf32>
      %cst_13 = arith.constant 0.000000e+00 : f32
      %16 = vector.broadcast %cst_13 : f32 to vector<8x256xf32>
      %17 = arith.maximumf %15, %16 : vector<8x256xf32>
      %c0_14 = arith.constant 0 : index
      %c0_15 = arith.constant 0 : index
      %18 = vector.load %arg6[%c0_14, %c0_15] : memref<8x256xf32, #tpu.memory_space<vmem>>, vector<8x256xf32>
      tpu.vector_store %arg6[%c0_14, %c0_15], %17 {strides = array<i32>} : memref<8x256xf32, #tpu.memory_space<vmem>>, vector<8x256xf32>,
    } else {
    }
    return
  }
  func.func @transform_0(%arg0: i32, %arg1: i32, %arg2: i32) -> (i32, i32) {
    %c0_i32 = arith.constant 0 : i32
    return %arg0, %arg2 : i32, i32
  }
  func.func @transform_1(%arg0: i32, %arg1: i32, %arg2: i32) -> (i32, i32) {
    %c0_i32 = arith.constant 0 : i32
    return %arg2, %arg1 : i32, i32
  }
  func.func @transform_2(%arg0: i32, %arg1: i32, %arg2: i32) -> (i32, i32) {
    %c0_i32 = arith.constant 0 : i32
    %c0_i32_0 = arith.constant 0 : i32
    return %c0_i32, %arg1 : i32, i32
  }
  func.func @transform_3(%arg0: i32, %arg1: i32, %arg2: i32) -> (i32, i32) {
    %c0_i32 = arith.constant 0 : i32
    return %arg0, %arg1 : i32, i32
  }
}

module attributes {stable_mosaic.version = 11 : i64} {
  func.func @_matmul_bn_kernel(%arg0: i32, %arg1: i32, %arg2: i32, %arg3: memref<8x256xbf16, #tpu.memory_space<vmem>>, %arg4: memref<256x256xbf16, #tpu.memory_space<vmem>>, %arg5: memref<1x256xf32, #tpu.memory_space<vmem>>, %arg6: memref<8x256xf32, #tpu.memory_space<vmem>>, %arg7: memref<8x256xf32, #tpu.memory_space<vmem>>) attributes {dimension_semantics = [#tpu.dimension_semantics<parallel>, #tpu.dimension_semantics<parallel>, #tpu.dimension_semantics<arbitrary>], iteration_bounds = array<i64: 1, 2, 1>, scalar_prefetch = 0 : i64, scratch_operands = 1 : i64, tpu.core_type = #tpu.core_type<tc>, window_params = [{transform_indices = @transform_0, window_bounds = array<i64: 8, 256>}, {transform_indices = @transform_1, window_bounds = array<i64: 256, 256>}, {transform_indices = @transform_2, window_bounds = array<i64: 1, 256>}, {transform_indices = @transform_3, window_bounds = array<i64: 8, 256>}]} {
    %c0_i32 = arith.constant 0 : i32
    %0 = arith.cmpi eq, %arg2, %c0_i32 : i32
    %1 = arith.extui %0 : i1 to i32
    %c0_i32_0 = arith.constant 0 : i32
    %2 = arith.cmpi ne, %1, %c0_i32_0 : i32
    scf.if %2 {
      %cst_10 = arith.constant 0.000000e+00 : f32
      %12 = vector.broadcast %cst_10 : f32 to vector<8x256xf32>
      %c0_11 = arith.constant 0 : index
      %c0_12 = arith.constant 0 : index
      %13 = vector.load %arg7[%c0_11, %c0_12] : memref<8x256xf32, #tpu.memory_space<vmem>>, vector<8x256xf32>
      tpu.vector_store %arg7[%c0_11, %c0_12], %12 {strides = array<i32>} : memref<8x256xf32, #tpu.memory_space<vmem>>, vector<8x256xf32>,
    } else {
    }
    %c0 = arith.constant 0 : index
    %c0_1 = arith.constant 0 : index
    %3 = vector.load %arg7[%c0, %c0_1] : memref<8x256xf32, #tpu.memory_space<vmem>>, vector<8x256xf32>
    %c0_2 = arith.constant 0 : index
    %c0_3 = arith.constant 0 : index
    %4 = vector.load %arg3[%c0_2, %c0_3] : memref<8x256xbf16, #tpu.memory_space<vmem>>, vector<8x256xbf16>
    %c0_4 = arith.constant 0 : index
    %c0_5 = arith.constant 0 : index
    %5 = vector.load %arg4[%c0_4, %c0_5] : memref<256x256xbf16, #tpu.memory_space<vmem>>, vector<256x256xbf16>
    %cst = arith.constant dense<0.000000e+00> : vector<8x256xf32>
    %6 = tpu.matmul %4, %5, %cst {dimension_numbers = #tpu.dot_dimension_numbers<[1], [0], [0], [1], [0, 0, 1, 1], [], []>} : vector<8x256xbf16>, vector<256x256xbf16>, vector<8x256xf32> -> vector<8x256xf32>
    %7 = arith.addf %3, %6 : vector<8x256xf32>
    %c0_6 = arith.constant 0 : index
    %c0_7 = arith.constant 0 : index
    %8 = vector.load %arg7[%c0_6, %c0_7] : memref<8x256xf32, #tpu.memory_space<vmem>>, vector<8x256xf32>
    tpu.vector_store %arg7[%c0_6, %c0_7], %7 {strides = array<i32>} : memref<8x256xf32, #tpu.memory_space<vmem>>, vector<8x256xf32>,
    %c0_i32_8 = arith.constant 0 : i32
    %9 = arith.cmpi eq, %arg2, %c0_i32_8 : i32
    %10 = arith.extui %9 : i1 to i32
    %c0_i32_9 = arith.constant 0 : i32
    %11 = arith.cmpi ne, %10, %c0_i32_9 : i32
    scf.if %11 {
      %c0_10 = arith.constant 0 : index
      %c0_11 = arith.constant 0 : index
      %12 = vector.load %arg7[%c0_10, %c0_11] : memref<8x256xf32, #tpu.memory_space<vmem>>, vector<8x256xf32>
      %c0_12 = arith.constant 0 : index
      %c0_13 = arith.constant 0 : index
      %13 = vector.load %arg5[%c0_12, %c0_13] : memref<1x256xf32, #tpu.memory_space<vmem>>, vector<1x256xf32>
      %14 = vector.broadcast %13 : vector<1x256xf32> to vector<8x256xf32>
      %15 = arith.addf %12, %14 : vector<8x256xf32>
      %c0_14 = arith.constant 0 : index
      %c0_15 = arith.constant 0 : index
      %16 = vector.load %arg6[%c0_14, %c0_15] : memref<8x256xf32, #tpu.memory_space<vmem>>, vector<8x256xf32>
      tpu.vector_store %arg6[%c0_14, %c0_15], %15 {strides = array<i32>} : memref<8x256xf32, #tpu.memory_space<vmem>>, vector<8x256xf32>,
    } else {
    }
    return
  }
  func.func @transform_0(%arg0: i32, %arg1: i32, %arg2: i32) -> (i32, i32) {
    %c0_i32 = arith.constant 0 : i32
    return %arg0, %arg2 : i32, i32
  }
  func.func @transform_1(%arg0: i32, %arg1: i32, %arg2: i32) -> (i32, i32) {
    %c0_i32 = arith.constant 0 : i32
    return %arg2, %arg1 : i32, i32
  }
  func.func @transform_2(%arg0: i32, %arg1: i32, %arg2: i32) -> (i32, i32) {
    %c0_i32 = arith.constant 0 : i32
    %c0_i32_0 = arith.constant 0 : i32
    return %c0_i32, %arg1 : i32, i32
  }
  func.func @transform_3(%arg0: i32, %arg1: i32, %arg2: i32) -> (i32, i32) {
    %c0_i32 = arith.constant 0 : i32
    return %arg0, %arg1 : i32, i32
  }
}

module attributes {stable_mosaic.version = 11 : i64} {
  func.func @_matmul_bn_add_relu_kernel(%arg0: i32, %arg1: i32, %arg2: i32, %arg3: memref<8x768xbf16, #tpu.memory_space<vmem>>, %arg4: memref<768x256xbf16, #tpu.memory_space<vmem>>, %arg5: memref<1x256xf32, #tpu.memory_space<vmem>>, %arg6: memref<8x256xf32, #tpu.memory_space<vmem>>, %arg7: memref<8x256xf32, #tpu.memory_space<vmem>>, %arg8: memref<8x256xf32, #tpu.memory_space<vmem>>) attributes {dimension_semantics = [#tpu.dimension_semantics<parallel>, #tpu.dimension_semantics<parallel>, #tpu.dimension_semantics<arbitrary>], iteration_bounds = array<i64: 1, 2, 6>, scalar_prefetch = 0 : i64, scratch_operands = 1 : i64, tpu.core_type = #tpu.core_type<tc>, window_params = [{transform_indices = @transform_0, window_bounds = array<i64: 8, 768>}, {transform_indices = @transform_1, window_bounds = array<i64: 768, 256>}, {transform_indices = @transform_2, window_bounds = array<i64: 1, 256>}, {transform_indices = @transform_3, window_bounds = array<i64: 8, 256>}, {transform_indices = @transform_4, window_bounds = array<i64: 8, 256>}]} {
    %c0_i32 = arith.constant 0 : i32
    %0 = arith.cmpi eq, %arg2, %c0_i32 : i32
    %1 = arith.extui %0 : i1 to i32
    %c0_i32_0 = arith.constant 0 : i32
    %2 = arith.cmpi ne, %1, %c0_i32_0 : i32
    scf.if %2 {
      %cst_9 = arith.constant 0.000000e+00 : f32
      %12 = vector.broadcast %cst_9 : f32 to vector<8x256xf32>
      %c0_10 = arith.constant 0 : index
      %c0_11 = arith.constant 0 : index
      %13 = vector.load %arg8[%c0_10, %c0_11] : memref<8x256xf32, #tpu.memory_space<vmem>>, vector<8x256xf32>
      tpu.vector_store %arg8[%c0_10, %c0_11], %12 {strides = array<i32>} : memref<8x256xf32, #tpu.memory_space<vmem>>, vector<8x256xf32>,
    } else {
    }
    %c0 = arith.constant 0 : index
    %c0_1 = arith.constant 0 : index
    %3 = vector.load %arg8[%c0, %c0_1] : memref<8x256xf32, #tpu.memory_space<vmem>>, vector<8x256xf32>
    %c0_2 = arith.constant 0 : index
    %c0_3 = arith.constant 0 : index
    %4 = vector.load %arg3[%c0_2, %c0_3] : memref<8x768xbf16, #tpu.memory_space<vmem>>, vector<8x768xbf16>
    %c0_4 = arith.constant 0 : index
    %c0_5 = arith.constant 0 : index
    %5 = vector.load %arg4[%c0_4, %c0_5] : memref<768x256xbf16, #tpu.memory_space<vmem>>, vector<768x256xbf16>
    %cst = arith.constant dense<0.000000e+00> : vector<8x256xf32>
    %6 = tpu.matmul %4, %5, %cst {dimension_numbers = #tpu.dot_dimension_numbers<[1], [0], [0], [1], [0, 0, 1, 1], [], []>} : vector<8x768xbf16>, vector<768x256xbf16>, vector<8x256xf32> -> vector<8x256xf32>
    %7 = arith.addf %3, %6 : vector<8x256xf32>
    %c0_6 = arith.constant 0 : index
    %c0_7 = arith.constant 0 : index
    %8 = vector.load %arg8[%c0_6, %c0_7] : memref<8x256xf32, #tpu.memory_space<vmem>>, vector<8x256xf32>
    tpu.vector_store %arg8[%c0_6, %c0_7], %7 {strides = array<i32>} : memref<8x256xf32, #tpu.memory_space<vmem>>, vector<8x256xf32>,
    %c5_i32 = arith.constant 5 : i32
    %9 = arith.cmpi eq, %arg2, %c5_i32 : i32
    %10 = arith.extui %9 : i1 to i32
    %c0_i32_8 = arith.constant 0 : i32
    %11 = arith.cmpi ne, %10, %c0_i32_8 : i32
    scf.if %11 {
      %c0_9 = arith.constant 0 : index
      %c0_10 = arith.constant 0 : index
      %12 = vector.load %arg8[%c0_9, %c0_10] : memref<8x256xf32, #tpu.memory_space<vmem>>, vector<8x256xf32>
      %c0_11 = arith.constant 0 : index
      %c0_12 = arith.constant 0 : index
      %13 = vector.load %arg5[%c0_11, %c0_12] : memref<1x256xf32, #tpu.memory_space<vmem>>, vector<1x256xf32>
      %14 = vector.broadcast %13 : vector<1x256xf32> to vector<8x256xf32>
      %15 = arith.addf %12, %14 : vector<8x256xf32>
      %c0_13 = arith.constant 0 : index
      %c0_14 = arith.constant 0 : index
      %16 = vector.load %arg6[%c0_13, %c0_14] : memref<8x256xf32, #tpu.memory_space<vmem>>, vector<8x256xf32>
      %17 = arith.addf %15, %16 : vector<8x256xf32>
      %cst_15 = arith.constant 0.000000e+00 : f32
      %18 = vector.broadcast %cst_15 : f32 to vector<8x256xf32>
      %19 = arith.maximumf %17, %18 : vector<8x256xf32>
      %c0_16 = arith.constant 0 : index
      %c0_17 = arith.constant 0 : index
      %20 = vector.load %arg7[%c0_16, %c0_17] : memref<8x256xf32, #tpu.memory_space<vmem>>, vector<8x256xf32>
      tpu.vector_store %arg7[%c0_16, %c0_17], %19 {strides = array<i32>} : memref<8x256xf32, #tpu.memory_space<vmem>>, vector<8x256xf32>,
    } else {
    }
    return
  }
  func.func @transform_0(%arg0: i32, %arg1: i32, %arg2: i32) -> (i32, i32) {
    %c0_i32 = arith.constant 0 : i32
    return %arg0, %arg2 : i32, i32
  }
  func.func @transform_1(%arg0: i32, %arg1: i32, %arg2: i32) -> (i32, i32) {
    %c0_i32 = arith.constant 0 : i32
    return %arg2, %arg1 : i32, i32
  }
  func.func @transform_2(%arg0: i32, %arg1: i32, %arg2: i32) -> (i32, i32) {
    %c0_i32 = arith.constant 0 : i32
    %c0_i32_0 = arith.constant 0 : i32
    return %c0_i32, %arg1 : i32, i32
  }
  func.func @transform_3(%arg0: i32, %arg1: i32, %arg2: i32) -> (i32, i32) {
    %c0_i32 = arith.constant 0 : i32
    return %arg0, %arg1 : i32, i32
  }
  func.func @transform_4(%arg0: i32, %arg1: i32, %arg2: i32) -> (i32, i32) {
    %c0_i32 = arith.constant 0 : i32
    return %arg0, %arg1 : i32, i32
  }
}

module attributes {stable_mosaic.version = 11 : i64} {
  func.func @_matmul_bn_kernel(%arg0: i32, %arg1: i32, %arg2: i32, %arg3: memref<8x768xbf16, #tpu.memory_space<vmem>>, %arg4: memref<768x256xbf16, #tpu.memory_space<vmem>>, %arg5: memref<1x256xf32, #tpu.memory_space<vmem>>, %arg6: memref<8x256xf32, #tpu.memory_space<vmem>>, %arg7: memref<8x256xf32, #tpu.memory_space<vmem>>) attributes {dimension_semantics = [#tpu.dimension_semantics<parallel>, #tpu.dimension_semantics<parallel>, #tpu.dimension_semantics<arbitrary>], iteration_bounds = array<i64: 1, 2, 6>, scalar_prefetch = 0 : i64, scratch_operands = 1 : i64, tpu.core_type = #tpu.core_type<tc>, window_params = [{transform_indices = @transform_0, window_bounds = array<i64: 8, 768>}, {transform_indices = @transform_1, window_bounds = array<i64: 768, 256>}, {transform_indices = @transform_2, window_bounds = array<i64: 1, 256>}, {transform_indices = @transform_3, window_bounds = array<i64: 8, 256>}]} {
    %c0_i32 = arith.constant 0 : i32
    %0 = arith.cmpi eq, %arg2, %c0_i32 : i32
    %1 = arith.extui %0 : i1 to i32
    %c0_i32_0 = arith.constant 0 : i32
    %2 = arith.cmpi ne, %1, %c0_i32_0 : i32
    scf.if %2 {
      %cst_9 = arith.constant 0.000000e+00 : f32
      %12 = vector.broadcast %cst_9 : f32 to vector<8x256xf32>
      %c0_10 = arith.constant 0 : index
      %c0_11 = arith.constant 0 : index
      %13 = vector.load %arg7[%c0_10, %c0_11] : memref<8x256xf32, #tpu.memory_space<vmem>>, vector<8x256xf32>
      tpu.vector_store %arg7[%c0_10, %c0_11], %12 {strides = array<i32>} : memref<8x256xf32, #tpu.memory_space<vmem>>, vector<8x256xf32>,
    } else {
    }
    %c0 = arith.constant 0 : index
    %c0_1 = arith.constant 0 : index
    %3 = vector.load %arg7[%c0, %c0_1] : memref<8x256xf32, #tpu.memory_space<vmem>>, vector<8x256xf32>
    %c0_2 = arith.constant 0 : index
    %c0_3 = arith.constant 0 : index
    %4 = vector.load %arg3[%c0_2, %c0_3] : memref<8x768xbf16, #tpu.memory_space<vmem>>, vector<8x768xbf16>
    %c0_4 = arith.constant 0 : index
    %c0_5 = arith.constant 0 : index
    %5 = vector.load %arg4[%c0_4, %c0_5] : memref<768x256xbf16, #tpu.memory_space<vmem>>, vector<768x256xbf16>
    %cst = arith.constant dense<0.000000e+00> : vector<8x256xf32>
    %6 = tpu.matmul %4, %5, %cst {dimension_numbers = #tpu.dot_dimension_numbers<[1], [0], [0], [1], [0, 0, 1, 1], [], []>} : vector<8x768xbf16>, vector<768x256xbf16>, vector<8x256xf32> -> vector<8x256xf32>
    %7 = arith.addf %3, %6 : vector<8x256xf32>
    %c0_6 = arith.constant 0 : index
    %c0_7 = arith.constant 0 : index
    %8 = vector.load %arg7[%c0_6, %c0_7] : memref<8x256xf32, #tpu.memory_space<vmem>>, vector<8x256xf32>
    tpu.vector_store %arg7[%c0_6, %c0_7], %7 {strides = array<i32>} : memref<8x256xf32, #tpu.memory_space<vmem>>, vector<8x256xf32>,
    %c5_i32 = arith.constant 5 : i32
    %9 = arith.cmpi eq, %arg2, %c5_i32 : i32
    %10 = arith.extui %9 : i1 to i32
    %c0_i32_8 = arith.constant 0 : i32
    %11 = arith.cmpi ne, %10, %c0_i32_8 : i32
    scf.if %11 {
      %c0_9 = arith.constant 0 : index
      %c0_10 = arith.constant 0 : index
      %12 = vector.load %arg7[%c0_9, %c0_10] : memref<8x256xf32, #tpu.memory_space<vmem>>, vector<8x256xf32>
      %c0_11 = arith.constant 0 : index
      %c0_12 = arith.constant 0 : index
      %13 = vector.load %arg5[%c0_11, %c0_12] : memref<1x256xf32, #tpu.memory_space<vmem>>, vector<1x256xf32>
      %14 = vector.broadcast %13 : vector<1x256xf32> to vector<8x256xf32>
      %15 = arith.addf %12, %14 : vector<8x256xf32>
      %cst_13 = arith.constant 0.000000e+00 : f32
      %16 = vector.broadcast %cst_13 : f32 to vector<8x256xf32>
      %17 = arith.maximumf %15, %16 : vector<8x256xf32>
      %c0_14 = arith.constant 0 : index
      %c0_15 = arith.constant 0 : index
      %18 = vector.load %arg6[%c0_14, %c0_15] : memref<8x256xf32, #tpu.memory_space<vmem>>, vector<8x256xf32>
      tpu.vector_store %arg6[%c0_14, %c0_15], %17 {strides = array<i32>} : memref<8x256xf32, #tpu.memory_space<vmem>>, vector<8x256xf32>,
    } else {
    }
    return
  }
  func.func @transform_0(%arg0: i32, %arg1: i32, %arg2: i32) -> (i32, i32) {
    %c0_i32 = arith.constant 0 : i32
    return %arg0, %arg2 : i32, i32
  }
  func.func @transform_1(%arg0: i32, %arg1: i32, %arg2: i32) -> (i32, i32) {
    %c0_i32 = arith.constant 0 : i32
    return %arg2, %arg1 : i32, i32
  }
  func.func @transform_2(%arg0: i32, %arg1: i32, %arg2: i32) -> (i32, i32) {
    %c0_i32 = arith.constant 0 : i32
    %c0_i32_0 = arith.constant 0 : i32
    return %c0_i32, %arg1 : i32, i32
  }
  func.func @transform_3(%arg0: i32, %arg1: i32, %arg2: i32) -> (i32, i32) {
    %c0_i32 = arith.constant 0 : i32
    return %arg0, %arg1 : i32, i32
  }
}

module attributes {stable_mosaic.version = 11 : i64} {
  func.func @_avgpool_kernel(%arg0: memref<2x1x512xf32, #tpu.memory_space<vmem>>, %arg1: memref<2x512xf32, #tpu.memory_space<vmem>>) attributes {dimension_semantics = [], scalar_prefetch = 0 : i64, scratch_operands = 0 : i64, tpu.core_type = #tpu.core_type<tc>} {
    %c0 = arith.constant 0 : index
    %c0_0 = arith.constant 0 : index
    %c0_1 = arith.constant 0 : index
    %0 = vector.load %arg0[%c0, %c0_0, %c0_1] : memref<2x1x512xf32, #tpu.memory_space<vmem>>, vector<2x1x512xf32>
    %cst = arith.constant dense<0.000000e+00> : vector<2x512xf32>
    %1 = vector.multi_reduction <add>, %0, %cst [1] : vector<2x1x512xf32> to vector<2x512xf32>
    %cst_2 = arith.constant 1.000000e+00 : f32
    %2 = vector.broadcast %cst_2 : f32 to vector<2x512xf32>
    %3 = arith.divf %1, %2 : vector<2x512xf32>
    %c0_3 = arith.constant 0 : index
    %c0_4 = arith.constant 0 : index
    %4 = vector.load %arg1[%c0_3, %c0_4] : memref<2x512xf32, #tpu.memory_space<vmem>>, vector<2x512xf32>
    tpu.vector_store %arg1[%c0_3, %c0_4], %3 {strides = array<i32>} : memref<2x512xf32, #tpu.memory_space<vmem>>, vector<2x512xf32>,
    return
  }
}

</mosaic_0001>

<bundles_post_ra>
// kernel: backbone_forward.23
= control target key start
LH: loop header
LB: loop body
LE: loop exit
PB: predicated region body
PF: predicated region fallthrough
CT: control target
= control target key end

     0   :  { %s470_s0 = inlined_call_operand.vmem [shape: f32[16,512], index: 0, kind: input, shape index: {}]   ;;  %s471_s1 = inlined_call_operand.vmem [shape: f32[16,512], index: 1, kind: input, shape index: {}]   ;;  %s472_s2 = inlined_call_operand.vmem [shape: f32[16,512], index: 2, kind: input, shape index: {}]   ;;  %s473_s3 = inlined_call_operand.vmem [shape: f32[16,512], index: 3, kind: input, shape index: {}]   ;;  %s474_s4 = inlined_call_operand.vmem [shape: f32[16,512], index: 4, kind: input, shape index: {}]   ;;  %s475_s5 = inlined_call_operand.vmem [shape: f32[16,512], index: 5, kind: input, shape index: {}]   ;;  %s476_s6 = inlined_call_operand.vmem [shape: f32[16,512], index: 6, kind: input, shape index: {}]   ;;  %s477_s7 = inlined_call_operand.vmem [shape: f32[16,512], index: 7, kind: input, shape index: {}]   ;;  %s478_s8 = inlined_call_operand.vmem [shape: f32[16,512], index: 8, kind: input, shape index: {}]   ;;  %s479_s9 = inlined_call_operand.vmem [shape: f32[16,512], index: 9, kind: output, shape index: {}]  }
   0x1   :  { %v32_v0 = vld [vmem:[%s470_s0] sm:$0xff]  ;;  %v33_v12 = vld [vmem:[%s470_s0 + $0x8] sm:$0xff]  ;;  %v34_v27 = vld [vmem:[%s470_s0 + $0x10] sm:$0xff] }
   0x2   :  { %v40_v1 = vld [vmem:[%s471_s1] sm:$0xff]  ;;  %v41_v13 = vld [vmem:[%s471_s1 + $0x8] sm:$0xff]  ;;  %v42_v28 = vld [vmem:[%s471_s1 + $0x10] sm:$0xff] }
   0x3   :  { %v56_v2 = vld [vmem:[%s472_s2] sm:$0xff]  ;;  %v48_v3 = vmax.f32 %v32_v0, %v40_v1  ;;  %v57_v14 = vld [vmem:[%s472_s2 + $0x8] sm:$0xff]  ;;  %v49_v16 = vmax.f32 %v33_v12, %v41_v13  ;;  %v58_v29 = vld [vmem:[%s472_s2 + $0x10] sm:$0xff]  ;;  %v50_v32 = vmax.f32 %v34_v27, %v42_v28 }
   0x4   :  { %v64_v4 = vld [vmem:[%s473_s3] sm:$0xff]  ;;  %v65_v17 = vld [vmem:[%s473_s3 + $0x8] sm:$0xff]  ;;  %v66_v33 = vld [vmem:[%s473_s3 + $0x10] sm:$0xff] }
   0x5   :  { %v80_v5 = vld [vmem:[%s474_s4] sm:$0xff]  ;;  %v72_v7 = vmax.f32 %v56_v2, %v64_v4  ;;  %v81_v18 = vld [vmem:[%s474_s4 + $0x8] sm:$0xff]  ;;  %v73_v22 = vmax.f32 %v57_v14, %v65_v17  ;;  %v82_v34 = vld [vmem:[%s474_s4 + $0x10] sm:$0xff]  ;;  %v74_v38 = vmax.f32 %v58_v29, %v66_v33 }
   0x6   :  { %v88_v6 = vld [vmem:[%s475_s5] sm:$0xff]  ;;  %v89_v19 = vld [vmem:[%s475_s5 + $0x8] sm:$0xff]  ;;  %v90_v35 = vld [vmem:[%s475_s5 + $0x10] sm:$0xff] }
   0x7   :  { %v96_v8 = vmax.f32 %v80_v5, %v88_v6  ;;  %v104_v9 = vld [vmem:[%s476_s6] sm:$0xff]  ;;  %v128_v15 = vmax.f32 %v48_v3, %v72_v7  ;;  %v97_v23 = vmax.f32 %v81_v18, %v89_v19  ;;  %v105_v24 = vld [vmem:[%s476_s6 + $0x8] sm:$0xff]  ;;  %v129_v31 = vmax.f32 %v49_v16, %v73_v22  ;;  %v106_v40 = vld [vmem:[%s476_s6 + $0x10] sm:$0xff] }
   0x8   :  { %v112_v10 = vld [vmem:[%s477_s7] sm:$0xff]  ;;  %v113_v25 = vld [vmem:[%s477_s7 + $0x8] sm:$0xff]  ;;  %v98_v39 = vmax.f32 %v82_v34, %v90_v35  ;;  %v114_v41 = vld [vmem:[%s477_s7 + $0x10] sm:$0xff]  ;;  %v130_v48 = vmax.f32 %v50_v32, %v74_v38 }
   0x9   :  { %v120_v11 = vmax.f32 %v104_v9, %v112_v10  ;;  %v152_v21 = vld [vmem:[%s478_s8] sm:$0xff]  ;;  %v121_v26 = vmax.f32 %v105_v24, %v113_v25  ;;  %v153_v37 = vld [vmem:[%s478_s8 + $0x8] sm:$0xff]  ;;  %v122_v43 = vmax.f32 %v106_v40, %v114_v41  ;;  %v35_v44 = vld [vmem:[%s470_s0 + $0x18] sm:$0xff] }
   0xa   :  { %v43_v45 = vld [vmem:[%s471_s1 + $0x18] sm:$0xff]  ;;  %v154_v54 = vld [vmem:[%s478_s8 + $0x10] sm:$0xff]  ;;  %v36_v61 = vld [vmem:[%s470_s0 + $0x20] sm:$0xff] }
   0xb   :  { %v136_v20 = vmax.f32 %v96_v8, %v120_v11  ;;  %v137_v36 = vmax.f32 %v97_v23, %v121_v26  ;;  %v59_v46 = vld [vmem:[%s472_s2 + $0x18] sm:$0xff]  ;;  %v51_v49 = vmax.f32 %v35_v44, %v43_v45  ;;  %v138_v53 = vmax.f32 %v98_v39, %v122_v43  ;;  %v44_v62 = vld [vmem:[%s471_s1 + $0x20] sm:$0xff]  ;;  %v37_v14 = vld [vmem:[%s470_s0 + $0x28] sm:$0xff] }
   0xc   :  { %v67_v50 = vld [vmem:[%s473_s3 + $0x18] sm:$0xff]  ;;  %v60_v63 = vld [vmem:[%s472_s2 + $0x20] sm:$0xff]  ;;  %v52_v2 = vmax.f32 %v36_v61, %v44_v62  ;;  %v61_v16 = vld [vmem:[%s472_s2 + $0x28] sm:$0xff] }
   0xd   :  { %v144_v30 = vmax.f32 %v128_v15, %v136_v20  ;;  %v145_v47 = vmax.f32 %v129_v31, %v137_v36  ;;  %v83_v51 = vld [vmem:[%s474_s4 + $0x18] sm:$0xff]  ;;  %v75_v55 = vmax.f32 %v59_v46, %v67_v50  ;;  %v146_v0 = vmax.f32 %v130_v48, %v138_v53  ;;  %v68_v3 = vld [vmem:[%s473_s3 + $0x20] sm:$0xff]  ;;  %v45_v15 = vld [vmem:[%s471_s1 + $0x28] sm:$0xff] }
   0xe   :  { %v91_v52 = vld [vmem:[%s475_s5 + $0x18] sm:$0xff]  ;;  %v84_v4 = vld [vmem:[%s474_s4 + $0x20] sm:$0xff]  ;;  %v76_v8 = vmax.f32 %v60_v63, %v68_v3  ;;  %v53_v19 = vmax.f32 %v37_v14, %v45_v15  ;;  %v69_v20 = vld [vmem:[%s473_s3 + $0x28] sm:$0xff] }
   0xf   :  { %v160_v42 = vmax.f32 %v144_v30, %v152_v21  ;;  %v99_v56 = vmax.f32 %v83_v51, %v91_v52  ;;  %v107_v57 = vld [vmem:[%s476_s6 + $0x18] sm:$0xff]  ;;  %v161_v59 = vmax.f32 %v145_v47, %v153_v37  ;;  %v131_v1 = vmax.f32 %v51_v49, %v75_v55  ;;  %v92_v5 = vld [vmem:[%s475_s5 + $0x20] sm:$0xff]  ;;  %v85_v21 = vld [vmem:[%s474_s4 + $0x28] sm:$0xff] }
  0x10   :  { %v115_v58 = vld [vmem:[%s477_s7 + $0x18] sm:$0xff]  ;;  %v100_v9 = vmax.f32 %v84_v4, %v92_v5  ;;  %v108_v10 = vld [vmem:[%s476_s6 + $0x20] sm:$0xff]  ;;  %v162_v12 = vmax.f32 %v146_v0, %v154_v54  ;;  %v132_v18 = vmax.f32 %v52_v2, %v76_v8  ;;  %v93_v22 = vld [vmem:[%s475_s5 + $0x28] sm:$0xff]  ;;  %v77_v25 = vmax.f32 %v61_v16, %v69_v20 }
  0x11   :  { %168 = vst [vmem:[%s479_s9] sm:$0xff] %v160_v42  ;;  %v123_v60 = vmax.f32 %v107_v57, %v115_v58  ;;  %169 = vst [vmem:[%s479_s9 + $0x8] sm:$0xff] %v161_v59  ;;  %v155_v7 = vld [vmem:[%s478_s8 + $0x18] sm:$0xff]  ;;  %v116_v11 = vld [vmem:[%s477_s7 + $0x20] sm:$0xff]  ;;  %v101_v26 = vmax.f32 %v85_v21, %v93_v22 }
  0x12   :  { %v124_v13 = vmax.f32 %v108_v10, %v116_v11  ;;  %170 = vst [vmem:[%s479_s9 + $0x10] sm:$0xff] %v162_v12  ;;  %v156_v24 = vld [vmem:[%s478_s8 + $0x20] sm:$0xff]  ;;  %v109_v27 = vld [vmem:[%s476_s6 + $0x28] sm:$0xff]  ;;  %v38_v31 = vld [vmem:[%s470_s0 + $0x30] sm:$0xff]  ;;  %v133_v35 = vmax.f32 %v53_v19, %v77_v25 }
  0x13   :  { %v139_v6 = vmax.f32 %v99_v56, %v123_v60  ;;  %v117_v28 = vld [vmem:[%s477_s7 + $0x28] sm:$0xff]  ;;  %v46_v32 = vld [vmem:[%s471_s1 + $0x30] sm:$0xff]  ;;  %v39_v48 = vld [vmem:[%s470_s0 + $0x38] sm:$0xff] }
  0x14   :  { %v140_v23 = vmax.f32 %v100_v9, %v124_v13  ;;  %v125_v30 = vmax.f32 %v109_v27, %v117_v28  ;;  %v62_v33 = vld [vmem:[%s472_s2 + $0x30] sm:$0xff]  ;;  %v54_v36 = vmax.f32 %v38_v31, %v46_v32  ;;  %v157_v41 = vld [vmem:[%s478_s8 + $0x28] sm:$0xff]  ;;  %v47_v49 = vld [vmem:[%s471_s1 + $0x38] sm:$0xff] }
  0x15   :  { %v147_v17 = vmax.f32 %v131_v1, %v139_v6  ;;  %v70_v37 = vld [vmem:[%s473_s3 + $0x30] sm:$0xff]  ;;  %v63_v50 = vld [vmem:[%s472_s2 + $0x38] sm:$0xff]  ;;  %v55_v53 = vmax.f32 %v39_v48, %v47_v49 }
  0x16   :  { %v148_v34 = vmax.f32 %v132_v18, %v140_v23  ;;  %v86_v38 = vld [vmem:[%s474_s4 + $0x30] sm:$0xff]  ;;  %v141_v40 = vmax.f32 %v101_v26, %v125_v30  ;;  %v78_v42 = vmax.f32 %v62_v33, %v70_v37  ;;  %v71_v54 = vld [vmem:[%s473_s3 + $0x38] sm:$0xff] }
  0x17   :  { %v163_v29 = vmax.f32 %v147_v17, %v155_v7  ;;  %v94_v39 = vld [vmem:[%s475_s5 + $0x30] sm:$0xff]  ;;  %v87_v55 = vld [vmem:[%s474_s4 + $0x38] sm:$0xff]  ;;  %v79_v58 = vmax.f32 %v63_v50, %v71_v54 }
  0x18   :  { %v102_v43 = vmax.f32 %v86_v38, %v94_v39  ;;  %v110_v44 = vld [vmem:[%s476_s6 + $0x30] sm:$0xff]  ;;  %v164_v46 = vmax.f32 %v148_v34, %v156_v24  ;;  %v149_v51 = vmax.f32 %v133_v35, %v141_v40  ;;  %v134_v52 = vmax.f32 %v54_v36, %v78_v42  ;;  %v95_v56 = vld [vmem:[%s475_s5 + $0x38] sm:$0xff] }
  0x19   :  { %171 = vst [vmem:[%s479_s9 + $0x18] sm:$0xff] %v163_v29  ;;  %v118_v45 = vld [vmem:[%s477_s7 + $0x30] sm:$0xff]  ;;  %v103_v59 = vmax.f32 %v87_v55, %v95_v56  ;;  %v111_v60 = vld [vmem:[%s476_s6 + $0x38] sm:$0xff]  ;;  %v135_v2 = vmax.f32 %v55_v53, %v79_v58 }
  0x1a   :  { %v126_v47 = vmax.f32 %v110_v44, %v118_v45  ;;  %172 = vst [vmem:[%s479_s9 + $0x20] sm:$0xff] %v164_v46  ;;  %v119_v61 = vld [vmem:[%s477_s7 + $0x38] sm:$0xff]  ;;  %v165_v62 = vmax.f32 %v149_v51, %v157_v41  ;;  %v158_v63 = vld [vmem:[%s478_s8 + $0x30] sm:$0xff] }
  0x1b   :  { %v127_v0 = vmax.f32 %v111_v60, %v119_v61  ;;  %v159_v5 = vld [vmem:[%s478_s8 + $0x38] sm:$0xff] }
  0x1c   :  { %v142_v57 = vmax.f32 %v102_v43, %v126_v47  ;;  %173 = vst [vmem:[%s479_s9 + $0x28] sm:$0xff] %v165_v62 }
  0x1d   :  { %v143_v3 = vmax.f32 %v103_v59, %v127_v0 }
  0x1e   :  { %v150_v1 = vmax.f32 %v134_v52, %v142_v57 }
  0x1f   :  { %v151_v6 = vmax.f32 %v135_v2, %v143_v3 }
  0x20   :  { %v166_v4 = vmax.f32 %v150_v1, %v158_v63 }
  0x21   :  { %v167_v7 = vmax.f32 %v151_v6, %v159_v5 }
  0x22   :  { %174 = vst [vmem:[%s479_s9 + $0x30] sm:$0xff] %v166_v4 }
  0x23   :  { %175 = vst [vmem:[%s479_s9 + $0x38] sm:$0xff] %v167_v7 }

// kernel: backbone_forward.22
= control target key start
LH: loop header
LB: loop body
LE: loop exit
PB: predicated region body
PF: predicated region fallthrough
CT: control target
= control target key end

     0   :  { %v1572_v0 = vmov 0   ;;  %s2126_s1 = inlined_call_operand.vmem [shape: bf16[256,128], index: 1, kind: input, shape index: {}]   ;;  %s2127_s0 = inlined_call_operand.vmem [shape: bf16[512,256], index: 0, kind: input, shape index: {}]   ;;  %s2128_s2 = inlined_call_operand.vmem [shape: f32[1,128], index: 2, kind: input, shape index: {}]   ;;  %s2129_s3 = inlined_call_operand.vmem [shape: f32[512,128], index: 3, kind: output, shape index: {}]  }
   0x1   :  { %659 = vmatprep.subr.bf16.mxu0 %v1572_v0  ;;  %1427 = vmatprep.subr.bf16.mxu1 %v1572_v0  ;;  %v1460_v1 = vld [vmem:[%s2126_s1] sm:$0xff]   ;;  %v1461_v2 = vld [vmem:[%s2126_s1 + $0x8] sm:$0xff]   ;;  %v1462_v3 = vld [vmem:[%s2126_s1 + $0x10] sm:$0xff]  }
   0x2   :  { %660 = vmatpush1.bf16.msra.mxu0 %v1460_v1  ;;  %1443 = vmatpush1.bf16.msra.mxu1 %v1460_v1  ;;  %v1463_v4 = vld [vmem:[%s2126_s1 + $0x18] sm:$0xff]   ;;  %v1464_v5 = vld [vmem:[%s2126_s1 + $0x20] sm:$0xff]   ;;  %v1465_v7 = vld [vmem:[%s2126_s1 + $0x28] sm:$0xff]  }
   0x3   :  { %661 = vmatprep.subr.bf16.mxu0 %v1572_v0  ;;  %1428 = vmatprep.subr.bf16.mxu1 %v1572_v0  ;;  %v1478_v6 = vld [vmem:[%s2127_s0 + $0x4] ss:$8 sps:$4 sm:$0xff]   ;;  %v1466_v9 = vld [vmem:[%s2126_s1 + $0x30] sm:$0xff]   ;;  %v1467_v10 = vld [vmem:[%s2126_s1 + $0x38] sm:$0xff]  }
   0x4   :  { %v1481_v8 = vld [vmem:[%s2127_s0 + $0x104] ss:$8 sps:$4 sm:$0xff]   ;;  %691 = vmatprep.mubr.bf16.mxu0 %v1478_v6  ;;  %v1470_v13 = vld [vmem:[%s2126_s1 + $0x50] sm:$0xff]   ;;  %v1471_v14 = vld [vmem:[%s2126_s1 + $0x58] sm:$0xff]  }
   0x5   :  { %819 = vmatprep.mubr.bf16.mxu1 %v1481_v8  ;;  %v1468_v11 = vld [vmem:[%s2126_s1 + $0x40] sm:$0xff]   ;;  %v1469_v12 = vld [vmem:[%s2126_s1 + $0x48] sm:$0xff]   ;;  %v1474_v17 = vld [vmem:[%s2126_s1 + $0x70] sm:$0xff]  }
   0x6   :  { %662 = vmatpush1.bf16.msra.mxu0 %v1461_v2  ;;  %1444 = vmatpush1.bf16.msra.mxu1 %v1461_v2  ;;  %v1472_v15 = vld [vmem:[%s2126_s1 + $0x60] sm:$0xff]   ;;  %v1473_v16 = vld [vmem:[%s2126_s1 + $0x68] sm:$0xff]   ;;  %v1475_v18 = vld [vmem:[%s2126_s1 + $0x78] sm:$0xff]  }
   0x7   :  { %663 = vmatprep.subr.bf16.mxu0 %v1572_v0  ;;  %1429 = vmatprep.subr.bf16.mxu1 %v1572_v0  ;;  %v1476_v19 = vld [vmem:[%s2127_s0] ss:$8 sps:$4 sm:$0xff]   ;;  %v1482_v21 = vld [vmem:[%s2127_s0 + $0x14] ss:$8 sps:$4 sm:$0xff]   ;;  %v1486_v23 = vld [vmem:[%s2127_s0 + $0x10] ss:$8 sps:$4 sm:$0xff]  }
   0x8   :  { %v1479_v20 = vld [vmem:[%s2127_s0 + $0x100] ss:$8 sps:$4 sm:$0xff]   ;;  %v1484_v22 = vld [vmem:[%s2127_s0 + $0x114] ss:$8 sps:$4 sm:$0xff]   ;;  %v1487_v24 = vld [vmem:[%s2127_s0 + $0x110] ss:$8 sps:$4 sm:$0xff]  }
   0x9   :  { %v1488_v25 = vld [vmem:[%s2127_s0 + $0x24] ss:$8 sps:$4 sm:$0xff]   ;;  %v1492_v27 = vld [vmem:[%s2127_s0 + $0x20] ss:$8 sps:$4 sm:$0xff]   ;;  %v1494_v29 = vld [vmem:[%s2127_s0 + $0x34] ss:$8 sps:$4 sm:$0xff]  }
   0xa   :  { %664 = vmatpush1.bf16.msra.mxu0 %v1462_v3  ;;  %1445 = vmatpush1.bf16.msra.mxu1 %v1462_v3  ;;  %v1490_v26 = vld [vmem:[%s2127_s0 + $0x124] ss:$8 sps:$4 sm:$0xff]   ;;  %v1493_v28 = vld [vmem:[%s2127_s0 + $0x120] ss:$8 sps:$4 sm:$0xff]   ;;  %v1496_v30 = vld [vmem:[%s2127_s0 + $0x134] ss:$8 sps:$4 sm:$0xff]  }
   0xb   :  { %665 = vmatprep.subr.bf16.mxu0 %v1572_v0  ;;  %1430 = vmatprep.subr.bf16.mxu1 %v1572_v0  ;;  %v1498_v31 = vld [vmem:[%s2127_s0 + $0x30] ss:$8 sps:$4 sm:$0xff]   ;;  %v1500_v33 = vld [vmem:[%s2127_s0 + $0x44] ss:$8 sps:$4 sm:$0xff]   ;;  %v1504_v35 = vld [vmem:[%s2127_s0 + $0x40] ss:$8 sps:$4 sm:$0xff]  }
   0xc   :  { %v1499_v32 = vld [vmem:[%s2127_s0 + $0x130] ss:$8 sps:$4 sm:$0xff]   ;;  %v1502_v34 = vld [vmem:[%s2127_s0 + $0x144] ss:$8 sps:$4 sm:$0xff]   ;;  %v1505_v36 = vld [vmem:[%s2127_s0 + $0x140] ss:$8 sps:$4 sm:$0xff]  }
   0xd   :  { %v1506_v37 = vld [vmem:[%s2127_s0 + $0x54] ss:$8 sps:$4 sm:$0xff]   ;;  %v1510_v39 = vld [vmem:[%s2127_s0 + $0x50] ss:$8 sps:$4 sm:$0xff]   ;;  %v1512_v41 = vld [vmem:[%s2127_s0 + $0x64] ss:$8 sps:$4 sm:$0xff]  }
   0xe   :  { %666 = vmatpush1.bf16.msra.mxu0 %v1463_v4  ;;  %1446 = vmatpush1.bf16.msra.mxu1 %v1463_v4  ;;  %v1508_v38 = vld [vmem:[%s2127_s0 + $0x154] ss:$8 sps:$4 sm:$0xff]   ;;  %v1511_v40 = vld [vmem:[%s2127_s0 + $0x150] ss:$8 sps:$4 sm:$0xff]   ;;  %v1514_v42 = vld [vmem:[%s2127_s0 + $0x164] ss:$8 sps:$4 sm:$0xff]  }
   0xf   :  { %667 = vmatprep.subr.bf16.mxu0 %v1572_v0  ;;  %1431 = vmatprep.subr.bf16.mxu1 %v1572_v0  ;;  %v1516_v43 = vld [vmem:[%s2127_s0 + $0x60] ss:$8 sps:$4 sm:$0xff]   ;;  %v1518_v45 = vld [vmem:[%s2127_s0 + $0x74] ss:$8 sps:$4 sm:$0xff]   ;;  %v1522_v47 = vld [vmem:[%s2127_s0 + $0x70] ss:$8 sps:$4 sm:$0xff]  }
  0x10   :  { %v1517_v44 = vld [vmem:[%s2127_s0 + $0x160] ss:$8 sps:$4 sm:$0xff]   ;;  %v1520_v46 = vld [vmem:[%s2127_s0 + $0x174] ss:$8 sps:$4 sm:$0xff]   ;;  %v1523_v48 = vld [vmem:[%s2127_s0 + $0x170] ss:$8 sps:$4 sm:$0xff]  }
  0x11   :  { %v1524_v49 = vld [vmem:[%s2127_s0 + $0x84] ss:$8 sps:$4 sm:$0xff]   ;;  %v1528_v51 = vld [vmem:[%s2127_s0 + $0x80] ss:$8 sps:$4 sm:$0xff]   ;;  %v1530_v53 = vld [vmem:[%s2127_s0 + $0x94] ss:$8 sps:$4 sm:$0xff]  }
  0x12   :  { %668 = vmatpush1.bf16.msra.mxu0 %v1464_v5  ;;  %1447 = vmatpush1.bf16.msra.mxu1 %v1464_v5  ;;  %v1526_v50 = vld [vmem:[%s2127_s0 + $0x184] ss:$8 sps:$4 sm:$0xff]   ;;  %v1529_v52 = vld [vmem:[%s2127_s0 + $0x180] ss:$8 sps:$4 sm:$0xff]   ;;  %v1532_v54 = vld [vmem:[%s2127_s0 + $0x194] ss:$8 sps:$4 sm:$0xff]  }
  0x13   :  { %669 = vmatprep.subr.bf16.mxu0 %v1572_v0  ;;  %1432 = vmatprep.subr.bf16.mxu1 %v1572_v0  ;;  %v1534_v55 = vld [vmem:[%s2127_s0 + $0x90] ss:$8 sps:$4 sm:$0xff]   ;;  %v1536_v57 = vld [vmem:[%s2127_s0 + $0xa4] ss:$8 sps:$4 sm:$0xff]   ;;  %v1540_v59 = vld [vmem:[%s2127_s0 + $0xa0] ss:$8 sps:$4 sm:$0xff]  }
  0x14   :  { %v1535_v56 = vld [vmem:[%s2127_s0 + $0x190] ss:$8 sps:$4 sm:$0xff]   ;;  %v1538_v58 = vld [vmem:[%s2127_s0 + $0x1a4] ss:$8 sps:$4 sm:$0xff]   ;;  %v1541_v60 = vld [vmem:[%s2127_s0 + $0x1a0] ss:$8 sps:$4 sm:$0xff]  }
  0x15   :  { %v1542_v61 = vld [vmem:[%s2127_s0 + $0xb4] ss:$8 sps:$4 sm:$0xff]   ;;  %v1546_v63 = vld [vmem:[%s2127_s0 + $0xb0] ss:$8 sps:$4 sm:$0xff]   ;;  %v1548_v1 = vld [vmem:[%s2127_s0 + $0xc4] ss:$8 sps:$4 sm:$0xff]  }
  0x16   :  { %670 = vmatpush1.bf16.msra.mxu0 %v1465_v7  ;;  %1448 = vmatpush1.bf16.msra.mxu1 %v1465_v7  ;;  %v1544_v62 = vld [vmem:[%s2127_s0 + $0x1b4] ss:$8 sps:$4 sm:$0xff]   ;;  %v1550_v2 = vld [vmem:[%s2127_s0 + $0x1c4] ss:$8 sps:$4 sm:$0xff]   ;;  %v1552_v3 = vld [vmem:[%s2127_s0 + $0xc0] ss:$8 sps:$4 sm:$0xff]  }
  0x17   :  { %671 = vmatprep.subr.bf16.mxu0 %v1572_v0  ;;  %1433 = vmatprep.subr.bf16.mxu1 %v1572_v0  ;;  %v1553_v4 = vld [vmem:[%s2127_s0 + $0x1c0] ss:$8 sps:$4 sm:$0xff]   ;;  %v1554_v5 = vld [vmem:[%s2127_s0 + $0xd4] ss:$8 sps:$4 sm:$0xff]   ;;  %v1558_v7 = vld [vmem:[%s2127_s0 + $0xd0] ss:$8 sps:$4 sm:$0xff]  }
  0x18   :  { %v1556_v6 = vld [vmem:[%s2127_s0 + $0x1d4] ss:$8 sps:$4 sm:$0xff]   ;;  %v1559_v8 = vld [vmem:[%s2127_s0 + $0x1d0] ss:$8 sps:$4 sm:$0xff]  }
  0x1a   :  { %672 = vmatpush1.bf16.msra.mxu0 %v1466_v9  ;;  %1449 = vmatpush1.bf16.msra.mxu1 %v1466_v9  ;;  %v1560_v9 = vld [vmem:[%s2127_s0 + $0xe4] ss:$8 sps:$4 sm:$0xff]  }
  0x1b   :  { %673 = vmatprep.subr.bf16.mxu0 %v1572_v0  ;;  %1434 = vmatprep.subr.bf16.mxu1 %v1572_v0 }
  0x1e   :  { %674 = vmatpush1.bf16.msra.mxu0 %v1467_v10  ;;  %1450 = vmatpush1.bf16.msra.mxu1 %v1467_v10  ;;  %v1562_v10 = vld [vmem:[%s2127_s0 + $0x1e4] ss:$8 sps:$4 sm:$0xff]  }
  0x1f   :  { %675 = vmatprep.subr.bf16.mxu0 %v1572_v0  ;;  %1435 = vmatprep.subr.bf16.mxu1 %v1572_v0 }
  0x22   :  { %676 = vmatpush1.bf16.msra.mxu0 %v1468_v11  ;;  %1451 = vmatpush1.bf16.msra.mxu1 %v1468_v11  ;;  %v1564_v11 = vld [vmem:[%s2127_s0 + $0xe0] ss:$8 sps:$4 sm:$0xff]  }
  0x23   :  { %677 = vmatprep.subr.bf16.mxu0 %v1572_v0  ;;  %1436 = vmatprep.subr.bf16.mxu1 %v1572_v0 }
  0x26   :  { %678 = vmatpush1.bf16.msra.mxu0 %v1469_v12  ;;  %1452 = vmatpush1.bf16.msra.mxu1 %v1469_v12  ;;  %v1565_v12 = vld [vmem:[%s2127_s0 + $0x1e0] ss:$8 sps:$4 sm:$0xff]  }
  0x27   :  { %679 = vmatprep.subr.bf16.mxu0 %v1572_v0  ;;  %1437 = vmatprep.subr.bf16.mxu1 %v1572_v0 }
  0x2a   :  { %680 = vmatpush1.bf16.msra.mxu0 %v1470_v13  ;;  %1453 = vmatpush1.bf16.msra.mxu1 %v1470_v13  ;;  %v1566_v13 = vld [vmem:[%s2127_s0 + $0xf4] ss:$8 sps:$4 sm:$0xff]  }
  0x2b   :  { %681 = vmatprep.subr.bf16.mxu0 %v1572_v0  ;;  %1438 = vmatprep.subr.bf16.mxu1 %v1572_v0 }
  0x2e   :  { %682 = vmatpush1.bf16.msra.mxu0 %v1471_v14  ;;  %1454 = vmatpush1.bf16.msra.mxu1 %v1471_v14  ;;  %v1568_v14 = vld [vmem:[%s2127_s0 + $0x1f4] ss:$8 sps:$4 sm:$0xff]  }
  0x2f   :  { %683 = vmatprep.subr.bf16.mxu0 %v1572_v0  ;;  %1439 = vmatprep.subr.bf16.mxu1 %v1572_v0 }
  0x32   :  { %684 = vmatpush1.bf16.msra.mxu0 %v1472_v15  ;;  %1455 = vmatpush1.bf16.msra.mxu1 %v1472_v15  ;;  %v1570_v15 = vld [vmem:[%s2127_s0 + $0xf0] ss:$8 sps:$4 sm:$0xff]  }
  0x33   :  { %685 = vmatprep.subr.bf16.mxu0 %v1572_v0  ;;  %1440 = vmatprep.subr.bf16.mxu1 %v1572_v0 }
  0x36   :  { %686 = vmatpush1.bf16.msra.mxu0 %v1473_v16  ;;  %1456 = vmatpush1.bf16.msra.mxu1 %v1473_v16  ;;  %v1571_v16 = vld [vmem:[%s2127_s0 + $0x1f0] ss:$8 sps:$4 sm:$0xff]  }
  0x37   :  { %687 = vmatprep.subr.bf16.mxu0 %v1572_v0  ;;  %1441 = vmatprep.subr.bf16.mxu1 %v1572_v0 }
  0x3a   :  { %688 = vmatpush1.bf16.msra.mxu0 %v1474_v17  ;;  %1457 = vmatpush1.bf16.msra.mxu1 %v1474_v17  ;;  %v1868_v17 = vld [vmem:[%s2128_s2] ss:$0 sm:$0xff] }
  0x3b   :  { %689 = vmatprep.subr.bf16.mxu0 %v1572_v0  ;;  %1442 = vmatprep.subr.bf16.mxu1 %v1572_v0  ;;  %v1547_v0 = vld [vmem:[%s2127_s0 + $0x1b0] ss:$8 sps:$4 sm:$0xff]  }
  0x3e   :  { %690 = vmatpush1.bf16.msra.mxu0 %v1475_v18  ;;  %1458 = vmatpush1.bf16.msra.mxu1 %v1475_v18 }
  0x41   :  { %692 = vmatmul.mubr.bf16.vlgmr.msra.gmra.mrb[0].mxu0 %v1476_v19  ;;  %820 = vmatmul.mubr.bf16.vlgmr.msra.gmra.mrb[0].mxu1 %v1479_v20 }
  0x42   :  { %699 = vmatprep.mubr.bf16.mxu0 %v1482_v21  ;;  %827 = vmatprep.mubr.bf16.mxu1 %v1484_v22 }
  0x49   :  { %700 = vmatmul.mubr.bf16.gmra.mrb[4].mxu0 %v1486_v23  ;;  %828 = vmatmul.mubr.bf16.gmra.mrb[4].mxu1 %v1487_v24 }
  0x4a   :  { %707 = vmatprep.mubr.bf16.mxu0 %v1488_v25  ;;  %835 = vmatprep.mubr.bf16.mxu1 %v1490_v26 }
  0x51   :  { %708 = vmatmul.mubr.bf16.gmra.mrb[8].mxu0 %v1492_v27  ;;  %836 = vmatmul.mubr.bf16.gmra.mrb[8].mxu1 %v1493_v28 }
  0x52   :  { %715 = vmatprep.mubr.bf16.mxu0 %v1494_v29  ;;  %843 = vmatprep.mubr.bf16.mxu1 %v1496_v30 }
  0x59   :  { %716 = vmatmul.mubr.bf16.gmra.mrb[12].mxu0 %v1498_v31  ;;  %844 = vmatmul.mubr.bf16.gmra.mrb[12].mxu1 %v1499_v32 }
  0x5a   :  { %723 = vmatprep.mubr.bf16.mxu0 %v1500_v33  ;;  %851 = vmatprep.mubr.bf16.mxu1 %v1502_v34 }
  0x61   :  { %724 = vmatmul.mubr.bf16.gmra.mrb[16].mxu0 %v1504_v35  ;;  %852 = vmatmul.mubr.bf16.gmra.mrb[16].mxu1 %v1505_v36 }
  0x62   :  { %731 = vmatprep.mubr.bf16.mxu0 %v1506_v37  ;;  %859 = vmatprep.mubr.bf16.mxu1 %v1508_v38 }
  0x69   :  { %732 = vmatmul.mubr.bf16.gmra.mrb[20].mxu0 %v1510_v39  ;;  %860 = vmatmul.mubr.bf16.gmra.mrb[20].mxu1 %v1511_v40 }
  0x6a   :  { %739 = vmatprep.mubr.bf16.mxu0 %v1512_v41  ;;  %867 = vmatprep.mubr.bf16.mxu1 %v1514_v42 }
  0x71   :  { %740 = vmatmul.mubr.bf16.gmra.mrb[24].mxu0 %v1516_v43  ;;  %868 = vmatmul.mubr.bf16.gmra.mrb[24].mxu1 %v1517_v44 }
  0x72   :  { %747 = vmatprep.mubr.bf16.mxu0 %v1518_v45  ;;  %875 = vmatprep.mubr.bf16.mxu1 %v1520_v46 }
  0x79   :  { %748 = vmatmul.mubr.bf16.gmra.mrb[28].mxu0 %v1522_v47  ;;  %876 = vmatmul.mubr.bf16.gmra.mrb[28].mxu1 %v1523_v48 }
  0x7a   :  { %755 = vmatprep.mubr.bf16.mxu0 %v1524_v49  ;;  %883 = vmatprep.mubr.bf16.mxu1 %v1526_v50 }
  0x81   :  { %756 = vmatmul.mubr.bf16.gmra.mrb[32].mxu0 %v1528_v51  ;;  %884 = vmatmul.mubr.bf16.gmra.mrb[32].mxu1 %v1529_v52 }
  0x82   :  { %763 = vmatprep.mubr.bf16.mxu0 %v1530_v53  ;;  %891 = vmatprep.mubr.bf16.mxu1 %v1532_v54 }
  0x89   :  { %764 = vmatmul.mubr.bf16.gmra.mrb[36].mxu0 %v1534_v55  ;;  %892 = vmatmul.mubr.bf16.gmra.mrb[36].mxu1 %v1535_v56 }
  0x8a   :  { %771 = vmatprep.mubr.bf16.mxu0 %v1536_v57  ;;  %899 = vmatprep.mubr.bf16.mxu1 %v1538_v58 }
  0x91   :  { %772 = vmatmul.mubr.bf16.gmra.mrb[40].mxu0 %v1540_v59  ;;  %900 = vmatmul.mubr.bf16.gmra.mrb[40].mxu1 %v1541_v60 }
  0x92   :  { %779 = vmatprep.mubr.bf16.mxu0 %v1542_v61  ;;  %907 = vmatprep.mubr.bf16.mxu1 %v1544_v62 }
  0x99   :  { %780 = vmatmul.mubr.bf16.gmra.mrb[44].mxu0 %v1546_v63  ;;  %908 = vmatmul.mubr.bf16.gmra.mrb[44].mxu1 %v1547_v0 }
  0x9a   :  { %787 = vmatprep.mubr.bf16.mxu0 %v1548_v1  ;;  %915 = vmatprep.mubr.bf16.mxu1 %v1550_v2 }
  0xa1   :  { %788 = vmatmul.mubr.bf16.gmra.mrb[48].mxu0 %v1552_v3  ;;  %916 = vmatmul.mubr.bf16.gmra.mrb[48].mxu1 %v1553_v4 }
  0xa2   :  { %795 = vmatprep.mubr.bf16.mxu0 %v1554_v5  ;;  %923 = vmatprep.mubr.bf16.mxu1 %v1556_v6 }
  0xa9   :  { %796 = vmatmul.mubr.bf16.gmra.mrb[52].mxu0 %v1558_v7  ;;  %924 = vmatmul.mubr.bf16.gmra.mrb[52].mxu1 %v1559_v8 }
  0xaa   :  { %803 = vmatprep.mubr.bf16.mxu0 %v1560_v9  ;;  %931 = vmatprep.mubr.bf16.mxu1 %v1562_v10 }
  0xb1   :  { %804 = vmatmul.mubr.bf16.gmra.mrb[56].mxu0 %v1564_v11  ;;  %932 = vmatmul.mubr.bf16.gmra.mrb[56].mxu1 %v1565_v12 }
  0xb2   :  { %811 = vmatprep.mubr.bf16.mxu0 %v1566_v13  ;;  %939 = vmatprep.mubr.bf16.mxu1 %v1568_v14 }
  0xb9   :  { %812 = vmatmul.mubr.bf16.gmra.mrb[60].mxu0 %v1570_v15  ;;  %940 = vmatmul.mubr.bf16.gmra.mrb[60].mxu1 %v1571_v16 }
 0x114   :  { %v693_v18 = vpop.f32.mrb[0].mxu0  ;;  %v821_v19 = vpop.f32.mrb[0].mxu1 }
 0x115   :  { %v1150_v20 = vadd.f32 %v1868_v17, %v693_v18  ;;  %v1182_v21 = vadd.f32 %v1868_v17, %v821_v19  ;;  %v695_v22 = vpop.f32.mrb[1].mxu0  ;;  %v823_v23 = vpop.f32.mrb[1].mxu1 }
 0x116   :  { %v696_v24 = vpop.f32.mrb[2].mxu0  ;;  %v824_v25 = vpop.f32.mrb[2].mxu1 }
 0x117   :  { %v1214_v26 = vmax.f32 %v1150_v20, 0.0  ;;  %v1246_v27 = vmax.f32 %v1182_v21, 0.0  ;;  %v1151_v28 = vadd.f32 %v1868_v17, %v696_v24  ;;  %v1183_v29 = vadd.f32 %v1868_v17, %v824_v25  ;;  %v698_v30 = vpop.f32.mrb[3].mxu0  ;;  %v826_v31 = vpop.f32.mrb[3].mxu1 }
 0x119   :  { %1278 = vst [vmem:[%s2129_s3] sm:$0xff] %v1214_v26  ;;  %1310 = vst [vmem:[%s2129_s3 + $0x100] sm:$0xff] %v1246_v27  ;;  %v1215_v32 = vmax.f32 %v1151_v28, 0.0  ;;  %v1247_v33 = vmax.f32 %v1183_v29, 0.0 }
 0x11b   :  { %1279 = vst [vmem:[%s2129_s3 + $0x8] sm:$0xff] %v1215_v32  ;;  %1311 = vst [vmem:[%s2129_s3 + $0x108] sm:$0xff] %v1247_v33 }
 0x11c   :  { %v701_v34 = vpop.f32.mrb[4].mxu0  ;;  %v829_v35 = vpop.f32.mrb[4].mxu1 }
 0x11d   :  { %v1152_v36 = vadd.f32 %v1868_v17, %v701_v34  ;;  %v1184_v37 = vadd.f32 %v1868_v17, %v829_v35  ;;  %v703_v38 = vpop.f32.mrb[5].mxu0  ;;  %v831_v39 = vpop.f32.mrb[5].mxu1 }
 0x11e   :  { %v704_v40 = vpop.f32.mrb[6].mxu0  ;;  %v832_v41 = vpop.f32.mrb[6].mxu1 }
 0x11f   :  { %v1216_v42 = vmax.f32 %v1152_v36, 0.0  ;;  %v1248_v43 = vmax.f32 %v1184_v37, 0.0  ;;  %v1153_v44 = vadd.f32 %v1868_v17, %v704_v40  ;;  %v1185_v45 = vadd.f32 %v1868_v17, %v832_v41  ;;  %v706_v46 = vpop.f32.mrb[7].mxu0  ;;  %v834_v47 = vpop.f32.mrb[7].mxu1 }
 0x121   :  { %1280 = vst [vmem:[%s2129_s3 + $0x10] sm:$0xff] %v1216_v42  ;;  %1312 = vst [vmem:[%s2129_s3 + $0x110] sm:$0xff] %v1248_v43  ;;  %v1217_v48 = vmax.f32 %v1153_v44, 0.0  ;;  %v1249_v49 = vmax.f32 %v1185_v45, 0.0 }
 0x123   :  { %1281 = vst [vmem:[%s2129_s3 + $0x18] sm:$0xff] %v1217_v48  ;;  %1313 = vst [vmem:[%s2129_s3 + $0x118] sm:$0xff] %v1249_v49 }
 0x124   :  { %v709_v50 = vpop.f32.mrb[8].mxu0  ;;  %v837_v51 = vpop.f32.mrb[8].mxu1 }
 0x125   :  { %v1154_v52 = vadd.f32 %v1868_v17, %v709_v50  ;;  %v1186_v53 = vadd.f32 %v1868_v17, %v837_v51  ;;  %v711_v54 = vpop.f32.mrb[9].mxu0  ;;  %v839_v55 = vpop.f32.mrb[9].mxu1 }
 0x126   :  { %v712_v56 = vpop.f32.mrb[10].mxu0  ;;  %v840_v57 = vpop.f32.mrb[10].mxu1 }
 0x127   :  { %v1218_v58 = vmax.f32 %v1154_v52, 0.0  ;;  %v1250_v59 = vmax.f32 %v1186_v53, 0.0  ;;  %v1155_v60 = vadd.f32 %v1868_v17, %v712_v56  ;;  %v1187_v61 = vadd.f32 %v1868_v17, %v840_v57  ;;  %v714_v62 = vpop.f32.mrb[11].mxu0  ;;  %v842_v63 = vpop.f32.mrb[11].mxu1 }
 0x129   :  { %1282 = vst [vmem:[%s2129_s3 + $0x20] sm:$0xff] %v1218_v58  ;;  %1314 = vst [vmem:[%s2129_s3 + $0x120] sm:$0xff] %v1250_v59  ;;  %v1219_v0 = vmax.f32 %v1155_v60, 0.0  ;;  %v1251_v1 = vmax.f32 %v1187_v61, 0.0 }
 0x12b   :  { %1283 = vst [vmem:[%s2129_s3 + $0x28] sm:$0xff] %v1219_v0  ;;  %1315 = vst [vmem:[%s2129_s3 + $0x128] sm:$0xff] %v1251_v1 }
 0x12c   :  { %v717_v2 = vpop.f32.mrb[12].mxu0  ;;  %v845_v3 = vpop.f32.mrb[12].mxu1 }
 0x12d   :  { %v1156_v4 = vadd.f32 %v1868_v17, %v717_v2  ;;  %v1188_v5 = vadd.f32 %v1868_v17, %v845_v3  ;;  %v719_v6 = vpop.f32.mrb[13].mxu0  ;;  %v847_v7 = vpop.f32.mrb[13].mxu1 }
 0x12e   :  { %v720_v8 = vpop.f32.mrb[14].mxu0  ;;  %v848_v9 = vpop.f32.mrb[14].mxu1 }
 0x12f   :  { %v1220_v10 = vmax.f32 %v1156_v4, 0.0  ;;  %v1252_v11 = vmax.f32 %v1188_v5, 0.0  ;;  %v1157_v12 = vadd.f32 %v1868_v17, %v720_v8  ;;  %v1189_v13 = vadd.f32 %v1868_v17, %v848_v9  ;;  %v722_v14 = vpop.f32.mrb[15].mxu0  ;;  %v850_v15 = vpop.f32.mrb[15].mxu1 }
 0x131   :  { %1284 = vst [vmem:[%s2129_s3 + $0x30] sm:$0xff] %v1220_v10  ;;  %1316 = vst [vmem:[%s2129_s3 + $0x130] sm:$0xff] %v1252_v11  ;;  %v1221_v16 = vmax.f32 %v1157_v12, 0.0  ;;  %v1253_v18 = vmax.f32 %v1189_v13, 0.0 }
 0x133   :  { %1285 = vst [vmem:[%s2129_s3 + $0x38] sm:$0xff] %v1221_v16  ;;  %1317 = vst [vmem:[%s2129_s3 + $0x138] sm:$0xff] %v1253_v18 }
 0x134   :  { %v725_v19 = vpop.f32.mrb[16].mxu0  ;;  %v853_v20 = vpop.f32.mrb[16].mxu1 }
 0x135   :  { %v1158_v21 = vadd.f32 %v1868_v17, %v725_v19  ;;  %v1190_v22 = vadd.f32 %v1868_v17, %v853_v20  ;;  %v727_v23 = vpop.f32.mrb[17].mxu0  ;;  %v855_v24 = vpop.f32.mrb[17].mxu1 }
 0x136   :  { %v728_v25 = vpop.f32.mrb[18].mxu0  ;;  %v856_v26 = vpop.f32.mrb[18].mxu1 }
 0x137   :  { %v1222_v27 = vmax.f32 %v1158_v21, 0.0  ;;  %v1254_v28 = vmax.f32 %v1190_v22, 0.0  ;;  %v1159_v29 = vadd.f32 %v1868_v17, %v728_v25  ;;  %v1191_v30 = vadd.f32 %v1868_v17, %v856_v26  ;;  %v730_v31 = vpop.f32.mrb[19].mxu0  ;;  %v858_v32 = vpop.f32.mrb[19].mxu1 }
 0x139   :  { %1286 = vst [vmem:[%s2129_s3 + $0x40] sm:$0xff] %v1222_v27  ;;  %1318 = vst [vmem:[%s2129_s3 + $0x140] sm:$0xff] %v1254_v28  ;;  %v1223_v33 = vmax.f32 %v1159_v29, 0.0  ;;  %v1255_v34 = vmax.f32 %v1191_v30, 0.0 }
 0x13b   :  { %1287 = vst [vmem:[%s2129_s3 + $0x48] sm:$0xff] %v1223_v33  ;;  %1319 = vst [vmem:[%s2129_s3 + $0x148] sm:$0xff] %v1255_v34 }
 0x13c   :  { %v733_v35 = vpop.f32.mrb[20].mxu0  ;;  %v861_v36 = vpop.f32.mrb[20].mxu1 }
 0x13d   :  { %v1160_v37 = vadd.f32 %v1868_v17, %v733_v35  ;;  %v1192_v38 = vadd.f32 %v1868_v17, %v861_v36  ;;  %v735_v39 = vpop.f32.mrb[21].mxu0  ;;  %v863_v40 = vpop.f32.mrb[21].mxu1 }
 0x13e   :  { %v736_v41 = vpop.f32.mrb[22].mxu0  ;;  %v864_v42 = vpop.f32.mrb[22].mxu1 }
 0x13f   :  { %v1224_v43 = vmax.f32 %v1160_v37, 0.0  ;;  %v1256_v44 = vmax.f32 %v1192_v38, 0.0  ;;  %v1161_v45 = vadd.f32 %v1868_v17, %v736_v41  ;;  %v1193_v46 = vadd.f32 %v1868_v17, %v864_v42  ;;  %v738_v47 = vpop.f32.mrb[23].mxu0  ;;  %v866_v48 = vpop.f32.mrb[23].mxu1 }
 0x141   :  { %1288 = vst [vmem:[%s2129_s3 + $0x50] sm:$0xff] %v1224_v43  ;;  %1320 = vst [vmem:[%s2129_s3 + $0x150] sm:$0xff] %v1256_v44  ;;  %v1225_v49 = vmax.f32 %v1161_v45, 0.0  ;;  %v1257_v50 = vmax.f32 %v1193_v46, 0.0 }
 0x143   :  { %1289 = vst [vmem:[%s2129_s3 + $0x58] sm:$0xff] %v1225_v49  ;;  %1321 = vst [vmem:[%s2129_s3 + $0x158] sm:$0xff] %v1257_v50 }
 0x144   :  { %v741_v51 = vpop.f32.mrb[24].mxu0  ;;  %v869_v52 = vpop.f32.mrb[24].mxu1 }
 0x145   :  { %v1162_v53 = vadd.f32 %v1868_v17, %v741_v51  ;;  %v1194_v54 = vadd.f32 %v1868_v17, %v869_v52  ;;  %v743_v55 = vpop.f32.mrb[25].mxu0  ;;  %v871_v56 = vpop.f32.mrb[25].mxu1 }
 0x146   :  { %v744_v57 = vpop.f32.mrb[26].mxu0  ;;  %v872_v58 = vpop.f32.mrb[26].mxu1 }
 0x147   :  { %v1226_v59 = vmax.f32 %v1162_v53, 0.0  ;;  %v1258_v60 = vmax.f32 %v1194_v54, 0.0  ;;  %v1163_v61 = vadd.f32 %v1868_v17, %v744_v57  ;;  %v1195_v62 = vadd.f32 %v1868_v17, %v872_v58  ;;  %v746_v63 = vpop.f32.mrb[27].mxu0  ;;  %v874_v0 = vpop.f32.mrb[27].mxu1 }
 0x149   :  { %1290 = vst [vmem:[%s2129_s3 + $0x60] sm:$0xff] %v1226_v59  ;;  %1322 = vst [vmem:[%s2129_s3 + $0x160] sm:$0xff] %v1258_v60  ;;  %v1227_v1 = vmax.f32 %v1163_v61, 0.0  ;;  %v1259_v2 = vmax.f32 %v1195_v62, 0.0 }
 0x14b   :  { %1291 = vst [vmem:[%s2129_s3 + $0x68] sm:$0xff] %v1227_v1  ;;  %1323 = vst [vmem:[%s2129_s3 + $0x168] sm:$0xff] %v1259_v2 }
 0x14c   :  { %v749_v3 = vpop.f32.mrb[28].mxu0  ;;  %v877_v4 = vpop.f32.mrb[28].mxu1 }
 0x14d   :  { %v1164_v5 = vadd.f32 %v1868_v17, %v749_v3  ;;  %v1196_v6 = vadd.f32 %v1868_v17, %v877_v4  ;;  %v751_v7 = vpop.f32.mrb[29].mxu0  ;;  %v879_v8 = vpop.f32.mrb[29].mxu1 }
 0x14e   :  { %v752_v9 = vpop.f32.mrb[30].mxu0  ;;  %v880_v10 = vpop.f32.mrb[30].mxu1 }
 0x14f   :  { %v1228_v11 = vmax.f32 %v1164_v5, 0.0  ;;  %v1260_v12 = vmax.f32 %v1196_v6, 0.0  ;;  %v1165_v13 = vadd.f32 %v1868_v17, %v752_v9  ;;  %v1197_v14 = vadd.f32 %v1868_v17, %v880_v10  ;;  %v754_v15 = vpop.f32.mrb[31].mxu0  ;;  %v882_v16 = vpop.f32.mrb[31].mxu1 }
 0x151   :  { %1292 = vst [vmem:[%s2129_s3 + $0x70] sm:$0xff] %v1228_v11  ;;  %1324 = vst [vmem:[%s2129_s3 + $0x170] sm:$0xff] %v1260_v12  ;;  %v1229_v18 = vmax.f32 %v1165_v13, 0.0  ;;  %v1261_v19 = vmax.f32 %v1197_v14, 0.0 }
 0x153   :  { %1293 = vst [vmem:[%s2129_s3 + $0x78] sm:$0xff] %v1229_v18  ;;  %1325 = vst [vmem:[%s2129_s3 + $0x178] sm:$0xff] %v1261_v19 }
 0x154   :  { %v757_v20 = vpop.f32.mrb[32].mxu0  ;;  %v885_v21 = vpop.f32.mrb[32].mxu1 }
 0x155   :  { %v1166_v22 = vadd.f32 %v1868_v17, %v757_v20  ;;  %v1198_v23 = vadd.f32 %v1868_v17, %v885_v21  ;;  %v759_v24 = vpop.f32.mrb[33].mxu0  ;;  %v887_v25 = vpop.f32.mrb[33].mxu1 }
 0x156   :  { %v760_v26 = vpop.f32.mrb[34].mxu0  ;;  %v888_v27 = vpop.f32.mrb[34].mxu1 }
 0x157   :  { %v1230_v28 = vmax.f32 %v1166_v22, 0.0  ;;  %v1262_v29 = vmax.f32 %v1198_v23, 0.0  ;;  %v1167_v30 = vadd.f32 %v1868_v17, %v760_v26  ;;  %v1199_v31 = vadd.f32 %v1868_v17, %v888_v27  ;;  %v762_v32 = vpop.f32.mrb[35].mxu0  ;;  %v890_v33 = vpop.f32.mrb[35].mxu1 }
 0x159   :  { %1294 = vst [vmem:[%s2129_s3 + $0x80] sm:$0xff] %v1230_v28  ;;  %1326 = vst [vmem:[%s2129_s3 + $0x180] sm:$0xff] %v1262_v29  ;;  %v1231_v34 = vmax.f32 %v1167_v30, 0.0  ;;  %v1263_v35 = vmax.f32 %v1199_v31, 0.0 }
 0x15b   :  { %1295 = vst [vmem:[%s2129_s3 + $0x88] sm:$0xff] %v1231_v34  ;;  %1327 = vst [vmem:[%s2129_s3 + $0x188] sm:$0xff] %v1263_v35 }
 0x15c   :  { %v765_v36 = vpop.f32.mrb[36].mxu0  ;;  %v893_v37 = vpop.f32.mrb[36].mxu1 }
 0x15d   :  { %v1168_v38 = vadd.f32 %v1868_v17, %v765_v36  ;;  %v1200_v39 = vadd.f32 %v1868_v17, %v893_v37  ;;  %v767_v40 = vpop.f32.mrb[37].mxu0  ;;  %v895_v41 = vpop.f32.mrb[37].mxu1 }
 0x15e   :  { %v768_v42 = vpop.f32.mrb[38].mxu0  ;;  %v896_v43 = vpop.f32.mrb[38].mxu1 }
 0x15f   :  { %v1232_v44 = vmax.f32 %v1168_v38, 0.0  ;;  %v1264_v45 = vmax.f32 %v1200_v39, 0.0  ;;  %v1169_v46 = vadd.f32 %v1868_v17, %v768_v42  ;;  %v1201_v47 = vadd.f32 %v1868_v17, %v896_v43  ;;  %v770_v48 = vpop.f32.mrb[39].mxu0  ;;  %v898_v49 = vpop.f32.mrb[39].mxu1 }
 0x161   :  { %1296 = vst [vmem:[%s2129_s3 + $0x90] sm:$0xff] %v1232_v44  ;;  %1328 = vst [vmem:[%s2129_s3 + $0x190] sm:$0xff] %v1264_v45  ;;  %v1233_v50 = vmax.f32 %v1169_v46, 0.0  ;;  %v1265_v51 = vmax.f32 %v1201_v47, 0.0 }
 0x163   :  { %1297 = vst [vmem:[%s2129_s3 + $0x98] sm:$0xff] %v1233_v50  ;;  %1329 = vst [vmem:[%s2129_s3 + $0x198] sm:$0xff] %v1265_v51 }
 0x164   :  { %v773_v52 = vpop.f32.mrb[40].mxu0  ;;  %v901_v53 = vpop.f32.mrb[40].mxu1 }
 0x165   :  { %v1170_v54 = vadd.f32 %v1868_v17, %v773_v52  ;;  %v1202_v55 = vadd.f32 %v1868_v17, %v901_v53  ;;  %v775_v56 = vpop.f32.mrb[41].mxu0  ;;  %v903_v57 = vpop.f32.mrb[41].mxu1 }
 0x166   :  { %v776_v58 = vpop.f32.mrb[42].mxu0  ;;  %v904_v59 = vpop.f32.mrb[42].mxu1 }
 0x167   :  { %v1234_v60 = vmax.f32 %v1170_v54, 0.0  ;;  %v1266_v61 = vmax.f32 %v1202_v55, 0.0  ;;  %v1171_v62 = vadd.f32 %v1868_v17, %v776_v58  ;;  %v1203_v63 = vadd.f32 %v1868_v17, %v904_v59  ;;  %v778_v0 = vpop.f32.mrb[43].mxu0  ;;  %v906_v1 = vpop.f32.mrb[43].mxu1 }
 0x169   :  { %1298 = vst [vmem:[%s2129_s3 + $0xa0] sm:$0xff] %v1234_v60  ;;  %1330 = vst [vmem:[%s2129_s3 + $0x1a0] sm:$0xff] %v1266_v61  ;;  %v1235_v2 = vmax.f32 %v1171_v62, 0.0  ;;  %v1267_v3 = vmax.f32 %v1203_v63, 0.0 }
 0x16b   :  { %1299 = vst [vmem:[%s2129_s3 + $0xa8] sm:$0xff] %v1235_v2  ;;  %1331 = vst [vmem:[%s2129_s3 + $0x1a8] sm:$0xff] %v1267_v3 }
 0x16c   :  { %v781_v4 = vpop.f32.mrb[44].mxu0  ;;  %v909_v5 = vpop.f32.mrb[44].mxu1 }
 0x16d   :  { %v1172_v6 = vadd.f32 %v1868_v17, %v781_v4  ;;  %v1204_v7 = vadd.f32 %v1868_v17, %v909_v5  ;;  %v783_v8 = vpop.f32.mrb[45].mxu0  ;;  %v911_v9 = vpop.f32.mrb[45].mxu1 }
 0x16e   :  { %v784_v10 = vpop.f32.mrb[46].mxu0  ;;  %v912_v11 = vpop.f32.mrb[46].mxu1 }
 0x16f   :  { %v1236_v12 = vmax.f32 %v1172_v6, 0.0  ;;  %v1268_v13 = vmax.f32 %v1204_v7, 0.0  ;;  %v1173_v14 = vadd.f32 %v1868_v17, %v784_v10  ;;  %v1205_v15 = vadd.f32 %v1868_v17, %v912_v11  ;;  %v786_v16 = vpop.f32.mrb[47].mxu0  ;;  %v914_v18 = vpop.f32.mrb[47].mxu1 }
 0x171   :  { %1300 = vst [vmem:[%s2129_s3 + $0xb0] sm:$0xff] %v1236_v12  ;;  %1332 = vst [vmem:[%s2129_s3 + $0x1b0] sm:$0xff] %v1268_v13  ;;  %v1237_v19 = vmax.f32 %v1173_v14, 0.0  ;;  %v1269_v20 = vmax.f32 %v1205_v15, 0.0 }
 0x173   :  { %1301 = vst [vmem:[%s2129_s3 + $0xb8] sm:$0xff] %v1237_v19  ;;  %1333 = vst [vmem:[%s2129_s3 + $0x1b8] sm:$0xff] %v1269_v20 }
 0x174   :  { %v789_v21 = vpop.f32.mrb[48].mxu0  ;;  %v917_v22 = vpop.f32.mrb[48].mxu1 }
 0x175   :  { %v1174_v23 = vadd.f32 %v1868_v17, %v789_v21  ;;  %v1206_v24 = vadd.f32 %v1868_v17, %v917_v22  ;;  %v791_v25 = vpop.f32.mrb[49].mxu0  ;;  %v919_v26 = vpop.f32.mrb[49].mxu1 }
 0x176   :  { %v792_v27 = vpop.f32.mrb[50].mxu0  ;;  %v920_v28 = vpop.f32.mrb[50].mxu1 }
 0x177   :  { %v1238_v29 = vmax.f32 %v1174_v23, 0.0  ;;  %v1270_v30 = vmax.f32 %v1206_v24, 0.0  ;;  %v1175_v31 = vadd.f32 %v1868_v17, %v792_v27  ;;  %v1207_v32 = vadd.f32 %v1868_v17, %v920_v28  ;;  %v794_v33 = vpop.f32.mrb[51].mxu0  ;;  %v922_v34 = vpop.f32.mrb[51].mxu1 }
 0x179   :  { %1302 = vst [vmem:[%s2129_s3 + $0xc0] sm:$0xff] %v1238_v29  ;;  %1334 = vst [vmem:[%s2129_s3 + $0x1c0] sm:$0xff] %v1270_v30  ;;  %v1239_v35 = vmax.f32 %v1175_v31, 0.0  ;;  %v1271_v36 = vmax.f32 %v1207_v32, 0.0 }
 0x17b   :  { %1303 = vst [vmem:[%s2129_s3 + $0xc8] sm:$0xff] %v1239_v35  ;;  %1335 = vst [vmem:[%s2129_s3 + $0x1c8] sm:$0xff] %v1271_v36 }
 0x17c   :  { %v797_v37 = vpop.f32.mrb[52].mxu0  ;;  %v925_v38 = vpop.f32.mrb[52].mxu1 }
 0x17d   :  { %v1176_v39 = vadd.f32 %v1868_v17, %v797_v37  ;;  %v1208_v40 = vadd.f32 %v1868_v17, %v925_v38  ;;  %v799_v41 = vpop.f32.mrb[53].mxu0  ;;  %v927_v42 = vpop.f32.mrb[53].mxu1 }
 0x17e   :  { %v800_v43 = vpop.f32.mrb[54].mxu0  ;;  %v928_v44 = vpop.f32.mrb[54].mxu1 }
 0x17f   :  { %v1240_v45 = vmax.f32 %v1176_v39, 0.0  ;;  %v1272_v46 = vmax.f32 %v1208_v40, 0.0  ;;  %v1177_v47 = vadd.f32 %v1868_v17, %v800_v43  ;;  %v1209_v48 = vadd.f32 %v1868_v17, %v928_v44  ;;  %v802_v49 = vpop.f32.mrb[55].mxu0  ;;  %v930_v50 = vpop.f32.mrb[55].mxu1 }
 0x181   :  { %1304 = vst [vmem:[%s2129_s3 + $0xd0] sm:$0xff] %v1240_v45  ;;  %1336 = vst [vmem:[%s2129_s3 + $0x1d0] sm:$0xff] %v1272_v46  ;;  %v1241_v51 = vmax.f32 %v1177_v47, 0.0  ;;  %v1273_v52 = vmax.f32 %v1209_v48, 0.0 }
 0x183   :  { %1305 = vst [vmem:[%s2129_s3 + $0xd8] sm:$0xff] %v1241_v51  ;;  %1337 = vst [vmem:[%s2129_s3 + $0x1d8] sm:$0xff] %v1273_v52 }
 0x184   :  { %v805_v53 = vpop.f32.mrb[56].mxu0  ;;  %v933_v54 = vpop.f32.mrb[56].mxu1 }
 0x185   :  { %v1178_v55 = vadd.f32 %v1868_v17, %v805_v53  ;;  %v1210_v56 = vadd.f32 %v1868_v17, %v933_v54  ;;  %v807_v57 = vpop.f32.mrb[57].mxu0  ;;  %v935_v58 = vpop.f32.mrb[57].mxu1 }
 0x186   :  { %v808_v59 = vpop.f32.mrb[58].mxu0  ;;  %v936_v60 = vpop.f32.mrb[58].mxu1 }
 0x187   :  { %v1242_v61 = vmax.f32 %v1178_v55, 0.0  ;;  %v1274_v62 = vmax.f32 %v1210_v56, 0.0  ;;  %v1179_v63 = vadd.f32 %v1868_v17, %v808_v59  ;;  %v1211_v0 = vadd.f32 %v1868_v17, %v936_v60  ;;  %v810_v1 = vpop.f32.mrb[59].mxu0  ;;  %v938_v2 = vpop.f32.mrb[59].mxu1 }
 0x189   :  { %1306 = vst [vmem:[%s2129_s3 + $0xe0] sm:$0xff] %v1242_v61  ;;  %1338 = vst [vmem:[%s2129_s3 + $0x1e0] sm:$0xff] %v1274_v62  ;;  %v1243_v3 = vmax.f32 %v1179_v63, 0.0  ;;  %v1275_v4 = vmax.f32 %v1211_v0, 0.0 }
 0x18b   :  { %1307 = vst [vmem:[%s2129_s3 + $0xe8] sm:$0xff] %v1243_v3  ;;  %1339 = vst [vmem:[%s2129_s3 + $0x1e8] sm:$0xff] %v1275_v4 }
 0x18c   :  { %v813_v5 = vpop.f32.mrb[60].mxu0  ;;  %v941_v6 = vpop.f32.mrb[60].mxu1 }
 0x18d   :  { %v1180_v7 = vadd.f32 %v1868_v17, %v813_v5  ;;  %v1212_v8 = vadd.f32 %v1868_v17, %v941_v6  ;;  %v815_v9 = vpop.f32.mrb[61].mxu0  ;;  %v943_v10 = vpop.f32.mrb[61].mxu1 }
 0x18e   :  { %v816_v11 = vpop.f32.mrb[62].mxu0  ;;  %v944_v12 = vpop.f32.mrb[62].mxu1 }
 0x18f   :  { %v1244_v13 = vmax.f32 %v1180_v7, 0.0  ;;  %v1276_v14 = vmax.f32 %v1212_v8, 0.0  ;;  %v1181_v15 = vadd.f32 %v1868_v17, %v816_v11  ;;  %v1213_v16 = vadd.f32 %v1868_v17, %v944_v12  ;;  %v818_v18 = vpop.f32.mrb[63].mxu0  ;;  %v946_v19 = vpop.f32.mrb[63].mxu1 }
 0x191   :  { %1308 = vst [vmem:[%s2129_s3 + $0xf0] sm:$0xff] %v1244_v13  ;;  %1340 = vst [vmem:[%s2129_s3 + $0x1f0] sm:$0xff] %v1276_v14  ;;  %v1245_v20 = vmax.f32 %v1181_v15, 0.0  ;;  %v1277_v21 = vmax.f32 %v1213_v16, 0.0 }
 0x193   :  { %1309 = vst [vmem:[%s2129_s3 + $0xf8] sm:$0xff] %v1245_v20  ;;  %1341 = vst [vmem:[%s2129_s3 + $0x1f8] sm:$0xff] %v1277_v21 }

// kernel: backbone_forward.24
= control target key start
LH: loop header
LB: loop body
LE: loop exit
PB: predicated region body
PF: predicated region fallthrough
CT: control target
= control target key end

     0   :  { %s1759_s1 = inlined_call_operand.vmem [shape: bf16[640,128], index: 1, kind: input, shape index: {}]   ;;  %s1760_s0 = inlined_call_operand.vmem [shape: bf16[128,640], index: 0, kind: input, shape index: {}]   ;;  %s1761_s2 = inlined_call_operand.vmem [shape: f32[1,128], index: 2, kind: input, shape index: {}]   ;;  %s1762_s3 = inlined_call_operand.vmem [shape: f32[128,128], index: 3, kind: output, shape index: {}]  }
   0x1   :  { %v1301_v0 = vld [vmem:[%s1759_s1 + $0x40] sm:$0xff]   ;;  %v1305_v4 = vld [vmem:[%s1759_s1 + $0x48] sm:$0xff]   ;;  %v1309_v8 = vld [vmem:[%s1759_s1 + $0x50] sm:$0xff]  }
   0x2   :  { %v1302_v1 = vld [vmem:[%s1759_s1 + $0xc0] sm:$0xff]   ;;  %1109 = vmatprep.subr.bf16.mxu0 %v1301_v0  ;;  %v1306_v5 = vld [vmem:[%s1759_s1 + $0xc8] sm:$0xff]   ;;  %v1310_v9 = vld [vmem:[%s1759_s1 + $0xd0] sm:$0xff]  }
   0x3   :  { %v1303_v2 = vld [vmem:[%s1759_s1] sm:$0xff]   ;;  %1173 = vmatprep.subr.bf16.mxu1 %v1302_v1  ;;  %v1307_v6 = vld [vmem:[%s1759_s1 + $0x8] sm:$0xff]   ;;  %v1311_v10 = vld [vmem:[%s1759_s1 + $0x10] sm:$0xff]  }
   0x4   :  { %v1304_v3 = vld [vmem:[%s1759_s1 + $0x80] sm:$0xff]   ;;  %1110 = vmatpush3.bf16.msra.mxu0 %v1303_v2  ;;  %v1308_v7 = vld [vmem:[%s1759_s1 + $0x88] sm:$0xff]   ;;  %v1312_v11 = vld [vmem:[%s1759_s1 + $0x90] sm:$0xff]  }
   0x5   :  { %1174 = vmatpush3.bf16.msra.mxu1 %v1304_v3  ;;  %1111 = vmatprep.subr.bf16.mxu0 %v1305_v4  ;;  %v1313_v12 = vld [vmem:[%s1759_s1 + $0x58] sm:$0xff]   ;;  %v1317_v16 = vld [vmem:[%s1759_s1 + $0x60] sm:$0xff]   ;;  %v1321_v20 = vld [vmem:[%s1759_s1 + $0x68] sm:$0xff]  }
   0x6   :  { %1175 = vmatprep.subr.bf16.mxu1 %v1306_v5  ;;  %v1314_v13 = vld [vmem:[%s1759_s1 + $0xd8] sm:$0xff]   ;;  %v1318_v17 = vld [vmem:[%s1759_s1 + $0xe0] sm:$0xff]   ;;  %v1322_v21 = vld [vmem:[%s1759_s1 + $0xe8] sm:$0xff]  }
   0x7   :  { %v1315_v14 = vld [vmem:[%s1759_s1 + $0x18] sm:$0xff]   ;;  %v1319_v18 = vld [vmem:[%s1759_s1 + $0x20] sm:$0xff]   ;;  %v1323_v22 = vld [vmem:[%s1759_s1 + $0x28] sm:$0xff]  }
   0x8   :  { %1112 = vmatpush3.bf16.msra.mxu0 %v1307_v6  ;;  %v1316_v15 = vld [vmem:[%s1759_s1 + $0x98] sm:$0xff]   ;;  %v1320_v19 = vld [vmem:[%s1759_s1 + $0xa0] sm:$0xff]   ;;  %v1324_v23 = vld [vmem:[%s1759_s1 + $0xa8] sm:$0xff]  }
   0x9   :  { %1176 = vmatpush3.bf16.msra.mxu1 %v1308_v7  ;;  %1113 = vmatprep.subr.bf16.mxu0 %v1309_v8  ;;  %v1325_v24 = vld [vmem:[%s1759_s1 + $0x70] sm:$0xff]   ;;  %v1329_v28 = vld [vmem:[%s1759_s1 + $0x78] sm:$0xff]   ;;  %v1338_v35 = vld [vmem:[%s1760_s0 + $0xc] ss:$20 sps:$4 sm:$0xff]  }
   0xa   :  { %1177 = vmatprep.subr.bf16.mxu1 %v1310_v9  ;;  %v1326_v25 = vld [vmem:[%s1759_s1 + $0xf0] sm:$0xff]   ;;  %v1330_v29 = vld [vmem:[%s1759_s1 + $0xf8] sm:$0xff]   ;;  %v1339_v36 = vld [vmem:[%s1759_s1 + $0x100] sm:$0xff]   ;;  %756 = vmatprep.mubr.bf16.mxu1 %v1338_v35 }
   0xb   :  { %v1327_v26 = vld [vmem:[%s1759_s1 + $0x30] sm:$0xff]   ;;  %v1331_v30 = vld [vmem:[%s1759_s1 + $0x38] sm:$0xff]   ;;  %v1340_v37 = vld [vmem:[%s1760_s0 + $0x2c] ss:$20 sps:$4 sm:$0xff]  }
   0xc   :  { %1114 = vmatpush3.bf16.msra.mxu0 %v1311_v10  ;;  %v1328_v27 = vld [vmem:[%s1759_s1 + $0xb0] sm:$0xff]   ;;  %v1332_v31 = vld [vmem:[%s1759_s1 + $0xb8] sm:$0xff]   ;;  %v1346_v39 = vld [vmem:[%s1759_s1 + $0x108] sm:$0xff]  }
   0xd   :  { %1178 = vmatpush3.bf16.msra.mxu1 %v1312_v11  ;;  %1115 = vmatprep.subr.bf16.mxu0 %v1313_v12  ;;  %v1333_v32 = vld [vmem:[%s1760_s0] ss:$20 sps:$4 sm:$0xff]   ;;  %v1335_v33 = vld [vmem:[%s1760_s0 + $0x4] ss:$20 sps:$4 sm:$0xff]   ;;  %v1336_v34 = vld [vmem:[%s1760_s0 + $0x8] ss:$20 sps:$4 sm:$0xff]  }
   0xe   :  { %1179 = vmatprep.subr.bf16.mxu1 %v1314_v13  ;;  %659 = vmatprep.mubr.bf16.mxu0 %v1335_v33  ;;  %v1342_v38 = vld [vmem:[%s1760_s0 + $0x34] ss:$20 sps:$4 sm:$0xff]   ;;  %v1345_v41 = vld [vmem:[%s1760_s0 + $0x30] ss:$20 sps:$4 sm:$0xff]   ;;  %v1360_v45 = vld [vmem:[%s1759_s1 + $0x118] sm:$0xff]  }
   0xf   :  { %v1344_v40 = vld [vmem:[%s1760_s0 + $0x28] ss:$20 sps:$4 sm:$0xff]   ;;  %v1353_v44 = vld [vmem:[%s1759_s1 + $0x110] sm:$0xff]   ;;  %v1352_v47 = vld [vmem:[%s1760_s0 + $0x58] ss:$20 sps:$4 sm:$0xff]  }
  0x10   :  { %1116 = vmatpush3.bf16.msra.mxu0 %v1315_v14  ;;  %v1347_v42 = vld [vmem:[%s1760_s0 + $0x54] ss:$20 sps:$4 sm:$0xff]   ;;  %v1349_v43 = vld [vmem:[%s1760_s0 + $0x5c] ss:$20 sps:$4 sm:$0xff]   ;;  %v1356_v49 = vld [vmem:[%s1760_s0 + $0x84] ss:$20 sps:$4 sm:$0xff]  }
  0x11   :  { %1180 = vmatpush3.bf16.msra.mxu1 %v1316_v15  ;;  %1117 = vmatprep.subr.bf16.mxu0 %v1317_v16  ;;  %v1351_v46 = vld [vmem:[%s1760_s0 + $0x50] ss:$20 sps:$4 sm:$0xff]   ;;  %v1374_v51 = vld [vmem:[%s1759_s1 + $0x128] sm:$0xff]   ;;  %v1359_v53 = vld [vmem:[%s1760_s0 + $0x80] ss:$20 sps:$4 sm:$0xff]  }
  0x12   :  { %1181 = vmatprep.subr.bf16.mxu1 %v1318_v17  ;;  %v1354_v48 = vld [vmem:[%s1760_s0 + $0x7c] ss:$20 sps:$4 sm:$0xff]   ;;  %v1367_v50 = vld [vmem:[%s1759_s1 + $0x120] sm:$0xff]   ;;  %v1358_v52 = vld [vmem:[%s1760_s0 + $0x78] ss:$20 sps:$4 sm:$0xff]  }
  0x13   :  { %v1361_v54 = vld [vmem:[%s1760_s0 + $0xa4] ss:$20 sps:$4 sm:$0xff]   ;;  %v1381_v55 = vld [vmem:[%s1759_s1 + $0x130] sm:$0xff]   ;;  %v1363_v56 = vld [vmem:[%s1760_s0 + $0xac] ss:$20 sps:$4 sm:$0xff]  }
  0x14   :  { %1118 = vmatpush3.bf16.msra.mxu0 %v1319_v18  ;;  %v1388_v57 = vld [vmem:[%s1759_s1 + $0x138] sm:$0xff]   ;;  %v1365_v58 = vld [vmem:[%s1760_s0 + $0xa0] ss:$20 sps:$4 sm:$0xff]   ;;  %v1373_v63 = vld [vmem:[%s1760_s0 + $0xd0] ss:$20 sps:$4 sm:$0xff]  }
  0x15   :  { %1182 = vmatpush3.bf16.msra.mxu1 %v1320_v19  ;;  %1119 = vmatprep.subr.bf16.mxu0 %v1321_v20  ;;  %v1366_v59 = vld [vmem:[%s1760_s0 + $0xa8] ss:$20 sps:$4 sm:$0xff]   ;;  %v1368_v60 = vld [vmem:[%s1760_s0 + $0xcc] ss:$20 sps:$4 sm:$0xff]   ;;  %v1379_v2 = vld [vmem:[%s1760_s0 + $0xf0] ss:$20 sps:$4 sm:$0xff]  }
  0x16   :  { %1183 = vmatprep.subr.bf16.mxu1 %v1322_v21  ;;  %v1370_v61 = vld [vmem:[%s1760_s0 + $0xd4] ss:$20 sps:$4 sm:$0xff]   ;;  %v1377_v1 = vld [vmem:[%s1760_s0 + $0xfc] ss:$20 sps:$4 sm:$0xff]   ;;  %v1380_v3 = vld [vmem:[%s1760_s0 + $0xf8] ss:$20 sps:$4 sm:$0xff]  }
  0x17   :  { %v1372_v62 = vld [vmem:[%s1760_s0 + $0xc8] ss:$20 sps:$4 sm:$0xff]   ;;  %v1384_v5 = vld [vmem:[%s1760_s0 + $0x124] ss:$20 sps:$4 sm:$0xff]   ;;  %v1387_v7 = vld [vmem:[%s1760_s0 + $0x120] ss:$20 sps:$4 sm:$0xff]  }
  0x18   :  { %1120 = vmatpush3.bf16.msra.mxu0 %v1323_v22  ;;  %v1375_v0 = vld [vmem:[%s1760_s0 + $0xf4] ss:$20 sps:$4 sm:$0xff]   ;;  %v1382_v4 = vld [vmem:[%s1760_s0 + $0x11c] ss:$20 sps:$4 sm:$0xff]   ;;  %v1386_v6 = vld [vmem:[%s1760_s0 + $0x118] ss:$20 sps:$4 sm:$0xff]  }
  0x19   :  { %1184 = vmatpush3.bf16.msra.mxu1 %v1324_v23  ;;  %1121 = vmatprep.subr.bf16.mxu0 %v1325_v24  ;;  %v1389_v8 = vld [vmem:[%s1760_s0 + $0x10] ss:$20 sps:$4 sm:$0xff]   ;;  %v1391_v10 = vld [vmem:[%s1760_s0 + $0x38] ss:$20 sps:$4 sm:$0xff]   ;;  %v1393_v12 = vld [vmem:[%s1760_s0 + $0x60] ss:$20 sps:$4 sm:$0xff]  }
  0x1a   :  { %1185 = vmatprep.subr.bf16.mxu1 %v1326_v25  ;;  %v1390_v9 = vld [vmem:[%s1760_s0 + $0xb0] ss:$20 sps:$4 sm:$0xff]   ;;  %v1392_v11 = vld [vmem:[%s1760_s0 + $0xd8] ss:$20 sps:$4 sm:$0xff]   ;;  %v1394_v13 = vld [vmem:[%s1760_s0 + $0x100] ss:$20 sps:$4 sm:$0xff]  }
  0x1b   :  { %v1395_v14 = vld [vmem:[%s1760_s0 + $0x88] ss:$20 sps:$4 sm:$0xff]  }
  0x1c   :  { %1122 = vmatpush3.bf16.msra.mxu0 %v1327_v26  ;;  %v1396_v15 = vld [vmem:[%s1760_s0 + $0x128] ss:$20 sps:$4 sm:$0xff]  }
  0x1d   :  { %1186 = vmatpush3.bf16.msra.mxu1 %v1328_v27  ;;  %1123 = vmatprep.subr.bf16.mxu0 %v1329_v28 }
  0x1e   :  { %1187 = vmatprep.subr.bf16.mxu1 %v1330_v29 }
  0x20   :  { %1124 = vmatpush3.bf16.msra.mxu0 %v1331_v30 }
  0x21   :  { %1188 = vmatpush3.bf16.msra.mxu1 %v1332_v31  ;;  %1253 = vmatprep.subr.bf16.mxu0 %v1339_v36 }
  0x22   :  { %1285 = vmatprep.subr.bf16.mxu1 %v1339_v36 }
  0x23   :  { %660 = vmatmul.mubr.bf16.vlgmr.msra.gmra.mrb[0].mxu0 %v1333_v32 }
  0x24   :  { %757 = vmatmul.mubr.bf16.vlgmr.msra.gmra.mrb[0].mxu1 %v1336_v34  ;;  %1254 = vmatpush3.bf16.msra.mxu0 %v1339_v36 }
  0x25   :  { %1293 = vmatpush3.bf16.msra.mxu1 %v1339_v36  ;;  %667 = vmatprep.mubr.bf16.mxu0 %v1340_v37 }
  0x26   :  { %764 = vmatprep.mubr.bf16.mxu1 %v1342_v38  ;;  %1255 = vmatprep.subr.bf16.mxu0 %v1346_v39 }
  0x27   :  { %1286 = vmatprep.subr.bf16.mxu1 %v1346_v39 }
  0x28   :  { %1256 = vmatpush3.bf16.msra.mxu0 %v1346_v39 }
  0x29   :  { %1294 = vmatpush3.bf16.msra.mxu1 %v1346_v39  ;;  %1257 = vmatprep.subr.bf16.mxu0 %v1353_v44 }
  0x2a   :  { %1287 = vmatprep.subr.bf16.mxu1 %v1353_v44 }
  0x2b   :  { %668 = vmatmul.mubr.bf16.gmra.mrb[4].mxu0 %v1344_v40 }
  0x2c   :  { %765 = vmatmul.mubr.bf16.gmra.mrb[4].mxu1 %v1345_v41  ;;  %675 = vmatprep.mubr.bf16.mxu0 %v1347_v42 }
  0x2d   :  { %772 = vmatprep.mubr.bf16.mxu1 %v1349_v43  ;;  %1258 = vmatpush3.bf16.msra.mxu0 %v1353_v44 }
  0x2e   :  { %1295 = vmatpush3.bf16.msra.mxu1 %v1353_v44  ;;  %1259 = vmatprep.subr.bf16.mxu0 %v1360_v45 }
  0x2f   :  { %1288 = vmatprep.subr.bf16.mxu1 %v1360_v45 }
  0x31   :  { %1260 = vmatpush3.bf16.msra.mxu0 %v1360_v45 }
  0x32   :  { %1296 = vmatpush3.bf16.msra.mxu1 %v1360_v45  ;;  %1261 = vmatprep.subr.bf16.mxu0 %v1367_v50 }
  0x33   :  { %676 = vmatmul.mubr.bf16.gmra.mrb[8].mxu0 %v1351_v46  ;;  %1289 = vmatprep.subr.bf16.mxu1 %v1367_v50 }
  0x34   :  { %773 = vmatmul.mubr.bf16.gmra.mrb[8].mxu1 %v1352_v47  ;;  %683 = vmatprep.mubr.bf16.mxu0 %v1354_v48 }
  0x35   :  { %780 = vmatprep.mubr.bf16.mxu1 %v1356_v49  ;;  %1262 = vmatpush3.bf16.msra.mxu0 %v1367_v50 }
  0x36   :  { %1297 = vmatpush3.bf16.msra.mxu1 %v1367_v50  ;;  %1263 = vmatprep.subr.bf16.mxu0 %v1374_v51 }
  0x37   :  { %1290 = vmatprep.subr.bf16.mxu1 %v1374_v51 }
  0x39   :  { %1264 = vmatpush3.bf16.msra.mxu0 %v1374_v51 }
  0x3a   :  { %1298 = vmatpush3.bf16.msra.mxu1 %v1374_v51  ;;  %1265 = vmatprep.subr.bf16.mxu0 %v1381_v55 }
  0x3b   :  { %684 = vmatmul.mubr.bf16.gmra.mrb[12].mxu0 %v1358_v52  ;;  %1291 = vmatprep.subr.bf16.mxu1 %v1381_v55 }
  0x3c   :  { %781 = vmatmul.mubr.bf16.gmra.mrb[12].mxu1 %v1359_v53  ;;  %691 = vmatprep.mubr.bf16.mxu0 %v1361_v54 }
  0x3d   :  { %788 = vmatprep.mubr.bf16.mxu1 %v1363_v56  ;;  %1266 = vmatpush3.bf16.msra.mxu0 %v1381_v55 }
  0x3e   :  { %1299 = vmatpush3.bf16.msra.mxu1 %v1381_v55  ;;  %1267 = vmatprep.subr.bf16.mxu0 %v1388_v57 }
  0x3f   :  { %1292 = vmatprep.subr.bf16.mxu1 %v1388_v57 }
  0x41   :  { %1268 = vmatpush3.bf16.msra.mxu0 %v1388_v57 }
  0x42   :  { %1300 = vmatpush3.bf16.msra.mxu1 %v1388_v57 }
  0x43   :  { %692 = vmatmul.mubr.bf16.gmra.mrb[16].mxu0 %v1365_v58 }
  0x44   :  { %789 = vmatmul.mubr.bf16.gmra.mrb[16].mxu1 %v1366_v59  ;;  %699 = vmatprep.mubr.bf16.mxu0 %v1368_v60 }
  0x45   :  { %796 = vmatprep.mubr.bf16.mxu1 %v1370_v61 }
  0x4b   :  { %700 = vmatmul.mubr.bf16.gmra.mrb[20].mxu0 %v1372_v62 }
  0x4c   :  { %797 = vmatmul.mubr.bf16.gmra.mrb[20].mxu1 %v1373_v63  ;;  %707 = vmatprep.mubr.bf16.mxu0 %v1375_v0 }
  0x4d   :  { %804 = vmatprep.mubr.bf16.mxu1 %v1377_v1 }
  0x53   :  { %708 = vmatmul.mubr.bf16.gmra.mrb[24].mxu0 %v1379_v2 }
  0x54   :  { %805 = vmatmul.mubr.bf16.gmra.mrb[24].mxu1 %v1380_v3  ;;  %715 = vmatprep.mubr.bf16.mxu0 %v1382_v4 }
  0x55   :  { %812 = vmatprep.mubr.bf16.mxu1 %v1384_v5 }
  0x5b   :  { %716 = vmatmul.mubr.bf16.gmra.mrb[28].mxu0 %v1386_v6 }
  0x5c   :  { %813 = vmatmul.mubr.bf16.gmra.mrb[28].mxu1 %v1387_v7  ;;  %1269 = vmatprep.mubr.bf16.mxu0 %v1389_v8 }
  0x5d   :  { %1277 = vmatprep.mubr.bf16.mxu1 %v1390_v9 }
  0x63   :  { %1270 = vmatmul.mubr.bf16.vlgmr.msra.gmra.mrb[32].mxu0 %v1391_v10 }
  0x64   :  { %1278 = vmatmul.mubr.bf16.vlgmr.msra.gmra.mrb[32].mxu1 %v1392_v11  ;;  %1273 = vmatprep.mubr.bf16.mxu0 %v1393_v12 }
  0x65   :  { %1281 = vmatprep.mubr.bf16.mxu1 %v1394_v13 }
  0x6b   :  { %1274 = vmatmul.mubr.bf16.gmra.mrb[36].mxu0 %v1395_v14 }
  0x6c   :  { %1282 = vmatmul.mubr.bf16.gmra.mrb[36].mxu1 %v1396_v15 }
  0xf6   :  { %v1125_v16 = vpop.f32.mrb[0].mxu0 }
  0xf7   :  { %v1189_v17 = vpop.f32.mrb[0].mxu1  ;;  %v1126_v18 = vpop.f32.mrb[1].mxu0 }
  0xf8   :  { %v1127_v19 = vadd.f32 %v1126_v18, %v1125_v16  ;;  %v1190_v20 = vpop.f32.mrb[1].mxu1  ;;  %v1128_v21 = vpop.f32.mrb[2].mxu0 }
  0xf9   :  { %v1191_v22 = vadd.f32 %v1190_v20, %v1189_v17  ;;  %v1192_v23 = vpop.f32.mrb[2].mxu1  ;;  %v1129_v24 = vpop.f32.mrb[3].mxu0 }
  0xfa   :  { %v1130_v25 = vadd.f32 %v1129_v24, %v1128_v21  ;;  %v1193_v26 = vpop.f32.mrb[3].mxu1 }
  0xfb   :  { %v1194_v27 = vadd.f32 %v1193_v26, %v1192_v23  ;;  %v1657_v28 = vadd.f32 %v1191_v22, %v1127_v19 }
  0xfd   :  { %v1659_v29 = vadd.f32 %v1194_v27, %v1130_v25 }
  0xfe   :  { %v1131_v30 = vpop.f32.mrb[4].mxu0 }
  0xff   :  { %v1195_v31 = vpop.f32.mrb[4].mxu1  ;;  %v1132_v32 = vpop.f32.mrb[5].mxu0 }
 0x100   :  { %v1133_v33 = vadd.f32 %v1132_v32, %v1131_v30  ;;  %v1196_v34 = vpop.f32.mrb[5].mxu1  ;;  %v1134_v35 = vpop.f32.mrb[6].mxu0 }
 0x101   :  { %v1197_v36 = vadd.f32 %v1196_v34, %v1195_v31  ;;  %v1198_v37 = vpop.f32.mrb[6].mxu1  ;;  %v1135_v38 = vpop.f32.mrb[7].mxu0 }
 0x102   :  { %v1136_v39 = vadd.f32 %v1135_v38, %v1134_v35  ;;  %v1199_v40 = vpop.f32.mrb[7].mxu1 }
 0x103   :  { %v1200_v41 = vadd.f32 %v1199_v40, %v1198_v37  ;;  %v1661_v42 = vadd.f32 %v1197_v36, %v1133_v33 }
 0x105   :  { %v1663_v43 = vadd.f32 %v1200_v41, %v1136_v39 }
 0x106   :  { %v1137_v44 = vpop.f32.mrb[8].mxu0 }
 0x107   :  { %v1201_v45 = vpop.f32.mrb[8].mxu1  ;;  %v1138_v46 = vpop.f32.mrb[9].mxu0 }
 0x108   :  { %v1139_v47 = vadd.f32 %v1138_v46, %v1137_v44  ;;  %v1202_v48 = vpop.f32.mrb[9].mxu1  ;;  %v1140_v49 = vpop.f32.mrb[10].mxu0 }
 0x109   :  { %v1203_v50 = vadd.f32 %v1202_v48, %v1201_v45  ;;  %v1204_v51 = vpop.f32.mrb[10].mxu1  ;;  %v1141_v52 = vpop.f32.mrb[11].mxu0 }
 0x10a   :  { %v1142_v53 = vadd.f32 %v1141_v52, %v1140_v49  ;;  %v1205_v54 = vpop.f32.mrb[11].mxu1 }
 0x10b   :  { %v1206_v55 = vadd.f32 %v1205_v54, %v1204_v51  ;;  %v1665_v56 = vadd.f32 %v1203_v50, %v1139_v47 }
 0x10d   :  { %v1667_v57 = vadd.f32 %v1206_v55, %v1142_v53 }
 0x10e   :  { %v1143_v58 = vpop.f32.mrb[12].mxu0 }
 0x10f   :  { %v1207_v59 = vpop.f32.mrb[12].mxu1  ;;  %v1144_v60 = vpop.f32.mrb[13].mxu0 }
 0x110   :  { %v1145_v61 = vadd.f32 %v1144_v60, %v1143_v58  ;;  %v1208_v62 = vpop.f32.mrb[13].mxu1  ;;  %v1146_v63 = vpop.f32.mrb[14].mxu0 }
 0x111   :  { %v1209_v0 = vadd.f32 %v1208_v62, %v1207_v59  ;;  %v1210_v1 = vpop.f32.mrb[14].mxu1  ;;  %v1147_v2 = vpop.f32.mrb[15].mxu0 }
 0x112   :  { %v1148_v3 = vadd.f32 %v1147_v2, %v1146_v63  ;;  %v1211_v4 = vpop.f32.mrb[15].mxu1 }
 0x113   :  { %v1212_v5 = vadd.f32 %v1211_v4, %v1210_v1  ;;  %v1669_v6 = vadd.f32 %v1209_v0, %v1145_v61 }
 0x115   :  { %v1671_v7 = vadd.f32 %v1212_v5, %v1148_v3 }
 0x116   :  { %v1149_v8 = vpop.f32.mrb[16].mxu0 }
 0x117   :  { %v1213_v9 = vpop.f32.mrb[16].mxu1  ;;  %v1150_v10 = vpop.f32.mrb[17].mxu0 }
 0x118   :  { %v1151_v11 = vadd.f32 %v1150_v10, %v1149_v8  ;;  %v1214_v12 = vpop.f32.mrb[17].mxu1  ;;  %v1152_v13 = vpop.f32.mrb[18].mxu0 }
 0x119   :  { %v1215_v14 = vadd.f32 %v1214_v12, %v1213_v9  ;;  %v1216_v15 = vpop.f32.mrb[18].mxu1  ;;  %v1153_v16 = vpop.f32.mrb[19].mxu0  ;;  %v1682_v9 = vld [vmem:[%s1761_s2] ss:$0 sm:$0xff] }
 0x11a   :  { %v1154_v17 = vadd.f32 %v1153_v16, %v1152_v13  ;;  %v1217_v18 = vpop.f32.mrb[19].mxu1 }
 0x11b   :  { %v1218_v19 = vadd.f32 %v1217_v18, %v1216_v15  ;;  %v791_v20 = vadd.f32 %v1215_v14, %v1151_v11 }
 0x11d   :  { %v1673_v21 = vadd.f32 %v1218_v19, %v1154_v17 }
 0x11e   :  { %v1155_v22 = vpop.f32.mrb[20].mxu0 }
 0x11f   :  { %v1219_v23 = vpop.f32.mrb[20].mxu1  ;;  %v1156_v24 = vpop.f32.mrb[21].mxu0 }
 0x120   :  { %v1157_v25 = vadd.f32 %v1156_v24, %v1155_v22  ;;  %v1220_v26 = vpop.f32.mrb[21].mxu1  ;;  %v1158_v27 = vpop.f32.mrb[22].mxu0 }
 0x121   :  { %v1221_v30 = vadd.f32 %v1220_v26, %v1219_v23  ;;  %v1222_v31 = vpop.f32.mrb[22].mxu1  ;;  %v1159_v32 = vpop.f32.mrb[23].mxu0 }
 0x122   :  { %v1160_v33 = vadd.f32 %v1159_v32, %v1158_v27  ;;  %v1223_v34 = vpop.f32.mrb[23].mxu1 }
 0x123   :  { %v1224_v35 = vadd.f32 %v1223_v34, %v1222_v31  ;;  %v799_v36 = vadd.f32 %v1221_v30, %v1157_v25 }
 0x125   :  { %v802_v37 = vadd.f32 %v1224_v35, %v1160_v33 }
 0x126   :  { %v1161_v38 = vpop.f32.mrb[24].mxu0 }
 0x127   :  { %v1225_v39 = vpop.f32.mrb[24].mxu1  ;;  %v1162_v40 = vpop.f32.mrb[25].mxu0 }
 0x128   :  { %v1163_v41 = vadd.f32 %v1162_v40, %v1161_v38  ;;  %v1226_v44 = vpop.f32.mrb[25].mxu1  ;;  %v1164_v45 = vpop.f32.mrb[26].mxu0 }
 0x129   :  { %v1227_v46 = vadd.f32 %v1226_v44, %v1225_v39  ;;  %v1228_v47 = vpop.f32.mrb[26].mxu1  ;;  %v1165_v48 = vpop.f32.mrb[27].mxu0 }
 0x12a   :  { %v1166_v49 = vadd.f32 %v1165_v48, %v1164_v45  ;;  %v1229_v50 = vpop.f32.mrb[27].mxu1 }
 0x12b   :  { %v1230_v51 = vadd.f32 %v1229_v50, %v1228_v47  ;;  %v1675_v52 = vadd.f32 %v1227_v46, %v1163_v41 }
 0x12d   :  { %v1677_v53 = vadd.f32 %v1230_v51, %v1166_v49 }
 0x12e   :  { %v1167_v54 = vpop.f32.mrb[28].mxu0 }
 0x12f   :  { %v1231_v55 = vpop.f32.mrb[28].mxu1  ;;  %v1168_v58 = vpop.f32.mrb[29].mxu0 }
 0x130   :  { %v1169_v59 = vadd.f32 %v1168_v58, %v1167_v54  ;;  %v1232_v60 = vpop.f32.mrb[29].mxu1  ;;  %v1170_v61 = vpop.f32.mrb[30].mxu0 }
 0x131   :  { %v1233_v62 = vadd.f32 %v1232_v60, %v1231_v55  ;;  %v1234_v63 = vpop.f32.mrb[30].mxu1  ;;  %v1171_v0 = vpop.f32.mrb[31].mxu0 }
 0x132   :  { %v1172_v1 = vadd.f32 %v1171_v0, %v1170_v61  ;;  %v1235_v2 = vpop.f32.mrb[31].mxu1 }
 0x133   :  { %v1236_v3 = vadd.f32 %v1235_v2, %v1234_v63  ;;  %v815_v4 = vadd.f32 %v1233_v62, %v1169_v59 }
 0x135   :  { %v818_v5 = vadd.f32 %v1236_v3, %v1172_v1 }
 0x136   :  { %v1271_v8 = vpop.f32.mrb[32].mxu0 }
 0x137   :  { %v864_v10 = vadd.f32 %v1271_v8, %v1661_v42  ;;  %v1279_v11 = vpop.f32.mrb[32].mxu1  ;;  %v855_v12 = vpop.f32.mrb[33].mxu0 }
 0x138   :  { %v896_v13 = vadd.f32 %v1279_v11, %v799_v36  ;;  %v856_v14 = vadd.f32 %v855_v12, %v1657_v28  ;;  %v887_v15 = vpop.f32.mrb[33].mxu1  ;;  %v1272_v16 = vpop.f32.mrb[34].mxu0 }
 0x139   :  { %v978_v17 = vadd.f32 %v1682_v9, %v864_v10  ;;  %v888_v18 = vadd.f32 %v887_v15, %v791_v20  ;;  %v867_v19 = vadd.f32 %v1272_v16, %v1663_v43  ;;  %v1280_v22 = vpop.f32.mrb[34].mxu1  ;;  %v858_v23 = vpop.f32.mrb[35].mxu0 }
 0x13a   :  { %v986_v24 = vadd.f32 %v1682_v9, %v896_v13  ;;  %v976_v25 = vadd.f32 %v1682_v9, %v856_v14  ;;  %v899_v26 = vadd.f32 %v1280_v22, %v802_v37  ;;  %v859_v42 = vadd.f32 %v858_v23, %v1659_v29  ;;  %v890_v27 = vpop.f32.mrb[35].mxu1 }
 0x13b   :  { %v994_v30 = vmax.f32 %v978_v17, 0.0  ;;  %v984_v28 = vadd.f32 %v1682_v9, %v888_v18  ;;  %v979_v31 = vadd.f32 %v1682_v9, %v867_v19  ;;  %v891_v32 = vadd.f32 %v890_v27, %v1673_v21 }
 0x13c   :  { %v1002_v20 = vmax.f32 %v986_v24, 0.0  ;;  %v992_v33 = vmax.f32 %v976_v25, 0.0  ;;  %v987_v43 = vadd.f32 %v1682_v9, %v899_v26  ;;  %v977_v34 = vadd.f32 %v1682_v9, %v859_v42 }
 0x13d   :  { %1010 = vst [vmem:[%s1762_s3 + $0x10] sm:$0xff] %v994_v30  ;;  %v1000_v35 = vmax.f32 %v984_v28, 0.0  ;;  %v995_v29 = vmax.f32 %v979_v31, 0.0  ;;  %v985_v36 = vadd.f32 %v1682_v9, %v891_v32 }
 0x13e   :  { %1018 = vst [vmem:[%s1762_s3 + $0x50] sm:$0xff] %v1002_v20  ;;  %1008 = vst [vmem:[%s1762_s3] sm:$0xff] %v992_v33  ;;  %v1003_v21 = vmax.f32 %v987_v43, 0.0  ;;  %v993_v37 = vmax.f32 %v977_v34, 0.0  ;;  %v1275_v38 = vpop.f32.mrb[36].mxu0 }
 0x13f   :  { %1016 = vst [vmem:[%s1762_s3 + $0x40] sm:$0xff] %v1000_v35  ;;  %1011 = vst [vmem:[%s1762_s3 + $0x18] sm:$0xff] %v995_v29  ;;  %v1001_v39 = vmax.f32 %v985_v36, 0.0  ;;  %v880_v40 = vadd.f32 %v1275_v38, %v1669_v6  ;;  %v1283_v41 = vpop.f32.mrb[36].mxu1  ;;  %v871_v44 = vpop.f32.mrb[37].mxu0 }
 0x140   :  { %1019 = vst [vmem:[%s1762_s3 + $0x58] sm:$0xff] %v1003_v21  ;;  %1009 = vst [vmem:[%s1762_s3 + $0x8] sm:$0xff] %v993_v37  ;;  %v912_v45 = vadd.f32 %v1283_v41, %v815_v4  ;;  %v872_v46 = vadd.f32 %v871_v44, %v1665_v56  ;;  %v903_v47 = vpop.f32.mrb[37].mxu1  ;;  %v1276_v48 = vpop.f32.mrb[38].mxu0 }
 0x141   :  { %1017 = vst [vmem:[%s1762_s3 + $0x48] sm:$0xff] %v1001_v39  ;;  %v982_v6 = vadd.f32 %v1682_v9, %v880_v40  ;;  %v904_v49 = vadd.f32 %v903_v47, %v1675_v52  ;;  %v883_v50 = vadd.f32 %v1276_v48, %v1671_v7  ;;  %v1284_v51 = vpop.f32.mrb[38].mxu1  ;;  %v874_v54 = vpop.f32.mrb[39].mxu0 }
 0x142   :  { %v990_v55 = vadd.f32 %v1682_v9, %v912_v45  ;;  %v980_v58 = vadd.f32 %v1682_v9, %v872_v46  ;;  %v915_v59 = vadd.f32 %v1284_v51, %v818_v5  ;;  %v875_v56 = vadd.f32 %v874_v54, %v1667_v57  ;;  %v906_v60 = vpop.f32.mrb[39].mxu1 }
 0x143   :  { %v998_v61 = vmax.f32 %v982_v6, 0.0  ;;  %v988_v62 = vadd.f32 %v1682_v9, %v904_v49  ;;  %v983_v63 = vadd.f32 %v1682_v9, %v883_v50  ;;  %v907_v0 = vadd.f32 %v906_v60, %v1677_v53 }
 0x144   :  { %v1006_v52 = vmax.f32 %v990_v55, 0.0  ;;  %v996_v1 = vmax.f32 %v980_v58, 0.0  ;;  %v991_v7 = vadd.f32 %v1682_v9, %v915_v59  ;;  %v981_v2 = vadd.f32 %v1682_v9, %v875_v56 }
 0x145   :  { %1014 = vst [vmem:[%s1762_s3 + $0x30] sm:$0xff] %v998_v61  ;;  %v1004_v3 = vmax.f32 %v988_v62, 0.0  ;;  %v999_v57 = vmax.f32 %v983_v63, 0.0  ;;  %v989_v4 = vadd.f32 %v1682_v9, %v907_v0 }
 0x146   :  { %1022 = vst [vmem:[%s1762_s3 + $0x70] sm:$0xff] %v1006_v52  ;;  %1012 = vst [vmem:[%s1762_s3 + $0x20] sm:$0xff] %v996_v1  ;;  %v1007_v53 = vmax.f32 %v991_v7, 0.0  ;;  %v997_v5 = vmax.f32 %v981_v2, 0.0 }
 0x147   :  { %1020 = vst [vmem:[%s1762_s3 + $0x60] sm:$0xff] %v1004_v3  ;;  %1015 = vst [vmem:[%s1762_s3 + $0x38] sm:$0xff] %v999_v57  ;;  %v1005_v8 = vmax.f32 %v989_v4, 0.0 }
 0x148   :  { %1023 = vst [vmem:[%s1762_s3 + $0x78] sm:$0xff] %v1007_v53  ;;  %1013 = vst [vmem:[%s1762_s3 + $0x28] sm:$0xff] %v997_v5 }
 0x149   :  { %1021 = vst [vmem:[%s1762_s3 + $0x68] sm:$0xff] %v1005_v8 }

// kernel: backbone_forward.25
= control target key start
LH: loop header
LB: loop body
LE: loop exit
PB: predicated region body
PF: predicated region fallthrough
CT: control target
= control target key end

     0   :  { %s1850_s1 = inlined_call_operand.vmem [shape: bf16[640,128], index: 1, kind: input, shape index: {}]   ;;  %s1851_s0 = inlined_call_operand.vmem [shape: bf16[128,640], index: 0, kind: input, shape index: {}]   ;;  %s1852_s2 = inlined_call_operand.vmem [shape: f32[1,128], index: 2, kind: input, shape index: {}]   ;;  %s1853_s3 = inlined_call_operand.vmem [shape: f32[128,128], index: 3, kind: input, shape index: {}]   ;;  %s1854_s4 = inlined_call_operand.vmem [shape: f32[128,128], index: 4, kind: output, shape index: {}]  }
   0x1   :  { %v1336_v0 = vld [vmem:[%s1850_s1 + $0x40] sm:$0xff]   ;;  %v1340_v4 = vld [vmem:[%s1850_s1 + $0x48] sm:$0xff]   ;;  %v1344_v8 = vld [vmem:[%s1850_s1 + $0x50] sm:$0xff]  }
   0x2   :  { %v1337_v1 = vld [vmem:[%s1850_s1 + $0xc0] sm:$0xff]   ;;  %1144 = vmatprep.subr.bf16.mxu0 %v1336_v0  ;;  %v1341_v5 = vld [vmem:[%s1850_s1 + $0xc8] sm:$0xff]   ;;  %v1345_v9 = vld [vmem:[%s1850_s1 + $0xd0] sm:$0xff]  }
   0x3   :  { %v1338_v2 = vld [vmem:[%s1850_s1] sm:$0xff]   ;;  %1208 = vmatprep.subr.bf16.mxu1 %v1337_v1  ;;  %v1342_v6 = vld [vmem:[%s1850_s1 + $0x8] sm:$0xff]   ;;  %v1346_v10 = vld [vmem:[%s1850_s1 + $0x10] sm:$0xff]  }
   0x4   :  { %v1339_v3 = vld [vmem:[%s1850_s1 + $0x80] sm:$0xff]   ;;  %1145 = vmatpush3.bf16.msra.mxu0 %v1338_v2  ;;  %v1343_v7 = vld [vmem:[%s1850_s1 + $0x88] sm:$0xff]   ;;  %v1347_v11 = vld [vmem:[%s1850_s1 + $0x90] sm:$0xff]  }
   0x5   :  { %1209 = vmatpush3.bf16.msra.mxu1 %v1339_v3  ;;  %1146 = vmatprep.subr.bf16.mxu0 %v1340_v4  ;;  %v1348_v12 = vld [vmem:[%s1850_s1 + $0x58] sm:$0xff]   ;;  %v1352_v16 = vld [vmem:[%s1850_s1 + $0x60] sm:$0xff]   ;;  %v1356_v20 = vld [vmem:[%s1850_s1 + $0x68] sm:$0xff]  }
   0x6   :  { %1210 = vmatprep.subr.bf16.mxu1 %v1341_v5  ;;  %v1349_v13 = vld [vmem:[%s1850_s1 + $0xd8] sm:$0xff]   ;;  %v1353_v17 = vld [vmem:[%s1850_s1 + $0xe0] sm:$0xff]   ;;  %v1357_v21 = vld [vmem:[%s1850_s1 + $0xe8] sm:$0xff]  }
   0x7   :  { %v1350_v14 = vld [vmem:[%s1850_s1 + $0x18] sm:$0xff]   ;;  %v1354_v18 = vld [vmem:[%s1850_s1 + $0x20] sm:$0xff]   ;;  %v1358_v22 = vld [vmem:[%s1850_s1 + $0x28] sm:$0xff]  }
   0x8   :  { %1147 = vmatpush3.bf16.msra.mxu0 %v1342_v6  ;;  %v1351_v15 = vld [vmem:[%s1850_s1 + $0x98] sm:$0xff]   ;;  %v1355_v19 = vld [vmem:[%s1850_s1 + $0xa0] sm:$0xff]   ;;  %v1359_v23 = vld [vmem:[%s1850_s1 + $0xa8] sm:$0xff]  }
   0x9   :  { %1211 = vmatpush3.bf16.msra.mxu1 %v1343_v7  ;;  %1148 = vmatprep.subr.bf16.mxu0 %v1344_v8  ;;  %v1360_v24 = vld [vmem:[%s1850_s1 + $0x70] sm:$0xff]   ;;  %v1364_v28 = vld [vmem:[%s1850_s1 + $0x78] sm:$0xff]   ;;  %v1373_v35 = vld [vmem:[%s1851_s0 + $0xc] ss:$20 sps:$4 sm:$0xff]  }
   0xa   :  { %1212 = vmatprep.subr.bf16.mxu1 %v1345_v9  ;;  %v1361_v25 = vld [vmem:[%s1850_s1 + $0xf0] sm:$0xff]   ;;  %v1365_v29 = vld [vmem:[%s1850_s1 + $0xf8] sm:$0xff]   ;;  %v1374_v36 = vld [vmem:[%s1850_s1 + $0x100] sm:$0xff]   ;;  %759 = vmatprep.mubr.bf16.mxu1 %v1373_v35 }
   0xb   :  { %v1362_v26 = vld [vmem:[%s1850_s1 + $0x30] sm:$0xff]   ;;  %v1366_v30 = vld [vmem:[%s1850_s1 + $0x38] sm:$0xff]   ;;  %v1375_v37 = vld [vmem:[%s1851_s0 + $0x2c] ss:$20 sps:$4 sm:$0xff]  }
   0xc   :  { %1149 = vmatpush3.bf16.msra.mxu0 %v1346_v10  ;;  %v1363_v27 = vld [vmem:[%s1850_s1 + $0xb0] sm:$0xff]   ;;  %v1367_v31 = vld [vmem:[%s1850_s1 + $0xb8] sm:$0xff]   ;;  %v1381_v39 = vld [vmem:[%s1850_s1 + $0x108] sm:$0xff]  }
   0xd   :  { %1213 = vmatpush3.bf16.msra.mxu1 %v1347_v11  ;;  %1150 = vmatprep.subr.bf16.mxu0 %v1348_v12  ;;  %v1368_v32 = vld [vmem:[%s1851_s0] ss:$20 sps:$4 sm:$0xff]   ;;  %v1370_v33 = vld [vmem:[%s1851_s0 + $0x4] ss:$20 sps:$4 sm:$0xff]   ;;  %v1371_v34 = vld [vmem:[%s1851_s0 + $0x8] ss:$20 sps:$4 sm:$0xff]  }
   0xe   :  { %1214 = vmatprep.subr.bf16.mxu1 %v1349_v13  ;;  %662 = vmatprep.mubr.bf16.mxu0 %v1370_v33  ;;  %v1377_v38 = vld [vmem:[%s1851_s0 + $0x34] ss:$20 sps:$4 sm:$0xff]   ;;  %v1380_v41 = vld [vmem:[%s1851_s0 + $0x30] ss:$20 sps:$4 sm:$0xff]   ;;  %v1395_v45 = vld [vmem:[%s1850_s1 + $0x118] sm:$0xff]  }
   0xf   :  { %v1379_v40 = vld [vmem:[%s1851_s0 + $0x28] ss:$20 sps:$4 sm:$0xff]   ;;  %v1388_v44 = vld [vmem:[%s1850_s1 + $0x110] sm:$0xff]   ;;  %v1387_v47 = vld [vmem:[%s1851_s0 + $0x58] ss:$20 sps:$4 sm:$0xff]  }
  0x10   :  { %1151 = vmatpush3.bf16.msra.mxu0 %v1350_v14  ;;  %v1382_v42 = vld [vmem:[%s1851_s0 + $0x54] ss:$20 sps:$4 sm:$0xff]   ;;  %v1384_v43 = vld [vmem:[%s1851_s0 + $0x5c] ss:$20 sps:$4 sm:$0xff]   ;;  %v1391_v49 = vld [vmem:[%s1851_s0 + $0x84] ss:$20 sps:$4 sm:$0xff]  }
  0x11   :  { %1215 = vmatpush3.bf16.msra.mxu1 %v1351_v15  ;;  %1152 = vmatprep.subr.bf16.mxu0 %v1352_v16  ;;  %v1386_v46 = vld [vmem:[%s1851_s0 + $0x50] ss:$20 sps:$4 sm:$0xff]   ;;  %v1409_v51 = vld [vmem:[%s1850_s1 + $0x128] sm:$0xff]   ;;  %v1394_v53 = vld [vmem:[%s1851_s0 + $0x80] ss:$20 sps:$4 sm:$0xff]  }
  0x12   :  { %1216 = vmatprep.subr.bf16.mxu1 %v1353_v17  ;;  %v1389_v48 = vld [vmem:[%s1851_s0 + $0x7c] ss:$20 sps:$4 sm:$0xff]   ;;  %v1402_v50 = vld [vmem:[%s1850_s1 + $0x120] sm:$0xff]   ;;  %v1393_v52 = vld [vmem:[%s1851_s0 + $0x78] ss:$20 sps:$4 sm:$0xff]  }
  0x13   :  { %v1396_v54 = vld [vmem:[%s1851_s0 + $0xa4] ss:$20 sps:$4 sm:$0xff]   ;;  %v1416_v55 = vld [vmem:[%s1850_s1 + $0x130] sm:$0xff]   ;;  %v1398_v56 = vld [vmem:[%s1851_s0 + $0xac] ss:$20 sps:$4 sm:$0xff]  }
  0x14   :  { %1153 = vmatpush3.bf16.msra.mxu0 %v1354_v18  ;;  %v1423_v57 = vld [vmem:[%s1850_s1 + $0x138] sm:$0xff]   ;;  %v1400_v58 = vld [vmem:[%s1851_s0 + $0xa0] ss:$20 sps:$4 sm:$0xff]   ;;  %v1408_v63 = vld [vmem:[%s1851_s0 + $0xd0] ss:$20 sps:$4 sm:$0xff]  }
  0x15   :  { %1217 = vmatpush3.bf16.msra.mxu1 %v1355_v19  ;;  %1154 = vmatprep.subr.bf16.mxu0 %v1356_v20  ;;  %v1401_v59 = vld [vmem:[%s1851_s0 + $0xa8] ss:$20 sps:$4 sm:$0xff]   ;;  %v1403_v60 = vld [vmem:[%s1851_s0 + $0xcc] ss:$20 sps:$4 sm:$0xff]   ;;  %v1414_v2 = vld [vmem:[%s1851_s0 + $0xf0] ss:$20 sps:$4 sm:$0xff]  }
  0x16   :  { %1218 = vmatprep.subr.bf16.mxu1 %v1357_v21  ;;  %v1405_v61 = vld [vmem:[%s1851_s0 + $0xd4] ss:$20 sps:$4 sm:$0xff]   ;;  %v1412_v1 = vld [vmem:[%s1851_s0 + $0xfc] ss:$20 sps:$4 sm:$0xff]   ;;  %v1415_v3 = vld [vmem:[%s1851_s0 + $0xf8] ss:$20 sps:$4 sm:$0xff]  }
  0x17   :  { %v1407_v62 = vld [vmem:[%s1851_s0 + $0xc8] ss:$20 sps:$4 sm:$0xff]   ;;  %v1419_v5 = vld [vmem:[%s1851_s0 + $0x124] ss:$20 sps:$4 sm:$0xff]   ;;  %v1422_v7 = vld [vmem:[%s1851_s0 + $0x120] ss:$20 sps:$4 sm:$0xff]  }
  0x18   :  { %1155 = vmatpush3.bf16.msra.mxu0 %v1358_v22  ;;  %v1410_v0 = vld [vmem:[%s1851_s0 + $0xf4] ss:$20 sps:$4 sm:$0xff]   ;;  %v1417_v4 = vld [vmem:[%s1851_s0 + $0x11c] ss:$20 sps:$4 sm:$0xff]   ;;  %v1421_v6 = vld [vmem:[%s1851_s0 + $0x118] ss:$20 sps:$4 sm:$0xff]  }
  0x19   :  { %1219 = vmatpush3.bf16.msra.mxu1 %v1359_v23  ;;  %1156 = vmatprep.subr.bf16.mxu0 %v1360_v24  ;;  %v1424_v8 = vld [vmem:[%s1851_s0 + $0x10] ss:$20 sps:$4 sm:$0xff]   ;;  %v1426_v10 = vld [vmem:[%s1851_s0 + $0x38] ss:$20 sps:$4 sm:$0xff]   ;;  %v1428_v12 = vld [vmem:[%s1851_s0 + $0x60] ss:$20 sps:$4 sm:$0xff]  }
  0x1a   :  { %1220 = vmatprep.subr.bf16.mxu1 %v1361_v25  ;;  %v1425_v9 = vld [vmem:[%s1851_s0 + $0xb0] ss:$20 sps:$4 sm:$0xff]   ;;  %v1427_v11 = vld [vmem:[%s1851_s0 + $0xd8] ss:$20 sps:$4 sm:$0xff]   ;;  %v1429_v13 = vld [vmem:[%s1851_s0 + $0x100] ss:$20 sps:$4 sm:$0xff]  }
  0x1b   :  { %v1430_v14 = vld [vmem:[%s1851_s0 + $0x88] ss:$20 sps:$4 sm:$0xff]  }
  0x1c   :  { %1157 = vmatpush3.bf16.msra.mxu0 %v1362_v26  ;;  %v1431_v15 = vld [vmem:[%s1851_s0 + $0x128] ss:$20 sps:$4 sm:$0xff]  }
  0x1d   :  { %1221 = vmatpush3.bf16.msra.mxu1 %v1363_v27  ;;  %1158 = vmatprep.subr.bf16.mxu0 %v1364_v28 }
  0x1e   :  { %1222 = vmatprep.subr.bf16.mxu1 %v1365_v29 }
  0x20   :  { %1159 = vmatpush3.bf16.msra.mxu0 %v1366_v30 }
  0x21   :  { %1223 = vmatpush3.bf16.msra.mxu1 %v1367_v31  ;;  %1288 = vmatprep.subr.bf16.mxu0 %v1374_v36 }
  0x22   :  { %1320 = vmatprep.subr.bf16.mxu1 %v1374_v36 }
  0x23   :  { %663 = vmatmul.mubr.bf16.vlgmr.msra.gmra.mrb[0].mxu0 %v1368_v32 }
  0x24   :  { %760 = vmatmul.mubr.bf16.vlgmr.msra.gmra.mrb[0].mxu1 %v1371_v34  ;;  %1289 = vmatpush3.bf16.msra.mxu0 %v1374_v36 }
  0x25   :  { %1328 = vmatpush3.bf16.msra.mxu1 %v1374_v36  ;;  %670 = vmatprep.mubr.bf16.mxu0 %v1375_v37 }
  0x26   :  { %767 = vmatprep.mubr.bf16.mxu1 %v1377_v38  ;;  %1290 = vmatprep.subr.bf16.mxu0 %v1381_v39 }
  0x27   :  { %1321 = vmatprep.subr.bf16.mxu1 %v1381_v39 }
  0x28   :  { %1291 = vmatpush3.bf16.msra.mxu0 %v1381_v39 }
  0x29   :  { %1329 = vmatpush3.bf16.msra.mxu1 %v1381_v39  ;;  %1292 = vmatprep.subr.bf16.mxu0 %v1388_v44 }
  0x2a   :  { %1322 = vmatprep.subr.bf16.mxu1 %v1388_v44 }
  0x2b   :  { %671 = vmatmul.mubr.bf16.gmra.mrb[4].mxu0 %v1379_v40 }
  0x2c   :  { %768 = vmatmul.mubr.bf16.gmra.mrb[4].mxu1 %v1380_v41  ;;  %678 = vmatprep.mubr.bf16.mxu0 %v1382_v42 }
  0x2d   :  { %775 = vmatprep.mubr.bf16.mxu1 %v1384_v43  ;;  %1293 = vmatpush3.bf16.msra.mxu0 %v1388_v44 }
  0x2e   :  { %1330 = vmatpush3.bf16.msra.mxu1 %v1388_v44  ;;  %1294 = vmatprep.subr.bf16.mxu0 %v1395_v45 }
  0x2f   :  { %1323 = vmatprep.subr.bf16.mxu1 %v1395_v45 }
  0x31   :  { %1295 = vmatpush3.bf16.msra.mxu0 %v1395_v45 }
  0x32   :  { %1331 = vmatpush3.bf16.msra.mxu1 %v1395_v45  ;;  %1296 = vmatprep.subr.bf16.mxu0 %v1402_v50 }
  0x33   :  { %679 = vmatmul.mubr.bf16.gmra.mrb[8].mxu0 %v1386_v46  ;;  %1324 = vmatprep.subr.bf16.mxu1 %v1402_v50 }
  0x34   :  { %776 = vmatmul.mubr.bf16.gmra.mrb[8].mxu1 %v1387_v47  ;;  %686 = vmatprep.mubr.bf16.mxu0 %v1389_v48 }
  0x35   :  { %783 = vmatprep.mubr.bf16.mxu1 %v1391_v49  ;;  %1297 = vmatpush3.bf16.msra.mxu0 %v1402_v50 }
  0x36   :  { %1332 = vmatpush3.bf16.msra.mxu1 %v1402_v50  ;;  %1298 = vmatprep.subr.bf16.mxu0 %v1409_v51 }
  0x37   :  { %1325 = vmatprep.subr.bf16.mxu1 %v1409_v51 }
  0x39   :  { %1299 = vmatpush3.bf16.msra.mxu0 %v1409_v51 }
  0x3a   :  { %1333 = vmatpush3.bf16.msra.mxu1 %v1409_v51  ;;  %1300 = vmatprep.subr.bf16.mxu0 %v1416_v55 }
  0x3b   :  { %687 = vmatmul.mubr.bf16.gmra.mrb[12].mxu0 %v1393_v52  ;;  %1326 = vmatprep.subr.bf16.mxu1 %v1416_v55 }
  0x3c   :  { %784 = vmatmul.mubr.bf16.gmra.mrb[12].mxu1 %v1394_v53  ;;  %694 = vmatprep.mubr.bf16.mxu0 %v1396_v54 }
  0x3d   :  { %791 = vmatprep.mubr.bf16.mxu1 %v1398_v56  ;;  %1301 = vmatpush3.bf16.msra.mxu0 %v1416_v55 }
  0x3e   :  { %1334 = vmatpush3.bf16.msra.mxu1 %v1416_v55  ;;  %1302 = vmatprep.subr.bf16.mxu0 %v1423_v57 }
  0x3f   :  { %1327 = vmatprep.subr.bf16.mxu1 %v1423_v57 }
  0x41   :  { %1303 = vmatpush3.bf16.msra.mxu0 %v1423_v57 }
  0x42   :  { %1335 = vmatpush3.bf16.msra.mxu1 %v1423_v57 }
  0x43   :  { %695 = vmatmul.mubr.bf16.gmra.mrb[16].mxu0 %v1400_v58 }
  0x44   :  { %792 = vmatmul.mubr.bf16.gmra.mrb[16].mxu1 %v1401_v59  ;;  %702 = vmatprep.mubr.bf16.mxu0 %v1403_v60 }
  0x45   :  { %799 = vmatprep.mubr.bf16.mxu1 %v1405_v61 }
  0x4b   :  { %703 = vmatmul.mubr.bf16.gmra.mrb[20].mxu0 %v1407_v62 }
  0x4c   :  { %800 = vmatmul.mubr.bf16.gmra.mrb[20].mxu1 %v1408_v63  ;;  %710 = vmatprep.mubr.bf16.mxu0 %v1410_v0 }
  0x4d   :  { %807 = vmatprep.mubr.bf16.mxu1 %v1412_v1 }
  0x53   :  { %711 = vmatmul.mubr.bf16.gmra.mrb[24].mxu0 %v1414_v2 }
  0x54   :  { %808 = vmatmul.mubr.bf16.gmra.mrb[24].mxu1 %v1415_v3  ;;  %718 = vmatprep.mubr.bf16.mxu0 %v1417_v4 }
  0x55   :  { %815 = vmatprep.mubr.bf16.mxu1 %v1419_v5 }
  0x5b   :  { %719 = vmatmul.mubr.bf16.gmra.mrb[28].mxu0 %v1421_v6 }
  0x5c   :  { %816 = vmatmul.mubr.bf16.gmra.mrb[28].mxu1 %v1422_v7  ;;  %1304 = vmatprep.mubr.bf16.mxu0 %v1424_v8 }
  0x5d   :  { %1312 = vmatprep.mubr.bf16.mxu1 %v1425_v9 }
  0x63   :  { %1305 = vmatmul.mubr.bf16.vlgmr.msra.gmra.mrb[32].mxu0 %v1426_v10 }
  0x64   :  { %1313 = vmatmul.mubr.bf16.vlgmr.msra.gmra.mrb[32].mxu1 %v1427_v11  ;;  %1308 = vmatprep.mubr.bf16.mxu0 %v1428_v12 }
  0x65   :  { %1316 = vmatprep.mubr.bf16.mxu1 %v1429_v13 }
  0x6b   :  { %1309 = vmatmul.mubr.bf16.gmra.mrb[36].mxu0 %v1430_v14 }
  0x6c   :  { %1317 = vmatmul.mubr.bf16.gmra.mrb[36].mxu1 %v1431_v15 }
  0xf6   :  { %v1160_v16 = vpop.f32.mrb[0].mxu0 }
  0xf7   :  { %v1224_v17 = vpop.f32.mrb[0].mxu1  ;;  %v1161_v18 = vpop.f32.mrb[1].mxu0 }
  0xf8   :  { %v1162_v19 = vadd.f32 %v1161_v18, %v1160_v16  ;;  %v1225_v20 = vpop.f32.mrb[1].mxu1  ;;  %v1163_v21 = vpop.f32.mrb[2].mxu0 }
  0xf9   :  { %v1226_v22 = vadd.f32 %v1225_v20, %v1224_v17  ;;  %v1227_v23 = vpop.f32.mrb[2].mxu1  ;;  %v1164_v24 = vpop.f32.mrb[3].mxu0 }
  0xfa   :  { %v1165_v25 = vadd.f32 %v1164_v24, %v1163_v21  ;;  %v1228_v26 = vpop.f32.mrb[3].mxu1 }
  0xfb   :  { %v1229_v27 = vadd.f32 %v1228_v26, %v1227_v23  ;;  %v1697_v28 = vadd.f32 %v1226_v22, %v1162_v19 }
  0xfd   :  { %v1699_v29 = vadd.f32 %v1229_v27, %v1165_v25 }
  0xfe   :  { %v1166_v30 = vpop.f32.mrb[4].mxu0 }
  0xff   :  { %v1230_v31 = vpop.f32.mrb[4].mxu1  ;;  %v1167_v32 = vpop.f32.mrb[5].mxu0 }
 0x100   :  { %v1168_v33 = vadd.f32 %v1167_v32, %v1166_v30  ;;  %v1231_v34 = vpop.f32.mrb[5].mxu1  ;;  %v1169_v35 = vpop.f32.mrb[6].mxu0 }
 0x101   :  { %v1232_v36 = vadd.f32 %v1231_v34, %v1230_v31  ;;  %v1233_v37 = vpop.f32.mrb[6].mxu1  ;;  %v1170_v38 = vpop.f32.mrb[7].mxu0 }
 0x102   :  { %v1171_v39 = vadd.f32 %v1170_v38, %v1169_v35  ;;  %v1234_v40 = vpop.f32.mrb[7].mxu1 }
 0x103   :  { %v1235_v41 = vadd.f32 %v1234_v40, %v1233_v37  ;;  %v1701_v42 = vadd.f32 %v1232_v36, %v1168_v33 }
 0x105   :  { %v1703_v43 = vadd.f32 %v1235_v41, %v1171_v39 }
 0x106   :  { %v1172_v44 = vpop.f32.mrb[8].mxu0 }
 0x107   :  { %v1236_v45 = vpop.f32.mrb[8].mxu1  ;;  %v1173_v46 = vpop.f32.mrb[9].mxu0 }
 0x108   :  { %v1174_v47 = vadd.f32 %v1173_v46, %v1172_v44  ;;  %v1237_v48 = vpop.f32.mrb[9].mxu1  ;;  %v1175_v49 = vpop.f32.mrb[10].mxu0 }
 0x109   :  { %v1238_v50 = vadd.f32 %v1237_v48, %v1236_v45  ;;  %v1239_v51 = vpop.f32.mrb[10].mxu1  ;;  %v1176_v52 = vpop.f32.mrb[11].mxu0 }
 0x10a   :  { %v1177_v53 = vadd.f32 %v1176_v52, %v1175_v49  ;;  %v1240_v54 = vpop.f32.mrb[11].mxu1 }
 0x10b   :  { %v1241_v55 = vadd.f32 %v1240_v54, %v1239_v51  ;;  %v1705_v56 = vadd.f32 %v1238_v50, %v1174_v47 }
 0x10d   :  { %v1707_v57 = vadd.f32 %v1241_v55, %v1177_v53 }
 0x10e   :  { %v1178_v58 = vpop.f32.mrb[12].mxu0 }
 0x10f   :  { %v1242_v59 = vpop.f32.mrb[12].mxu1  ;;  %v1179_v60 = vpop.f32.mrb[13].mxu0 }
 0x110   :  { %v1180_v61 = vadd.f32 %v1179_v60, %v1178_v58  ;;  %v1243_v62 = vpop.f32.mrb[13].mxu1  ;;  %v1181_v63 = vpop.f32.mrb[14].mxu0 }
 0x111   :  { %v1244_v0 = vadd.f32 %v1243_v62, %v1242_v59  ;;  %v1245_v1 = vpop.f32.mrb[14].mxu1  ;;  %v1182_v2 = vpop.f32.mrb[15].mxu0 }
 0x112   :  { %v1183_v3 = vadd.f32 %v1182_v2, %v1181_v63  ;;  %v1246_v4 = vpop.f32.mrb[15].mxu1 }
 0x113   :  { %v1247_v5 = vadd.f32 %v1246_v4, %v1245_v1  ;;  %v1709_v6 = vadd.f32 %v1244_v0, %v1180_v61 }
 0x115   :  { %v1711_v7 = vadd.f32 %v1247_v5, %v1183_v3 }
 0x116   :  { %v1184_v8 = vpop.f32.mrb[16].mxu0 }
 0x117   :  { %v1248_v9 = vpop.f32.mrb[16].mxu1  ;;  %v1185_v10 = vpop.f32.mrb[17].mxu0 }
 0x118   :  { %v1186_v11 = vadd.f32 %v1185_v10, %v1184_v8  ;;  %v1249_v12 = vpop.f32.mrb[17].mxu1  ;;  %v1187_v13 = vpop.f32.mrb[18].mxu0 }
 0x119   :  { %v1250_v14 = vadd.f32 %v1249_v12, %v1248_v9  ;;  %v1251_v15 = vpop.f32.mrb[18].mxu1  ;;  %v1188_v16 = vpop.f32.mrb[19].mxu0  ;;  %v1724_v9 = vld [vmem:[%s1852_s2] ss:$0 sm:$0xff] }
 0x11a   :  { %v1189_v17 = vadd.f32 %v1188_v16, %v1187_v13  ;;  %v1252_v18 = vpop.f32.mrb[19].mxu1  ;;  %v997_v13 = vld [vmem:[%s1853_s3 + $0x10] sm:$0xff] }
 0x11b   :  { %v1253_v19 = vadd.f32 %v1252_v18, %v1251_v15  ;;  %v794_v20 = vadd.f32 %v1250_v14, %v1186_v11 }
 0x11d   :  { %v1713_v21 = vadd.f32 %v1253_v19, %v1189_v17  ;;  %v1005_v19 = vld [vmem:[%s1853_s3 + $0x50] sm:$0xff] }
 0x11e   :  { %v1190_v22 = vpop.f32.mrb[20].mxu0 }
 0x11f   :  { %v1254_v23 = vpop.f32.mrb[20].mxu1  ;;  %v1191_v24 = vpop.f32.mrb[21].mxu0 }
 0x120   :  { %v1192_v25 = vadd.f32 %v1191_v24, %v1190_v22  ;;  %v1255_v26 = vpop.f32.mrb[21].mxu1  ;;  %v1193_v27 = vpop.f32.mrb[22].mxu0 }
 0x121   :  { %v1256_v30 = vadd.f32 %v1255_v26, %v1254_v23  ;;  %v1257_v31 = vpop.f32.mrb[22].mxu1  ;;  %v1194_v32 = vpop.f32.mrb[23].mxu0 }
 0x122   :  { %v1195_v33 = vadd.f32 %v1194_v32, %v1193_v27  ;;  %v1258_v34 = vpop.f32.mrb[23].mxu1  ;;  %v1003_v27 = vld [vmem:[%s1853_s3 + $0x40] sm:$0xff] }
 0x123   :  { %v1259_v35 = vadd.f32 %v1258_v34, %v1257_v31  ;;  %v802_v36 = vadd.f32 %v1256_v30, %v1192_v25  ;;  %v998_v30 = vld [vmem:[%s1853_s3 + $0x18] sm:$0xff] }
 0x125   :  { %v805_v37 = vadd.f32 %v1259_v35, %v1195_v33  ;;  %v1006_v35 = vld [vmem:[%s1853_s3 + $0x58] sm:$0xff] }
 0x126   :  { %v1196_v38 = vpop.f32.mrb[24].mxu0 }
 0x127   :  { %v1260_v39 = vpop.f32.mrb[24].mxu1  ;;  %v1197_v40 = vpop.f32.mrb[25].mxu0 }
 0x128   :  { %v1198_v41 = vadd.f32 %v1197_v40, %v1196_v38  ;;  %v1261_v44 = vpop.f32.mrb[25].mxu1  ;;  %v1199_v45 = vpop.f32.mrb[26].mxu0 }
 0x129   :  { %v1262_v46 = vadd.f32 %v1261_v44, %v1260_v39  ;;  %v1263_v47 = vpop.f32.mrb[26].mxu1  ;;  %v1200_v48 = vpop.f32.mrb[27].mxu0 }
 0x12a   :  { %v1201_v49 = vadd.f32 %v1200_v48, %v1199_v45  ;;  %v1264_v50 = vpop.f32.mrb[27].mxu1 }
 0x12b   :  { %v1265_v51 = vadd.f32 %v1264_v50, %v1263_v47  ;;  %v1715_v52 = vadd.f32 %v1262_v46, %v1198_v41  ;;  %v1004_v41 = vld [vmem:[%s1853_s3 + $0x48] sm:$0xff] }
 0x12d   :  { %v1717_v53 = vadd.f32 %v1265_v51, %v1201_v49 }
 0x12e   :  { %v1202_v54 = vpop.f32.mrb[28].mxu0 }
 0x12f   :  { %v1266_v55 = vpop.f32.mrb[28].mxu1  ;;  %v1203_v58 = vpop.f32.mrb[29].mxu0 }
 0x130   :  { %v1204_v59 = vadd.f32 %v1203_v58, %v1202_v54  ;;  %v1267_v60 = vpop.f32.mrb[29].mxu1  ;;  %v1205_v61 = vpop.f32.mrb[30].mxu0 }
 0x131   :  { %v1268_v62 = vadd.f32 %v1267_v60, %v1266_v55  ;;  %v1269_v63 = vpop.f32.mrb[30].mxu1  ;;  %v1206_v0 = vpop.f32.mrb[31].mxu0 }
 0x132   :  { %v1207_v1 = vadd.f32 %v1206_v0, %v1205_v61  ;;  %v1270_v2 = vpop.f32.mrb[31].mxu1  ;;  %v1001_v0 = vld [vmem:[%s1853_s3 + $0x30] sm:$0xff] }
 0x133   :  { %v1271_v3 = vadd.f32 %v1270_v2, %v1269_v63  ;;  %v818_v4 = vadd.f32 %v1268_v62, %v1204_v59 }
 0x135   :  { %v1719_v5 = vadd.f32 %v1271_v3, %v1207_v1 }
 0x136   :  { %v1306_v8 = vpop.f32.mrb[32].mxu0 }
 0x137   :  { %v867_v10 = vadd.f32 %v1306_v8, %v1701_v42  ;;  %v1314_v11 = vpop.f32.mrb[32].mxu1  ;;  %v858_v12 = vpop.f32.mrb[33].mxu0  ;;  %v995_v42 = vld [vmem:[%s1853_s3] sm:$0xff] }
 0x138   :  { %v899_v14 = vadd.f32 %v1314_v11, %v802_v36  ;;  %v859_v15 = vadd.f32 %v858_v12, %v1697_v28  ;;  %v890_v16 = vpop.f32.mrb[33].mxu1  ;;  %v1307_v17 = vpop.f32.mrb[34].mxu0  ;;  %v996_v36 = vld [vmem:[%s1853_s3 + $0x8] sm:$0xff]  ;;  %v1009_v11 = vld [vmem:[%s1853_s3 + $0x70] sm:$0xff] }
 0x139   :  { %v981_v18 = vadd.f32 %v1724_v9, %v867_v10  ;;  %v891_v22 = vadd.f32 %v890_v16, %v794_v20  ;;  %v870_v23 = vadd.f32 %v1307_v17, %v1703_v43  ;;  %v1315_v24 = vpop.f32.mrb[34].mxu1  ;;  %v861_v25 = vpop.f32.mrb[35].mxu0 }
 0x13a   :  { %v989_v26 = vadd.f32 %v1724_v9, %v899_v14  ;;  %v979_v28 = vadd.f32 %v1724_v9, %v859_v15  ;;  %v902_v31 = vadd.f32 %v1315_v24, %v805_v37  ;;  %v862_v32 = vadd.f32 %v861_v25, %v1699_v29  ;;  %v893_v20 = vpop.f32.mrb[35].mxu1  ;;  %v1010_v24 = vld [vmem:[%s1853_s3 + $0x78] sm:$0xff] }
 0x13b   :  { %v1013_v33 = vadd.f32 %v997_v13, %v981_v18  ;;  %v987_v43 = vadd.f32 %v1724_v9, %v891_v22  ;;  %v982_v34 = vadd.f32 %v1724_v9, %v870_v23  ;;  %v894_v38 = vadd.f32 %v893_v20, %v1713_v21 }
 0x13c   :  { %v1021_v39 = vadd.f32 %v1005_v19, %v989_v26  ;;  %v1011_v37 = vadd.f32 %v995_v42, %v979_v28  ;;  %v990_v29 = vadd.f32 %v1724_v9, %v902_v31  ;;  %v980_v40 = vadd.f32 %v1724_v9, %v862_v32 }
 0x13d   :  { %v1029_v44 = vmax.f32 %v1013_v33, 0.0  ;;  %v1019_v45 = vadd.f32 %v1003_v27, %v987_v43  ;;  %v1014_v46 = vadd.f32 %v998_v30, %v982_v34  ;;  %v988_v47 = vadd.f32 %v1724_v9, %v894_v38  ;;  %v1008_v30 = vld [vmem:[%s1853_s3 + $0x68] sm:$0xff] }
 0x13e   :  { %v1037_v48 = vmax.f32 %v1021_v39, 0.0  ;;  %v1027_v49 = vmax.f32 %v1011_v37, 0.0  ;;  %v1022_v50 = vadd.f32 %v1006_v35, %v990_v29  ;;  %v1012_v51 = vadd.f32 %v996_v36, %v980_v40  ;;  %v1310_v21 = vpop.f32.mrb[36].mxu0 }
 0x13f   :  { %1045 = vst [vmem:[%s1854_s4 + $0x10] sm:$0xff] %v1029_v44  ;;  %v1035_v54 = vmax.f32 %v1019_v45, 0.0  ;;  %v1030_v55 = vmax.f32 %v1014_v46, 0.0  ;;  %v1020_v58 = vadd.f32 %v1004_v41, %v988_v47  ;;  %v883_v59 = vadd.f32 %v1310_v21, %v1709_v6  ;;  %v1318_v60 = vpop.f32.mrb[36].mxu1  ;;  %v874_v61 = vpop.f32.mrb[37].mxu0 }
 0x140   :  { %1053 = vst [vmem:[%s1854_s4 + $0x50] sm:$0xff] %v1037_v48  ;;  %1043 = vst [vmem:[%s1854_s4] sm:$0xff] %v1027_v49  ;;  %v1038_v62 = vmax.f32 %v1022_v50, 0.0  ;;  %v1028_v63 = vmax.f32 %v1012_v51, 0.0  ;;  %v915_v1 = vadd.f32 %v1318_v60, %v818_v4  ;;  %v875_v2 = vadd.f32 %v874_v61, %v1705_v56  ;;  %v906_v6 = vpop.f32.mrb[37].mxu1  ;;  %v1311_v3 = vpop.f32.mrb[38].mxu0  ;;  %v999_v56 = vld [vmem:[%s1853_s3 + $0x20] sm:$0xff] }
 0x141   :  { %1051 = vst [vmem:[%s1854_s4 + $0x40] sm:$0xff] %v1035_v54  ;;  %1046 = vst [vmem:[%s1854_s4 + $0x18] sm:$0xff] %v1030_v55  ;;  %v1036_v8 = vmax.f32 %v1020_v58, 0.0  ;;  %v985_v10 = vadd.f32 %v1724_v9, %v883_v59  ;;  %v907_v4 = vadd.f32 %v906_v6, %v1715_v52  ;;  %v886_v12 = vadd.f32 %v1311_v3, %v1711_v7  ;;  %v1319_v13 = vpop.f32.mrb[38].mxu1  ;;  %v877_v14 = vpop.f32.mrb[39].mxu0  ;;  %v1007_v52 = vld [vmem:[%s1853_s3 + $0x60] sm:$0xff] }
 0x142   :  { %1054 = vst [vmem:[%s1854_s4 + $0x58] sm:$0xff] %v1038_v62  ;;  %1044 = vst [vmem:[%s1854_s4 + $0x8] sm:$0xff] %v1028_v63  ;;  %v993_v15 = vadd.f32 %v1724_v9, %v915_v1  ;;  %v983_v16 = vadd.f32 %v1724_v9, %v875_v2  ;;  %v1002_v7 = vld [vmem:[%s1853_s3 + $0x38] sm:$0xff]  ;;  %v918_v17 = vadd.f32 %v1319_v13, %v1719_v5  ;;  %v909_v19 = vpop.f32.mrb[39].mxu1  ;;  %v1000_v5 = vld [vmem:[%s1853_s3 + $0x28] sm:$0xff] }
 0x143   :  { %v878_v18 = vadd.f32 %v877_v14, %v1707_v57  ;;  %1052 = vst [vmem:[%s1854_s4 + $0x48] sm:$0xff] %v1036_v8  ;;  %v1017_v42 = vadd.f32 %v1001_v0, %v985_v10  ;;  %v991_v22 = vadd.f32 %v1724_v9, %v907_v4  ;;  %v986_v23 = vadd.f32 %v1724_v9, %v886_v12 }
 0x144   :  { %v910_v57 = vadd.f32 %v909_v19, %v1717_v53  ;;  %v1025_v25 = vadd.f32 %v1009_v11, %v993_v15  ;;  %v1015_v26 = vadd.f32 %v999_v56, %v983_v16  ;;  %v994_v28 = vadd.f32 %v1724_v9, %v918_v17 }
 0x145   :  { %v984_v27 = vadd.f32 %v1724_v9, %v878_v18  ;;  %v1033_v31 = vmax.f32 %v1017_v42, 0.0  ;;  %v1023_v32 = vadd.f32 %v1007_v52, %v991_v22  ;;  %v1018_v20 = vadd.f32 %v1002_v7, %v986_v23 }
 0x146   :  { %v992_v33 = vadd.f32 %v1724_v9, %v910_v57  ;;  %v1041_v43 = vmax.f32 %v1025_v25, 0.0  ;;  %v1031_v34 = vmax.f32 %v1015_v26, 0.0  ;;  %v1026_v35 = vadd.f32 %v1010_v24, %v994_v28 }
 0x147   :  { %v1016_v36 = vadd.f32 %v1000_v5, %v984_v27  ;;  %1049 = vst [vmem:[%s1854_s4 + $0x30] sm:$0xff] %v1033_v31  ;;  %v1039_v53 = vmax.f32 %v1023_v32, 0.0  ;;  %v1034_v38 = vmax.f32 %v1018_v20, 0.0 }
 0x148   :  { %v1024_v39 = vadd.f32 %v1008_v30, %v992_v33  ;;  %1057 = vst [vmem:[%s1854_s4 + $0x70] sm:$0xff] %v1041_v43  ;;  %1047 = vst [vmem:[%s1854_s4 + $0x20] sm:$0xff] %v1031_v34  ;;  %v1042_v9 = vmax.f32 %v1026_v35, 0.0 }
 0x149   :  { %v1032_v37 = vmax.f32 %v1016_v36, 0.0  ;;  %1055 = vst [vmem:[%s1854_s4 + $0x60] sm:$0xff] %v1039_v53  ;;  %1050 = vst [vmem:[%s1854_s4 + $0x38] sm:$0xff] %v1034_v38 }
 0x14a   :  { %v1040_v29 = vmax.f32 %v1024_v39, 0.0  ;;  %1058 = vst [vmem:[%s1854_s4 + $0x78] sm:$0xff] %v1042_v9 }
 0x14b   :  { %1048 = vst [vmem:[%s1854_s4 + $0x28] sm:$0xff] %v1032_v37 }
 0x14c   :  { %1056 = vst [vmem:[%s1854_s4 + $0x68] sm:$0xff] %v1040_v29 }

// kernel: backbone_forward.28
= control target key start
LH: loop header
LB: loop body
LE: loop exit
PB: predicated region body
PF: predicated region fallthrough
CT: control target
= control target key end

     0   :  { %s972_s1 = inlined_call_operand.vmem [shape: bf16[640,128], index: 1, kind: input, shape index: {}]   ;;  %s973_s0 = inlined_call_operand.vmem [shape: bf16[32,640], index: 0, kind: input, shape index: {}]   ;;  %s974_s2 = inlined_call_operand.vmem [shape: f32[1,128], index: 2, kind: input, shape index: {}]   ;;  %s975_s3 = inlined_call_operand.vmem [shape: f32[32,128], index: 3, kind: output, shape index: {}]  }
   0x1   :  { %v733_v0 = vld [vmem:[%s972_s1 + $0x40] sm:$0xff]   ;;  %v737_v4 = vld [vmem:[%s972_s1 + $0x48] sm:$0xff]   ;;  %v741_v8 = vld [vmem:[%s972_s1 + $0x50] sm:$0xff]  }
   0x2   :  { %v734_v1 = vld [vmem:[%s972_s1 + $0xc0] sm:$0xff]   ;;  %647 = vmatprep.subr.bf16.mxu0 %v733_v0  ;;  %v738_v5 = vld [vmem:[%s972_s1 + $0xc8] sm:$0xff]   ;;  %v742_v9 = vld [vmem:[%s972_s1 + $0xd0] sm:$0xff]  }
   0x3   :  { %v735_v2 = vld [vmem:[%s972_s1] sm:$0xff]   ;;  %675 = vmatprep.subr.bf16.mxu1 %v734_v1  ;;  %v739_v6 = vld [vmem:[%s972_s1 + $0x8] sm:$0xff]   ;;  %v743_v10 = vld [vmem:[%s972_s1 + $0x10] sm:$0xff]  }
   0x4   :  { %v736_v3 = vld [vmem:[%s972_s1 + $0x80] sm:$0xff]   ;;  %648 = vmatpush3.bf16.msra.mxu0 %v735_v2  ;;  %v740_v7 = vld [vmem:[%s972_s1 + $0x88] sm:$0xff]   ;;  %v744_v11 = vld [vmem:[%s972_s1 + $0x90] sm:$0xff]  }
   0x5   :  { %676 = vmatpush3.bf16.msra.mxu1 %v736_v3  ;;  %649 = vmatprep.subr.bf16.mxu0 %v737_v4  ;;  %v745_v12 = vld [vmem:[%s972_s1 + $0x58] sm:$0xff]   ;;  %v749_v16 = vld [vmem:[%s972_s1 + $0x60] sm:$0xff]   ;;  %v753_v20 = vld [vmem:[%s972_s1 + $0x68] sm:$0xff]  }
   0x6   :  { %677 = vmatprep.subr.bf16.mxu1 %v738_v5  ;;  %v746_v13 = vld [vmem:[%s972_s1 + $0xd8] sm:$0xff]   ;;  %v750_v17 = vld [vmem:[%s972_s1 + $0xe0] sm:$0xff]   ;;  %v754_v21 = vld [vmem:[%s972_s1 + $0xe8] sm:$0xff]  }
   0x7   :  { %v747_v14 = vld [vmem:[%s972_s1 + $0x18] sm:$0xff]   ;;  %v751_v18 = vld [vmem:[%s972_s1 + $0x20] sm:$0xff]   ;;  %v755_v22 = vld [vmem:[%s972_s1 + $0x28] sm:$0xff]  }
   0x8   :  { %650 = vmatpush3.bf16.msra.mxu0 %v739_v6  ;;  %v748_v15 = vld [vmem:[%s972_s1 + $0x98] sm:$0xff]   ;;  %v752_v19 = vld [vmem:[%s972_s1 + $0xa0] sm:$0xff]   ;;  %v756_v23 = vld [vmem:[%s972_s1 + $0xa8] sm:$0xff]  }
   0x9   :  { %678 = vmatpush3.bf16.msra.mxu1 %v740_v7  ;;  %651 = vmatprep.subr.bf16.mxu0 %v741_v8  ;;  %v757_v24 = vld [vmem:[%s972_s1 + $0x70] sm:$0xff]   ;;  %v761_v28 = vld [vmem:[%s972_s1 + $0x78] sm:$0xff]   ;;  %v770_v35 = vld [vmem:[%s973_s0 + $0xc] ss:$20 sps:$4 sm:$0xff]  }
   0xa   :  { %679 = vmatprep.subr.bf16.mxu1 %v742_v9  ;;  %v758_v25 = vld [vmem:[%s972_s1 + $0xf0] sm:$0xff]   ;;  %v762_v29 = vld [vmem:[%s972_s1 + $0xf8] sm:$0xff]   ;;  %v771_v36 = vld [vmem:[%s972_s1 + $0x100] sm:$0xff]   ;;  %492 = vmatprep.mubr.bf16.mxu1 %v770_v35 }
   0xb   :  { %v759_v26 = vld [vmem:[%s972_s1 + $0x30] sm:$0xff]   ;;  %v763_v30 = vld [vmem:[%s972_s1 + $0x38] sm:$0xff]   ;;  %v772_v37 = vld [vmem:[%s972_s1 + $0x108] sm:$0xff]  }
   0xc   :  { %652 = vmatpush3.bf16.msra.mxu0 %v743_v10  ;;  %v760_v27 = vld [vmem:[%s972_s1 + $0xb0] sm:$0xff]   ;;  %v764_v31 = vld [vmem:[%s972_s1 + $0xb8] sm:$0xff]   ;;  %v776_v39 = vld [vmem:[%s973_s0 + $0x2c] ss:$20 sps:$4 sm:$0xff]  }
   0xd   :  { %680 = vmatpush3.bf16.msra.mxu1 %v744_v11  ;;  %653 = vmatprep.subr.bf16.mxu0 %v745_v12  ;;  %v765_v32 = vld [vmem:[%s973_s0] ss:$20 sps:$4 sm:$0xff]   ;;  %v767_v33 = vld [vmem:[%s973_s0 + $0x4] ss:$20 sps:$4 sm:$0xff]   ;;  %v768_v34 = vld [vmem:[%s973_s0 + $0x8] ss:$20 sps:$4 sm:$0xff]  }
   0xe   :  { %681 = vmatprep.subr.bf16.mxu1 %v746_v13  ;;  %443 = vmatprep.mubr.bf16.mxu0 %v767_v33  ;;  %v773_v38 = vld [vmem:[%s972_s1 + $0x110] sm:$0xff]   ;;  %v774_v41 = vld [vmem:[%s972_s1 + $0x118] sm:$0xff]   ;;  %v775_v45 = vld [vmem:[%s972_s1 + $0x120] sm:$0xff]  }
   0xf   :  { %v778_v40 = vld [vmem:[%s973_s0 + $0x34] ss:$20 sps:$4 sm:$0xff]   ;;  %v782_v43 = vld [vmem:[%s973_s0 + $0x30] ss:$20 sps:$4 sm:$0xff]   ;;  %v784_v48 = vld [vmem:[%s972_s1 + $0x138] sm:$0xff]  }
  0x10   :  { %654 = vmatpush3.bf16.msra.mxu0 %v747_v14  ;;  %v781_v42 = vld [vmem:[%s973_s0 + $0x28] ss:$20 sps:$4 sm:$0xff]   ;;  %v785_v44 = vld [vmem:[%s973_s0 + $0x10] ss:$20 sps:$4 sm:$0xff]   ;;  %v786_v49 = vld [vmem:[%s973_s0 + $0x38] ss:$20 sps:$4 sm:$0xff]  }
  0x11   :  { %682 = vmatpush3.bf16.msra.mxu1 %v748_v15  ;;  %655 = vmatprep.subr.bf16.mxu0 %v749_v16  ;;  %v780_v46 = vld [vmem:[%s972_s1 + $0x128] sm:$0xff]   ;;  %v783_v47 = vld [vmem:[%s972_s1 + $0x130] sm:$0xff]   ;;  %v646_v15 = vld [vmem:[%s974_s2] ss:$0 sm:$0xff] }
  0x12   :  { %683 = vmatprep.subr.bf16.mxu1 %v750_v17 }
  0x14   :  { %656 = vmatpush3.bf16.msra.mxu0 %v751_v18 }
  0x15   :  { %684 = vmatpush3.bf16.msra.mxu1 %v752_v19  ;;  %657 = vmatprep.subr.bf16.mxu0 %v753_v20 }
  0x16   :  { %685 = vmatprep.subr.bf16.mxu1 %v754_v21 }
  0x18   :  { %658 = vmatpush3.bf16.msra.mxu0 %v755_v22 }
  0x19   :  { %686 = vmatpush3.bf16.msra.mxu1 %v756_v23  ;;  %659 = vmatprep.subr.bf16.mxu0 %v757_v24 }
  0x1a   :  { %687 = vmatprep.subr.bf16.mxu1 %v758_v25 }
  0x1c   :  { %660 = vmatpush3.bf16.msra.mxu0 %v759_v26 }
  0x1d   :  { %688 = vmatpush3.bf16.msra.mxu1 %v760_v27  ;;  %661 = vmatprep.subr.bf16.mxu0 %v761_v28 }
  0x1e   :  { %689 = vmatprep.subr.bf16.mxu1 %v762_v29 }
  0x20   :  { %662 = vmatpush3.bf16.msra.mxu0 %v763_v30 }
  0x21   :  { %690 = vmatpush3.bf16.msra.mxu1 %v764_v31  ;;  %713 = vmatprep.subr.bf16.mxu0 %v771_v36 }
  0x23   :  { %444 = vmatmul.mubr.bf16.vlgmr.msra.gmra.mrb[0].mxu0 %v765_v32 }
  0x24   :  { %493 = vmatmul.mubr.bf16.vlgmr.msra.gmra.mrb[0].mxu1 %v768_v34  ;;  %714 = vmatpush3.bf16.msra.mxu0 %v771_v36 }
  0x25   :  { %715 = vmatprep.subr.bf16.mxu0 %v772_v37  ;;  %451 = vmatprep.mubr.bf16.mxu0 %v776_v39 }
  0x26   :  { %500 = vmatprep.mubr.bf16.mxu1 %v778_v40 }
  0x28   :  { %716 = vmatpush3.bf16.msra.mxu0 %v772_v37 }
  0x29   :  { %717 = vmatprep.subr.bf16.mxu0 %v773_v38 }
  0x2b   :  { %452 = vmatmul.mubr.bf16.gmra.mrb[4].mxu0 %v781_v42 }
  0x2c   :  { %501 = vmatmul.mubr.bf16.gmra.mrb[4].mxu1 %v782_v43  ;;  %718 = vmatpush3.bf16.msra.mxu0 %v773_v38 }
  0x2d   :  { %719 = vmatprep.subr.bf16.mxu0 %v774_v41  ;;  %729 = vmatprep.mubr.bf16.mxu0 %v785_v44 }
  0x30   :  { %720 = vmatpush3.bf16.msra.mxu0 %v774_v41 }
  0x31   :  { %721 = vmatprep.subr.bf16.mxu0 %v775_v45 }
  0x34   :  { %722 = vmatpush3.bf16.msra.mxu0 %v775_v45 }
  0x35   :  { %723 = vmatprep.subr.bf16.mxu0 %v780_v46 }
  0x38   :  { %724 = vmatpush3.bf16.msra.mxu0 %v780_v46 }
  0x39   :  { %725 = vmatprep.subr.bf16.mxu0 %v783_v47 }
  0x3c   :  { %726 = vmatpush3.bf16.msra.mxu0 %v783_v47 }
  0x3d   :  { %727 = vmatprep.subr.bf16.mxu0 %v784_v48 }
  0x40   :  { %728 = vmatpush3.bf16.msra.mxu0 %v784_v48 }
  0x43   :  { %730 = vmatmul.mubr.bf16.vlgmr.msra.gmra.mrb[8].mxu0 %v786_v49 }
  0xf6   :  { %v663_v50 = vpop.f32.mrb[0].mxu0 }
  0xf7   :  { %v691_v51 = vpop.f32.mrb[0].mxu1  ;;  %v664_v52 = vpop.f32.mrb[1].mxu0 }
  0xf8   :  { %v665_v53 = vadd.f32 %v664_v52, %v663_v50  ;;  %v692_v54 = vpop.f32.mrb[1].mxu1  ;;  %v666_v55 = vpop.f32.mrb[2].mxu0 }
  0xf9   :  { %v693_v56 = vadd.f32 %v692_v54, %v691_v51  ;;  %v694_v57 = vpop.f32.mrb[2].mxu1  ;;  %v667_v58 = vpop.f32.mrb[3].mxu0 }
  0xfa   :  { %v668_v59 = vadd.f32 %v667_v58, %v666_v55  ;;  %v695_v60 = vpop.f32.mrb[3].mxu1 }
  0xfb   :  { %v696_v61 = vadd.f32 %v695_v60, %v694_v57  ;;  %v495_v62 = vadd.f32 %v693_v56, %v665_v53 }
  0xfd   :  { %v498_v63 = vadd.f32 %v696_v61, %v668_v59 }
  0xfe   :  { %v669_v0 = vpop.f32.mrb[4].mxu0 }
  0xff   :  { %v697_v1 = vpop.f32.mrb[4].mxu1  ;;  %v670_v2 = vpop.f32.mrb[5].mxu0 }
 0x100   :  { %v671_v3 = vadd.f32 %v670_v2, %v669_v0  ;;  %v698_v4 = vpop.f32.mrb[5].mxu1  ;;  %v672_v5 = vpop.f32.mrb[6].mxu0 }
 0x101   :  { %v699_v6 = vadd.f32 %v698_v4, %v697_v1  ;;  %v700_v7 = vpop.f32.mrb[6].mxu1  ;;  %v673_v8 = vpop.f32.mrb[7].mxu0 }
 0x102   :  { %v674_v9 = vadd.f32 %v673_v8, %v672_v5  ;;  %v701_v10 = vpop.f32.mrb[7].mxu1 }
 0x103   :  { %v702_v11 = vadd.f32 %v701_v10, %v700_v7  ;;  %v503_v12 = vadd.f32 %v699_v6, %v671_v3 }
 0x105   :  { %v506_v13 = vadd.f32 %v702_v11, %v674_v9 }
 0x116   :  { %v731_v14 = vpop.f32.mrb[8].mxu0 }
 0x117   :  { %v552_v16 = vadd.f32 %v731_v14, %v503_v12  ;;  %v543_v17 = vpop.f32.mrb[9].mxu0 }
 0x118   :  { %v544_v18 = vadd.f32 %v543_v17, %v495_v62  ;;  %v732_v19 = vpop.f32.mrb[10].mxu0 }
 0x119   :  { %v582_v20 = vadd.f32 %v646_v15, %v552_v16  ;;  %v555_v21 = vadd.f32 %v732_v19, %v506_v13  ;;  %v546_v22 = vpop.f32.mrb[11].mxu0 }
 0x11a   :  { %v580_v23 = vadd.f32 %v646_v15, %v544_v18  ;;  %v547_v24 = vadd.f32 %v546_v22, %v498_v63 }
 0x11b   :  { %v586_v25 = vmax.f32 %v582_v20, 0.0  ;;  %v583_v26 = vadd.f32 %v646_v15, %v555_v21 }
 0x11c   :  { %v584_v27 = vmax.f32 %v580_v23, 0.0  ;;  %v581_v28 = vadd.f32 %v646_v15, %v547_v24 }
 0x11d   :  { %590 = vst [vmem:[%s975_s3 + $0x10] sm:$0xff] %v586_v25  ;;  %v587_v29 = vmax.f32 %v583_v26, 0.0 }
 0x11e   :  { %588 = vst [vmem:[%s975_s3] sm:$0xff] %v584_v27  ;;  %v585_v30 = vmax.f32 %v581_v28, 0.0 }
 0x11f   :  { %591 = vst [vmem:[%s975_s3 + $0x18] sm:$0xff] %v587_v29 }
 0x120   :  { %589 = vst [vmem:[%s975_s3 + $0x8] sm:$0xff] %v585_v30 }

// kernel: backbone_forward.29
= control target key start
LH: loop header
LB: loop body
LE: loop exit
PB: predicated region body
PF: predicated region fallthrough
CT: control target
= control target key end

     0   :  { %s306_s1 = inlined_call_operand.vmem [shape: bf16[128,128], index: 1, kind: input, shape index: {}]   ;;  %s307_s0 = inlined_call_operand.vmem [shape: bf16[32,128], index: 0, kind: input, shape index: {}]   ;;  %s308_s2 = inlined_call_operand.vmem [shape: f32[1,128], index: 2, kind: input, shape index: {}]   ;;  %s309_s3 = inlined_call_operand.vmem [shape: f32[32,128], index: 3, kind: output, shape index: {}]  }
   0x1   :  { %v231_v0 = vld [vmem:[%s306_s1] sm:$0xff]   ;;  %v232_v1 = vld [vmem:[%s306_s1 + $0x8] sm:$0xff]   ;;  %v233_v2 = vld [vmem:[%s306_s1 + $0x10] sm:$0xff]  }
   0x2   :  { %211 = vmatprep.subr.bf16.mxu0 %v231_v0  ;;  %v234_v3 = vld [vmem:[%s306_s1 + $0x18] sm:$0xff]   ;;  %v239_v4 = vld [vmem:[%s307_s0] sm:$0xff]   ;;  %v236_v6 = vld [vmem:[%s306_s1 + $0x28] sm:$0xff]  }
   0x3   :  { %212 = vmatpush3.bf16.msra.mxu0 %v231_v0  ;;  %227 = vmatprep.mubr.bf16.mxu0 %v239_v4  ;;  %v235_v5 = vld [vmem:[%s306_s1 + $0x20] sm:$0xff]   ;;  %v237_v7 = vld [vmem:[%s306_s1 + $0x30] sm:$0xff]   ;;  %v238_v8 = vld [vmem:[%s306_s1 + $0x38] sm:$0xff]  }
   0x4   :  { %213 = vmatprep.subr.bf16.mxu0 %v232_v1  ;;  %v240_v9 = vld [vmem:[%s307_s0 + $0x8] sm:$0xff]   ;;  %v200_v10 = vld [vmem:[%s308_s2] ss:$0 sm:$0xff] }
   0x7   :  { %214 = vmatpush3.bf16.msra.mxu0 %v232_v1 }
   0x8   :  { %215 = vmatprep.subr.bf16.mxu0 %v233_v2 }
   0xb   :  { %216 = vmatpush3.bf16.msra.mxu0 %v233_v2 }
   0xc   :  { %217 = vmatprep.subr.bf16.mxu0 %v234_v3 }
   0xf   :  { %218 = vmatpush3.bf16.msra.mxu0 %v234_v3 }
  0x10   :  { %219 = vmatprep.subr.bf16.mxu0 %v235_v5 }
  0x13   :  { %220 = vmatpush3.bf16.msra.mxu0 %v235_v5 }
  0x14   :  { %221 = vmatprep.subr.bf16.mxu0 %v236_v6 }
  0x17   :  { %222 = vmatpush3.bf16.msra.mxu0 %v236_v6 }
  0x18   :  { %223 = vmatprep.subr.bf16.mxu0 %v237_v7 }
  0x1b   :  { %224 = vmatpush3.bf16.msra.mxu0 %v237_v7 }
  0x1c   :  { %225 = vmatprep.subr.bf16.mxu0 %v238_v8 }
  0x1f   :  { %226 = vmatpush3.bf16.msra.mxu0 %v238_v8 }
  0x22   :  { %228 = vmatmul.mubr.bf16.vlgmr.msra.gmra.mrb[0].mxu0 %v240_v9 }
  0xf5   :  { %v229_v11 = vpop.f32.mrb[0].mxu0 }
  0xf6   :  { %v180_v12 = vadd.f32 %v229_v11, %v200_v10  ;;  %v141_v13 = vpop.f32.mrb[1].mxu0 }
  0xf7   :  { %v178_v14 = vadd.f32 %v200_v10, %v141_v13  ;;  %v230_v15 = vpop.f32.mrb[2].mxu0 }
  0xf8   :  { %184 = vst [vmem:[%s309_s3 + $0x10] sm:$0xff] %v180_v12  ;;  %v181_v16 = vadd.f32 %v230_v15, %v200_v10  ;;  %v144_v17 = vpop.f32.mrb[3].mxu0 }
  0xf9   :  { %182 = vst [vmem:[%s309_s3] sm:$0xff] %v178_v14  ;;  %v179_v18 = vadd.f32 %v200_v10, %v144_v17 }
  0xfa   :  { %185 = vst [vmem:[%s309_s3 + $0x18] sm:$0xff] %v181_v16 }
  0xfb   :  { %183 = vst [vmem:[%s309_s3 + $0x8] sm:$0xff] %v179_v18 }

// kernel: backbone_forward.30
= control target key start
LH: loop header
LB: loop body
LE: loop exit
PB: predicated region body
PF: predicated region fallthrough
CT: control target
= control target key end

     0   :  { %s1128_s15 = smov 0   ;;  %s1130_s16 = smov 0   ;;  %s1256_s0 = inlined_call_operand.vmem [shape: bf16[32,1152], index: 0, kind: input, shape index: {}]   ;;  %s1257_s1 = inlined_call_operand.vmem [shape: bf16[1152,128], index: 1, kind: input, shape index: {}]   ;;  %s1258_s2 = inlined_call_operand.vmem [shape: f32[1,128], index: 2, kind: input, shape index: {}]   ;;  %s1259_s3 = inlined_call_operand.vmem [shape: f32[32,128], index: 3, kind: input, shape index: {}]   ;;  %s1260_s4 = inlined_call_operand.vmem [shape: f32[32,128], index: 4, kind: output, shape index: {}]  }
   0x1   :  { %s1132_s17 = smov 0   ;;  %s1134_s18 = smov 0  }
   0x2   :  { %s1136_s19 = smov 0  }
   0x3 LB: > { %s26_s20 = sadd.s32 1, %s1096_s18  ;;  %p49_p1 = scmp.ne.s32.totalorder %s1088_s16, %s1084_s15  ;;  %s1100_s19 = sphi %s1136_s19, %s14_s19   ;;  %s1096_s18 = sphi %s1134_s18, %s1264_s18   ;;  %s1092_s17 = sphi %s1132_s17, %s1263_s17   ;;  %s1088_s16 = sphi %s1130_s16, %s1262_s16   ;;  %s1084_s15 = sphi %s1128_s15, %s1261_s15  }
   0x4   : > { %p27_p0 = scmp.ge.s32.totalorder %s26_s20, 3  ;;  %p50_p2 = scmp.eq.s32.totalorder %s1100_s19, 0 }
   0x5   : > { %s42_s22 = sadd.s32 1, %s1088_s16  ;;  %p879_p5 = scmp.ge.s32.totalorder %s1100_s19, 3 }
   0x6   : > { %s1266_s20 = smov (%p27_p0, %s26_s20), 0  ;;  %p51_p3 = por %p50_p2, %p49_p1 }
   0x7   : > { %s38_s21 = ssub.s32 %s1096_s18, %s1266_s20  ;;  %203 = sbr.rel (%p879_p5) target bundleno = 23 (0x17), region = 24 }
   0x8   : > { %p40_p4 = scmp.eq.s32.totalorder %s38_s21, 0 }
   0xa   : > { %s1163_s23 = scalar_select %p40_p4, %s1088_s16, %s42_s22  }
   0xe   : > { %206 = sbr.rel (!%p51_p3) target bundleno = 23 (0x17), region = 28  ;;  %s208_s24 = sand.u32 (%p51_p3), 1, %s1088_s16  }
   0xf   : > { %s928_s25 = smul.u32 (%p51_p3), 12, %s1096_s18 }
  0x10   : > { %s987_s26 = smul.u32 (%p51_p3), 48, %s208_s24 }
  0x11   : > { %s216_s29 = scalar_lea.vmem (%p51_p3), %s1256_s0, %s928_s25 }
  0x12   : > { %v231_v0 = vld [vmem:[%s216_s29] sm:$0xff] (%p51_p3)  ;;  %v235_v2 = vld [vmem:[%s216_s29 + $0x48] sm:$0xff] (%p51_p3)  ;;  %s210_s30 = scalar_lea.vmem (%p51_p3), [#allocation3], %s987_s26  ;;  %v885_v6 = vld [vmem:[%s216_s29 + $0x50] sm:$0xf] (%p51_p3) }
  0x13   : > { %v233_v1 = vld [vmem:[%s216_s29 + $0x24] sm:$0xff] (%p51_p3)  ;;  %232 = vst [vmem:[%s210_s30] sm:$0xff] (%p51_p3), %v231_v0  ;;  %236 = vst [vmem:[%s210_s30 + $0x18] sm:$0xff] (%p51_p3), %v235_v2  ;;  %v237_v3 = vld [vmem:[%s216_s29 + $0x6c] sm:$0xff] (%p51_p3) }
  0x14   : > { %234 = vst [vmem:[%s210_s30 + $0xc] sm:$0xff] (%p51_p3), %v233_v1  ;;  %v881_v4 = vld [vmem:[%s216_s29 + $0x8] sm:$0xf] (%p51_p3)  ;;  %v883_v5 = vld [vmem:[%s216_s29 + $0x2c] sm:$0xf] (%p51_p3)  ;;  %238 = vst [vmem:[%s210_s30 + $0x24] sm:$0xff] (%p51_p3), %v237_v3 }
  0x15   : > { %882 = vst [vmem:[%s210_s30 + $0x8] sm:$0xf] %v881_v4  ;;  %884 = vst [vmem:[%s210_s30 + $0x14] sm:$0xf] %v883_v5  ;;  %v887_v7 = vld [vmem:[%s216_s29 + $0x74] sm:$0xf] }
  0x16   : > { %886 = vst [vmem:[%s210_s30 + $0x20] sm:$0xf] %v885_v6  ;;  %888 = vst [vmem:[%s210_s30 + $0x2c] sm:$0xf] %v887_v7 }
  0x17 PF: > { %p889_p6 = scmp.ge.s32.totalorder %s1100_s19, 1  ;;  %p270_p7 = scmp.lt.s32.totalorder %s1100_s19, 4 }
  0x19   : > { %p271_p8 = pnand %p889_p6, %p270_p7 }
  0x1a   : > { %s277_s5 = sand.u32 (!%p271_p8), 1, %s1084_s15   ;;  %s326_s6 = smul.u32 (!%p271_p8), 48, %s1092_s17 }
  0x1b   : > { %274 = sbr.rel (%p271_p8) target bundleno = 318 (0x13e), region = 58  ;;  %p891_p10 = scmp.ne.s32.totalorder (!%p271_p8), %s1092_s17, 0 }
  0x1c   : > { %s988_s7 = smul.u32 (!%p271_p8), 48, %s277_s5  ;;  %p327_p9 = scmp.lt.s32.totalorder (!%p271_p8), %s326_s6, 143 }
  0x1e   : > { %s1180_s12 = scalar_lea.vmem (!%p271_p8), [#allocation3], %s988_s7 }
  0x22   : > { %s1268_s6 = smov (!%p327_p9, %s326_s6), 143  ;;  %360 = sbr.rel (%p891_p10) target bundleno = 41 (0x29), region = 66 }
  0x23   : > { %s890_s8 = sshll.u32 %s1268_s6, 2  ;;  %v1102_v8 = vmov (!%p891_p10), 0.0  }
  0x24   : > { %s1178_s11 = scalar_lea.vmem %s1257_s1, %s890_s8  ;;  %361 = vst [vmem:[#allocation2] sm:$0xff] (!%p891_p10), %v1102_v8  ;;  %362 = vst [vmem:[#allocation2 + $0x8] sm:$0xff] (!%p891_p10), %v1102_v8 }
  0x25   : > { %363 = vst [vmem:[#allocation2 + $0x10] sm:$0xff] (!%p891_p10), %v1102_v8  ;;  %364 = vst [vmem:[#allocation2 + $0x18] sm:$0xff] (!%p891_p10), %v1102_v8 }
  0x29 PF: > { %v1030_v9 = vld [vmem:[%s1178_s11 + $0x40] sm:$0xff]   ;;  %v1033_v12 = vld [vmem:[%s1178_s11 + $0x48] sm:$0xff]   ;;  %v1036_v15 = vld [vmem:[%s1178_s11 + $0x50] sm:$0xff]   ;;  %p922_p11 = scmp.ne.s32.totalorder %s1092_s17, 2 }
  0x2a   : > { %v1031_v10 = vld [vmem:[%s1178_s11] sm:$0xff]   ;;  %929 = vmatprep.subr.bf16.mxu0 %v1030_v9  ;;  %v1034_v13 = vld [vmem:[%s1178_s11 + $0x8] sm:$0xff]   ;;  %v1037_v16 = vld [vmem:[%s1178_s11 + $0x10] sm:$0xff]  }
  0x2b   : > { %v1032_v11 = vld [vmem:[%s1178_s11 + $0x80] sm:$0xff]   ;;  %930 = vmatpush3.bf16.msra.mxu0 %v1031_v10  ;;  %v1035_v14 = vld [vmem:[%s1178_s11 + $0x88] sm:$0xff]   ;;  %v1038_v17 = vld [vmem:[%s1178_s11 + $0x90] sm:$0xff]  }
  0x2c   : > { %967 = vmatprep.subr.bf16.mxu1 %v1032_v11  ;;  %931 = vmatprep.subr.bf16.mxu0 %v1033_v12  ;;  %v1039_v18 = vld [vmem:[%s1178_s11 + $0x58] sm:$0xff]   ;;  %v1042_v21 = vld [vmem:[%s1178_s11 + $0x60] sm:$0xff]   ;;  %v1045_v24 = vld [vmem:[%s1178_s11 + $0x68] sm:$0xff]  }
  0x2d   : > { %968 = vmatpush3.bf16.msra.mxu1 %v1032_v11  ;;  %v1040_v19 = vld [vmem:[%s1178_s11 + $0x18] sm:$0xff]   ;;  %v1044_v22 = vld [vmem:[%s1178_s11 + $0xa0] sm:$0xff]   ;;  %v1047_v25 = vld [vmem:[%s1178_s11 + $0xa8] sm:$0xff]  }
  0x2e   : > { %969 = vmatprep.subr.bf16.mxu1 %v1035_v14  ;;  %v1041_v20 = vld [vmem:[%s1178_s11 + $0x98] sm:$0xff]   ;;  %v1043_v23 = vld [vmem:[%s1178_s11 + $0x20] sm:$0xff]   ;;  %v1046_v26 = vld [vmem:[%s1178_s11 + $0x28] sm:$0xff]  }
  0x2f   : > { %932 = vmatpush3.bf16.msra.mxu0 %v1034_v13  ;;  %v1048_v27 = vld [vmem:[%s1178_s11 + $0x70] sm:$0xff]   ;;  %v1051_v30 = vld [vmem:[%s1178_s11 + $0x78] sm:$0xff]   ;;  %v365_v45 = vld [vmem:[#allocation2] sm:$0xff] }
  0x30   : > { %933 = vmatprep.subr.bf16.mxu0 %v1036_v15  ;;  %v1049_v28 = vld [vmem:[%s1178_s11 + $0x30] sm:$0xff]   ;;  %v1053_v31 = vld [vmem:[%s1178_s11 + $0xb8] sm:$0xff]   ;;  %v366_v50 = vld [vmem:[#allocation2 + $0x8] sm:$0xff] }
  0x31   : > { %970 = vmatpush3.bf16.msra.mxu1 %v1035_v14  ;;  %v1050_v29 = vld [vmem:[%s1178_s11 + $0xb0] sm:$0xff]   ;;  %v1052_v34 = vld [vmem:[%s1178_s11 + $0x38] sm:$0xff]   ;;  %v923_v4 = vld [vmem:[%s1258_s2] ss:$0 sm:$0xff] (!%p922_p11) }
  0x32   : > { %971 = vmatprep.subr.bf16.mxu1 %v1038_v17  ;;  %v1056_v32 = vld [vmem:[%s1180_s12 + $0x4] ss:$12 sps:$4 sm:$0xff]   ;;  %v1057_v33 = vld [vmem:[%s1180_s12 + $0x8] ss:$12 sps:$4 sm:$0xff]   ;;  %v1054_v35 = vld [vmem:[%s1180_s12] ss:$12 sps:$4 sm:$0xff]  }
  0x33   : > { %934 = vmatpush3.bf16.msra.mxu0 %v1037_v16  ;;  %633 = vmatprep.mubr.bf16.mxu0 %v1056_v32  ;;  %v1059_v36 = vld [vmem:[%s1180_s12 + $0x1c] ss:$12 sps:$4 sm:$0xff]   ;;  %v1058_v37 = vld [vmem:[%s1180_s12 + $0x20] ss:$12 sps:$4 sm:$0xff]   ;;  %v1061_v38 = vld [vmem:[%s1180_s12 + $0x18] ss:$12 sps:$4 sm:$0xff]  }
  0x34   : > { %935 = vmatprep.subr.bf16.mxu0 %v1039_v18  ;;  %983 = vmatprep.mubr.bf16.mxu1 %v1057_v33  ;;  %v367_v59 = vld [vmem:[#allocation2 + $0x10] sm:$0xff]  ;;  %v368_v63 = vld [vmem:[#allocation2 + $0x18] sm:$0xff]  ;;  %v726_v5 = vld [vmem:[%s1259_s3] sm:$0xff] (!%p922_p11) }
  0x35   : > { %972 = vmatpush3.bf16.msra.mxu1 %v1038_v17  ;;  %v727_v8 = vld [vmem:[%s1259_s3 + $0x8] sm:$0xff] (!%p922_p11)  ;;  %v728_v12 = vld [vmem:[%s1259_s3 + $0x10] sm:$0xff] (!%p922_p11)  ;;  %v729_v14 = vld [vmem:[%s1259_s3 + $0x18] sm:$0xff] (!%p922_p11) }
  0x36   : > { %973 = vmatprep.subr.bf16.mxu1 %v1041_v20 }
  0x37   : > { %936 = vmatpush3.bf16.msra.mxu0 %v1040_v19 }
  0x38   : > { %937 = vmatprep.subr.bf16.mxu0 %v1042_v21 }
  0x39   : > { %974 = vmatpush3.bf16.msra.mxu1 %v1041_v20 }
  0x3a   : > { %975 = vmatprep.subr.bf16.mxu1 %v1044_v22 }
  0x3b   : > { %938 = vmatpush3.bf16.msra.mxu0 %v1043_v23 }
  0x3c   : > { %939 = vmatprep.subr.bf16.mxu0 %v1045_v24 }
  0x3d   : > { %976 = vmatpush3.bf16.msra.mxu1 %v1044_v22 }
  0x3e   : > { %977 = vmatprep.subr.bf16.mxu1 %v1047_v25 }
  0x3f   : > { %940 = vmatpush3.bf16.msra.mxu0 %v1046_v26 }
  0x40   : > { %941 = vmatprep.subr.bf16.mxu0 %v1048_v27 }
  0x41   : > { %978 = vmatpush3.bf16.msra.mxu1 %v1047_v25 }
  0x42   : > { %979 = vmatprep.subr.bf16.mxu1 %v1050_v29 }
  0x43   : > { %942 = vmatpush3.bf16.msra.mxu0 %v1049_v28 }
  0x44   : > { %943 = vmatprep.subr.bf16.mxu0 %v1051_v30 }
  0x45   : > { %980 = vmatpush3.bf16.msra.mxu1 %v1050_v29 }
  0x46   : > { %981 = vmatprep.subr.bf16.mxu1 %v1053_v31 }
  0x47   : > { %944 = vmatpush3.bf16.msra.mxu0 %v1052_v34 }
  0x49   : > { %982 = vmatpush3.bf16.msra.mxu1 %v1053_v31 }
  0x4a   : > { %634 = vmatmul.mubr.bf16.vlgmr.msra.gmra.mrb[0].mxu0 %v1054_v35 }
  0x4b   : > { %641 = vmatprep.mubr.bf16.mxu0 %v1059_v36 }
  0x4c   : > { %984 = vmatmul.mubr.bf16.vlgmr.msra.gmra.mrb[0].mxu1 %v1058_v37 }
  0x52   : > { %642 = vmatmul.mubr.bf16.gmra.mrb[4].mxu0 %v1061_v38 }
 0x11d   : > { %v945_v39 = vpop.f32.mrb[0].mxu0 }
 0x11e   : > { %v946_v40 = vpop.f32.mrb[1].mxu0 }
 0x11f   : > { %v947_v41 = vadd.f32 %v946_v40, %v945_v39  ;;  %v948_v42 = vpop.f32.mrb[2].mxu0  ;;  %v985_v43 = vpop.f32.mrb[0].mxu1 }
 0x120   : > { %v949_v44 = vpop.f32.mrb[3].mxu0  ;;  %v684_v46 = vpop.f32.mrb[1].mxu1 }
 0x121   : > { %v950_v47 = vadd.f32 %v949_v44, %v948_v42  ;;  %v685_v48 = vadd.f32 %v947_v41, %v684_v46  ;;  %v986_v49 = vpop.f32.mrb[2].mxu1 }
 0x122   : > { %v687_v51 = vpop.f32.mrb[3].mxu1 }
 0x123   : > { %v699_v52 = vadd.f32 %v685_v48, %v365_v45  ;;  %v688_v53 = vadd.f32 %v950_v47, %v687_v51 }
 0x125   : > { %703 = vst [vmem:[#allocation2] sm:$0xff] %v699_v52  ;;  %v700_v54 = vadd.f32 %v688_v53, %v366_v50  ;;  %v951_v55 = vpop.f32.mrb[4].mxu0 }
 0x126   : > { %v952_v56 = vpop.f32.mrb[5].mxu0 }
 0x127   : > { %704 = vst [vmem:[#allocation2 + $0x8] sm:$0xff] %v700_v54  ;;  %v953_v57 = vadd.f32 %v952_v56, %v951_v55  ;;  %v954_v58 = vpop.f32.mrb[6].mxu0 }
 0x128   : > { %v955_v60 = vpop.f32.mrb[7].mxu0 }
 0x129   : > { %v693_v61 = vadd.f32 %v985_v43, %v953_v57  ;;  %v956_v62 = vadd.f32 %v955_v60, %v954_v58  ;;  %710 = sbr.rel (%p922_p11) target bundleno = 318 (0x13e), region = 70 }
 0x12b   : > { %v701_v0 = vadd.f32 %v693_v61, %v367_v59  ;;  %v696_v1 = vadd.f32 %v986_v49, %v956_v62 }
 0x12c   : > { %v711_v3 = vld [vmem:[#allocation2] sm:$0xff] (!%p922_p11) }
 0x12d   : > { %705 = vst [vmem:[#allocation2 + $0x10] sm:$0xff] %v701_v0  ;;  %v702_v2 = vadd.f32 %v696_v1, %v368_v63  ;;  %v722_v6 = vadd.f32 (!%p922_p11), %v923_v4, %v711_v3 }
 0x12e   : > { %v712_v7 = vld [vmem:[#allocation2 + $0x8] sm:$0xff] (!%p922_p11) }
 0x12f   : > { %706 = vst [vmem:[#allocation2 + $0x18] sm:$0xff] %v702_v2  ;;  %v723_v10 = vadd.f32 (!%p922_p11), %v923_v4, %v712_v7  ;;  %v730_v15 = vadd.f32 (!%p922_p11), %v726_v5, %v722_v6 }
 0x131   : > { %v731_v17 = vadd.f32 %v727_v8, %v723_v10  ;;  %v734_v19 = vmax.f32 %v730_v15, 0.0 }
 0x133   : > { %v735_v21 = vmax.f32 %v731_v17, 0.0  ;;  %738 = vst [vmem:[%s1260_s4] sm:$0xff] %v734_v19 }
 0x134   : > { %v713_v9 = vld [vmem:[#allocation2 + $0x10] sm:$0xff] }
 0x135   : > { %v724_v11 = vadd.f32 %v923_v4, %v713_v9  ;;  %739 = vst [vmem:[%s1260_s4 + $0x8] sm:$0xff] %v735_v21 }
 0x136   : > { %v714_v13 = vld [vmem:[#allocation2 + $0x18] sm:$0xff] }
 0x137   : > { %v725_v16 = vadd.f32 %v923_v4, %v714_v13  ;;  %v732_v18 = vadd.f32 %v728_v12, %v724_v11 }
 0x139   : > { %v733_v20 = vadd.f32 %v729_v14, %v725_v16  ;;  %v736_v22 = vmax.f32 %v732_v18, 0.0 }
 0x13b   : > { %v737_v23 = vmax.f32 %v733_v20, 0.0  ;;  %740 = vst [vmem:[%s1260_s4 + $0x10] sm:$0xff] %v736_v22 }
 0x13d   : > { %741 = vst [vmem:[%s1260_s4 + $0x18] sm:$0xff] %v737_v23 }
 0x13e PF: > { %s14_s19 = sadd.s32 1, %s1100_s19   ;;  %s1261_s15 = smov %s1088_s16 }
 0x13f   : > { %p11_p12 = scmp.ge.s32.totalorder %s14_s19, 5   ;;  %s1262_s16 = smov %s1163_s23 }
 0x140   : > { %s1263_s17 = smov %s1096_s18  ;;  %s1264_s18 = smov %s1266_s20 }
 0x141   :  { %13 = sbr.rel (!%p11_p12) target bundleno = 3 (0x3), region = 120 }

// kernel: backbone_forward.31
= control target key start
LH: loop header
LB: loop body
LE: loop exit
PB: predicated region body
PF: predicated region fallthrough
CT: control target
= control target key end

     0   :  { %s1036_s12 = smov 0   ;;  %s1038_s13 = smov 0   ;;  %s1152_s0 = inlined_call_operand.vmem [shape: bf16[32,1152], index: 0, kind: input, shape index: {}]   ;;  %s1153_s1 = inlined_call_operand.vmem [shape: bf16[1152,128], index: 1, kind: input, shape index: {}]   ;;  %s1154_s2 = inlined_call_operand.vmem [shape: f32[1,128], index: 2, kind: input, shape index: {}]   ;;  %s1155_s3 = inlined_call_operand.vmem [shape: f32[32,128], index: 3, kind: output, shape index: {}]  }
   0x1   :  { %s1040_s14 = smov 0   ;;  %s1042_s15 = smov 0  }
   0x2   :  { %s1044_s16 = smov 0  }
   0x3 LB: > { %s25_s17 = sadd.s32 1, %s1009_s15  ;;  %p48_p1 = scmp.ne.s32.totalorder %s1001_s13, %s997_s12  ;;  %s1013_s16 = sphi %s1044_s16, %s13_s16   ;;  %s1009_s15 = sphi %s1042_s15, %s1159_s15   ;;  %s1005_s14 = sphi %s1040_s14, %s1158_s14   ;;  %s1001_s13 = sphi %s1038_s13, %s1157_s13   ;;  %s997_s12 = sphi %s1036_s12, %s1156_s12  }
   0x4   : > { %p26_p0 = scmp.ge.s32.totalorder %s25_s17, 3  ;;  %p49_p2 = scmp.eq.s32.totalorder %s1013_s16, 0 }
   0x5   : > { %s41_s19 = sadd.s32 1, %s1001_s13  ;;  %p792_p5 = scmp.ge.s32.totalorder %s1013_s16, 3 }
   0x6   : > { %s1161_s17 = smov (%p26_p0, %s25_s17), 0  ;;  %p50_p3 = por %p49_p2, %p48_p1 }
   0x7   : > { %s37_s18 = ssub.s32 %s1009_s15, %s1161_s17  ;;  %162 = sbr.rel (%p792_p5) target bundleno = 23 (0x17), region = 20 }
   0x8   : > { %p39_p4 = scmp.eq.s32.totalorder %s37_s18, 0 }
   0xa   : > { %s1071_s20 = scalar_select %p39_p4, %s1001_s13, %s41_s19  }
   0xe   : > { %165 = sbr.rel (!%p50_p3) target bundleno = 23 (0x17), region = 24  ;;  %s167_s21 = sand.u32 (%p50_p3), 1, %s1001_s13  }
   0xf   : > { %s841_s22 = smul.u32 (%p50_p3), 12, %s1009_s15 }
  0x10   : > { %s900_s23 = smul.u32 (%p50_p3), 48, %s167_s21 }
  0x11   : > { %s175_s26 = scalar_lea.vmem (%p50_p3), %s1152_s0, %s841_s22 }
  0x12   : > { %v190_v0 = vld [vmem:[%s175_s26] sm:$0xff] (%p50_p3)  ;;  %v194_v2 = vld [vmem:[%s175_s26 + $0x48] sm:$0xff] (%p50_p3)  ;;  %s169_s27 = scalar_lea.vmem (%p50_p3), [#allocation3], %s900_s23  ;;  %v798_v6 = vld [vmem:[%s175_s26 + $0x50] sm:$0xf] (%p50_p3) }
  0x13   : > { %v192_v1 = vld [vmem:[%s175_s26 + $0x24] sm:$0xff] (%p50_p3)  ;;  %191 = vst [vmem:[%s169_s27] sm:$0xff] (%p50_p3), %v190_v0  ;;  %195 = vst [vmem:[%s169_s27 + $0x18] sm:$0xff] (%p50_p3), %v194_v2  ;;  %v196_v3 = vld [vmem:[%s175_s26 + $0x6c] sm:$0xff] (%p50_p3) }
  0x14   : > { %193 = vst [vmem:[%s169_s27 + $0xc] sm:$0xff] (%p50_p3), %v192_v1  ;;  %v794_v4 = vld [vmem:[%s175_s26 + $0x8] sm:$0xf] (%p50_p3)  ;;  %v796_v5 = vld [vmem:[%s175_s26 + $0x2c] sm:$0xf] (%p50_p3)  ;;  %197 = vst [vmem:[%s169_s27 + $0x24] sm:$0xff] (%p50_p3), %v196_v3 }
  0x15   : > { %795 = vst [vmem:[%s169_s27 + $0x8] sm:$0xf] %v794_v4  ;;  %797 = vst [vmem:[%s169_s27 + $0x14] sm:$0xf] %v796_v5  ;;  %v800_v7 = vld [vmem:[%s175_s26 + $0x74] sm:$0xf] }
  0x16   : > { %799 = vst [vmem:[%s169_s27 + $0x20] sm:$0xf] %v798_v6  ;;  %801 = vst [vmem:[%s169_s27 + $0x2c] sm:$0xf] %v800_v7 }
  0x17 PF: > { %p802_p6 = scmp.ge.s32.totalorder %s1013_s16, 1  ;;  %p229_p7 = scmp.lt.s32.totalorder %s1013_s16, 4 }
  0x19   : > { %p230_p8 = pnand %p802_p6, %p229_p7 }
  0x1a   : > { %s236_s28 = sand.u32 (!%p230_p8), 1, %s997_s12   ;;  %s275_s29 = smul.u32 (!%p230_p8), 48, %s1005_s14 }
  0x1b   : > { %233 = sbr.rel (%p230_p8) target bundleno = 316 (0x13c), region = 54  ;;  %p804_p10 = scmp.ne.s32.totalorder (!%p230_p8), %s1005_s14, 0 }
  0x1c   : > { %s901_s30 = smul.u32 (!%p230_p8), 48, %s236_s28  ;;  %p276_p9 = scmp.lt.s32.totalorder (!%p230_p8), %s275_s29, 143 }
  0x1e   : > { %s1088_s8 = scalar_lea.vmem (!%p230_p8), [#allocation3], %s901_s30 }
  0x22   : > { %s1163_s29 = smov (!%p276_p9, %s275_s29), 143  ;;  %300 = sbr.rel (%p804_p10) target bundleno = 41 (0x29), region = 62 }
  0x23   : > { %s803_s4 = sshll.u32 %s1163_s29, 2  ;;  %v1015_v8 = vmov (!%p804_p10), 0.0  }
  0x24   : > { %s1086_s7 = scalar_lea.vmem %s1153_s1, %s803_s4  ;;  %301 = vst [vmem:[#allocation2] sm:$0xff] (!%p804_p10), %v1015_v8  ;;  %302 = vst [vmem:[#allocation2 + $0x8] sm:$0xff] (!%p804_p10), %v1015_v8 }
  0x25   : > { %303 = vst [vmem:[#allocation2 + $0x10] sm:$0xff] (!%p804_p10), %v1015_v8  ;;  %304 = vst [vmem:[#allocation2 + $0x18] sm:$0xff] (!%p804_p10), %v1015_v8 }
  0x29 PF: > { %v943_v9 = vld [vmem:[%s1086_s7 + $0x40] sm:$0xff]   ;;  %v946_v12 = vld [vmem:[%s1086_s7 + $0x48] sm:$0xff]   ;;  %v949_v15 = vld [vmem:[%s1086_s7 + $0x50] sm:$0xff]   ;;  %p835_p11 = scmp.ne.s32.totalorder %s1005_s14, 2 }
  0x2a   : > { %v944_v10 = vld [vmem:[%s1086_s7] sm:$0xff]   ;;  %842 = vmatprep.subr.bf16.mxu0 %v943_v9  ;;  %v947_v13 = vld [vmem:[%s1086_s7 + $0x8] sm:$0xff]   ;;  %v950_v16 = vld [vmem:[%s1086_s7 + $0x10] sm:$0xff]  }
  0x2b   : > { %v945_v11 = vld [vmem:[%s1086_s7 + $0x80] sm:$0xff]   ;;  %843 = vmatpush3.bf16.msra.mxu0 %v944_v10  ;;  %v948_v14 = vld [vmem:[%s1086_s7 + $0x88] sm:$0xff]   ;;  %v951_v17 = vld [vmem:[%s1086_s7 + $0x90] sm:$0xff]  }
  0x2c   : > { %880 = vmatprep.subr.bf16.mxu1 %v945_v11  ;;  %844 = vmatprep.subr.bf16.mxu0 %v946_v12  ;;  %v952_v18 = vld [vmem:[%s1086_s7 + $0x58] sm:$0xff]   ;;  %v955_v21 = vld [vmem:[%s1086_s7 + $0x60] sm:$0xff]   ;;  %v958_v24 = vld [vmem:[%s1086_s7 + $0x68] sm:$0xff]  }
  0x2d   : > { %881 = vmatpush3.bf16.msra.mxu1 %v945_v11  ;;  %v953_v19 = vld [vmem:[%s1086_s7 + $0x18] sm:$0xff]   ;;  %v957_v22 = vld [vmem:[%s1086_s7 + $0xa0] sm:$0xff]   ;;  %v960_v25 = vld [vmem:[%s1086_s7 + $0xa8] sm:$0xff]  }
  0x2e   : > { %882 = vmatprep.subr.bf16.mxu1 %v948_v14  ;;  %v954_v20 = vld [vmem:[%s1086_s7 + $0x98] sm:$0xff]   ;;  %v956_v23 = vld [vmem:[%s1086_s7 + $0x20] sm:$0xff]   ;;  %v959_v26 = vld [vmem:[%s1086_s7 + $0x28] sm:$0xff]  }
  0x2f   : > { %845 = vmatpush3.bf16.msra.mxu0 %v947_v13  ;;  %v961_v27 = vld [vmem:[%s1086_s7 + $0x70] sm:$0xff]   ;;  %v964_v30 = vld [vmem:[%s1086_s7 + $0x78] sm:$0xff]   ;;  %v305_v45 = vld [vmem:[#allocation2] sm:$0xff] }
  0x30   : > { %846 = vmatprep.subr.bf16.mxu0 %v949_v15  ;;  %v962_v28 = vld [vmem:[%s1086_s7 + $0x30] sm:$0xff]   ;;  %v966_v31 = vld [vmem:[%s1086_s7 + $0xb8] sm:$0xff]   ;;  %v306_v50 = vld [vmem:[#allocation2 + $0x8] sm:$0xff] }
  0x31   : > { %883 = vmatpush3.bf16.msra.mxu1 %v948_v14  ;;  %v963_v29 = vld [vmem:[%s1086_s7 + $0xb0] sm:$0xff]   ;;  %v965_v34 = vld [vmem:[%s1086_s7 + $0x38] sm:$0xff]   ;;  %v836_v4 = vld [vmem:[%s1154_s2] ss:$0 sm:$0xff] (!%p835_p11) }
  0x32   : > { %884 = vmatprep.subr.bf16.mxu1 %v951_v17  ;;  %v969_v32 = vld [vmem:[%s1088_s8 + $0x4] ss:$12 sps:$4 sm:$0xff]   ;;  %v970_v33 = vld [vmem:[%s1088_s8 + $0x8] ss:$12 sps:$4 sm:$0xff]   ;;  %v967_v35 = vld [vmem:[%s1088_s8] ss:$12 sps:$4 sm:$0xff]  }
  0x33   : > { %847 = vmatpush3.bf16.msra.mxu0 %v950_v16  ;;  %573 = vmatprep.mubr.bf16.mxu0 %v969_v32  ;;  %v972_v36 = vld [vmem:[%s1088_s8 + $0x1c] ss:$12 sps:$4 sm:$0xff]   ;;  %v971_v37 = vld [vmem:[%s1088_s8 + $0x20] ss:$12 sps:$4 sm:$0xff]   ;;  %v974_v38 = vld [vmem:[%s1088_s8 + $0x18] ss:$12 sps:$4 sm:$0xff]  }
  0x34   : > { %848 = vmatprep.subr.bf16.mxu0 %v952_v18  ;;  %896 = vmatprep.mubr.bf16.mxu1 %v970_v33  ;;  %v307_v59 = vld [vmem:[#allocation2 + $0x10] sm:$0xff]  ;;  %v308_v63 = vld [vmem:[#allocation2 + $0x18] sm:$0xff] }
  0x35   : > { %885 = vmatpush3.bf16.msra.mxu1 %v951_v17 }
  0x36   : > { %886 = vmatprep.subr.bf16.mxu1 %v954_v20 }
  0x37   : > { %849 = vmatpush3.bf16.msra.mxu0 %v953_v19 }
  0x38   : > { %850 = vmatprep.subr.bf16.mxu0 %v955_v21 }
  0x39   : > { %887 = vmatpush3.bf16.msra.mxu1 %v954_v20 }
  0x3a   : > { %888 = vmatprep.subr.bf16.mxu1 %v957_v22 }
  0x3b   : > { %851 = vmatpush3.bf16.msra.mxu0 %v956_v23 }
  0x3c   : > { %852 = vmatprep.subr.bf16.mxu0 %v958_v24 }
  0x3d   : > { %889 = vmatpush3.bf16.msra.mxu1 %v957_v22 }
  0x3e   : > { %890 = vmatprep.subr.bf16.mxu1 %v960_v25 }
  0x3f   : > { %853 = vmatpush3.bf16.msra.mxu0 %v959_v26 }
  0x40   : > { %854 = vmatprep.subr.bf16.mxu0 %v961_v27 }
  0x41   : > { %891 = vmatpush3.bf16.msra.mxu1 %v960_v25 }
  0x42   : > { %892 = vmatprep.subr.bf16.mxu1 %v963_v29 }
  0x43   : > { %855 = vmatpush3.bf16.msra.mxu0 %v962_v28 }
  0x44   : > { %856 = vmatprep.subr.bf16.mxu0 %v964_v30 }
  0x45   : > { %893 = vmatpush3.bf16.msra.mxu1 %v963_v29 }
  0x46   : > { %894 = vmatprep.subr.bf16.mxu1 %v966_v31 }
  0x47   : > { %857 = vmatpush3.bf16.msra.mxu0 %v965_v34 }
  0x49   : > { %895 = vmatpush3.bf16.msra.mxu1 %v966_v31 }
  0x4a   : > { %574 = vmatmul.mubr.bf16.vlgmr.msra.gmra.mrb[0].mxu0 %v967_v35 }
  0x4b   : > { %581 = vmatprep.mubr.bf16.mxu0 %v972_v36 }
  0x4c   : > { %897 = vmatmul.mubr.bf16.vlgmr.msra.gmra.mrb[0].mxu1 %v971_v37 }
  0x52   : > { %582 = vmatmul.mubr.bf16.gmra.mrb[4].mxu0 %v974_v38 }
 0x11d   : > { %v858_v39 = vpop.f32.mrb[0].mxu0 }
 0x11e   : > { %v859_v40 = vpop.f32.mrb[1].mxu0 }
 0x11f   : > { %v860_v41 = vadd.f32 %v859_v40, %v858_v39  ;;  %v861_v42 = vpop.f32.mrb[2].mxu0  ;;  %v898_v43 = vpop.f32.mrb[0].mxu1 }
 0x120   : > { %v862_v44 = vpop.f32.mrb[3].mxu0  ;;  %v624_v46 = vpop.f32.mrb[1].mxu1 }
 0x121   : > { %v863_v47 = vadd.f32 %v862_v44, %v861_v42  ;;  %v625_v48 = vadd.f32 %v860_v41, %v624_v46  ;;  %v899_v49 = vpop.f32.mrb[2].mxu1 }
 0x122   : > { %v627_v51 = vpop.f32.mrb[3].mxu1 }
 0x123   : > { %v639_v52 = vadd.f32 %v625_v48, %v305_v45  ;;  %v628_v53 = vadd.f32 %v863_v47, %v627_v51 }
 0x125   : > { %643 = vst [vmem:[#allocation2] sm:$0xff] %v639_v52  ;;  %v640_v54 = vadd.f32 %v628_v53, %v306_v50  ;;  %v864_v55 = vpop.f32.mrb[4].mxu0 }
 0x126   : > { %v865_v56 = vpop.f32.mrb[5].mxu0 }
 0x127   : > { %644 = vst [vmem:[#allocation2 + $0x8] sm:$0xff] %v640_v54  ;;  %v866_v57 = vadd.f32 %v865_v56, %v864_v55  ;;  %v867_v58 = vpop.f32.mrb[6].mxu0 }
 0x128   : > { %v868_v60 = vpop.f32.mrb[7].mxu0 }
 0x129   : > { %v633_v61 = vadd.f32 %v898_v43, %v866_v57  ;;  %v869_v62 = vadd.f32 %v868_v60, %v867_v58  ;;  %650 = sbr.rel (%p835_p11) target bundleno = 316 (0x13c), region = 66 }
 0x12b   : > { %v641_v0 = vadd.f32 %v633_v61, %v307_v59  ;;  %v636_v1 = vadd.f32 %v899_v49, %v869_v62 }
 0x12c   : > { %v651_v3 = vld [vmem:[#allocation2] sm:$0xff] (!%p835_p11) }
 0x12d   : > { %645 = vst [vmem:[#allocation2 + $0x10] sm:$0xff] %v641_v0  ;;  %v642_v2 = vadd.f32 %v636_v1, %v308_v63  ;;  %v662_v6 = vadd.f32 (!%p835_p11), %v836_v4, %v651_v3 }
 0x12e   : > { %v652_v5 = vld [vmem:[#allocation2 + $0x8] sm:$0xff] (!%p835_p11) }
 0x12f   : > { %646 = vst [vmem:[#allocation2 + $0x18] sm:$0xff] %v642_v2  ;;  %v663_v7 = vadd.f32 (!%p835_p11), %v836_v4, %v652_v5  ;;  %v666_v12 = vmax.f32 (!%p835_p11), %v662_v6, 0.0 }
 0x131   : > { %v667_v13 = vmax.f32 %v663_v7, 0.0  ;;  %670 = vst [vmem:[%s1155_s3] sm:$0xff] %v666_v12 }
 0x133   : > { %671 = vst [vmem:[%s1155_s3 + $0x8] sm:$0xff] %v667_v13 }
 0x134   : > { %v653_v8 = vld [vmem:[#allocation2 + $0x10] sm:$0xff] }
 0x135   : > { %v664_v10 = vadd.f32 %v836_v4, %v653_v8 }
 0x136   : > { %v654_v9 = vld [vmem:[#allocation2 + $0x18] sm:$0xff] }
 0x137   : > { %v665_v11 = vadd.f32 %v836_v4, %v654_v9  ;;  %v668_v14 = vmax.f32 %v664_v10, 0.0 }
 0x139   : > { %v669_v15 = vmax.f32 %v665_v11, 0.0  ;;  %672 = vst [vmem:[%s1155_s3 + $0x10] sm:$0xff] %v668_v14 }
 0x13b   : > { %673 = vst [vmem:[%s1155_s3 + $0x18] sm:$0xff] %v669_v15 }
 0x13c PF: > { %s13_s16 = sadd.s32 1, %s1013_s16   ;;  %s1156_s12 = smov %s1001_s13 }
 0x13d   : > { %p10_p12 = scmp.ge.s32.totalorder %s13_s16, 5   ;;  %s1157_s13 = smov %s1071_s20 }
 0x13e   : > { %s1158_s14 = smov %s1009_s15  ;;  %s1159_s15 = smov %s1161_s17 }
 0x13f   :  { %12 = sbr.rel (!%p10_p12) target bundleno = 3 (0x3), region = 113 }

// kernel: backbone_forward.33
= control target key start
LH: loop header
LB: loop body
LE: loop exit
PB: predicated region body
PF: predicated region fallthrough
CT: control target
= control target key end

     0   :  { %s1027_s12 = smov 0   ;;  %s1029_s13 = smov 0   ;;  %s1129_s0 = inlined_call_operand.vmem [shape: bf16[8,1152], index: 0, kind: input, shape index: {}]   ;;  %s1130_s1 = inlined_call_operand.vmem [shape: bf16[1152,256], index: 1, kind: input, shape index: {}]   ;;  %s1131_s2 = inlined_call_operand.vmem [shape: f32[1,256], index: 2, kind: input, shape index: {}]   ;;  %s1132_s3 = inlined_call_operand.vmem [shape: f32[8,256], index: 3, kind: output, shape index: {}]  }
   0x1   :  { %s1031_s14 = smov 0  }
   0x2 LB: > { %s25_s15 = sadd.s32 1, %s999_s13  ;;  %p818_p0 = scmp.ge.s32.totalorder %s1003_s14, 1  ;;  %s1003_s14 = sphi %s1031_s14, %s13_s14   ;;  %s999_s13 = sphi %s1029_s13, %s1134_s13   ;;  %s995_s12 = sphi %s1027_s12, %s1133_s12  }
   0x3   : > { %p26_p1 = scmp.ge.s32.totalorder %s25_s15, 3  ;;  %p194_p2 = scmp.lt.s32.totalorder %s1003_s14, 4 }
   0x5   : > { %s1136_s15 = smov (%p26_p1, %s25_s15), 0  ;;  %p195_p3 = pnand %p818_p0, %p194_p2 }
   0x6   : > { %s240_s16 = smul.u32 (!%p195_p3), 3, %s995_s12  ;;  %p822_p6 = scmp.ne.s32.totalorder (!%p195_p3), %s995_s12, 0 }
   0x7   : > { %198 = sbr.rel (%p195_p3) target bundleno = 319 (0x13f), region = 32 }
   0x8   : > { %s250_s17 = smul.u32 (!%p195_p3), 48, %s995_s12  ;;  %p243_p4 = scmp.lt.s32.totalorder (!%p195_p3), %s240_s16, 8 }
   0xa   : > { %p252_p5 = scmp.lt.s32.totalorder (!%p195_p3), %s250_s17, 143 }
   0xe   : > { %s1138_s16 = smov (!%p243_p4, %s240_s16), 8  ;;  %s1140_s17 = smov (!%p252_p5, %s250_s17), 143 }
   0xf   : > { %s819_s18 = sshll.u32 %s1138_s16, 2  ;;  %s879_s22 = sshll.u32 %s1140_s17, 3  ;;  %v1005_v0 = vmov (!%p822_p6), 0.0  }
  0x10   : > { %s1052_s21 = scalar_lea.vmem %s1129_s0, %s819_s18  ;;  %s1057_s25 = scalar_lea.vmem %s1130_s1, %s879_s22  ;;  %282 = vst [vmem:[#allocation2] sm:$0xff] (!%p822_p6), %v1005_v0  ;;  %283 = vst [vmem:[#allocation2 + $0x8] sm:$0xff] (!%p822_p6), %v1005_v0 }
  0x11   : > { %281 = sbr.rel (%p822_p6) target bundleno = 24 (0x18), region = 36 }
  0x18 PF: > { %v906_v1 = vld [vmem:[%s1057_s25 + $0x4] ss:$8 sps:$4 sm:$0xff]   ;;  %v908_v2 = vld [vmem:[%s1057_s25] ss:$8 sps:$4 sm:$0xff]   ;;  %v1006_v3 = vmov 0   ;;  %p874_p7 = scmp.ne.s32.totalorder %s995_s12, 2 }
  0x19   : > { %660 = vmatprep.mubr.bf16.mxu1 %v1006_v3  ;;  %587 = vmatprep.subr.bf16.mxu0 %v906_v1  ;;  %v909_v4 = vld [vmem:[%s1057_s25 + $0x14] ss:$8 sps:$4 sm:$0xff]   ;;  %v911_v5 = vld [vmem:[%s1057_s25 + $0x10] ss:$8 sps:$4 sm:$0xff]   ;;  %v912_v6 = vld [vmem:[%s1057_s25 + $0x24] ss:$8 sps:$4 sm:$0xff]  }
  0x1a   : > { %588 = vmatpush1.bf16.msra.mxu0 %v908_v2  ;;  %v914_v7 = vld [vmem:[%s1057_s25 + $0x20] ss:$8 sps:$4 sm:$0xff]   ;;  %v915_v8 = vld [vmem:[%s1057_s25 + $0x34] ss:$8 sps:$4 sm:$0xff]   ;;  %v917_v9 = vld [vmem:[%s1057_s25 + $0x30] ss:$8 sps:$4 sm:$0xff]  }
  0x1b   : > { %589 = vmatprep.subr.bf16.mxu0 %v909_v4  ;;  %v930_v10 = vld [vmem:[%s1057_s25 + $0x104] ss:$8 sps:$4 sm:$0xff]   ;;  %v932_v11 = vld [vmem:[%s1057_s25 + $0x100] ss:$8 sps:$4 sm:$0xff]   ;;  %v936_v13 = vld [vmem:[%s1057_s25 + $0x114] ss:$8 sps:$4 sm:$0xff]   ;;  %v681_v4 = vlaneseq (!%p874_p7) }
  0x1c   : > { %v918_v12 = vld [vmem:[%s1057_s25 + $0x44] ss:$8 sps:$4 sm:$0xff]   ;;  %628 = vmatprep.subr.bf16.mxu1 %v930_v10  ;;  %v938_v14 = vld [vmem:[%s1057_s25 + $0x110] ss:$8 sps:$4 sm:$0xff]   ;;  %v920_v15 = vld [vmem:[%s1057_s25 + $0x40] ss:$8 sps:$4 sm:$0xff]  }
  0x1d   : > { %629 = vmatpush1.bf16.msra.mxu1 %v932_v11  ;;  %v921_v16 = vld [vmem:[%s1057_s25 + $0x54] ss:$8 sps:$4 sm:$0xff]   ;;  %v942_v17 = vld [vmem:[%s1057_s25 + $0x124] ss:$8 sps:$4 sm:$0xff]   ;;  %v944_v18 = vld [vmem:[%s1057_s25 + $0x120] ss:$8 sps:$4 sm:$0xff]  }
  0x1e   : > { %590 = vmatpush1.bf16.msra.mxu0 %v911_v5  ;;  %630 = vmatprep.subr.bf16.mxu1 %v936_v13  ;;  %v923_v19 = vld [vmem:[%s1057_s25 + $0x50] ss:$8 sps:$4 sm:$0xff]   ;;  %v948_v20 = vld [vmem:[%s1057_s25 + $0x134] ss:$8 sps:$4 sm:$0xff]   ;;  %v924_v21 = vld [vmem:[%s1057_s25 + $0x64] ss:$8 sps:$4 sm:$0xff]  }
  0x1f   : > { %591 = vmatprep.subr.bf16.mxu0 %v912_v6  ;;  %v950_v22 = vld [vmem:[%s1057_s25 + $0x130] ss:$8 sps:$4 sm:$0xff]   ;;  %v926_v23 = vld [vmem:[%s1057_s25 + $0x60] ss:$8 sps:$4 sm:$0xff]   ;;  %v954_v24 = vld [vmem:[%s1057_s25 + $0x144] ss:$8 sps:$4 sm:$0xff]  }
  0x20   : > { %v927_v25 = vld [vmem:[%s1057_s25 + $0x74] ss:$8 sps:$4 sm:$0xff]   ;;  %v956_v26 = vld [vmem:[%s1057_s25 + $0x140] ss:$8 sps:$4 sm:$0xff]   ;;  %v929_v27 = vld [vmem:[%s1057_s25 + $0x70] ss:$8 sps:$4 sm:$0xff]  }
  0x21   : > { %631 = vmatpush1.bf16.msra.mxu1 %v938_v14  ;;  %v960_v28 = vld [vmem:[%s1057_s25 + $0x154] ss:$8 sps:$4 sm:$0xff]   ;;  %v933_v29 = vld [vmem:[%s1057_s25 + $0x84] ss:$8 sps:$4 sm:$0xff]   ;;  %v962_v30 = vld [vmem:[%s1057_s25 + $0x150] ss:$8 sps:$4 sm:$0xff]  }
  0x22   : > { %592 = vmatpush1.bf16.msra.mxu0 %v914_v7  ;;  %632 = vmatprep.subr.bf16.mxu1 %v942_v17  ;;  %v935_v31 = vld [vmem:[%s1057_s25 + $0x80] ss:$8 sps:$4 sm:$0xff]   ;;  %v966_v32 = vld [vmem:[%s1057_s25 + $0x164] ss:$8 sps:$4 sm:$0xff]   ;;  %v939_v33 = vld [vmem:[%s1057_s25 + $0x94] ss:$8 sps:$4 sm:$0xff]  }
  0x23   : > { %593 = vmatprep.subr.bf16.mxu0 %v915_v8  ;;  %v286_v34 = vld [vmem:[%s1052_s21] sm:$0xff]  ;;  %v941_v37 = vld [vmem:[%s1057_s25 + $0x90] ss:$8 sps:$4 sm:$0xff]   ;;  %v972_v38 = vld [vmem:[%s1057_s25 + $0x174] ss:$8 sps:$4 sm:$0xff]   ;;  %v682_v5 = vshrl.u32 (!%p874_p7), %v681_v4, 7 }
  0x24   : > { %v824_v35 = vcombine.high %v286_v34, %v286_v34  ;;  %v968_v36 = vld [vmem:[%s1057_s25 + $0x160] ss:$8 sps:$4 sm:$0xff]   ;;  %v945_v39 = vld [vmem:[%s1057_s25 + $0xa4] ss:$8 sps:$4 sm:$0xff]   ;;  %v974_v40 = vld [vmem:[%s1057_s25 + $0x170] ss:$8 sps:$4 sm:$0xff]   ;;  %v823_v53 = vcombine.low %v286_v34, %v286_v34 }
  0x25   : > { %633 = vmatpush1.bf16.msra.mxu1 %v944_v18  ;;  %v947_v41 = vld [vmem:[%s1057_s25 + $0xa0] ss:$8 sps:$4 sm:$0xff]   ;;  %v951_v42 = vld [vmem:[%s1057_s25 + $0xb4] ss:$8 sps:$4 sm:$0xff]   ;;  %v953_v44 = vld [vmem:[%s1057_s25 + $0xb0] ss:$8 sps:$4 sm:$0xff]  }
  0x26   : > { %594 = vmatpush1.bf16.msra.mxu0 %v917_v9  ;;  %634 = vmatprep.subr.bf16.mxu1 %v948_v20  ;;  %v978_v43 = vld [vmem:[%s1052_s21 + $0x8] ss:$0 sps:$4 sm:$0xff]   ;;  %v957_v45 = vld [vmem:[%s1057_s25 + $0xc4] ss:$8 sps:$4 sm:$0xff]   ;;  %v963_v47 = vld [vmem:[%s1057_s25 + $0xd4] ss:$8 sps:$4 sm:$0xff]  }
  0x27   : > { %595 = vmatprep.subr.bf16.mxu0 %v918_v12  ;;  %619 = vmatprep.mubr.bf16.mxu0 %v824_v35  ;;  %v959_v46 = vld [vmem:[%s1057_s25 + $0xc0] ss:$8 sps:$4 sm:$0xff]   ;;  %v965_v48 = vld [vmem:[%s1057_s25 + $0xd0] ss:$8 sps:$4 sm:$0xff]   ;;  %v969_v49 = vld [vmem:[%s1057_s25 + $0xe4] ss:$8 sps:$4 sm:$0xff]  }
  0x28   : > { %v971_v50 = vld [vmem:[%s1057_s25 + $0xe0] ss:$8 sps:$4 sm:$0xff]   ;;  %v975_v51 = vld [vmem:[%s1057_s25 + $0xf4] ss:$8 sps:$4 sm:$0xff]   ;;  %v977_v52 = vld [vmem:[%s1057_s25 + $0xf0] ss:$8 sps:$4 sm:$0xff]  }
  0x29   : > { %635 = vmatpush1.bf16.msra.mxu1 %v950_v22  ;;  %v284_v58 = vld [vmem:[#allocation2] sm:$0xff]  ;;  %v285_v61 = vld [vmem:[#allocation2 + $0x8] sm:$0xff]  ;;  %v683_v7 = vsub.s32 (!%p874_p7), 0, %v682_v5  ;;  %v687_v8 = vsub.s32 (!%p874_p7), 1, %v682_v5 }
  0x2a   : > { %596 = vmatpush1.bf16.msra.mxu0 %v920_v15  ;;  %636 = vmatprep.subr.bf16.mxu1 %v954_v24  ;;  %v679_v6 = vld [vmem:[%s1131_s2] sm:$0x3] (!%p874_p7) }
  0x2b   : > { %597 = vmatprep.subr.bf16.mxu0 %v921_v16  ;;  %v684_v11 = vrot.slane (!%p874_p7), %v679_v6, %v683_v7  ;;  %v688_v12 = vrot.slane (!%p874_p7), %v679_v6, %v687_v8 }
  0x2d   : > { %637 = vmatpush1.bf16.msra.mxu1 %v956_v26 }
  0x2e   : > { %598 = vmatpush1.bf16.msra.mxu0 %v923_v19  ;;  %638 = vmatprep.subr.bf16.mxu1 %v960_v28 }
  0x2f   : > { %599 = vmatprep.subr.bf16.mxu0 %v924_v21 }
  0x31   : > { %639 = vmatpush1.bf16.msra.mxu1 %v962_v30 }
  0x32   : > { %600 = vmatpush1.bf16.msra.mxu0 %v926_v23  ;;  %640 = vmatprep.subr.bf16.mxu1 %v966_v32 }
  0x33   : > { %601 = vmatprep.subr.bf16.mxu0 %v927_v25 }
  0x35   : > { %641 = vmatpush1.bf16.msra.mxu1 %v968_v36 }
  0x36   : > { %602 = vmatpush1.bf16.msra.mxu0 %v929_v27  ;;  %642 = vmatprep.subr.bf16.mxu1 %v972_v38 }
  0x37   : > { %603 = vmatprep.subr.bf16.mxu0 %v933_v29 }
  0x39   : > { %643 = vmatpush1.bf16.msra.mxu1 %v974_v40 }
  0x3a   : > { %604 = vmatpush1.bf16.msra.mxu0 %v935_v31 }
  0x3b   : > { %605 = vmatprep.subr.bf16.mxu0 %v939_v33 }
  0x3c   : > { %661 = vmatmul.mubr.bf16.vlgmr.msra.gmra.mrb[0].mxu1 %v978_v43 }
  0x3e   : > { %606 = vmatpush1.bf16.msra.mxu0 %v941_v37 }
  0x3f   : > { %607 = vmatprep.subr.bf16.mxu0 %v945_v39 }
  0x42   : > { %608 = vmatpush1.bf16.msra.mxu0 %v947_v41 }
  0x43   : > { %609 = vmatprep.subr.bf16.mxu0 %v951_v42 }
  0x46   : > { %610 = vmatpush1.bf16.msra.mxu0 %v953_v44 }
  0x47   : > { %611 = vmatprep.subr.bf16.mxu0 %v957_v45 }
  0x4a   : > { %612 = vmatpush1.bf16.msra.mxu0 %v959_v46 }
  0x4b   : > { %613 = vmatprep.subr.bf16.mxu0 %v963_v47 }
  0x4e   : > { %614 = vmatpush1.bf16.msra.mxu0 %v965_v48 }
  0x4f   : > { %615 = vmatprep.subr.bf16.mxu0 %v969_v49 }
  0x52   : > { %616 = vmatpush1.bf16.msra.mxu0 %v971_v50 }
  0x53   : > { %617 = vmatprep.subr.bf16.mxu0 %v975_v51 }
  0x56   : > { %618 = vmatpush1.bf16.msra.mxu0 %v977_v52 }
  0x59   : > { %620 = vmatmul.mubr.bf16.vlgmr.msra.gmra.mrb[0].mxu0 %v823_v53 }
 0x10f   : > { %v662_v54 = vpop.f32.mrb[0].mxu1 }
 0x110   : > { %v664_v55 = vpop.f32.mrb[1].mxu1 }
 0x111   : > { %v666_v56 = vpop.f32.mrb[2].mxu1 }
 0x112   : > { %v667_v57 = vpop.f32.mrb[3].mxu1 }
 0x12c   : > { %v621_v59 = vpop.f32.mrb[0].mxu0  ;;  %676 = sbr.rel (%p874_p7) target bundleno = 319 (0x13f), region = 40 }
 0x12d   : > { %v663_v60 = vadd.f32 %v662_v54, %v621_v59  ;;  %v623_v62 = vpop.f32.mrb[1].mxu0 }
 0x12e   : > { %v665_v63 = vadd.f32 %v664_v55, %v623_v62  ;;  %v625_v0 = vpop.f32.mrb[2].mxu0 }
 0x12f   : > { %v669_v1 = vadd.f32 %v663_v60, %v284_v58  ;;  %v626_v2 = vpop.f32.mrb[3].mxu0 }
 0x130   : > { %v670_v3 = vadd.f32 %v665_v63, %v285_v61 }
 0x131   : > { %671 = vst [vmem:[#allocation2] sm:$0xff] %v669_v1 }
 0x132   : > { %672 = vst [vmem:[#allocation2 + $0x8] sm:$0xff] %v670_v3 }
 0x138   : > { %v677_v9 = vld [vmem:[#allocation2] sm:$0xff] }
 0x139   : > { %v678_v10 = vld [vmem:[#allocation2 + $0x8] sm:$0xff]  ;;  %v691_v13 = vadd.f32 %v684_v11, %v677_v9 }
 0x13a   : > { %v692_v14 = vadd.f32 %v688_v12, %v678_v10 }
 0x13b   : > { %v693_v15 = vmax.f32 %v691_v13, 0.0 }
 0x13c   : > { %v694_v16 = vmax.f32 %v692_v14, 0.0 }
 0x13d   : > { %695 = vst [vmem:[%s1132_s3] sm:$0xff] %v693_v15 }
 0x13e   : > { %696 = vst [vmem:[%s1132_s3 + $0x8] sm:$0xff] %v694_v16 }
 0x13f PF: > { %s13_s14 = sadd.s32 1, %s1003_s14   ;;  %s1133_s12 = smov %s999_s13 }
 0x140   : > { %p10_p8 = scmp.ge.s32.totalorder %s13_s14, 5   ;;  %s1134_s13 = smov %s1136_s15 }
 0x142   :  { %12 = sbr.rel (!%p10_p8) target bundleno = 2 (0x2), region = 76 }

// kernel: backbone_forward.34
= control target key start
LH: loop header
LB: loop body
LE: loop exit
PB: predicated region body
PF: predicated region fallthrough
CT: control target
= control target key end

     0   :  { %v231_v1 = vmov 0   ;;  %v172_v18 = vlaneseq  ;;  %s312_s1 = inlined_call_operand.vmem [shape: bf16[128,256], index: 1, kind: input, shape index: {}]   ;;  %s313_s0 = inlined_call_operand.vmem [shape: bf16[8,128], index: 0, kind: input, shape index: {}]   ;;  %s314_s2 = inlined_call_operand.vmem [shape: f32[1,256], index: 2, kind: input, shape index: {}]   ;;  %s315_s3 = inlined_call_operand.vmem [shape: f32[8,256], index: 3, kind: output, shape index: {}]  }
   0x1   :  { %v207_v0 = vld [vmem:[%s312_s1 + $0x4] ss:$8 sps:$4 sm:$0xff]   ;;  %152 = vmatprep.mubr.bf16.mxu0 %v231_v1  ;;  %v209_v2 = vld [vmem:[%s312_s1] ss:$8 sps:$4 sm:$0xff]   ;;  %v210_v3 = vld [vmem:[%s312_s1 + $0x14] ss:$8 sps:$4 sm:$0xff]  }
   0x2   :  { %120 = vmatprep.subr.bf16.mxu0 %v207_v0  ;;  %v212_v4 = vld [vmem:[%s312_s1 + $0x10] ss:$8 sps:$4 sm:$0xff]   ;;  %v213_v5 = vld [vmem:[%s312_s1 + $0x24] ss:$8 sps:$4 sm:$0xff]   ;;  %v215_v6 = vld [vmem:[%s312_s1 + $0x20] ss:$8 sps:$4 sm:$0xff]  }
   0x3   :  { %121 = vmatpush1.bf16.msra.mxu0 %v209_v2  ;;  %v216_v7 = vld [vmem:[%s312_s1 + $0x34] ss:$8 sps:$4 sm:$0xff]   ;;  %v218_v8 = vld [vmem:[%s312_s1 + $0x30] ss:$8 sps:$4 sm:$0xff]   ;;  %v219_v9 = vld [vmem:[%s312_s1 + $0x44] ss:$8 sps:$4 sm:$0xff]  }
   0x4   :  { %122 = vmatprep.subr.bf16.mxu0 %v210_v3  ;;  %v221_v10 = vld [vmem:[%s312_s1 + $0x40] ss:$8 sps:$4 sm:$0xff]   ;;  %v222_v11 = vld [vmem:[%s312_s1 + $0x54] ss:$8 sps:$4 sm:$0xff]   ;;  %v224_v12 = vld [vmem:[%s312_s1 + $0x50] ss:$8 sps:$4 sm:$0xff]  }
   0x5   :  { %v225_v13 = vld [vmem:[%s312_s1 + $0x64] ss:$8 sps:$4 sm:$0xff]   ;;  %v227_v14 = vld [vmem:[%s312_s1 + $0x60] ss:$8 sps:$4 sm:$0xff]   ;;  %v228_v15 = vld [vmem:[%s312_s1 + $0x74] ss:$8 sps:$4 sm:$0xff]  }
   0x6   :  { %v230_v16 = vld [vmem:[%s312_s1 + $0x70] ss:$8 sps:$4 sm:$0xff]   ;;  %v23_v17 = vld [vmem:[%s313_s0] sm:$0xf]  ;;  %v173_v19 = vshrl.u32 %v172_v18, 7 }
   0x7   :  { %123 = vmatpush1.bf16.msra.mxu0 %v212_v4  ;;  %v170_v21 = vld [vmem:[%s314_s2] sm:$0x3] }
   0x8   :  { %124 = vmatprep.subr.bf16.mxu0 %v213_v5  ;;  %v174_v20 = vsub.s32 0, %v173_v19  ;;  %v178_v22 = vsub.s32 1, %v173_v19 }
   0xa   :  { %v175_v23 = vrot.slane %v170_v21, %v174_v20  ;;  %v179_v24 = vrot.slane %v170_v21, %v178_v22 }
   0xb   :  { %125 = vmatpush1.bf16.msra.mxu0 %v215_v6 }
   0xc   :  { %126 = vmatprep.subr.bf16.mxu0 %v216_v7 }
   0xf   :  { %127 = vmatpush1.bf16.msra.mxu0 %v218_v8 }
  0x10   :  { %128 = vmatprep.subr.bf16.mxu0 %v219_v9 }
  0x13   :  { %129 = vmatpush1.bf16.msra.mxu0 %v221_v10 }
  0x14   :  { %130 = vmatprep.subr.bf16.mxu0 %v222_v11 }
  0x17   :  { %131 = vmatpush1.bf16.msra.mxu0 %v224_v12 }
  0x18   :  { %132 = vmatprep.subr.bf16.mxu0 %v225_v13 }
  0x1b   :  { %133 = vmatpush1.bf16.msra.mxu0 %v227_v14 }
  0x1c   :  { %134 = vmatprep.subr.bf16.mxu0 %v228_v15 }
  0x1f   :  { %135 = vmatpush1.bf16.msra.mxu0 %v230_v16 }
  0x22   :  { %153 = vmatmul.mubr.bf16.vlgmr.msra.gmra.mrb[0].mxu0 %v23_v17 }
  0xf5   :  { %v154_v25 = vpop.f32.mrb[0].mxu0 }
  0xf6   :  { %v182_v26 = vadd.f32 %v175_v23, %v154_v25  ;;  %v156_v27 = vpop.f32.mrb[1].mxu0 }
  0xf7   :  { %v183_v28 = vadd.f32 %v179_v24, %v156_v27  ;;  %v158_v29 = vpop.f32.mrb[2].mxu0 }
  0xf8   :  { %184 = vst [vmem:[%s315_s3] sm:$0xff] %v182_v26  ;;  %v159_v30 = vpop.f32.mrb[3].mxu0 }
  0xf9   :  { %185 = vst [vmem:[%s315_s3 + $0x8] sm:$0xff] %v183_v28 }

// kernel: backbone_forward.35
= control target key start
LH: loop header
LB: loop body
LE: loop exit
PB: predicated region body
PF: predicated region fallthrough
CT: control target
= control target key end

     0   :  { %s1584_s15 = smov 0   ;;  %s1586_s16 = smov 0   ;;  %s1747_s0 = inlined_call_operand.vmem [shape: bf16[8,2304], index: 0, kind: input, shape index: {}]   ;;  %s1748_s1 = inlined_call_operand.vmem [shape: bf16[2304,256], index: 1, kind: input, shape index: {}]   ;;  %s1749_s2 = inlined_call_operand.vmem [shape: f32[1,256], index: 2, kind: input, shape index: {}]   ;;  %s1750_s3 = inlined_call_operand.vmem [shape: f32[8,256], index: 3, kind: input, shape index: {}]   ;;  %s1751_s4 = inlined_call_operand.vmem [shape: f32[8,256], index: 4, kind: output, shape index: {}]  }
   0x1   :  { %s1588_s17 = smov 0  }
   0x2 LB: > { %s26_s18 = sadd.s32 1, %s1552_s16  ;;  %p1246_p0 = scmp.ge.s32.totalorder %s1556_s17, 1  ;;  %s1556_s17 = sphi %s1588_s17, %s14_s17   ;;  %s1552_s16 = sphi %s1586_s16, %s1753_s16   ;;  %s1548_s15 = sphi %s1584_s15, %s1752_s15  }
   0x3   : > { %p27_p1 = scmp.ge.s32.totalorder %s26_s18, 3  ;;  %p236_p2 = scmp.lt.s32.totalorder %s1556_s17, 4 }
   0x5   : > { %s1755_s18 = smov (%p27_p1, %s26_s18), 0  ;;  %p237_p3 = pnand %p1246_p0, %p236_p2 }
   0x6   : > { %s293_s19 = smul.u32 (!%p237_p3), 6, %s1548_s15  ;;  %p1250_p6 = scmp.ne.s32.totalorder (!%p237_p3), %s1548_s15, 0 }
   0x7   : > { %240 = sbr.rel (%p237_p3) target bundleno = 385 (0x181), region = 36 }
   0x8   : > { %s303_s20 = smul.u32 (!%p237_p3), 96, %s1548_s15  ;;  %p296_p4 = scmp.lt.s32.totalorder (!%p237_p3), %s293_s19, 17 }
   0xa   : > { %p305_p5 = scmp.lt.s32.totalorder (!%p237_p3), %s303_s20, 287 }
   0xe   : > { %s1757_s19 = smov (!%p296_p4, %s293_s19), 17  ;;  %s1759_s20 = smov (!%p305_p5, %s303_s20), 287 }
   0xf   : > { %s1247_s21 = sshll.u32 %s1757_s19, 2  ;;  %s1358_s25 = sshll.u32 %s1759_s20, 3  ;;  %v1558_v0 = vmov (!%p1250_p6), 0.0  }
  0x10   : > { %s1609_s24 = scalar_lea.vmem %s1747_s0, %s1247_s21  ;;  %s1614_s28 = scalar_lea.vmem %s1748_s1, %s1358_s25  ;;  %344 = vst [vmem:[#allocation2] sm:$0xff] (!%p1250_p6), %v1558_v0  ;;  %345 = vst [vmem:[#allocation2 + $0x8] sm:$0xff] (!%p1250_p6), %v1558_v0 }
  0x11   : > { %343 = sbr.rel (%p1250_p6) target bundleno = 24 (0x18), region = 40 }
  0x18 PF: > { %v1384_v1 = vld [vmem:[%s1614_s28 + $0x4] ss:$8 sps:$4 sm:$0xff]   ;;  %v1388_v3 = vld [vmem:[%s1614_s28] ss:$8 sps:$4 sm:$0xff]   ;;  %v1390_v5 = vld [vmem:[%s1614_s28 + $0x14] ss:$8 sps:$4 sm:$0xff]  }
  0x19   : > { %v1386_v2 = vld [vmem:[%s1614_s28 + $0x104] ss:$8 sps:$4 sm:$0xff]   ;;  %948 = vmatprep.subr.bf16.mxu0 %v1384_v1  ;;  %v1389_v4 = vld [vmem:[%s1614_s28 + $0x100] ss:$8 sps:$4 sm:$0xff]   ;;  %v1392_v6 = vld [vmem:[%s1614_s28 + $0x114] ss:$8 sps:$4 sm:$0xff]  }
  0x1a   : > { %989 = vmatprep.subr.bf16.mxu1 %v1386_v2  ;;  %949 = vmatpush1.bf16.msra.mxu0 %v1388_v3  ;;  %v1394_v7 = vld [vmem:[%s1614_s28 + $0x10] ss:$8 sps:$4 sm:$0xff]   ;;  %v1396_v9 = vld [vmem:[%s1614_s28 + $0x24] ss:$8 sps:$4 sm:$0xff]   ;;  %v1400_v11 = vld [vmem:[%s1614_s28 + $0x20] ss:$8 sps:$4 sm:$0xff]  }
  0x1b   : > { %990 = vmatpush1.bf16.msra.mxu1 %v1389_v4  ;;  %950 = vmatprep.subr.bf16.mxu0 %v1390_v5  ;;  %v1395_v8 = vld [vmem:[%s1614_s28 + $0x110] ss:$8 sps:$4 sm:$0xff]   ;;  %v1398_v10 = vld [vmem:[%s1614_s28 + $0x124] ss:$8 sps:$4 sm:$0xff]   ;;  %v1401_v12 = vld [vmem:[%s1614_s28 + $0x120] ss:$8 sps:$4 sm:$0xff]  }
  0x1c   : > { %991 = vmatprep.subr.bf16.mxu1 %v1392_v6  ;;  %v1402_v13 = vld [vmem:[%s1614_s28 + $0x34] ss:$8 sps:$4 sm:$0xff]   ;;  %v1406_v15 = vld [vmem:[%s1614_s28 + $0x30] ss:$8 sps:$4 sm:$0xff]   ;;  %v1408_v17 = vld [vmem:[%s1614_s28 + $0x44] ss:$8 sps:$4 sm:$0xff]  }
  0x1d   : > { %v1404_v14 = vld [vmem:[%s1614_s28 + $0x134] ss:$8 sps:$4 sm:$0xff]   ;;  %v1407_v16 = vld [vmem:[%s1614_s28 + $0x130] ss:$8 sps:$4 sm:$0xff]   ;;  %v1410_v18 = vld [vmem:[%s1614_s28 + $0x144] ss:$8 sps:$4 sm:$0xff]  }
  0x1e   : > { %951 = vmatpush1.bf16.msra.mxu0 %v1394_v7  ;;  %v1412_v19 = vld [vmem:[%s1614_s28 + $0x40] ss:$8 sps:$4 sm:$0xff]   ;;  %v1414_v21 = vld [vmem:[%s1614_s28 + $0x54] ss:$8 sps:$4 sm:$0xff]   ;;  %v1418_v23 = vld [vmem:[%s1614_s28 + $0x50] ss:$8 sps:$4 sm:$0xff]  }
  0x1f   : > { %992 = vmatpush1.bf16.msra.mxu1 %v1395_v8  ;;  %952 = vmatprep.subr.bf16.mxu0 %v1396_v9  ;;  %v1413_v20 = vld [vmem:[%s1614_s28 + $0x140] ss:$8 sps:$4 sm:$0xff]   ;;  %v1416_v22 = vld [vmem:[%s1614_s28 + $0x154] ss:$8 sps:$4 sm:$0xff]   ;;  %v1419_v24 = vld [vmem:[%s1614_s28 + $0x150] ss:$8 sps:$4 sm:$0xff]  }
  0x20   : > { %993 = vmatprep.subr.bf16.mxu1 %v1398_v10  ;;  %v1420_v25 = vld [vmem:[%s1614_s28 + $0x64] ss:$8 sps:$4 sm:$0xff]   ;;  %v1424_v27 = vld [vmem:[%s1614_s28 + $0x60] ss:$8 sps:$4 sm:$0xff]   ;;  %v1426_v29 = vld [vmem:[%s1614_s28 + $0x74] ss:$8 sps:$4 sm:$0xff]  }
  0x21   : > { %v1422_v26 = vld [vmem:[%s1614_s28 + $0x164] ss:$8 sps:$4 sm:$0xff]   ;;  %v1425_v28 = vld [vmem:[%s1614_s28 + $0x160] ss:$8 sps:$4 sm:$0xff]   ;;  %v1428_v30 = vld [vmem:[%s1614_s28 + $0x174] ss:$8 sps:$4 sm:$0xff]  }
  0x22   : > { %953 = vmatpush1.bf16.msra.mxu0 %v1400_v11  ;;  %v1430_v31 = vld [vmem:[%s1614_s28 + $0x70] ss:$8 sps:$4 sm:$0xff]   ;;  %v1432_v33 = vld [vmem:[%s1614_s28 + $0x84] ss:$8 sps:$4 sm:$0xff]   ;;  %v1436_v35 = vld [vmem:[%s1614_s28 + $0x80] ss:$8 sps:$4 sm:$0xff]  }
  0x23   : > { %994 = vmatpush1.bf16.msra.mxu1 %v1401_v12  ;;  %954 = vmatprep.subr.bf16.mxu0 %v1402_v13  ;;  %v1431_v32 = vld [vmem:[%s1614_s28 + $0x170] ss:$8 sps:$4 sm:$0xff]   ;;  %v1434_v34 = vld [vmem:[%s1614_s28 + $0x184] ss:$8 sps:$4 sm:$0xff]   ;;  %v1437_v36 = vld [vmem:[%s1614_s28 + $0x180] ss:$8 sps:$4 sm:$0xff]  }
  0x24   : > { %995 = vmatprep.subr.bf16.mxu1 %v1404_v14  ;;  %v1438_v37 = vld [vmem:[%s1614_s28 + $0x94] ss:$8 sps:$4 sm:$0xff]   ;;  %v1442_v39 = vld [vmem:[%s1614_s28 + $0x90] ss:$8 sps:$4 sm:$0xff]   ;;  %v1444_v41 = vld [vmem:[%s1614_s28 + $0xa4] ss:$8 sps:$4 sm:$0xff]  }
  0x25   : > { %v1440_v38 = vld [vmem:[%s1614_s28 + $0x194] ss:$8 sps:$4 sm:$0xff]   ;;  %v1443_v40 = vld [vmem:[%s1614_s28 + $0x190] ss:$8 sps:$4 sm:$0xff]   ;;  %v1446_v42 = vld [vmem:[%s1614_s28 + $0x1a4] ss:$8 sps:$4 sm:$0xff]  }
  0x26   : > { %955 = vmatpush1.bf16.msra.mxu0 %v1406_v15  ;;  %v1448_v43 = vld [vmem:[%s1614_s28 + $0xa0] ss:$8 sps:$4 sm:$0xff]   ;;  %v1450_v45 = vld [vmem:[%s1614_s28 + $0xb4] ss:$8 sps:$4 sm:$0xff]   ;;  %v1454_v50 = vld [vmem:[%s1614_s28 + $0xb0] ss:$8 sps:$4 sm:$0xff]  }
  0x27   : > { %996 = vmatpush1.bf16.msra.mxu1 %v1407_v16  ;;  %956 = vmatprep.subr.bf16.mxu0 %v1408_v17  ;;  %v1449_v44 = vld [vmem:[%s1614_s28 + $0x1a0] ss:$8 sps:$4 sm:$0xff]   ;;  %v1452_v46 = vld [vmem:[%s1614_s28 + $0x1b4] ss:$8 sps:$4 sm:$0xff]   ;;  %v1455_v51 = vld [vmem:[%s1614_s28 + $0x1b0] ss:$8 sps:$4 sm:$0xff]  }
  0x28   : > { %997 = vmatprep.subr.bf16.mxu1 %v1410_v18  ;;  %v348_v47 = vld [vmem:[%s1609_s24] sm:$0xff]  ;;  %v349_v49 = vld [vmem:[%s1609_s24 + $0x8] sm:$0xff]  ;;  %v1462_v57 = vld [vmem:[%s1614_s28 + $0xd4] ss:$8 sps:$4 sm:$0xff]   ;;  %p1353_p7 = scmp.ne.s32.totalorder %s1548_s15, 2 }
  0x29   : > { %v1252_v48 = vcombine.high %v348_v47, %v348_v47  ;;  %v1254_v52 = vcombine.high %v349_v49, %v349_v49  ;;  %v1456_v53 = vld [vmem:[%s1614_s28 + $0xc4] ss:$8 sps:$4 sm:$0xff]   ;;  %v1460_v55 = vld [vmem:[%s1614_s28 + $0xc0] ss:$8 sps:$4 sm:$0xff]   ;;  %v1464_v58 = vld [vmem:[%s1614_s28 + $0x1d4] ss:$8 sps:$4 sm:$0xff]   ;;  %v1251_v6 = vcombine.low %v348_v47, %v348_v47  ;;  %v1253_v7 = vcombine.low %v349_v49, %v349_v49 }
  0x2a   : > { %957 = vmatpush1.bf16.msra.mxu0 %v1412_v19  ;;  %v1458_v54 = vld [vmem:[%s1614_s28 + $0x1c4] ss:$8 sps:$4 sm:$0xff]   ;;  %v1461_v56 = vld [vmem:[%s1614_s28 + $0x1c0] ss:$8 sps:$4 sm:$0xff]   ;;  %v1466_v59 = vld [vmem:[%s1614_s28 + $0xd0] ss:$8 sps:$4 sm:$0xff]  }
  0x2b   : > { %998 = vmatpush1.bf16.msra.mxu1 %v1413_v20  ;;  %958 = vmatprep.subr.bf16.mxu0 %v1414_v21  ;;  %v1467_v60 = vld [vmem:[%s1614_s28 + $0x1d0] ss:$8 sps:$4 sm:$0xff]   ;;  %v1468_v61 = vld [vmem:[%s1614_s28 + $0xe4] ss:$8 sps:$4 sm:$0xff]   ;;  %v1472_v63 = vld [vmem:[%s1614_s28 + $0xe0] ss:$8 sps:$4 sm:$0xff]  }
  0x2c   : > { %999 = vmatprep.subr.bf16.mxu1 %v1416_v22  ;;  %980 = vmatprep.mubr.bf16.mxu0 %v1252_v48  ;;  %v1470_v62 = vld [vmem:[%s1614_s28 + $0x1e4] ss:$8 sps:$4 sm:$0xff]   ;;  %v1473_v0 = vld [vmem:[%s1614_s28 + $0x1e0] ss:$8 sps:$4 sm:$0xff]   ;;  %v1474_v1 = vld [vmem:[%s1614_s28 + $0xf4] ss:$8 sps:$4 sm:$0xff]  }
  0x2d   : > { %1021 = vmatprep.mubr.bf16.mxu1 %v1254_v52  ;;  %v1476_v2 = vld [vmem:[%s1614_s28 + $0x1f4] ss:$8 sps:$4 sm:$0xff]   ;;  %v1478_v3 = vld [vmem:[%s1614_s28 + $0xf0] ss:$8 sps:$4 sm:$0xff]   ;;  %v1486_v5 = vld [vmem:[%s1614_s28 + $0x204] ss:$8 sps:$4 sm:$0xff]  }
  0x2e   : > { %959 = vmatpush1.bf16.msra.mxu0 %v1418_v23  ;;  %v1479_v4 = vld [vmem:[%s1614_s28 + $0x1f0] ss:$8 sps:$4 sm:$0xff]   ;;  %v1484_v8 = vld [vmem:[%s1614_s28 + $0x200] ss:$8 sps:$4 sm:$0xff]   ;;  %v1489_v10 = vld [vmem:[%s1614_s28 + $0x214] ss:$8 sps:$4 sm:$0xff]  }
  0x2f   : > { %1000 = vmatpush1.bf16.msra.mxu1 %v1419_v24  ;;  %960 = vmatprep.subr.bf16.mxu0 %v1420_v25  ;;  %v1686_v9 = vld [vmem:[%s1609_s24 + $0x10] sm:$0xff]  ;;  %v1492_v13 = vld [vmem:[%s1614_s28 + $0x224] ss:$8 sps:$4 sm:$0xff]   ;;  %v1490_v14 = vld [vmem:[%s1614_s28 + $0x220] ss:$8 sps:$4 sm:$0xff]  }
  0x30   : > { %1001 = vmatprep.subr.bf16.mxu1 %v1422_v26  ;;  %v1256_v11 = vcombine.high %v1686_v9, %v1686_v9  ;;  %v1487_v12 = vld [vmem:[%s1614_s28 + $0x210] ss:$8 sps:$4 sm:$0xff]   ;;  %v1495_v15 = vld [vmem:[%s1614_s28 + $0x234] ss:$8 sps:$4 sm:$0xff]   ;;  %v1498_v17 = vld [vmem:[%s1614_s28 + $0x244] ss:$8 sps:$4 sm:$0xff]  }
  0x31   : > { %v1493_v16 = vld [vmem:[%s1614_s28 + $0x230] ss:$8 sps:$4 sm:$0xff]   ;;  %v1496_v18 = vld [vmem:[%s1614_s28 + $0x240] ss:$8 sps:$4 sm:$0xff]   ;;  %v1501_v19 = vld [vmem:[%s1614_s28 + $0x254] ss:$8 sps:$4 sm:$0xff]  }
  0x32   : > { %961 = vmatpush1.bf16.msra.mxu0 %v1424_v27  ;;  %v1499_v20 = vld [vmem:[%s1614_s28 + $0x250] ss:$8 sps:$4 sm:$0xff]   ;;  %v1504_v21 = vld [vmem:[%s1614_s28 + $0x264] ss:$8 sps:$4 sm:$0xff]   ;;  %v1502_v22 = vld [vmem:[%s1614_s28 + $0x260] ss:$8 sps:$4 sm:$0xff]  }
  0x33   : > { %1002 = vmatpush1.bf16.msra.mxu1 %v1425_v28  ;;  %962 = vmatprep.subr.bf16.mxu0 %v1426_v29  ;;  %v1507_v23 = vld [vmem:[%s1614_s28 + $0x274] ss:$8 sps:$4 sm:$0xff]   ;;  %v1505_v24 = vld [vmem:[%s1614_s28 + $0x270] ss:$8 sps:$4 sm:$0xff]   ;;  %v1510_v25 = vld [vmem:[%s1614_s28 + $0x284] ss:$8 sps:$4 sm:$0xff]  }
  0x34   : > { %1003 = vmatprep.subr.bf16.mxu1 %v1428_v30  ;;  %v1508_v26 = vld [vmem:[%s1614_s28 + $0x280] ss:$8 sps:$4 sm:$0xff]   ;;  %v1513_v27 = vld [vmem:[%s1614_s28 + $0x294] ss:$8 sps:$4 sm:$0xff]   ;;  %v1511_v28 = vld [vmem:[%s1614_s28 + $0x290] ss:$8 sps:$4 sm:$0xff]  }
  0x35   : > { %v1516_v29 = vld [vmem:[%s1614_s28 + $0x2a4] ss:$8 sps:$4 sm:$0xff]   ;;  %v1514_v30 = vld [vmem:[%s1614_s28 + $0x2a0] ss:$8 sps:$4 sm:$0xff]  }
  0x36   : > { %963 = vmatpush1.bf16.msra.mxu0 %v1430_v31  ;;  %v1519_v31 = vld [vmem:[%s1614_s28 + $0x2b4] ss:$8 sps:$4 sm:$0xff]   ;;  %v346_v52 = vld [vmem:[#allocation2] sm:$0xff] }
  0x37   : > { %1004 = vmatpush1.bf16.msra.mxu1 %v1431_v32  ;;  %964 = vmatprep.subr.bf16.mxu0 %v1432_v33  ;;  %v1517_v32 = vld [vmem:[%s1614_s28 + $0x2b0] ss:$8 sps:$4 sm:$0xff]   ;;  %v1522_v33 = vld [vmem:[%s1614_s28 + $0x2c4] ss:$8 sps:$4 sm:$0xff]  }
  0x38   : > { %1005 = vmatprep.subr.bf16.mxu1 %v1434_v34  ;;  %v1520_v34 = vld [vmem:[%s1614_s28 + $0x2c0] ss:$8 sps:$4 sm:$0xff]  }
  0x3a   : > { %965 = vmatpush1.bf16.msra.mxu0 %v1436_v35  ;;  %v1525_v35 = vld [vmem:[%s1614_s28 + $0x2d4] ss:$8 sps:$4 sm:$0xff]  }
  0x3b   : > { %1006 = vmatpush1.bf16.msra.mxu1 %v1437_v36  ;;  %966 = vmatprep.subr.bf16.mxu0 %v1438_v37  ;;  %v1523_v36 = vld [vmem:[%s1614_s28 + $0x2d0] ss:$8 sps:$4 sm:$0xff]   ;;  %v1528_v37 = vld [vmem:[%s1614_s28 + $0x2e4] ss:$8 sps:$4 sm:$0xff]  }
  0x3c   : > { %1007 = vmatprep.subr.bf16.mxu1 %v1440_v38  ;;  %v1526_v38 = vld [vmem:[%s1614_s28 + $0x2e0] ss:$8 sps:$4 sm:$0xff]  }
  0x3e   : > { %967 = vmatpush1.bf16.msra.mxu0 %v1442_v39  ;;  %v1531_v39 = vld [vmem:[%s1614_s28 + $0x2f4] ss:$8 sps:$4 sm:$0xff]  }
  0x3f   : > { %1008 = vmatpush1.bf16.msra.mxu1 %v1443_v40  ;;  %968 = vmatprep.subr.bf16.mxu0 %v1444_v41  ;;  %v1529_v40 = vld [vmem:[%s1614_s28 + $0x2f0] ss:$8 sps:$4 sm:$0xff]   ;;  %v1255_v41 = vcombine.low %v1686_v9, %v1686_v9 }
  0x40   : > { %1009 = vmatprep.subr.bf16.mxu1 %v1446_v42 }
  0x42   : > { %969 = vmatpush1.bf16.msra.mxu0 %v1448_v43 }
  0x43   : > { %1010 = vmatpush1.bf16.msra.mxu1 %v1449_v44  ;;  %970 = vmatprep.subr.bf16.mxu0 %v1450_v45 }
  0x44   : > { %1011 = vmatprep.subr.bf16.mxu1 %v1452_v46 }
  0x46   : > { %971 = vmatpush1.bf16.msra.mxu0 %v1454_v50 }
  0x47   : > { %1012 = vmatpush1.bf16.msra.mxu1 %v1455_v51  ;;  %972 = vmatprep.subr.bf16.mxu0 %v1456_v53 }
  0x48   : > { %1013 = vmatprep.subr.bf16.mxu1 %v1458_v54 }
  0x4a   : > { %973 = vmatpush1.bf16.msra.mxu0 %v1460_v55  ;;  %v347_v55 = vld [vmem:[#allocation2 + $0x8] sm:$0xff] }
  0x4b   : > { %1014 = vmatpush1.bf16.msra.mxu1 %v1461_v56  ;;  %974 = vmatprep.subr.bf16.mxu0 %v1462_v57 }
  0x4c   : > { %1015 = vmatprep.subr.bf16.mxu1 %v1464_v58 }
  0x4e   : > { %975 = vmatpush1.bf16.msra.mxu0 %v1466_v59 }
  0x4f   : > { %1016 = vmatpush1.bf16.msra.mxu1 %v1467_v60  ;;  %976 = vmatprep.subr.bf16.mxu0 %v1468_v61 }
  0x50   : > { %1017 = vmatprep.subr.bf16.mxu1 %v1470_v62  ;;  %v1083_v62 = vlaneseq (!%p1353_p7) }
  0x52   : > { %977 = vmatpush1.bf16.msra.mxu0 %v1472_v63  ;;  %v1084_v63 = vshrl.u32 (!%p1353_p7), %v1083_v62, 7 }
  0x53   : > { %1018 = vmatpush1.bf16.msra.mxu1 %v1473_v0  ;;  %978 = vmatprep.subr.bf16.mxu0 %v1474_v1  ;;  %v1081_v0 = vld [vmem:[%s1749_s2] sm:$0x3] (!%p1353_p7) }
  0x54   : > { %1019 = vmatprep.subr.bf16.mxu1 %v1476_v2  ;;  %v1085_v1 = vsub.s32 (!%p1353_p7), 0, %v1084_v63  ;;  %v1089_v2 = vsub.s32 (!%p1353_p7), 1, %v1084_v63 }
  0x56   : > { %979 = vmatpush1.bf16.msra.mxu0 %v1478_v3 }
  0x57   : > { %1020 = vmatpush1.bf16.msra.mxu1 %v1479_v4  ;;  %1030 = vmatprep.subr.bf16.mxu0 %v1486_v5  ;;  %v1086_v5 = vrot.slane (!%p1353_p7), %v1081_v0, %v1085_v1 }
  0x59   : > { %981 = vmatmul.mubr.bf16.vlgmr.msra.gmra.mrb[0].mxu0 %v1251_v6  ;;  %v1090_v6 = vrot.slane (!%p1353_p7), %v1081_v0, %v1089_v2 }
  0x5a   : > { %1022 = vmatmul.mubr.bf16.vlgmr.msra.gmra.mrb[0].mxu1 %v1253_v7  ;;  %1031 = vmatpush1.bf16.msra.mxu0 %v1484_v8  ;;  %v1095_v7 = vld [vmem:[%s1750_s3] sm:$0xff] (!%p1353_p7)  ;;  %v1096_v8 = vld [vmem:[%s1750_s3 + $0x8] sm:$0xff] (!%p1353_p7) }
  0x5b   : > { %1062 = vmatprep.mubr.bf16.mxu0 %v1256_v11  ;;  %1032 = vmatprep.subr.bf16.mxu0 %v1489_v10 }
  0x5e   : > { %1033 = vmatpush1.bf16.msra.mxu0 %v1487_v12 }
  0x5f   : > { %1034 = vmatprep.subr.bf16.mxu0 %v1492_v13 }
  0x62   : > { %1035 = vmatpush1.bf16.msra.mxu0 %v1490_v14 }
  0x63   : > { %1036 = vmatprep.subr.bf16.mxu0 %v1495_v15 }
  0x66   : > { %1037 = vmatpush1.bf16.msra.mxu0 %v1493_v16 }
  0x67   : > { %1038 = vmatprep.subr.bf16.mxu0 %v1498_v17 }
  0x6a   : > { %1039 = vmatpush1.bf16.msra.mxu0 %v1496_v18 }
  0x6b   : > { %1040 = vmatprep.subr.bf16.mxu0 %v1501_v19 }
  0x6e   : > { %1041 = vmatpush1.bf16.msra.mxu0 %v1499_v20 }
  0x6f   : > { %1042 = vmatprep.subr.bf16.mxu0 %v1504_v21 }
  0x72   : > { %1043 = vmatpush1.bf16.msra.mxu0 %v1502_v22 }
  0x73   : > { %1044 = vmatprep.subr.bf16.mxu0 %v1507_v23 }
  0x76   : > { %1045 = vmatpush1.bf16.msra.mxu0 %v1505_v24 }
  0x77   : > { %1046 = vmatprep.subr.bf16.mxu0 %v1510_v25 }
  0x7a   : > { %1047 = vmatpush1.bf16.msra.mxu0 %v1508_v26 }
  0x7b   : > { %1048 = vmatprep.subr.bf16.mxu0 %v1513_v27 }
  0x7e   : > { %1049 = vmatpush1.bf16.msra.mxu0 %v1511_v28 }
  0x7f   : > { %1050 = vmatprep.subr.bf16.mxu0 %v1516_v29 }
  0x82   : > { %1051 = vmatpush1.bf16.msra.mxu0 %v1514_v30 }
  0x83   : > { %1052 = vmatprep.subr.bf16.mxu0 %v1519_v31 }
  0x86   : > { %1053 = vmatpush1.bf16.msra.mxu0 %v1517_v32 }
  0x87   : > { %1054 = vmatprep.subr.bf16.mxu0 %v1522_v33 }
  0x8a   : > { %1055 = vmatpush1.bf16.msra.mxu0 %v1520_v34 }
  0x8b   : > { %1056 = vmatprep.subr.bf16.mxu0 %v1525_v35 }
  0x8e   : > { %1057 = vmatpush1.bf16.msra.mxu0 %v1523_v36 }
  0x8f   : > { %1058 = vmatprep.subr.bf16.mxu0 %v1528_v37 }
  0x92   : > { %1059 = vmatpush1.bf16.msra.mxu0 %v1526_v38 }
  0x93   : > { %1060 = vmatprep.subr.bf16.mxu0 %v1531_v39 }
  0x96   : > { %1061 = vmatpush1.bf16.msra.mxu0 %v1529_v40 }
  0x99   : > { %1063 = vmatmul.mubr.bf16.vlgmr.msra.gmra.mrb[4].mxu0 %v1255_v41 }
 0x12c   : > { %v982_v42 = vpop.f32.mrb[0].mxu0 }
 0x12d   : > { %v1023_v43 = vpop.f32.mrb[0].mxu1  ;;  %v984_v45 = vpop.f32.mrb[1].mxu0 }
 0x12e   : > { %v1024_v44 = vadd.f32 %v1023_v43, %v982_v42  ;;  %v1025_v46 = vpop.f32.mrb[1].mxu1  ;;  %v986_v48 = vpop.f32.mrb[2].mxu0 }
 0x12f   : > { %v1026_v47 = vadd.f32 %v1025_v46, %v984_v45  ;;  %v1027_v49 = vpop.f32.mrb[2].mxu1  ;;  %v987_v50 = vpop.f32.mrb[3].mxu0 }
 0x130   : > { %v1028_v51 = vpop.f32.mrb[3].mxu1 }
 0x16c   : > { %v1064_v53 = vpop.f32.mrb[4].mxu0  ;;  %1078 = sbr.rel (%p1353_p7) target bundleno = 385 (0x181), region = 44 }
 0x16d   : > { %v1065_v54 = vadd.f32 %v1064_v53, %v1024_v44  ;;  %v1066_v56 = vpop.f32.mrb[5].mxu0 }
 0x16e   : > { %v1067_v57 = vadd.f32 %v1066_v56, %v1026_v47  ;;  %v1068_v58 = vpop.f32.mrb[6].mxu0 }
 0x16f   : > { %v1071_v59 = vadd.f32 %v1065_v54, %v346_v52  ;;  %v1069_v60 = vpop.f32.mrb[7].mxu0 }
 0x170   : > { %v1072_v61 = vadd.f32 %v1067_v57, %v347_v55 }
 0x171   : > { %1073 = vst [vmem:[#allocation2] sm:$0xff] %v1071_v59 }
 0x172   : > { %1074 = vst [vmem:[#allocation2 + $0x8] sm:$0xff] %v1072_v61 }
 0x178   : > { %v1079_v3 = vld [vmem:[#allocation2] sm:$0xff] }
 0x179   : > { %v1080_v4 = vld [vmem:[#allocation2 + $0x8] sm:$0xff]  ;;  %v1093_v9 = vadd.f32 %v1086_v5, %v1079_v3 }
 0x17a   : > { %v1094_v10 = vadd.f32 %v1090_v6, %v1080_v4 }
 0x17b   : > { %v1097_v11 = vadd.f32 %v1095_v7, %v1093_v9 }
 0x17c   : > { %v1098_v12 = vadd.f32 %v1096_v8, %v1094_v10 }
 0x17d   : > { %v1099_v13 = vmax.f32 %v1097_v11, 0.0 }
 0x17e   : > { %v1100_v14 = vmax.f32 %v1098_v12, 0.0 }
 0x17f   : > { %1101 = vst [vmem:[%s1751_s4] sm:$0xff] %v1099_v13 }
 0x180   : > { %1102 = vst [vmem:[%s1751_s4 + $0x8] sm:$0xff] %v1100_v14 }
 0x181 PF: > { %s14_s17 = sadd.s32 1, %s1556_s17   ;;  %s1752_s15 = smov %s1552_s16 }
 0x182   : > { %p11_p8 = scmp.ge.s32.totalorder %s14_s17, 5   ;;  %s1753_s16 = smov %s1755_s18 }
 0x184   :  { %13 = sbr.rel (!%p11_p8) target bundleno = 2 (0x2), region = 83 }

// kernel: backbone_forward.36
= control target key start
LH: loop header
LB: loop body
LE: loop exit
PB: predicated region body
PF: predicated region fallthrough
CT: control target
= control target key end

     0   :  { %s1490_s12 = smov 0   ;;  %s1492_s13 = smov 0   ;;  %s1647_s0 = inlined_call_operand.vmem [shape: bf16[8,2304], index: 0, kind: input, shape index: {}]   ;;  %s1648_s1 = inlined_call_operand.vmem [shape: bf16[2304,256], index: 1, kind: input, shape index: {}]   ;;  %s1649_s2 = inlined_call_operand.vmem [shape: f32[1,256], index: 2, kind: input, shape index: {}]   ;;  %s1650_s3 = inlined_call_operand.vmem [shape: f32[8,256], index: 3, kind: output, shape index: {}]  }
   0x1   :  { %s1494_s14 = smov 0  }
   0x2 LB: > { %s25_s15 = sadd.s32 1, %s1463_s13  ;;  %p1157_p0 = scmp.ge.s32.totalorder %s1467_s14, 1  ;;  %s1467_s14 = sphi %s1494_s14, %s13_s14   ;;  %s1463_s13 = sphi %s1492_s13, %s1652_s13   ;;  %s1459_s12 = sphi %s1490_s12, %s1651_s12  }
   0x3   : > { %p26_p1 = scmp.ge.s32.totalorder %s25_s15, 3  ;;  %p194_p2 = scmp.lt.s32.totalorder %s1467_s14, 4 }
   0x5   : > { %s1654_s15 = smov (%p26_p1, %s25_s15), 0  ;;  %p195_p3 = pnand %p1157_p0, %p194_p2 }
   0x6   : > { %s240_s16 = smul.u32 (!%p195_p3), 6, %s1459_s12  ;;  %p1161_p6 = scmp.ne.s32.totalorder (!%p195_p3), %s1459_s12, 0 }
   0x7   : > { %198 = sbr.rel (%p195_p3) target bundleno = 383 (0x17f), region = 32 }
   0x8   : > { %s250_s17 = smul.u32 (!%p195_p3), 96, %s1459_s12  ;;  %p243_p4 = scmp.lt.s32.totalorder (!%p195_p3), %s240_s16, 17 }
   0xa   : > { %p252_p5 = scmp.lt.s32.totalorder (!%p195_p3), %s250_s17, 287 }
   0xe   : > { %s1656_s16 = smov (!%p243_p4, %s240_s16), 17  ;;  %s1658_s17 = smov (!%p252_p5, %s250_s17), 287 }
   0xf   : > { %s1158_s18 = sshll.u32 %s1656_s16, 2  ;;  %s1269_s22 = sshll.u32 %s1658_s17, 3  ;;  %v1469_v0 = vmov (!%p1161_p6), 0.0  }
  0x10   : > { %s1515_s21 = scalar_lea.vmem %s1647_s0, %s1158_s18  ;;  %s1520_s25 = scalar_lea.vmem %s1648_s1, %s1269_s22  ;;  %281 = vst [vmem:[#allocation2] sm:$0xff] (!%p1161_p6), %v1469_v0  ;;  %282 = vst [vmem:[#allocation2 + $0x8] sm:$0xff] (!%p1161_p6), %v1469_v0 }
  0x11   : > { %280 = sbr.rel (%p1161_p6) target bundleno = 24 (0x18), region = 36 }
  0x18 PF: > { %v1295_v1 = vld [vmem:[%s1520_s25 + $0x4] ss:$8 sps:$4 sm:$0xff]   ;;  %v1299_v3 = vld [vmem:[%s1520_s25] ss:$8 sps:$4 sm:$0xff]   ;;  %v1301_v5 = vld [vmem:[%s1520_s25 + $0x14] ss:$8 sps:$4 sm:$0xff]  }
  0x19   : > { %v1297_v2 = vld [vmem:[%s1520_s25 + $0x104] ss:$8 sps:$4 sm:$0xff]   ;;  %885 = vmatprep.subr.bf16.mxu0 %v1295_v1  ;;  %v1300_v4 = vld [vmem:[%s1520_s25 + $0x100] ss:$8 sps:$4 sm:$0xff]   ;;  %v1303_v6 = vld [vmem:[%s1520_s25 + $0x114] ss:$8 sps:$4 sm:$0xff]  }
  0x1a   : > { %926 = vmatprep.subr.bf16.mxu1 %v1297_v2  ;;  %886 = vmatpush1.bf16.msra.mxu0 %v1299_v3  ;;  %v1305_v7 = vld [vmem:[%s1520_s25 + $0x10] ss:$8 sps:$4 sm:$0xff]   ;;  %v1307_v9 = vld [vmem:[%s1520_s25 + $0x24] ss:$8 sps:$4 sm:$0xff]   ;;  %v1311_v11 = vld [vmem:[%s1520_s25 + $0x20] ss:$8 sps:$4 sm:$0xff]  }
  0x1b   : > { %927 = vmatpush1.bf16.msra.mxu1 %v1300_v4  ;;  %887 = vmatprep.subr.bf16.mxu0 %v1301_v5  ;;  %v1306_v8 = vld [vmem:[%s1520_s25 + $0x110] ss:$8 sps:$4 sm:$0xff]   ;;  %v1309_v10 = vld [vmem:[%s1520_s25 + $0x124] ss:$8 sps:$4 sm:$0xff]   ;;  %v1312_v12 = vld [vmem:[%s1520_s25 + $0x120] ss:$8 sps:$4 sm:$0xff]  }
  0x1c   : > { %928 = vmatprep.subr.bf16.mxu1 %v1303_v6  ;;  %v1313_v13 = vld [vmem:[%s1520_s25 + $0x34] ss:$8 sps:$4 sm:$0xff]   ;;  %v1317_v15 = vld [vmem:[%s1520_s25 + $0x30] ss:$8 sps:$4 sm:$0xff]   ;;  %v1319_v17 = vld [vmem:[%s1520_s25 + $0x44] ss:$8 sps:$4 sm:$0xff]  }
  0x1d   : > { %v1315_v14 = vld [vmem:[%s1520_s25 + $0x134] ss:$8 sps:$4 sm:$0xff]   ;;  %v1318_v16 = vld [vmem:[%s1520_s25 + $0x130] ss:$8 sps:$4 sm:$0xff]   ;;  %v1321_v18 = vld [vmem:[%s1520_s25 + $0x144] ss:$8 sps:$4 sm:$0xff]  }
  0x1e   : > { %888 = vmatpush1.bf16.msra.mxu0 %v1305_v7  ;;  %v1323_v19 = vld [vmem:[%s1520_s25 + $0x40] ss:$8 sps:$4 sm:$0xff]   ;;  %v1325_v21 = vld [vmem:[%s1520_s25 + $0x54] ss:$8 sps:$4 sm:$0xff]   ;;  %v1329_v23 = vld [vmem:[%s1520_s25 + $0x50] ss:$8 sps:$4 sm:$0xff]  }
  0x1f   : > { %929 = vmatpush1.bf16.msra.mxu1 %v1306_v8  ;;  %889 = vmatprep.subr.bf16.mxu0 %v1307_v9  ;;  %v1324_v20 = vld [vmem:[%s1520_s25 + $0x140] ss:$8 sps:$4 sm:$0xff]   ;;  %v1327_v22 = vld [vmem:[%s1520_s25 + $0x154] ss:$8 sps:$4 sm:$0xff]   ;;  %v1330_v24 = vld [vmem:[%s1520_s25 + $0x150] ss:$8 sps:$4 sm:$0xff]  }
  0x20   : > { %930 = vmatprep.subr.bf16.mxu1 %v1309_v10  ;;  %v1331_v25 = vld [vmem:[%s1520_s25 + $0x64] ss:$8 sps:$4 sm:$0xff]   ;;  %v1335_v27 = vld [vmem:[%s1520_s25 + $0x60] ss:$8 sps:$4 sm:$0xff]   ;;  %v1337_v29 = vld [vmem:[%s1520_s25 + $0x74] ss:$8 sps:$4 sm:$0xff]  }
  0x21   : > { %v1333_v26 = vld [vmem:[%s1520_s25 + $0x164] ss:$8 sps:$4 sm:$0xff]   ;;  %v1336_v28 = vld [vmem:[%s1520_s25 + $0x160] ss:$8 sps:$4 sm:$0xff]   ;;  %v1339_v30 = vld [vmem:[%s1520_s25 + $0x174] ss:$8 sps:$4 sm:$0xff]  }
  0x22   : > { %890 = vmatpush1.bf16.msra.mxu0 %v1311_v11  ;;  %v1341_v31 = vld [vmem:[%s1520_s25 + $0x70] ss:$8 sps:$4 sm:$0xff]   ;;  %v1343_v33 = vld [vmem:[%s1520_s25 + $0x84] ss:$8 sps:$4 sm:$0xff]   ;;  %v1347_v35 = vld [vmem:[%s1520_s25 + $0x80] ss:$8 sps:$4 sm:$0xff]  }
  0x23   : > { %931 = vmatpush1.bf16.msra.mxu1 %v1312_v12  ;;  %891 = vmatprep.subr.bf16.mxu0 %v1313_v13  ;;  %v1342_v32 = vld [vmem:[%s1520_s25 + $0x170] ss:$8 sps:$4 sm:$0xff]   ;;  %v1345_v34 = vld [vmem:[%s1520_s25 + $0x184] ss:$8 sps:$4 sm:$0xff]   ;;  %v1348_v36 = vld [vmem:[%s1520_s25 + $0x180] ss:$8 sps:$4 sm:$0xff]  }
  0x24   : > { %932 = vmatprep.subr.bf16.mxu1 %v1315_v14  ;;  %v1349_v37 = vld [vmem:[%s1520_s25 + $0x94] ss:$8 sps:$4 sm:$0xff]   ;;  %v1353_v39 = vld [vmem:[%s1520_s25 + $0x90] ss:$8 sps:$4 sm:$0xff]   ;;  %v1355_v41 = vld [vmem:[%s1520_s25 + $0xa4] ss:$8 sps:$4 sm:$0xff]  }
  0x25   : > { %v1351_v38 = vld [vmem:[%s1520_s25 + $0x194] ss:$8 sps:$4 sm:$0xff]   ;;  %v1354_v40 = vld [vmem:[%s1520_s25 + $0x190] ss:$8 sps:$4 sm:$0xff]   ;;  %v1357_v42 = vld [vmem:[%s1520_s25 + $0x1a4] ss:$8 sps:$4 sm:$0xff]  }
  0x26   : > { %892 = vmatpush1.bf16.msra.mxu0 %v1317_v15  ;;  %v1359_v43 = vld [vmem:[%s1520_s25 + $0xa0] ss:$8 sps:$4 sm:$0xff]   ;;  %v1361_v45 = vld [vmem:[%s1520_s25 + $0xb4] ss:$8 sps:$4 sm:$0xff]   ;;  %v1365_v50 = vld [vmem:[%s1520_s25 + $0xb0] ss:$8 sps:$4 sm:$0xff]  }
  0x27   : > { %933 = vmatpush1.bf16.msra.mxu1 %v1318_v16  ;;  %893 = vmatprep.subr.bf16.mxu0 %v1319_v17  ;;  %v1360_v44 = vld [vmem:[%s1520_s25 + $0x1a0] ss:$8 sps:$4 sm:$0xff]   ;;  %v1363_v46 = vld [vmem:[%s1520_s25 + $0x1b4] ss:$8 sps:$4 sm:$0xff]   ;;  %v1366_v51 = vld [vmem:[%s1520_s25 + $0x1b0] ss:$8 sps:$4 sm:$0xff]  }
  0x28   : > { %934 = vmatprep.subr.bf16.mxu1 %v1321_v18  ;;  %v285_v47 = vld [vmem:[%s1515_s21] sm:$0xff]  ;;  %v286_v49 = vld [vmem:[%s1515_s21 + $0x8] sm:$0xff]  ;;  %v1373_v57 = vld [vmem:[%s1520_s25 + $0xd4] ss:$8 sps:$4 sm:$0xff]   ;;  %p1264_p7 = scmp.ne.s32.totalorder %s1459_s12, 2 }
  0x29   : > { %v1163_v48 = vcombine.high %v285_v47, %v285_v47  ;;  %v1165_v52 = vcombine.high %v286_v49, %v286_v49  ;;  %v1367_v53 = vld [vmem:[%s1520_s25 + $0xc4] ss:$8 sps:$4 sm:$0xff]   ;;  %v1371_v55 = vld [vmem:[%s1520_s25 + $0xc0] ss:$8 sps:$4 sm:$0xff]   ;;  %v1375_v58 = vld [vmem:[%s1520_s25 + $0x1d4] ss:$8 sps:$4 sm:$0xff]   ;;  %v1162_v6 = vcombine.low %v285_v47, %v285_v47  ;;  %v1164_v7 = vcombine.low %v286_v49, %v286_v49 }
  0x2a   : > { %894 = vmatpush1.bf16.msra.mxu0 %v1323_v19  ;;  %v1369_v54 = vld [vmem:[%s1520_s25 + $0x1c4] ss:$8 sps:$4 sm:$0xff]   ;;  %v1372_v56 = vld [vmem:[%s1520_s25 + $0x1c0] ss:$8 sps:$4 sm:$0xff]   ;;  %v1377_v59 = vld [vmem:[%s1520_s25 + $0xd0] ss:$8 sps:$4 sm:$0xff]  }
  0x2b   : > { %935 = vmatpush1.bf16.msra.mxu1 %v1324_v20  ;;  %895 = vmatprep.subr.bf16.mxu0 %v1325_v21  ;;  %v1378_v60 = vld [vmem:[%s1520_s25 + $0x1d0] ss:$8 sps:$4 sm:$0xff]   ;;  %v1379_v61 = vld [vmem:[%s1520_s25 + $0xe4] ss:$8 sps:$4 sm:$0xff]   ;;  %v1383_v63 = vld [vmem:[%s1520_s25 + $0xe0] ss:$8 sps:$4 sm:$0xff]  }
  0x2c   : > { %936 = vmatprep.subr.bf16.mxu1 %v1327_v22  ;;  %917 = vmatprep.mubr.bf16.mxu0 %v1163_v48  ;;  %v1381_v62 = vld [vmem:[%s1520_s25 + $0x1e4] ss:$8 sps:$4 sm:$0xff]   ;;  %v1384_v0 = vld [vmem:[%s1520_s25 + $0x1e0] ss:$8 sps:$4 sm:$0xff]   ;;  %v1385_v1 = vld [vmem:[%s1520_s25 + $0xf4] ss:$8 sps:$4 sm:$0xff]  }
  0x2d   : > { %958 = vmatprep.mubr.bf16.mxu1 %v1165_v52  ;;  %v1387_v2 = vld [vmem:[%s1520_s25 + $0x1f4] ss:$8 sps:$4 sm:$0xff]   ;;  %v1389_v3 = vld [vmem:[%s1520_s25 + $0xf0] ss:$8 sps:$4 sm:$0xff]   ;;  %v1397_v5 = vld [vmem:[%s1520_s25 + $0x204] ss:$8 sps:$4 sm:$0xff]  }
  0x2e   : > { %896 = vmatpush1.bf16.msra.mxu0 %v1329_v23  ;;  %v1390_v4 = vld [vmem:[%s1520_s25 + $0x1f0] ss:$8 sps:$4 sm:$0xff]   ;;  %v1395_v8 = vld [vmem:[%s1520_s25 + $0x200] ss:$8 sps:$4 sm:$0xff]   ;;  %v1400_v10 = vld [vmem:[%s1520_s25 + $0x214] ss:$8 sps:$4 sm:$0xff]  }
  0x2f   : > { %937 = vmatpush1.bf16.msra.mxu1 %v1330_v24  ;;  %897 = vmatprep.subr.bf16.mxu0 %v1331_v25  ;;  %v1592_v9 = vld [vmem:[%s1515_s21 + $0x10] sm:$0xff]  ;;  %v1403_v13 = vld [vmem:[%s1520_s25 + $0x224] ss:$8 sps:$4 sm:$0xff]   ;;  %v1401_v14 = vld [vmem:[%s1520_s25 + $0x220] ss:$8 sps:$4 sm:$0xff]  }
  0x30   : > { %938 = vmatprep.subr.bf16.mxu1 %v1333_v26  ;;  %v1167_v11 = vcombine.high %v1592_v9, %v1592_v9  ;;  %v1398_v12 = vld [vmem:[%s1520_s25 + $0x210] ss:$8 sps:$4 sm:$0xff]   ;;  %v1406_v15 = vld [vmem:[%s1520_s25 + $0x234] ss:$8 sps:$4 sm:$0xff]   ;;  %v1409_v17 = vld [vmem:[%s1520_s25 + $0x244] ss:$8 sps:$4 sm:$0xff]  }
  0x31   : > { %v1404_v16 = vld [vmem:[%s1520_s25 + $0x230] ss:$8 sps:$4 sm:$0xff]   ;;  %v1407_v18 = vld [vmem:[%s1520_s25 + $0x240] ss:$8 sps:$4 sm:$0xff]   ;;  %v1412_v19 = vld [vmem:[%s1520_s25 + $0x254] ss:$8 sps:$4 sm:$0xff]  }
  0x32   : > { %898 = vmatpush1.bf16.msra.mxu0 %v1335_v27  ;;  %v1410_v20 = vld [vmem:[%s1520_s25 + $0x250] ss:$8 sps:$4 sm:$0xff]   ;;  %v1415_v21 = vld [vmem:[%s1520_s25 + $0x264] ss:$8 sps:$4 sm:$0xff]   ;;  %v1413_v22 = vld [vmem:[%s1520_s25 + $0x260] ss:$8 sps:$4 sm:$0xff]  }
  0x33   : > { %939 = vmatpush1.bf16.msra.mxu1 %v1336_v28  ;;  %899 = vmatprep.subr.bf16.mxu0 %v1337_v29  ;;  %v1418_v23 = vld [vmem:[%s1520_s25 + $0x274] ss:$8 sps:$4 sm:$0xff]   ;;  %v1416_v24 = vld [vmem:[%s1520_s25 + $0x270] ss:$8 sps:$4 sm:$0xff]   ;;  %v1421_v25 = vld [vmem:[%s1520_s25 + $0x284] ss:$8 sps:$4 sm:$0xff]  }
  0x34   : > { %940 = vmatprep.subr.bf16.mxu1 %v1339_v30  ;;  %v1419_v26 = vld [vmem:[%s1520_s25 + $0x280] ss:$8 sps:$4 sm:$0xff]   ;;  %v1424_v27 = vld [vmem:[%s1520_s25 + $0x294] ss:$8 sps:$4 sm:$0xff]   ;;  %v1422_v28 = vld [vmem:[%s1520_s25 + $0x290] ss:$8 sps:$4 sm:$0xff]  }
  0x35   : > { %v1427_v29 = vld [vmem:[%s1520_s25 + $0x2a4] ss:$8 sps:$4 sm:$0xff]   ;;  %v1425_v30 = vld [vmem:[%s1520_s25 + $0x2a0] ss:$8 sps:$4 sm:$0xff]  }
  0x36   : > { %900 = vmatpush1.bf16.msra.mxu0 %v1341_v31  ;;  %v1430_v31 = vld [vmem:[%s1520_s25 + $0x2b4] ss:$8 sps:$4 sm:$0xff]   ;;  %v283_v52 = vld [vmem:[#allocation2] sm:$0xff] }
  0x37   : > { %941 = vmatpush1.bf16.msra.mxu1 %v1342_v32  ;;  %901 = vmatprep.subr.bf16.mxu0 %v1343_v33  ;;  %v1428_v32 = vld [vmem:[%s1520_s25 + $0x2b0] ss:$8 sps:$4 sm:$0xff]   ;;  %v1433_v33 = vld [vmem:[%s1520_s25 + $0x2c4] ss:$8 sps:$4 sm:$0xff]  }
  0x38   : > { %942 = vmatprep.subr.bf16.mxu1 %v1345_v34  ;;  %v1431_v34 = vld [vmem:[%s1520_s25 + $0x2c0] ss:$8 sps:$4 sm:$0xff]  }
  0x3a   : > { %902 = vmatpush1.bf16.msra.mxu0 %v1347_v35  ;;  %v1436_v35 = vld [vmem:[%s1520_s25 + $0x2d4] ss:$8 sps:$4 sm:$0xff]  }
  0x3b   : > { %943 = vmatpush1.bf16.msra.mxu1 %v1348_v36  ;;  %903 = vmatprep.subr.bf16.mxu0 %v1349_v37  ;;  %v1434_v36 = vld [vmem:[%s1520_s25 + $0x2d0] ss:$8 sps:$4 sm:$0xff]   ;;  %v1439_v37 = vld [vmem:[%s1520_s25 + $0x2e4] ss:$8 sps:$4 sm:$0xff]  }
  0x3c   : > { %944 = vmatprep.subr.bf16.mxu1 %v1351_v38  ;;  %v1437_v38 = vld [vmem:[%s1520_s25 + $0x2e0] ss:$8 sps:$4 sm:$0xff]  }
  0x3e   : > { %904 = vmatpush1.bf16.msra.mxu0 %v1353_v39  ;;  %v1442_v39 = vld [vmem:[%s1520_s25 + $0x2f4] ss:$8 sps:$4 sm:$0xff]  }
  0x3f   : > { %945 = vmatpush1.bf16.msra.mxu1 %v1354_v40  ;;  %905 = vmatprep.subr.bf16.mxu0 %v1355_v41  ;;  %v1440_v40 = vld [vmem:[%s1520_s25 + $0x2f0] ss:$8 sps:$4 sm:$0xff]   ;;  %v1166_v41 = vcombine.low %v1592_v9, %v1592_v9 }
  0x40   : > { %946 = vmatprep.subr.bf16.mxu1 %v1357_v42 }
  0x42   : > { %906 = vmatpush1.bf16.msra.mxu0 %v1359_v43 }
  0x43   : > { %947 = vmatpush1.bf16.msra.mxu1 %v1360_v44  ;;  %907 = vmatprep.subr.bf16.mxu0 %v1361_v45 }
  0x44   : > { %948 = vmatprep.subr.bf16.mxu1 %v1363_v46 }
  0x46   : > { %908 = vmatpush1.bf16.msra.mxu0 %v1365_v50 }
  0x47   : > { %949 = vmatpush1.bf16.msra.mxu1 %v1366_v51  ;;  %909 = vmatprep.subr.bf16.mxu0 %v1367_v53 }
  0x48   : > { %950 = vmatprep.subr.bf16.mxu1 %v1369_v54 }
  0x4a   : > { %910 = vmatpush1.bf16.msra.mxu0 %v1371_v55  ;;  %v284_v55 = vld [vmem:[#allocation2 + $0x8] sm:$0xff] }
  0x4b   : > { %951 = vmatpush1.bf16.msra.mxu1 %v1372_v56  ;;  %911 = vmatprep.subr.bf16.mxu0 %v1373_v57 }
  0x4c   : > { %952 = vmatprep.subr.bf16.mxu1 %v1375_v58 }
  0x4e   : > { %912 = vmatpush1.bf16.msra.mxu0 %v1377_v59 }
  0x4f   : > { %953 = vmatpush1.bf16.msra.mxu1 %v1378_v60  ;;  %913 = vmatprep.subr.bf16.mxu0 %v1379_v61 }
  0x50   : > { %954 = vmatprep.subr.bf16.mxu1 %v1381_v62  ;;  %v1020_v62 = vlaneseq (!%p1264_p7) }
  0x52   : > { %914 = vmatpush1.bf16.msra.mxu0 %v1383_v63  ;;  %v1021_v63 = vshrl.u32 (!%p1264_p7), %v1020_v62, 7 }
  0x53   : > { %955 = vmatpush1.bf16.msra.mxu1 %v1384_v0  ;;  %915 = vmatprep.subr.bf16.mxu0 %v1385_v1  ;;  %v1018_v0 = vld [vmem:[%s1649_s2] sm:$0x3] (!%p1264_p7) }
  0x54   : > { %956 = vmatprep.subr.bf16.mxu1 %v1387_v2  ;;  %v1022_v1 = vsub.s32 (!%p1264_p7), 0, %v1021_v63  ;;  %v1026_v2 = vsub.s32 (!%p1264_p7), 1, %v1021_v63 }
  0x56   : > { %916 = vmatpush1.bf16.msra.mxu0 %v1389_v3 }
  0x57   : > { %957 = vmatpush1.bf16.msra.mxu1 %v1390_v4  ;;  %967 = vmatprep.subr.bf16.mxu0 %v1397_v5  ;;  %v1023_v5 = vrot.slane (!%p1264_p7), %v1018_v0, %v1022_v1 }
  0x59   : > { %918 = vmatmul.mubr.bf16.vlgmr.msra.gmra.mrb[0].mxu0 %v1162_v6  ;;  %v1027_v6 = vrot.slane (!%p1264_p7), %v1018_v0, %v1026_v2 }
  0x5a   : > { %959 = vmatmul.mubr.bf16.vlgmr.msra.gmra.mrb[0].mxu1 %v1164_v7  ;;  %968 = vmatpush1.bf16.msra.mxu0 %v1395_v8 }
  0x5b   : > { %999 = vmatprep.mubr.bf16.mxu0 %v1167_v11  ;;  %969 = vmatprep.subr.bf16.mxu0 %v1400_v10 }
  0x5e   : > { %970 = vmatpush1.bf16.msra.mxu0 %v1398_v12 }
  0x5f   : > { %971 = vmatprep.subr.bf16.mxu0 %v1403_v13 }
  0x62   : > { %972 = vmatpush1.bf16.msra.mxu0 %v1401_v14 }
  0x63   : > { %973 = vmatprep.subr.bf16.mxu0 %v1406_v15 }
  0x66   : > { %974 = vmatpush1.bf16.msra.mxu0 %v1404_v16 }
  0x67   : > { %975 = vmatprep.subr.bf16.mxu0 %v1409_v17 }
  0x6a   : > { %976 = vmatpush1.bf16.msra.mxu0 %v1407_v18 }
  0x6b   : > { %977 = vmatprep.subr.bf16.mxu0 %v1412_v19 }
  0x6e   : > { %978 = vmatpush1.bf16.msra.mxu0 %v1410_v20 }
  0x6f   : > { %979 = vmatprep.subr.bf16.mxu0 %v1415_v21 }
  0x72   : > { %980 = vmatpush1.bf16.msra.mxu0 %v1413_v22 }
  0x73   : > { %981 = vmatprep.subr.bf16.mxu0 %v1418_v23 }
  0x76   : > { %982 = vmatpush1.bf16.msra.mxu0 %v1416_v24 }
  0x77   : > { %983 = vmatprep.subr.bf16.mxu0 %v1421_v25 }
  0x7a   : > { %984 = vmatpush1.bf16.msra.mxu0 %v1419_v26 }
  0x7b   : > { %985 = vmatprep.subr.bf16.mxu0 %v1424_v27 }
  0x7e   : > { %986 = vmatpush1.bf16.msra.mxu0 %v1422_v28 }
  0x7f   : > { %987 = vmatprep.subr.bf16.mxu0 %v1427_v29 }
  0x82   : > { %988 = vmatpush1.bf16.msra.mxu0 %v1425_v30 }
  0x83   : > { %989 = vmatprep.subr.bf16.mxu0 %v1430_v31 }
  0x86   : > { %990 = vmatpush1.bf16.msra.mxu0 %v1428_v32 }
  0x87   : > { %991 = vmatprep.subr.bf16.mxu0 %v1433_v33 }
  0x8a   : > { %992 = vmatpush1.bf16.msra.mxu0 %v1431_v34 }
  0x8b   : > { %993 = vmatprep.subr.bf16.mxu0 %v1436_v35 }
  0x8e   : > { %994 = vmatpush1.bf16.msra.mxu0 %v1434_v36 }
  0x8f   : > { %995 = vmatprep.subr.bf16.mxu0 %v1439_v37 }
  0x92   : > { %996 = vmatpush1.bf16.msra.mxu0 %v1437_v38 }
  0x93   : > { %997 = vmatprep.subr.bf16.mxu0 %v1442_v39 }
  0x96   : > { %998 = vmatpush1.bf16.msra.mxu0 %v1440_v40 }
  0x99   : > { %1000 = vmatmul.mubr.bf16.vlgmr.msra.gmra.mrb[4].mxu0 %v1166_v41 }
 0x12c   : > { %v919_v42 = vpop.f32.mrb[0].mxu0 }
 0x12d   : > { %v960_v43 = vpop.f32.mrb[0].mxu1  ;;  %v921_v45 = vpop.f32.mrb[1].mxu0 }
 0x12e   : > { %v961_v44 = vadd.f32 %v960_v43, %v919_v42  ;;  %v962_v46 = vpop.f32.mrb[1].mxu1  ;;  %v923_v48 = vpop.f32.mrb[2].mxu0 }
 0x12f   : > { %v963_v47 = vadd.f32 %v962_v46, %v921_v45  ;;  %v964_v49 = vpop.f32.mrb[2].mxu1  ;;  %v924_v50 = vpop.f32.mrb[3].mxu0 }
 0x130   : > { %v965_v51 = vpop.f32.mrb[3].mxu1 }
 0x16c   : > { %v1001_v53 = vpop.f32.mrb[4].mxu0  ;;  %1015 = sbr.rel (%p1264_p7) target bundleno = 383 (0x17f), region = 40 }
 0x16d   : > { %v1002_v54 = vadd.f32 %v1001_v53, %v961_v44  ;;  %v1003_v56 = vpop.f32.mrb[5].mxu0 }
 0x16e   : > { %v1004_v57 = vadd.f32 %v1003_v56, %v963_v47  ;;  %v1005_v58 = vpop.f32.mrb[6].mxu0 }
 0x16f   : > { %v1008_v59 = vadd.f32 %v1002_v54, %v283_v52  ;;  %v1006_v60 = vpop.f32.mrb[7].mxu0 }
 0x170   : > { %v1009_v61 = vadd.f32 %v1004_v57, %v284_v55 }
 0x171   : > { %1010 = vst [vmem:[#allocation2] sm:$0xff] %v1008_v59 }
 0x172   : > { %1011 = vst [vmem:[#allocation2 + $0x8] sm:$0xff] %v1009_v61 }
 0x178   : > { %v1016_v3 = vld [vmem:[#allocation2] sm:$0xff] }
 0x179   : > { %v1017_v4 = vld [vmem:[#allocation2 + $0x8] sm:$0xff]  ;;  %v1030_v7 = vadd.f32 %v1023_v5, %v1016_v3 }
 0x17a   : > { %v1031_v8 = vadd.f32 %v1027_v6, %v1017_v4 }
 0x17b   : > { %v1032_v9 = vmax.f32 %v1030_v7, 0.0 }
 0x17c   : > { %v1033_v10 = vmax.f32 %v1031_v8, 0.0 }
 0x17d   : > { %1034 = vst [vmem:[%s1650_s3] sm:$0xff] %v1032_v9 }
 0x17e   : > { %1035 = vst [vmem:[%s1650_s3 + $0x8] sm:$0xff] %v1033_v10 }
 0x17f PF: > { %s13_s14 = sadd.s32 1, %s1467_s14   ;;  %s1651_s12 = smov %s1463_s13 }
 0x180   : > { %p10_p8 = scmp.ge.s32.totalorder %s13_s14, 5   ;;  %s1652_s13 = smov %s1654_s15 }
 0x182   :  { %12 = sbr.rel (!%p10_p8) target bundleno = 2 (0x2), region = 76 }

// kernel: backbone_forward.38
= control target key start
LH: loop header
LB: loop body
LE: loop exit
PB: predicated region body
PF: predicated region fallthrough
CT: control target
= control target key end

     0   :  { %s1965_s12 = smov 0   ;;  %s1967_s13 = smov 0   ;;  %s2380_s0 = inlined_call_operand.vmem [shape: bf16[8,2304], index: 0, kind: input, shape index: {}]   ;;  %s2381_s1 = inlined_call_operand.vmem [shape: bf16[2304,512], index: 1, kind: input, shape index: {}]   ;;  %s2382_s2 = inlined_call_operand.vmem [shape: f32[1,512], index: 2, kind: input, shape index: {}]   ;;  %s2383_s3 = inlined_call_operand.vmem [shape: f32[8,512], index: 3, kind: output, shape index: {}]  }
   0x1   :  { %s1969_s14 = smov 0   ;;  %s1971_s15 = smov 0  }
   0x2   :  { %s1973_s16 = smov 0   ;;  %s1975_s17 = smov 0  }
   0x3   :  { %s1977_s18 = smov 0  }
   0x4 LB: > { %s25_s19 = sadd.s32 1, %s1934_s16  ;;  %s28_s20 = sadd.s32 1, %s1938_s17  ;;  %s1942_s18 = sphi %s1977_s18, %s13_s18   ;;  %s1938_s17 = sphi %s1975_s17, %s2389_s17   ;;  %s1934_s16 = sphi %s1973_s16, %s2388_s16   ;;  %s1930_s15 = sphi %s1971_s15, %s2387_s15   ;;  %s1926_s14 = sphi %s1969_s14, %s2386_s14   ;;  %s1922_s13 = sphi %s1967_s13, %s2385_s13   ;;  %s1918_s12 = sphi %s1965_s12, %s2384_s12  }
   0x5   : > { %p26_p0 = scmp.ge.s32.totalorder %s25_s19, 3  ;;  %p76_p1 = scmp.ne.s32.totalorder %s1922_s13, %s1918_s12 }
   0x6   : > { %p77_p2 = scmp.eq.s32.totalorder %s1942_s18, 0  ;;  %s69_s24 = sadd.s32 1, %s1922_s13 }
   0x7   : > { %s2391_s19 = smov (%p26_p0, %s25_s19), 0  ;;  %s2393_s20 = smov (!%p26_p0, %s28_s20), %s1938_s17 }
   0x8   : > { %p78_p3 = por %p77_p2, %p76_p1  ;;  %p30_p4 = scmp.ge.s32.totalorder %s2393_s20, 2 }
   0x9   : > { %s64_s21 = ssub.s32 %s1934_s16, %s2391_s19  ;;  %p1563_p6 = scmp.ge.s32.totalorder %s1942_s18, 6 }
   0xa   : > { %s2395_s20 = smov (%p30_p4, %s2393_s20), 0 }
   0xb   : > { %s65_s22 = ssub.s32 %s1938_s17, %s2395_s20  ;;  %156 = sbr.rel (%p1563_p6) target bundleno = 74 (0x4a), region = 16 }
   0xc   : > { %s66_s23 = sor.u32 %s65_s22, %s64_s21 }
   0xd   : > { %p67_p5 = scmp.eq.s32.totalorder %s66_s23, 0 }
   0xf   : > { %s2016_s25 = scalar_select %p67_p5, %s1922_s13, %s69_s24  }
  0x12   : > { %172 = sbr.rel (!%p78_p3) target bundleno = 74 (0x4a), region = 24  ;;  %s174_s26 = sand.u32 (%p78_p3), 1, %s1922_s13  }
  0x13   : > { %s1679_s27 = smul.u32 (%p78_p3), 768, %s174_s26  ;;  %s1564_s28 = sshll.u32 (%p78_p3), %s1938_s17, 1 }
  0x14   : > { %s1678_s29 = smul.u32 (%p78_p3), 384, %s1934_s16 }
  0x15   : > { %s2030_s8 = scalar_lea.vmem (%p78_p3), [#allocation3], %s1679_s27 }
  0x16   : > { %s180_s30 = sadd.s32 (%p78_p3), %s1678_s29, %s1564_s28 }
  0x17   : > { %s1566_s4 = sshll.u32 (%p78_p3), %s180_s30, 2 }
  0x18   : > { %s2025_s7 = scalar_lea.vmem (%p78_p3), %s2381_s1, %s1566_s4 }
  0x19   : > { %v400_v0 = vld [vmem:[%s2025_s7] sm:$0xff]  ;;  %v402_v1 = vld [vmem:[%s2025_s7 + $0x10] sm:$0xff] }
  0x1a   : > { %v404_v2 = vld [vmem:[%s2025_s7 + $0x20] sm:$0xff]  ;;  %401 = vst [vmem:[%s2030_s8] sm:$0xff] %v400_v0  ;;  %403 = vst [vmem:[%s2030_s8 + $0x8] sm:$0xff] %v402_v1  ;;  %v406_v3 = vld [vmem:[%s2025_s7 + $0x30] sm:$0xff] }
  0x1b   : > { %405 = vst [vmem:[%s2030_s8 + $0x10] sm:$0xff] %v404_v2  ;;  %v408_v4 = vld [vmem:[%s2025_s7 + $0x40] sm:$0xff]  ;;  %v410_v5 = vld [vmem:[%s2025_s7 + $0x50] sm:$0xff]  ;;  %407 = vst [vmem:[%s2030_s8 + $0x18] sm:$0xff] %v406_v3 }
  0x1c   : > { %409 = vst [vmem:[%s2030_s8 + $0x20] sm:$0xff] %v408_v4  ;;  %411 = vst [vmem:[%s2030_s8 + $0x28] sm:$0xff] %v410_v5  ;;  %v412_v6 = vld [vmem:[%s2025_s7 + $0x60] sm:$0xff]  ;;  %v414_v7 = vld [vmem:[%s2025_s7 + $0x70] sm:$0xff] }
  0x1d   : > { %v416_v8 = vld [vmem:[%s2025_s7 + $0x80] sm:$0xff]  ;;  %413 = vst [vmem:[%s2030_s8 + $0x30] sm:$0xff] %v412_v6  ;;  %415 = vst [vmem:[%s2030_s8 + $0x38] sm:$0xff] %v414_v7  ;;  %v418_v9 = vld [vmem:[%s2025_s7 + $0x90] sm:$0xff] }
  0x1e   : > { %417 = vst [vmem:[%s2030_s8 + $0x40] sm:$0xff] %v416_v8  ;;  %v420_v10 = vld [vmem:[%s2025_s7 + $0xa0] sm:$0xff]  ;;  %v422_v11 = vld [vmem:[%s2025_s7 + $0xb0] sm:$0xff]  ;;  %419 = vst [vmem:[%s2030_s8 + $0x48] sm:$0xff] %v418_v9 }
  0x1f   : > { %421 = vst [vmem:[%s2030_s8 + $0x50] sm:$0xff] %v420_v10  ;;  %423 = vst [vmem:[%s2030_s8 + $0x58] sm:$0xff] %v422_v11  ;;  %v424_v12 = vld [vmem:[%s2025_s7 + $0xc0] sm:$0xff]  ;;  %v426_v13 = vld [vmem:[%s2025_s7 + $0xd0] sm:$0xff] }
  0x20   : > { %v428_v14 = vld [vmem:[%s2025_s7 + $0xe0] sm:$0xff]  ;;  %425 = vst [vmem:[%s2030_s8 + $0x60] sm:$0xff] %v424_v12  ;;  %427 = vst [vmem:[%s2030_s8 + $0x68] sm:$0xff] %v426_v13  ;;  %v430_v15 = vld [vmem:[%s2025_s7 + $0xf0] sm:$0xff] }
  0x21   : > { %429 = vst [vmem:[%s2030_s8 + $0x70] sm:$0xff] %v428_v14  ;;  %v432_v16 = vld [vmem:[%s2025_s7 + $0x100] sm:$0xff]  ;;  %v434_v17 = vld [vmem:[%s2025_s7 + $0x110] sm:$0xff]  ;;  %431 = vst [vmem:[%s2030_s8 + $0x78] sm:$0xff] %v430_v15 }
  0x22   : > { %433 = vst [vmem:[%s2030_s8 + $0x80] sm:$0xff] %v432_v16  ;;  %435 = vst [vmem:[%s2030_s8 + $0x88] sm:$0xff] %v434_v17  ;;  %v436_v18 = vld [vmem:[%s2025_s7 + $0x120] sm:$0xff]  ;;  %v438_v19 = vld [vmem:[%s2025_s7 + $0x130] sm:$0xff] }
  0x23   : > { %v440_v20 = vld [vmem:[%s2025_s7 + $0x140] sm:$0xff]  ;;  %437 = vst [vmem:[%s2030_s8 + $0x90] sm:$0xff] %v436_v18  ;;  %439 = vst [vmem:[%s2030_s8 + $0x98] sm:$0xff] %v438_v19  ;;  %v442_v21 = vld [vmem:[%s2025_s7 + $0x150] sm:$0xff] }
  0x24   : > { %441 = vst [vmem:[%s2030_s8 + $0xa0] sm:$0xff] %v440_v20  ;;  %v444_v22 = vld [vmem:[%s2025_s7 + $0x160] sm:$0xff]  ;;  %v446_v23 = vld [vmem:[%s2025_s7 + $0x170] sm:$0xff]  ;;  %443 = vst [vmem:[%s2030_s8 + $0xa8] sm:$0xff] %v442_v21 }
  0x25   : > { %445 = vst [vmem:[%s2030_s8 + $0xb0] sm:$0xff] %v444_v22  ;;  %447 = vst [vmem:[%s2030_s8 + $0xb8] sm:$0xff] %v446_v23  ;;  %v448_v24 = vld [vmem:[%s2025_s7 + $0x180] sm:$0xff]  ;;  %v450_v25 = vld [vmem:[%s2025_s7 + $0x190] sm:$0xff] }
  0x26   : > { %v452_v26 = vld [vmem:[%s2025_s7 + $0x1a0] sm:$0xff]  ;;  %449 = vst [vmem:[%s2030_s8 + $0xc0] sm:$0xff] %v448_v24  ;;  %451 = vst [vmem:[%s2030_s8 + $0xc8] sm:$0xff] %v450_v25  ;;  %v454_v27 = vld [vmem:[%s2025_s7 + $0x1b0] sm:$0xff] }
  0x27   : > { %453 = vst [vmem:[%s2030_s8 + $0xd0] sm:$0xff] %v452_v26  ;;  %v456_v28 = vld [vmem:[%s2025_s7 + $0x1c0] sm:$0xff]  ;;  %v458_v29 = vld [vmem:[%s2025_s7 + $0x1d0] sm:$0xff]  ;;  %455 = vst [vmem:[%s2030_s8 + $0xd8] sm:$0xff] %v454_v27 }
  0x28   : > { %457 = vst [vmem:[%s2030_s8 + $0xe0] sm:$0xff] %v456_v28  ;;  %459 = vst [vmem:[%s2030_s8 + $0xe8] sm:$0xff] %v458_v29  ;;  %v460_v30 = vld [vmem:[%s2025_s7 + $0x1e0] sm:$0xff]  ;;  %v462_v31 = vld [vmem:[%s2025_s7 + $0x1f0] sm:$0xff] }
  0x29   : > { %v464_v32 = vld [vmem:[%s2025_s7 + $0x200] sm:$0xff]  ;;  %461 = vst [vmem:[%s2030_s8 + $0xf0] sm:$0xff] %v460_v30  ;;  %463 = vst [vmem:[%s2030_s8 + $0xf8] sm:$0xff] %v462_v31  ;;  %v466_v33 = vld [vmem:[%s2025_s7 + $0x210] sm:$0xff] }
  0x2a   : > { %465 = vst [vmem:[%s2030_s8 + $0x100] sm:$0xff] %v464_v32  ;;  %v468_v34 = vld [vmem:[%s2025_s7 + $0x220] sm:$0xff]  ;;  %v470_v35 = vld [vmem:[%s2025_s7 + $0x230] sm:$0xff]  ;;  %467 = vst [vmem:[%s2030_s8 + $0x108] sm:$0xff] %v466_v33 }
  0x2b   : > { %469 = vst [vmem:[%s2030_s8 + $0x110] sm:$0xff] %v468_v34  ;;  %471 = vst [vmem:[%s2030_s8 + $0x118] sm:$0xff] %v470_v35  ;;  %v472_v36 = vld [vmem:[%s2025_s7 + $0x240] sm:$0xff]  ;;  %v474_v37 = vld [vmem:[%s2025_s7 + $0x250] sm:$0xff] }
  0x2c   : > { %v476_v38 = vld [vmem:[%s2025_s7 + $0x260] sm:$0xff]  ;;  %473 = vst [vmem:[%s2030_s8 + $0x120] sm:$0xff] %v472_v36  ;;  %475 = vst [vmem:[%s2030_s8 + $0x128] sm:$0xff] %v474_v37  ;;  %v478_v39 = vld [vmem:[%s2025_s7 + $0x270] sm:$0xff] }
  0x2d   : > { %477 = vst [vmem:[%s2030_s8 + $0x130] sm:$0xff] %v476_v38  ;;  %v480_v40 = vld [vmem:[%s2025_s7 + $0x280] sm:$0xff]  ;;  %v482_v41 = vld [vmem:[%s2025_s7 + $0x290] sm:$0xff]  ;;  %479 = vst [vmem:[%s2030_s8 + $0x138] sm:$0xff] %v478_v39 }
  0x2e   : > { %481 = vst [vmem:[%s2030_s8 + $0x140] sm:$0xff] %v480_v40  ;;  %483 = vst [vmem:[%s2030_s8 + $0x148] sm:$0xff] %v482_v41  ;;  %v484_v42 = vld [vmem:[%s2025_s7 + $0x2a0] sm:$0xff]  ;;  %v486_v43 = vld [vmem:[%s2025_s7 + $0x2b0] sm:$0xff] }
  0x2f   : > { %v488_v44 = vld [vmem:[%s2025_s7 + $0x2c0] sm:$0xff]  ;;  %485 = vst [vmem:[%s2030_s8 + $0x150] sm:$0xff] %v484_v42  ;;  %487 = vst [vmem:[%s2030_s8 + $0x158] sm:$0xff] %v486_v43  ;;  %v490_v45 = vld [vmem:[%s2025_s7 + $0x2d0] sm:$0xff] }
  0x30   : > { %489 = vst [vmem:[%s2030_s8 + $0x160] sm:$0xff] %v488_v44  ;;  %v492_v46 = vld [vmem:[%s2025_s7 + $0x2e0] sm:$0xff]  ;;  %v494_v47 = vld [vmem:[%s2025_s7 + $0x2f0] sm:$0xff]  ;;  %491 = vst [vmem:[%s2030_s8 + $0x168] sm:$0xff] %v490_v45 }
  0x31   : > { %493 = vst [vmem:[%s2030_s8 + $0x170] sm:$0xff] %v492_v46  ;;  %495 = vst [vmem:[%s2030_s8 + $0x178] sm:$0xff] %v494_v47  ;;  %v496_v48 = vld [vmem:[%s2025_s7 + $0x300] sm:$0xff]  ;;  %v498_v49 = vld [vmem:[%s2025_s7 + $0x310] sm:$0xff] }
  0x32   : > { %v500_v50 = vld [vmem:[%s2025_s7 + $0x320] sm:$0xff]  ;;  %497 = vst [vmem:[%s2030_s8 + $0x180] sm:$0xff] %v496_v48  ;;  %499 = vst [vmem:[%s2030_s8 + $0x188] sm:$0xff] %v498_v49  ;;  %v502_v51 = vld [vmem:[%s2025_s7 + $0x330] sm:$0xff] }
  0x33   : > { %501 = vst [vmem:[%s2030_s8 + $0x190] sm:$0xff] %v500_v50  ;;  %v504_v52 = vld [vmem:[%s2025_s7 + $0x340] sm:$0xff]  ;;  %v506_v53 = vld [vmem:[%s2025_s7 + $0x350] sm:$0xff]  ;;  %503 = vst [vmem:[%s2030_s8 + $0x198] sm:$0xff] %v502_v51 }
  0x34   : > { %505 = vst [vmem:[%s2030_s8 + $0x1a0] sm:$0xff] %v504_v52  ;;  %507 = vst [vmem:[%s2030_s8 + $0x1a8] sm:$0xff] %v506_v53  ;;  %v508_v54 = vld [vmem:[%s2025_s7 + $0x360] sm:$0xff]  ;;  %v510_v55 = vld [vmem:[%s2025_s7 + $0x370] sm:$0xff] }
  0x35   : > { %v512_v56 = vld [vmem:[%s2025_s7 + $0x380] sm:$0xff]  ;;  %509 = vst [vmem:[%s2030_s8 + $0x1b0] sm:$0xff] %v508_v54  ;;  %511 = vst [vmem:[%s2030_s8 + $0x1b8] sm:$0xff] %v510_v55  ;;  %v514_v57 = vld [vmem:[%s2025_s7 + $0x390] sm:$0xff] }
  0x36   : > { %513 = vst [vmem:[%s2030_s8 + $0x1c0] sm:$0xff] %v512_v56  ;;  %v516_v58 = vld [vmem:[%s2025_s7 + $0x3a0] sm:$0xff]  ;;  %v518_v59 = vld [vmem:[%s2025_s7 + $0x3b0] sm:$0xff]  ;;  %515 = vst [vmem:[%s2030_s8 + $0x1c8] sm:$0xff] %v514_v57 }
  0x37   : > { %517 = vst [vmem:[%s2030_s8 + $0x1d0] sm:$0xff] %v516_v58  ;;  %519 = vst [vmem:[%s2030_s8 + $0x1d8] sm:$0xff] %v518_v59  ;;  %v520_v60 = vld [vmem:[%s2025_s7 + $0x3c0] sm:$0xff]  ;;  %v522_v61 = vld [vmem:[%s2025_s7 + $0x3d0] sm:$0xff] }
  0x38   : > { %v524_v62 = vld [vmem:[%s2025_s7 + $0x3e0] sm:$0xff]  ;;  %521 = vst [vmem:[%s2030_s8 + $0x1e0] sm:$0xff] %v520_v60  ;;  %523 = vst [vmem:[%s2030_s8 + $0x1e8] sm:$0xff] %v522_v61  ;;  %v526_v63 = vld [vmem:[%s2025_s7 + $0x3f0] sm:$0xff] }
  0x39   : > { %525 = vst [vmem:[%s2030_s8 + $0x1f0] sm:$0xff] %v524_v62  ;;  %v528_v0 = vld [vmem:[%s2025_s7 + $0x400] sm:$0xff]  ;;  %v530_v1 = vld [vmem:[%s2025_s7 + $0x410] sm:$0xff]  ;;  %527 = vst [vmem:[%s2030_s8 + $0x1f8] sm:$0xff] %v526_v63 }
  0x3a   : > { %529 = vst [vmem:[%s2030_s8 + $0x200] sm:$0xff] %v528_v0  ;;  %531 = vst [vmem:[%s2030_s8 + $0x208] sm:$0xff] %v530_v1  ;;  %v532_v2 = vld [vmem:[%s2025_s7 + $0x420] sm:$0xff]  ;;  %v534_v3 = vld [vmem:[%s2025_s7 + $0x430] sm:$0xff] }
  0x3b   : > { %v536_v4 = vld [vmem:[%s2025_s7 + $0x440] sm:$0xff]  ;;  %533 = vst [vmem:[%s2030_s8 + $0x210] sm:$0xff] %v532_v2  ;;  %535 = vst [vmem:[%s2030_s8 + $0x218] sm:$0xff] %v534_v3  ;;  %v538_v5 = vld [vmem:[%s2025_s7 + $0x450] sm:$0xff] }
  0x3c   : > { %537 = vst [vmem:[%s2030_s8 + $0x220] sm:$0xff] %v536_v4  ;;  %v540_v6 = vld [vmem:[%s2025_s7 + $0x460] sm:$0xff]  ;;  %v542_v7 = vld [vmem:[%s2025_s7 + $0x470] sm:$0xff]  ;;  %539 = vst [vmem:[%s2030_s8 + $0x228] sm:$0xff] %v538_v5 }
  0x3d   : > { %541 = vst [vmem:[%s2030_s8 + $0x230] sm:$0xff] %v540_v6  ;;  %543 = vst [vmem:[%s2030_s8 + $0x238] sm:$0xff] %v542_v7  ;;  %v544_v8 = vld [vmem:[%s2025_s7 + $0x480] sm:$0xff]  ;;  %v546_v9 = vld [vmem:[%s2025_s7 + $0x490] sm:$0xff] }
  0x3e   : > { %v548_v10 = vld [vmem:[%s2025_s7 + $0x4a0] sm:$0xff]  ;;  %545 = vst [vmem:[%s2030_s8 + $0x240] sm:$0xff] %v544_v8  ;;  %547 = vst [vmem:[%s2030_s8 + $0x248] sm:$0xff] %v546_v9  ;;  %v550_v11 = vld [vmem:[%s2025_s7 + $0x4b0] sm:$0xff] }
  0x3f   : > { %549 = vst [vmem:[%s2030_s8 + $0x250] sm:$0xff] %v548_v10  ;;  %v552_v12 = vld [vmem:[%s2025_s7 + $0x4c0] sm:$0xff]  ;;  %v554_v13 = vld [vmem:[%s2025_s7 + $0x4d0] sm:$0xff]  ;;  %551 = vst [vmem:[%s2030_s8 + $0x258] sm:$0xff] %v550_v11 }
  0x40   : > { %553 = vst [vmem:[%s2030_s8 + $0x260] sm:$0xff] %v552_v12  ;;  %555 = vst [vmem:[%s2030_s8 + $0x268] sm:$0xff] %v554_v13  ;;  %v556_v14 = vld [vmem:[%s2025_s7 + $0x4e0] sm:$0xff]  ;;  %v558_v15 = vld [vmem:[%s2025_s7 + $0x4f0] sm:$0xff] }
  0x41   : > { %v560_v16 = vld [vmem:[%s2025_s7 + $0x500] sm:$0xff]  ;;  %557 = vst [vmem:[%s2030_s8 + $0x270] sm:$0xff] %v556_v14  ;;  %559 = vst [vmem:[%s2030_s8 + $0x278] sm:$0xff] %v558_v15  ;;  %v562_v17 = vld [vmem:[%s2025_s7 + $0x510] sm:$0xff] }
  0x42   : > { %561 = vst [vmem:[%s2030_s8 + $0x280] sm:$0xff] %v560_v16  ;;  %v564_v18 = vld [vmem:[%s2025_s7 + $0x520] sm:$0xff]  ;;  %v566_v19 = vld [vmem:[%s2025_s7 + $0x530] sm:$0xff]  ;;  %563 = vst [vmem:[%s2030_s8 + $0x288] sm:$0xff] %v562_v17 }
  0x43   : > { %565 = vst [vmem:[%s2030_s8 + $0x290] sm:$0xff] %v564_v18  ;;  %567 = vst [vmem:[%s2030_s8 + $0x298] sm:$0xff] %v566_v19  ;;  %v568_v20 = vld [vmem:[%s2025_s7 + $0x540] sm:$0xff]  ;;  %v570_v21 = vld [vmem:[%s2025_s7 + $0x550] sm:$0xff] }
  0x44   : > { %v572_v22 = vld [vmem:[%s2025_s7 + $0x560] sm:$0xff]  ;;  %569 = vst [vmem:[%s2030_s8 + $0x2a0] sm:$0xff] %v568_v20  ;;  %571 = vst [vmem:[%s2030_s8 + $0x2a8] sm:$0xff] %v570_v21  ;;  %v574_v23 = vld [vmem:[%s2025_s7 + $0x570] sm:$0xff] }
  0x45   : > { %573 = vst [vmem:[%s2030_s8 + $0x2b0] sm:$0xff] %v572_v22  ;;  %v576_v24 = vld [vmem:[%s2025_s7 + $0x580] sm:$0xff]  ;;  %v578_v25 = vld [vmem:[%s2025_s7 + $0x590] sm:$0xff]  ;;  %575 = vst [vmem:[%s2030_s8 + $0x2b8] sm:$0xff] %v574_v23 }
  0x46   : > { %577 = vst [vmem:[%s2030_s8 + $0x2c0] sm:$0xff] %v576_v24  ;;  %579 = vst [vmem:[%s2030_s8 + $0x2c8] sm:$0xff] %v578_v25  ;;  %v580_v26 = vld [vmem:[%s2025_s7 + $0x5a0] sm:$0xff]  ;;  %v582_v27 = vld [vmem:[%s2025_s7 + $0x5b0] sm:$0xff] }
  0x47   : > { %v584_v28 = vld [vmem:[%s2025_s7 + $0x5c0] sm:$0xff]  ;;  %581 = vst [vmem:[%s2030_s8 + $0x2d0] sm:$0xff] %v580_v26  ;;  %583 = vst [vmem:[%s2030_s8 + $0x2d8] sm:$0xff] %v582_v27  ;;  %v586_v29 = vld [vmem:[%s2025_s7 + $0x5d0] sm:$0xff] }
  0x48   : > { %585 = vst [vmem:[%s2030_s8 + $0x2e0] sm:$0xff] %v584_v28  ;;  %v588_v30 = vld [vmem:[%s2025_s7 + $0x5e0] sm:$0xff]  ;;  %v590_v31 = vld [vmem:[%s2025_s7 + $0x5f0] sm:$0xff]  ;;  %587 = vst [vmem:[%s2030_s8 + $0x2e8] sm:$0xff] %v586_v29 }
  0x49   : > { %589 = vst [vmem:[%s2030_s8 + $0x2f0] sm:$0xff] %v588_v30  ;;  %591 = vst [vmem:[%s2030_s8 + $0x2f8] sm:$0xff] %v590_v31 }
  0x4a PF: > { %p1567_p7 = scmp.ge.s32.totalorder %s1942_s18, 1  ;;  %p604_p8 = scmp.lt.s32.totalorder %s1942_s18, 7 }
  0x4c   : > { %p605_p9 = pnand %p1567_p7, %p604_p8 }
  0x4d   : > { %s611_s9 = sand.u32 (!%p605_p9), 1, %s1918_s12   ;;  %s651_s10 = smul.u32 (!%p605_p9), 6, %s1926_s14 }
  0x4e   : > { %608 = sbr.rel (%p605_p9) target bundleno = 454 (0x1c6), region = 66  ;;  %s1569_s21 = sshll.u32 (!%p605_p9), %s1930_s15, 1 }
  0x4f   : > { %s1680_s11 = smul.u32 (!%p605_p9), 768, %s611_s9  ;;  %p654_p10 = scmp.lt.s32.totalorder (!%p605_p9), %s651_s10, 17 }
  0x50   : > { %p664_p11 = scmp.lt.s32.totalorder (!%p605_p9), %s1569_s21, 3  ;;  %p1572_p12 = scmp.ne.s32.totalorder (!%p605_p9), %s1926_s14, 0 }
  0x51   : > { %s2243_s5 = scalar_lea.vmem (!%p605_p9), [#allocation3], %s1680_s11 }
  0x55   : > { %s2397_s10 = smov (!%p654_p10, %s651_s10), 17  ;;  %s2399_s21 = smov (!%p664_p11, %s1569_s21), 3 }
  0x56   : > { %s1568_s22 = sshll.u32 %s2397_s10, 2  ;;  %s666_s12 = scalar_lea.vmem %s2382_s2, %s2399_s21  ;;  %v1944_v32 = vmov (!%p1572_p12), 0.0  }
  0x57   : > { %s2231_s26 = scalar_lea.vmem %s2380_s0, %s1568_s22  ;;  %s1571_s29 = sshll.u32 %s2399_s21, 3  ;;  %682 = vst [vmem:[#allocation2] sm:$0xff] (!%p1572_p12), %v1944_v32  ;;  %683 = vst [vmem:[#allocation2 + $0x8] sm:$0xff] (!%p1572_p12), %v1944_v32 }
  0x58   : > { %s2241_s4 = scalar_lea.vmem %s2383_s3, %s1571_s29  ;;  %681 = sbr.rel (%p1572_p12) target bundleno = 95 (0x5f), region = 74 }
  0x5f PF: > { %v1738_v33 = vld [vmem:[%s2243_s5 + $0x4] ss:$8 sps:$4 sm:$0xff]   ;;  %v1742_v35 = vld [vmem:[%s2243_s5] ss:$8 sps:$4 sm:$0xff]   ;;  %v1744_v37 = vld [vmem:[%s2243_s5 + $0x14] ss:$8 sps:$4 sm:$0xff]  }
  0x60   : > { %v1740_v34 = vld [vmem:[%s2243_s5 + $0x104] ss:$8 sps:$4 sm:$0xff]   ;;  %1286 = vmatprep.subr.bf16.mxu0 %v1738_v33  ;;  %v1743_v36 = vld [vmem:[%s2243_s5 + $0x100] ss:$8 sps:$4 sm:$0xff]   ;;  %v1746_v38 = vld [vmem:[%s2243_s5 + $0x114] ss:$8 sps:$4 sm:$0xff]  }
  0x61   : > { %1327 = vmatprep.subr.bf16.mxu1 %v1740_v34  ;;  %1287 = vmatpush1.bf16.msra.mxu0 %v1742_v35  ;;  %v1748_v39 = vld [vmem:[%s2243_s5 + $0x10] ss:$8 sps:$4 sm:$0xff]   ;;  %v1750_v41 = vld [vmem:[%s2243_s5 + $0x24] ss:$8 sps:$4 sm:$0xff]   ;;  %v1754_v43 = vld [vmem:[%s2243_s5 + $0x20] ss:$8 sps:$4 sm:$0xff]  }
  0x62   : > { %1328 = vmatpush1.bf16.msra.mxu1 %v1743_v36  ;;  %1288 = vmatprep.subr.bf16.mxu0 %v1744_v37  ;;  %v1749_v40 = vld [vmem:[%s2243_s5 + $0x110] ss:$8 sps:$4 sm:$0xff]   ;;  %v1752_v42 = vld [vmem:[%s2243_s5 + $0x124] ss:$8 sps:$4 sm:$0xff]   ;;  %v1755_v44 = vld [vmem:[%s2243_s5 + $0x120] ss:$8 sps:$4 sm:$0xff]  }
  0x63   : > { %1329 = vmatprep.subr.bf16.mxu1 %v1746_v38  ;;  %v1756_v45 = vld [vmem:[%s2243_s5 + $0x34] ss:$8 sps:$4 sm:$0xff]   ;;  %v1760_v47 = vld [vmem:[%s2243_s5 + $0x30] ss:$8 sps:$4 sm:$0xff]   ;;  %v1762_v49 = vld [vmem:[%s2243_s5 + $0x44] ss:$8 sps:$4 sm:$0xff]  }
  0x64   : > { %v1758_v46 = vld [vmem:[%s2243_s5 + $0x134] ss:$8 sps:$4 sm:$0xff]   ;;  %v1761_v48 = vld [vmem:[%s2243_s5 + $0x130] ss:$8 sps:$4 sm:$0xff]   ;;  %v1764_v50 = vld [vmem:[%s2243_s5 + $0x144] ss:$8 sps:$4 sm:$0xff]  }
  0x65   : > { %1289 = vmatpush1.bf16.msra.mxu0 %v1748_v39  ;;  %v1766_v51 = vld [vmem:[%s2243_s5 + $0x40] ss:$8 sps:$4 sm:$0xff]   ;;  %v1768_v53 = vld [vmem:[%s2243_s5 + $0x54] ss:$8 sps:$4 sm:$0xff]   ;;  %v1772_v55 = vld [vmem:[%s2243_s5 + $0x50] ss:$8 sps:$4 sm:$0xff]  }
  0x66   : > { %1330 = vmatpush1.bf16.msra.mxu1 %v1749_v40  ;;  %1290 = vmatprep.subr.bf16.mxu0 %v1750_v41  ;;  %v1767_v52 = vld [vmem:[%s2243_s5 + $0x140] ss:$8 sps:$4 sm:$0xff]   ;;  %v1770_v54 = vld [vmem:[%s2243_s5 + $0x154] ss:$8 sps:$4 sm:$0xff]   ;;  %v1773_v56 = vld [vmem:[%s2243_s5 + $0x150] ss:$8 sps:$4 sm:$0xff]  }
  0x67   : > { %1331 = vmatprep.subr.bf16.mxu1 %v1752_v42  ;;  %v1774_v57 = vld [vmem:[%s2243_s5 + $0x64] ss:$8 sps:$4 sm:$0xff]   ;;  %v1778_v59 = vld [vmem:[%s2243_s5 + $0x60] ss:$8 sps:$4 sm:$0xff]   ;;  %v1780_v61 = vld [vmem:[%s2243_s5 + $0x74] ss:$8 sps:$4 sm:$0xff]  }
  0x68   : > { %v1776_v58 = vld [vmem:[%s2243_s5 + $0x164] ss:$8 sps:$4 sm:$0xff]   ;;  %v1779_v60 = vld [vmem:[%s2243_s5 + $0x160] ss:$8 sps:$4 sm:$0xff]   ;;  %v1782_v62 = vld [vmem:[%s2243_s5 + $0x174] ss:$8 sps:$4 sm:$0xff]  }
  0x69   : > { %1291 = vmatpush1.bf16.msra.mxu0 %v1754_v43  ;;  %v1784_v63 = vld [vmem:[%s2243_s5 + $0x70] ss:$8 sps:$4 sm:$0xff]   ;;  %v1786_v1 = vld [vmem:[%s2243_s5 + $0x84] ss:$8 sps:$4 sm:$0xff]   ;;  %v1790_v3 = vld [vmem:[%s2243_s5 + $0x80] ss:$8 sps:$4 sm:$0xff]  }
  0x6a   : > { %1332 = vmatpush1.bf16.msra.mxu1 %v1755_v44  ;;  %1292 = vmatprep.subr.bf16.mxu0 %v1756_v45  ;;  %v1785_v0 = vld [vmem:[%s2243_s5 + $0x170] ss:$8 sps:$4 sm:$0xff]   ;;  %v1788_v2 = vld [vmem:[%s2243_s5 + $0x184] ss:$8 sps:$4 sm:$0xff]   ;;  %v1791_v4 = vld [vmem:[%s2243_s5 + $0x180] ss:$8 sps:$4 sm:$0xff]  }
  0x6b   : > { %1333 = vmatprep.subr.bf16.mxu1 %v1758_v46  ;;  %v1792_v5 = vld [vmem:[%s2243_s5 + $0x94] ss:$8 sps:$4 sm:$0xff]   ;;  %v1796_v7 = vld [vmem:[%s2243_s5 + $0x90] ss:$8 sps:$4 sm:$0xff]   ;;  %v1798_v9 = vld [vmem:[%s2243_s5 + $0xa4] ss:$8 sps:$4 sm:$0xff]  }
  0x6c   : > { %v1794_v6 = vld [vmem:[%s2243_s5 + $0x194] ss:$8 sps:$4 sm:$0xff]   ;;  %v1797_v8 = vld [vmem:[%s2243_s5 + $0x190] ss:$8 sps:$4 sm:$0xff]   ;;  %v1800_v10 = vld [vmem:[%s2243_s5 + $0x1a4] ss:$8 sps:$4 sm:$0xff]  }
  0x6d   : > { %1293 = vmatpush1.bf16.msra.mxu0 %v1760_v47  ;;  %v1802_v11 = vld [vmem:[%s2243_s5 + $0xa0] ss:$8 sps:$4 sm:$0xff]   ;;  %v1804_v13 = vld [vmem:[%s2243_s5 + $0xb4] ss:$8 sps:$4 sm:$0xff]   ;;  %v1808_v18 = vld [vmem:[%s2243_s5 + $0xb0] ss:$8 sps:$4 sm:$0xff]  }
  0x6e   : > { %1334 = vmatpush1.bf16.msra.mxu1 %v1761_v48  ;;  %1294 = vmatprep.subr.bf16.mxu0 %v1762_v49  ;;  %v1803_v12 = vld [vmem:[%s2243_s5 + $0x1a0] ss:$8 sps:$4 sm:$0xff]   ;;  %v1806_v14 = vld [vmem:[%s2243_s5 + $0x1b4] ss:$8 sps:$4 sm:$0xff]   ;;  %v1809_v19 = vld [vmem:[%s2243_s5 + $0x1b0] ss:$8 sps:$4 sm:$0xff]  }
  0x6f   : > { %1335 = vmatprep.subr.bf16.mxu1 %v1764_v50  ;;  %v686_v15 = vld [vmem:[%s2231_s26] sm:$0xff]  ;;  %v687_v17 = vld [vmem:[%s2231_s26 + $0x8] sm:$0xff]  ;;  %v1810_v21 = vld [vmem:[%s2243_s5 + $0xc4] ss:$8 sps:$4 sm:$0xff]   ;;  %p1675_p13 = scmp.ne.s32.totalorder %s1926_s14, 2 }
  0x70   : > { %v1574_v16 = vcombine.high %v686_v15, %v686_v15  ;;  %v1576_v20 = vcombine.high %v687_v17, %v687_v17  ;;  %v1812_v22 = vld [vmem:[%s2243_s5 + $0x1c4] ss:$8 sps:$4 sm:$0xff]   ;;  %v1814_v23 = vld [vmem:[%s2243_s5 + $0xc0] ss:$8 sps:$4 sm:$0xff]   ;;  %v1816_v25 = vld [vmem:[%s2243_s5 + $0xd4] ss:$8 sps:$4 sm:$0xff]   ;;  %v1573_v38 = vcombine.low %v686_v15, %v686_v15  ;;  %v1575_v39 = vcombine.low %v687_v17, %v687_v17 }
  0x71   : > { %1295 = vmatpush1.bf16.msra.mxu0 %v1766_v51  ;;  %v1815_v24 = vld [vmem:[%s2243_s5 + $0x1c0] ss:$8 sps:$4 sm:$0xff]   ;;  %v1818_v26 = vld [vmem:[%s2243_s5 + $0x1d4] ss:$8 sps:$4 sm:$0xff]   ;;  %v1820_v27 = vld [vmem:[%s2243_s5 + $0xd0] ss:$8 sps:$4 sm:$0xff]  }
  0x72   : > { %1336 = vmatpush1.bf16.msra.mxu1 %v1767_v52  ;;  %1296 = vmatprep.subr.bf16.mxu0 %v1768_v53  ;;  %v1821_v28 = vld [vmem:[%s2243_s5 + $0x1d0] ss:$8 sps:$4 sm:$0xff]   ;;  %v1822_v29 = vld [vmem:[%s2243_s5 + $0xe4] ss:$8 sps:$4 sm:$0xff]   ;;  %v1826_v31 = vld [vmem:[%s2243_s5 + $0xe0] ss:$8 sps:$4 sm:$0xff]  }
  0x73   : > { %1337 = vmatprep.subr.bf16.mxu1 %v1770_v54  ;;  %1318 = vmatprep.mubr.bf16.mxu0 %v1574_v16  ;;  %v1824_v30 = vld [vmem:[%s2243_s5 + $0x1e4] ss:$8 sps:$4 sm:$0xff]   ;;  %v1827_v32 = vld [vmem:[%s2243_s5 + $0x1e0] ss:$8 sps:$4 sm:$0xff]   ;;  %v1828_v33 = vld [vmem:[%s2243_s5 + $0xf4] ss:$8 sps:$4 sm:$0xff]  }
  0x74   : > { %1359 = vmatprep.mubr.bf16.mxu1 %v1576_v20  ;;  %v1830_v34 = vld [vmem:[%s2243_s5 + $0x1f4] ss:$8 sps:$4 sm:$0xff]   ;;  %v1832_v35 = vld [vmem:[%s2243_s5 + $0xf0] ss:$8 sps:$4 sm:$0xff]   ;;  %v1840_v37 = vld [vmem:[%s2243_s5 + $0x204] ss:$8 sps:$4 sm:$0xff]  }
  0x75   : > { %1297 = vmatpush1.bf16.msra.mxu0 %v1772_v55  ;;  %v1833_v36 = vld [vmem:[%s2243_s5 + $0x1f0] ss:$8 sps:$4 sm:$0xff]   ;;  %v1838_v40 = vld [vmem:[%s2243_s5 + $0x200] ss:$8 sps:$4 sm:$0xff]   ;;  %v1843_v42 = vld [vmem:[%s2243_s5 + $0x214] ss:$8 sps:$4 sm:$0xff]  }
  0x76   : > { %1338 = vmatpush1.bf16.msra.mxu1 %v1773_v56  ;;  %1298 = vmatprep.subr.bf16.mxu0 %v1774_v57  ;;  %v2315_v41 = vld [vmem:[%s2231_s26 + $0x10] sm:$0xff]  ;;  %v1841_v44 = vld [vmem:[%s2243_s5 + $0x210] ss:$8 sps:$4 sm:$0xff]   ;;  %v1849_v47 = vld [vmem:[%s2243_s5 + $0x234] ss:$8 sps:$4 sm:$0xff]  }
  0x77   : > { %1339 = vmatprep.subr.bf16.mxu1 %v1776_v58  ;;  %v1578_v43 = vcombine.high %v2315_v41, %v2315_v41  ;;  %v1846_v45 = vld [vmem:[%s2243_s5 + $0x224] ss:$8 sps:$4 sm:$0xff]   ;;  %v1844_v46 = vld [vmem:[%s2243_s5 + $0x220] ss:$8 sps:$4 sm:$0xff]   ;;  %v1847_v48 = vld [vmem:[%s2243_s5 + $0x230] ss:$8 sps:$4 sm:$0xff]  }
  0x78   : > { %v1852_v49 = vld [vmem:[%s2243_s5 + $0x244] ss:$8 sps:$4 sm:$0xff]   ;;  %v1850_v50 = vld [vmem:[%s2243_s5 + $0x240] ss:$8 sps:$4 sm:$0xff]   ;;  %v1855_v51 = vld [vmem:[%s2243_s5 + $0x254] ss:$8 sps:$4 sm:$0xff]  }
  0x79   : > { %1299 = vmatpush1.bf16.msra.mxu0 %v1778_v59  ;;  %v1853_v52 = vld [vmem:[%s2243_s5 + $0x250] ss:$8 sps:$4 sm:$0xff]   ;;  %v1858_v53 = vld [vmem:[%s2243_s5 + $0x264] ss:$8 sps:$4 sm:$0xff]   ;;  %v1856_v54 = vld [vmem:[%s2243_s5 + $0x260] ss:$8 sps:$4 sm:$0xff]  }
  0x7a   : > { %1340 = vmatpush1.bf16.msra.mxu1 %v1779_v60  ;;  %1300 = vmatprep.subr.bf16.mxu0 %v1780_v61  ;;  %v1861_v55 = vld [vmem:[%s2243_s5 + $0x274] ss:$8 sps:$4 sm:$0xff]   ;;  %v1859_v56 = vld [vmem:[%s2243_s5 + $0x270] ss:$8 sps:$4 sm:$0xff]   ;;  %v1864_v57 = vld [vmem:[%s2243_s5 + $0x284] ss:$8 sps:$4 sm:$0xff]  }
  0x7b   : > { %1341 = vmatprep.subr.bf16.mxu1 %v1782_v62  ;;  %v1862_v58 = vld [vmem:[%s2243_s5 + $0x280] ss:$8 sps:$4 sm:$0xff]   ;;  %v1867_v59 = vld [vmem:[%s2243_s5 + $0x294] ss:$8 sps:$4 sm:$0xff]   ;;  %v1865_v60 = vld [vmem:[%s2243_s5 + $0x290] ss:$8 sps:$4 sm:$0xff]  }
  0x7c   : > { %v1870_v61 = vld [vmem:[%s2243_s5 + $0x2a4] ss:$8 sps:$4 sm:$0xff]   ;;  %v1868_v62 = vld [vmem:[%s2243_s5 + $0x2a0] ss:$8 sps:$4 sm:$0xff]   ;;  %v684_v20 = vld [vmem:[#allocation2] sm:$0xff] }
  0x7d   : > { %1301 = vmatpush1.bf16.msra.mxu0 %v1784_v63  ;;  %v1873_v63 = vld [vmem:[%s2243_s5 + $0x2b4] ss:$8 sps:$4 sm:$0xff]  }
  0x7e   : > { %1342 = vmatpush1.bf16.msra.mxu1 %v1785_v0  ;;  %1302 = vmatprep.subr.bf16.mxu0 %v1786_v1  ;;  %v1871_v0 = vld [vmem:[%s2243_s5 + $0x2b0] ss:$8 sps:$4 sm:$0xff]   ;;  %v1876_v1 = vld [vmem:[%s2243_s5 + $0x2c4] ss:$8 sps:$4 sm:$0xff]  }
  0x7f   : > { %1343 = vmatprep.subr.bf16.mxu1 %v1788_v2  ;;  %v1874_v2 = vld [vmem:[%s2243_s5 + $0x2c0] ss:$8 sps:$4 sm:$0xff]  }
  0x81   : > { %1303 = vmatpush1.bf16.msra.mxu0 %v1790_v3  ;;  %v1879_v3 = vld [vmem:[%s2243_s5 + $0x2d4] ss:$8 sps:$4 sm:$0xff]  }
  0x82   : > { %1344 = vmatpush1.bf16.msra.mxu1 %v1791_v4  ;;  %1304 = vmatprep.subr.bf16.mxu0 %v1792_v5  ;;  %v1877_v4 = vld [vmem:[%s2243_s5 + $0x2d0] ss:$8 sps:$4 sm:$0xff]   ;;  %v1882_v5 = vld [vmem:[%s2243_s5 + $0x2e4] ss:$8 sps:$4 sm:$0xff]  }
  0x83   : > { %1345 = vmatprep.subr.bf16.mxu1 %v1794_v6  ;;  %v1880_v6 = vld [vmem:[%s2243_s5 + $0x2e0] ss:$8 sps:$4 sm:$0xff]  }
  0x85   : > { %1305 = vmatpush1.bf16.msra.mxu0 %v1796_v7  ;;  %v1885_v7 = vld [vmem:[%s2243_s5 + $0x2f4] ss:$8 sps:$4 sm:$0xff]  }
  0x86   : > { %1346 = vmatpush1.bf16.msra.mxu1 %v1797_v8  ;;  %1306 = vmatprep.subr.bf16.mxu0 %v1798_v9  ;;  %v1883_v8 = vld [vmem:[%s2243_s5 + $0x2f0] ss:$8 sps:$4 sm:$0xff]   ;;  %v1577_v9 = vcombine.low %v2315_v41, %v2315_v41 }
  0x87   : > { %1347 = vmatprep.subr.bf16.mxu1 %v1800_v10 }
  0x89   : > { %1307 = vmatpush1.bf16.msra.mxu0 %v1802_v11 }
  0x8a   : > { %1348 = vmatpush1.bf16.msra.mxu1 %v1803_v12  ;;  %1308 = vmatprep.subr.bf16.mxu0 %v1804_v13 }
  0x8b   : > { %1349 = vmatprep.subr.bf16.mxu1 %v1806_v14 }
  0x8d   : > { %1309 = vmatpush1.bf16.msra.mxu0 %v1808_v18 }
  0x8e   : > { %1350 = vmatpush1.bf16.msra.mxu1 %v1809_v19  ;;  %1310 = vmatprep.subr.bf16.mxu0 %v1810_v21 }
  0x8f   : > { %1351 = vmatprep.subr.bf16.mxu1 %v1812_v22 }
  0x91   : > { %1311 = vmatpush1.bf16.msra.mxu0 %v1814_v23  ;;  %v685_v23 = vld [vmem:[#allocation2 + $0x8] sm:$0xff] }
  0x92   : > { %1352 = vmatpush1.bf16.msra.mxu1 %v1815_v24  ;;  %1312 = vmatprep.subr.bf16.mxu0 %v1816_v25 }
  0x93   : > { %1353 = vmatprep.subr.bf16.mxu1 %v1818_v26 }
  0x95   : > { %1313 = vmatpush1.bf16.msra.mxu0 %v1820_v27 }
  0x96   : > { %1354 = vmatpush1.bf16.msra.mxu1 %v1821_v28  ;;  %1314 = vmatprep.subr.bf16.mxu0 %v1822_v29 }
  0x97   : > { %1355 = vmatprep.subr.bf16.mxu1 %v1824_v30  ;;  %v1421_v30 = vlaneseq (!%p1675_p13) }
  0x99   : > { %1315 = vmatpush1.bf16.msra.mxu0 %v1826_v31  ;;  %v1422_v31 = vshrl.u32 (!%p1675_p13), %v1421_v30, 7 }
  0x9a   : > { %1356 = vmatpush1.bf16.msra.mxu1 %v1827_v32  ;;  %1316 = vmatprep.subr.bf16.mxu0 %v1828_v33  ;;  %v1419_v32 = vld [vmem:[%s666_s12] sm:$0x3] (!%p1675_p13) }
  0x9b   : > { %1357 = vmatprep.subr.bf16.mxu1 %v1830_v34  ;;  %v1423_v33 = vsub.s32 (!%p1675_p13), 0, %v1422_v31  ;;  %v1427_v34 = vsub.s32 (!%p1675_p13), 1, %v1422_v31 }
  0x9d   : > { %1317 = vmatpush1.bf16.msra.mxu0 %v1832_v35 }
  0x9e   : > { %1358 = vmatpush1.bf16.msra.mxu1 %v1833_v36  ;;  %1368 = vmatprep.subr.bf16.mxu0 %v1840_v37  ;;  %v1424_v37 = vrot.slane (!%p1675_p13), %v1419_v32, %v1423_v33 }
  0xa0   : > { %1319 = vmatmul.mubr.bf16.vlgmr.msra.gmra.mrb[0].mxu0 %v1573_v38  ;;  %v1428_v38 = vrot.slane (!%p1675_p13), %v1419_v32, %v1427_v34 }
  0xa1   : > { %1360 = vmatmul.mubr.bf16.vlgmr.msra.gmra.mrb[0].mxu1 %v1575_v39  ;;  %1369 = vmatpush1.bf16.msra.mxu0 %v1838_v40 }
  0xa2   : > { %1400 = vmatprep.mubr.bf16.mxu0 %v1578_v43  ;;  %1370 = vmatprep.subr.bf16.mxu0 %v1843_v42 }
  0xa5   : > { %1371 = vmatpush1.bf16.msra.mxu0 %v1841_v44 }
  0xa6   : > { %1372 = vmatprep.subr.bf16.mxu0 %v1846_v45 }
  0xa9   : > { %1373 = vmatpush1.bf16.msra.mxu0 %v1844_v46 }
  0xaa   : > { %1374 = vmatprep.subr.bf16.mxu0 %v1849_v47 }
  0xad   : > { %1375 = vmatpush1.bf16.msra.mxu0 %v1847_v48 }
  0xae   : > { %1376 = vmatprep.subr.bf16.mxu0 %v1852_v49 }
  0xb1   : > { %1377 = vmatpush1.bf16.msra.mxu0 %v1850_v50 }
  0xb2   : > { %1378 = vmatprep.subr.bf16.mxu0 %v1855_v51 }
  0xb5   : > { %1379 = vmatpush1.bf16.msra.mxu0 %v1853_v52 }
  0xb6   : > { %1380 = vmatprep.subr.bf16.mxu0 %v1858_v53 }
  0xb9   : > { %1381 = vmatpush1.bf16.msra.mxu0 %v1856_v54 }
  0xba   : > { %1382 = vmatprep.subr.bf16.mxu0 %v1861_v55 }
  0xbd   : > { %1383 = vmatpush1.bf16.msra.mxu0 %v1859_v56 }
  0xbe   : > { %1384 = vmatprep.subr.bf16.mxu0 %v1864_v57 }
  0xc1   : > { %1385 = vmatpush1.bf16.msra.mxu0 %v1862_v58 }
  0xc2   : > { %1386 = vmatprep.subr.bf16.mxu0 %v1867_v59 }
  0xc5   : > { %1387 = vmatpush1.bf16.msra.mxu0 %v1865_v60 }
  0xc6   : > { %1388 = vmatprep.subr.bf16.mxu0 %v1870_v61 }
  0xc9   : > { %1389 = vmatpush1.bf16.msra.mxu0 %v1868_v62 }
  0xca   : > { %1390 = vmatprep.subr.bf16.mxu0 %v1873_v63 }
  0xcd   : > { %1391 = vmatpush1.bf16.msra.mxu0 %v1871_v0 }
  0xce   : > { %1392 = vmatprep.subr.bf16.mxu0 %v1876_v1 }
  0xd1   : > { %1393 = vmatpush1.bf16.msra.mxu0 %v1874_v2 }
  0xd2   : > { %1394 = vmatprep.subr.bf16.mxu0 %v1879_v3 }
  0xd5   : > { %1395 = vmatpush1.bf16.msra.mxu0 %v1877_v4 }
  0xd6   : > { %1396 = vmatprep.subr.bf16.mxu0 %v1882_v5 }
  0xd9   : > { %1397 = vmatpush1.bf16.msra.mxu0 %v1880_v6 }
  0xda   : > { %1398 = vmatprep.subr.bf16.mxu0 %v1885_v7 }
  0xdd   : > { %1399 = vmatpush1.bf16.msra.mxu0 %v1883_v8 }
  0xe0   : > { %1401 = vmatmul.mubr.bf16.vlgmr.msra.gmra.mrb[4].mxu0 %v1577_v9 }
 0x173   : > { %v1320_v10 = vpop.f32.mrb[0].mxu0 }
 0x174   : > { %v1361_v11 = vpop.f32.mrb[0].mxu1  ;;  %v1322_v13 = vpop.f32.mrb[1].mxu0 }
 0x175   : > { %v1362_v12 = vadd.f32 %v1361_v11, %v1320_v10  ;;  %v1363_v14 = vpop.f32.mrb[1].mxu1  ;;  %v1324_v16 = vpop.f32.mrb[2].mxu0 }
 0x176   : > { %v1364_v15 = vadd.f32 %v1363_v14, %v1322_v13  ;;  %v1365_v17 = vpop.f32.mrb[2].mxu1  ;;  %v1325_v18 = vpop.f32.mrb[3].mxu0 }
 0x177   : > { %v1366_v19 = vpop.f32.mrb[3].mxu1 }
 0x1b3   : > { %v1402_v21 = vpop.f32.mrb[4].mxu0  ;;  %1416 = sbr.rel (%p1675_p13) target bundleno = 454 (0x1c6), region = 78 }
 0x1b4   : > { %v1403_v22 = vadd.f32 %v1402_v21, %v1362_v12  ;;  %v1404_v24 = vpop.f32.mrb[5].mxu0 }
 0x1b5   : > { %v1405_v25 = vadd.f32 %v1404_v24, %v1364_v15  ;;  %v1406_v26 = vpop.f32.mrb[6].mxu0 }
 0x1b6   : > { %v1409_v27 = vadd.f32 %v1403_v22, %v684_v20  ;;  %v1407_v28 = vpop.f32.mrb[7].mxu0 }
 0x1b7   : > { %v1410_v29 = vadd.f32 %v1405_v25, %v685_v23 }
 0x1b8   : > { %1411 = vst [vmem:[#allocation2] sm:$0xff] %v1409_v27 }
 0x1b9   : > { %1412 = vst [vmem:[#allocation2 + $0x8] sm:$0xff] %v1410_v29 }
 0x1bf   : > { %v1417_v35 = vld [vmem:[#allocation2] sm:$0xff] }
 0x1c0   : > { %v1418_v36 = vld [vmem:[#allocation2 + $0x8] sm:$0xff]  ;;  %v1431_v39 = vadd.f32 %v1424_v37, %v1417_v35 }
 0x1c1   : > { %v1432_v40 = vadd.f32 %v1428_v38, %v1418_v36 }
 0x1c2   : > { %v1433_v41 = vmax.f32 %v1431_v39, 0.0 }
 0x1c3   : > { %v1434_v42 = vmax.f32 %v1432_v40, 0.0 }
 0x1c4   : > { %1435 = vst [vmem:[%s2241_s4] sm:$0xff] %v1433_v41 }
 0x1c5   : > { %1436 = vst [vmem:[%s2241_s4 + $0x8] sm:$0xff] %v1434_v42 }
 0x1c6 PF: > { %s13_s18 = sadd.s32 1, %s1942_s18   ;;  %s2384_s12 = smov %s1922_s13 }
 0x1c7   : > { %p10_p0 = scmp.ge.s32.totalorder %s13_s18, 8   ;;  %s2385_s13 = smov %s2016_s25 }
 0x1c8   : > { %s2386_s14 = smov %s1934_s16  ;;  %s2387_s15 = smov %s1938_s17 }
 0x1c9   : > { %s2388_s16 = smov %s2391_s19  ;;  %s2389_s17 = smov %s2395_s20 }
 0x1ca   :  { %12 = sbr.rel (!%p10_p0) target bundleno = 4 (0x4), region = 119 }

// kernel: backbone_forward.39
= control target key start
LH: loop header
LB: loop body
LE: loop exit
PB: predicated region body
PF: predicated region fallthrough
CT: control target
= control target key end

     0   :  { %s1019_s12 = smov 0   ;;  %s1021_s13 = smov 0   ;;  %s1198_s0 = inlined_call_operand.vmem [shape: bf16[8,256], index: 0, kind: input, shape index: {}]   ;;  %s1199_s1 = inlined_call_operand.vmem [shape: bf16[256,512], index: 1, kind: input, shape index: {}]   ;;  %s1200_s2 = inlined_call_operand.vmem [shape: f32[1,512], index: 2, kind: input, shape index: {}]   ;;  %s1201_s3 = inlined_call_operand.vmem [shape: f32[8,512], index: 3, kind: output, shape index: {}]  }
   0x1   :  { %s1023_s14 = smov 0   ;;  %s1025_s15 = smov 0  }
   0x2   :  { %s1027_s16 = smov 0  }
   0x3 LB: > { %s28_s17 = sadd.s32 1, %s993_s15  ;;  %p76_p1 = scmp.ne.s32.totalorder %s985_s13, %s981_s12  ;;  %s997_s16 = sphi %s1027_s16, %s13_s16   ;;  %s993_s15 = sphi %s1025_s15, %s1205_s15   ;;  %s989_s14 = sphi %s1023_s14, %s1204_s14   ;;  %s985_s13 = sphi %s1021_s13, %s1203_s13   ;;  %s981_s12 = sphi %s1019_s12, %s1202_s12  }
   0x4   : > { %p30_p0 = scmp.ge.s32.totalorder %s28_s17, 2  ;;  %p77_p2 = scmp.eq.s32.totalorder %s997_s16, 0 }
   0x5   : > { %s69_s19 = sadd.s32 1, %s985_s13  ;;  %p823_p5 = scmp.ge.s32.totalorder %s997_s16, 2 }
   0x6   : > { %s1207_s17 = smov (%p30_p0, %s28_s17), 0  ;;  %p78_p3 = por %p77_p2, %p76_p1 }
   0x7   : > { %s65_s18 = ssub.s32 %s993_s15, %s1207_s17  ;;  %169 = sbr.rel (%p823_p5) target bundleno = 34 (0x22), region = 20 }
   0x8   : > { %p67_p4 = scmp.eq.s32.totalorder %s65_s18, 0 }
   0xa   : > { %s1054_s20 = scalar_select %p67_p4, %s985_s13, %s69_s19  }
   0xe   : > { %172 = sbr.rel (!%p78_p3) target bundleno = 34 (0x22), region = 24  ;;  %s174_s21 = sand.u32 (%p78_p3), 1, %s985_s13  }
   0xf   : > { %s868_s22 = sshll.u32 (%p78_p3), %s993_s15, 3  ;;  %s824_s23 = sshll.u32 (%p78_p3), %s174_s21, 8 }
  0x10   : > { %s1062_s26 = scalar_lea.vmem (%p78_p3), %s1199_s1, %s868_s22  ;;  %s1067_s27 = scalar_lea.vmem (%p78_p3), [#allocation3], %s824_s23 }
  0x11   : > { %v272_v0 = vld [vmem:[%s1062_s26] sm:$0xff] (%p78_p3)  ;;  %v274_v1 = vld [vmem:[%s1062_s26 + $0x10] sm:$0xff] (%p78_p3) }
  0x12   : > { %v276_v2 = vld [vmem:[%s1062_s26 + $0x20] sm:$0xff] (%p78_p3)  ;;  %273 = vst [vmem:[%s1067_s27] sm:$0xff] (%p78_p3), %v272_v0  ;;  %275 = vst [vmem:[%s1067_s27 + $0x8] sm:$0xff] (%p78_p3), %v274_v1  ;;  %v278_v3 = vld [vmem:[%s1062_s26 + $0x30] sm:$0xff] (%p78_p3) }
  0x13   : > { %277 = vst [vmem:[%s1067_s27 + $0x10] sm:$0xff] (%p78_p3), %v276_v2  ;;  %v280_v4 = vld [vmem:[%s1062_s26 + $0x40] sm:$0xff] (%p78_p3)  ;;  %v282_v5 = vld [vmem:[%s1062_s26 + $0x50] sm:$0xff] (%p78_p3)  ;;  %279 = vst [vmem:[%s1067_s27 + $0x18] sm:$0xff] (%p78_p3), %v278_v3 }
  0x14   : > { %281 = vst [vmem:[%s1067_s27 + $0x20] sm:$0xff] (%p78_p3), %v280_v4  ;;  %283 = vst [vmem:[%s1067_s27 + $0x28] sm:$0xff] (%p78_p3), %v282_v5  ;;  %v284_v6 = vld [vmem:[%s1062_s26 + $0x60] sm:$0xff] (%p78_p3)  ;;  %v286_v7 = vld [vmem:[%s1062_s26 + $0x70] sm:$0xff] (%p78_p3) }
  0x15   : > { %v288_v8 = vld [vmem:[%s1062_s26 + $0x80] sm:$0xff]  ;;  %285 = vst [vmem:[%s1067_s27 + $0x30] sm:$0xff] %v284_v6  ;;  %287 = vst [vmem:[%s1067_s27 + $0x38] sm:$0xff] %v286_v7  ;;  %v290_v9 = vld [vmem:[%s1062_s26 + $0x90] sm:$0xff] }
  0x16   : > { %289 = vst [vmem:[%s1067_s27 + $0x40] sm:$0xff] %v288_v8  ;;  %v292_v10 = vld [vmem:[%s1062_s26 + $0xa0] sm:$0xff]  ;;  %v294_v11 = vld [vmem:[%s1062_s26 + $0xb0] sm:$0xff]  ;;  %291 = vst [vmem:[%s1067_s27 + $0x48] sm:$0xff] %v290_v9 }
  0x17   : > { %293 = vst [vmem:[%s1067_s27 + $0x50] sm:$0xff] %v292_v10  ;;  %295 = vst [vmem:[%s1067_s27 + $0x58] sm:$0xff] %v294_v11  ;;  %v296_v12 = vld [vmem:[%s1062_s26 + $0xc0] sm:$0xff]  ;;  %v298_v13 = vld [vmem:[%s1062_s26 + $0xd0] sm:$0xff] }
  0x18   : > { %v300_v14 = vld [vmem:[%s1062_s26 + $0xe0] sm:$0xff]  ;;  %297 = vst [vmem:[%s1067_s27 + $0x60] sm:$0xff] %v296_v12  ;;  %299 = vst [vmem:[%s1067_s27 + $0x68] sm:$0xff] %v298_v13  ;;  %v302_v15 = vld [vmem:[%s1062_s26 + $0xf0] sm:$0xff] }
  0x19   : > { %301 = vst [vmem:[%s1067_s27 + $0x70] sm:$0xff] %v300_v14  ;;  %v304_v16 = vld [vmem:[%s1062_s26 + $0x100] sm:$0xff]  ;;  %v306_v17 = vld [vmem:[%s1062_s26 + $0x110] sm:$0xff]  ;;  %303 = vst [vmem:[%s1067_s27 + $0x78] sm:$0xff] %v302_v15 }
  0x1a   : > { %305 = vst [vmem:[%s1067_s27 + $0x80] sm:$0xff] %v304_v16  ;;  %307 = vst [vmem:[%s1067_s27 + $0x88] sm:$0xff] %v306_v17  ;;  %v308_v18 = vld [vmem:[%s1062_s26 + $0x120] sm:$0xff]  ;;  %v310_v19 = vld [vmem:[%s1062_s26 + $0x130] sm:$0xff] }
  0x1b   : > { %v312_v20 = vld [vmem:[%s1062_s26 + $0x140] sm:$0xff]  ;;  %309 = vst [vmem:[%s1067_s27 + $0x90] sm:$0xff] %v308_v18  ;;  %311 = vst [vmem:[%s1067_s27 + $0x98] sm:$0xff] %v310_v19  ;;  %v314_v21 = vld [vmem:[%s1062_s26 + $0x150] sm:$0xff] }
  0x1c   : > { %313 = vst [vmem:[%s1067_s27 + $0xa0] sm:$0xff] %v312_v20  ;;  %v316_v22 = vld [vmem:[%s1062_s26 + $0x160] sm:$0xff]  ;;  %v318_v23 = vld [vmem:[%s1062_s26 + $0x170] sm:$0xff]  ;;  %315 = vst [vmem:[%s1067_s27 + $0xa8] sm:$0xff] %v314_v21 }
  0x1d   : > { %317 = vst [vmem:[%s1067_s27 + $0xb0] sm:$0xff] %v316_v22  ;;  %319 = vst [vmem:[%s1067_s27 + $0xb8] sm:$0xff] %v318_v23  ;;  %v320_v24 = vld [vmem:[%s1062_s26 + $0x180] sm:$0xff]  ;;  %v322_v25 = vld [vmem:[%s1062_s26 + $0x190] sm:$0xff] }
  0x1e   : > { %v324_v26 = vld [vmem:[%s1062_s26 + $0x1a0] sm:$0xff]  ;;  %321 = vst [vmem:[%s1067_s27 + $0xc0] sm:$0xff] %v320_v24  ;;  %323 = vst [vmem:[%s1067_s27 + $0xc8] sm:$0xff] %v322_v25  ;;  %v326_v27 = vld [vmem:[%s1062_s26 + $0x1b0] sm:$0xff] }
  0x1f   : > { %325 = vst [vmem:[%s1067_s27 + $0xd0] sm:$0xff] %v324_v26  ;;  %v328_v28 = vld [vmem:[%s1062_s26 + $0x1c0] sm:$0xff]  ;;  %v330_v29 = vld [vmem:[%s1062_s26 + $0x1d0] sm:$0xff]  ;;  %327 = vst [vmem:[%s1067_s27 + $0xd8] sm:$0xff] %v326_v27 }
  0x20   : > { %329 = vst [vmem:[%s1067_s27 + $0xe0] sm:$0xff] %v328_v28  ;;  %331 = vst [vmem:[%s1067_s27 + $0xe8] sm:$0xff] %v330_v29  ;;  %v332_v30 = vld [vmem:[%s1062_s26 + $0x1e0] sm:$0xff]  ;;  %v334_v31 = vld [vmem:[%s1062_s26 + $0x1f0] sm:$0xff] }
  0x21   : > { %333 = vst [vmem:[%s1067_s27 + $0xf0] sm:$0xff] %v332_v30  ;;  %335 = vst [vmem:[%s1067_s27 + $0xf8] sm:$0xff] %v334_v31 }
  0x22 PF: > { %p827_p6 = scmp.ge.s32.totalorder %s997_s16, 1  ;;  %p348_p7 = scmp.lt.s32.totalorder %s997_s16, 3 }
  0x24   : > { %p349_p8 = pnand %p827_p6, %p348_p7 }
  0x25   : > { %s355_s28 = sand.u32 (!%p349_p8), 1, %s981_s12   ;;  %v1136_v32 = vld [vmem:[%s1198_s0] sm:$0xff] (!%p349_p8)  ;;  %s829_s6 = sshll.u32 (!%p349_p8), %s989_s14, 1  ;;  %v682_v3 = vlaneseq (!%p349_p8) }
  0x26   : > { %352 = sbr.rel (%p349_p8) target bundleno = 321 (0x141), region = 66  ;;  %s828_s4 = sshll.u32 (!%p349_p8), %s355_s28, 8  ;;  %v833_v33 = vcombine.high (!%p349_p8), %v1136_v32, %v1136_v32  ;;  %v832_v2 = vcombine.low (!%p349_p8), %v1136_v32, %v1136_v32 }
  0x27   : > { %s1140_s5 = scalar_lea.vmem (!%p349_p8), [#allocation3], %s828_s4  ;;  %p408_p9 = scmp.lt.s32.totalorder (!%p349_p8), %s829_s6, 3  ;;  %v683_v4 = vshrl.u32 (!%p349_p8), %v682_v3, 7 }
  0x28   : > { %v909_v34 = vld [vmem:[%s1140_s5 + $0x4] ss:$8 sps:$4 sm:$0xff] (!%p349_p8)   ;;  %662 = vmatprep.mubr.bf16.mxu0 (!%p349_p8), %v833_v33  ;;  %v911_v35 = vld [vmem:[%s1140_s5] ss:$8 sps:$4 sm:$0xff] (!%p349_p8)   ;;  %v912_v36 = vld [vmem:[%s1140_s5 + $0x14] ss:$8 sps:$4 sm:$0xff] (!%p349_p8)  }
  0x29   : > { %630 = vmatprep.subr.bf16.mxu0 (!%p349_p8), %v909_v34  ;;  %v914_v37 = vld [vmem:[%s1140_s5 + $0x10] ss:$8 sps:$4 sm:$0xff] (!%p349_p8)   ;;  %v915_v38 = vld [vmem:[%s1140_s5 + $0x24] ss:$8 sps:$4 sm:$0xff] (!%p349_p8)   ;;  %v917_v39 = vld [vmem:[%s1140_s5 + $0x20] ss:$8 sps:$4 sm:$0xff] (!%p349_p8)  }
  0x2a   : > { %631 = vmatpush1.bf16.msra.mxu0 (!%p349_p8), %v911_v35  ;;  %v918_v40 = vld [vmem:[%s1140_s5 + $0x34] ss:$8 sps:$4 sm:$0xff] (!%p349_p8)   ;;  %v920_v41 = vld [vmem:[%s1140_s5 + $0x30] ss:$8 sps:$4 sm:$0xff] (!%p349_p8)   ;;  %v921_v42 = vld [vmem:[%s1140_s5 + $0x44] ss:$8 sps:$4 sm:$0xff] (!%p349_p8)  }
  0x2b   : > { %632 = vmatprep.subr.bf16.mxu0 (!%p349_p8), %v912_v36  ;;  %v923_v43 = vld [vmem:[%s1140_s5 + $0x40] ss:$8 sps:$4 sm:$0xff] (!%p349_p8)   ;;  %v924_v44 = vld [vmem:[%s1140_s5 + $0x54] ss:$8 sps:$4 sm:$0xff] (!%p349_p8)   ;;  %v926_v45 = vld [vmem:[%s1140_s5 + $0x50] ss:$8 sps:$4 sm:$0xff] (!%p349_p8)  }
  0x2c   : > { %v927_v46 = vld [vmem:[%s1140_s5 + $0x64] ss:$8 sps:$4 sm:$0xff] (!%p349_p8)   ;;  %v929_v47 = vld [vmem:[%s1140_s5 + $0x60] ss:$8 sps:$4 sm:$0xff] (!%p349_p8)   ;;  %v930_v48 = vld [vmem:[%s1140_s5 + $0x74] ss:$8 sps:$4 sm:$0xff] (!%p349_p8)  }
  0x2d   : > { %v932_v49 = vld [vmem:[%s1140_s5 + $0x70] ss:$8 sps:$4 sm:$0xff]   ;;  %v933_v50 = vld [vmem:[%s1140_s5 + $0x84] ss:$8 sps:$4 sm:$0xff]   ;;  %v935_v51 = vld [vmem:[%s1140_s5 + $0x80] ss:$8 sps:$4 sm:$0xff]  }
  0x2e   : > { %633 = vmatpush1.bf16.msra.mxu0 %v914_v37  ;;  %v936_v52 = vld [vmem:[%s1140_s5 + $0x94] ss:$8 sps:$4 sm:$0xff]   ;;  %v938_v53 = vld [vmem:[%s1140_s5 + $0x90] ss:$8 sps:$4 sm:$0xff]   ;;  %v939_v54 = vld [vmem:[%s1140_s5 + $0xa4] ss:$8 sps:$4 sm:$0xff]  }
  0x2f   : > { %634 = vmatprep.subr.bf16.mxu0 %v915_v38  ;;  %v941_v55 = vld [vmem:[%s1140_s5 + $0xa0] ss:$8 sps:$4 sm:$0xff]   ;;  %v942_v56 = vld [vmem:[%s1140_s5 + $0xb4] ss:$8 sps:$4 sm:$0xff]   ;;  %v944_v57 = vld [vmem:[%s1140_s5 + $0xb0] ss:$8 sps:$4 sm:$0xff]  }
  0x30   : > { %v945_v58 = vld [vmem:[%s1140_s5 + $0xc4] ss:$8 sps:$4 sm:$0xff]   ;;  %v947_v59 = vld [vmem:[%s1140_s5 + $0xc0] ss:$8 sps:$4 sm:$0xff]   ;;  %v948_v60 = vld [vmem:[%s1140_s5 + $0xd4] ss:$8 sps:$4 sm:$0xff]  }
  0x31   : > { %v950_v61 = vld [vmem:[%s1140_s5 + $0xd0] ss:$8 sps:$4 sm:$0xff]   ;;  %v951_v62 = vld [vmem:[%s1140_s5 + $0xe4] ss:$8 sps:$4 sm:$0xff]   ;;  %v953_v63 = vld [vmem:[%s1140_s5 + $0xe0] ss:$8 sps:$4 sm:$0xff]  }
  0x32   : > { %635 = vmatpush1.bf16.msra.mxu0 %v917_v39  ;;  %v954_v0 = vld [vmem:[%s1140_s5 + $0xf4] ss:$8 sps:$4 sm:$0xff]   ;;  %v956_v1 = vld [vmem:[%s1140_s5 + $0xf0] ss:$8 sps:$4 sm:$0xff]   ;;  %s1209_s6 = smov (!%p408_p9, %s829_s6), 3  ;;  %v684_v5 = vsub.s32 0, %v683_v4 }
  0x33   : > { %636 = vmatprep.subr.bf16.mxu0 %v918_v40  ;;  %s410_s9 = scalar_lea.vmem %s1200_s2, %s1209_s6  ;;  %v688_v7 = vsub.s32 1, %v683_v4  ;;  %s831_s10 = sshll.u32 %s1209_s6, 3 }
  0x34   : > { %v680_v6 = vld [vmem:[%s410_s9] sm:$0x3]  ;;  %s420_s18 = scalar_lea.vmem %s1201_s3, %s831_s10 }
  0x35   : > { %v685_v8 = vrot.slane %v680_v6, %v684_v5  ;;  %v689_v9 = vrot.slane %v680_v6, %v688_v7 }
  0x36   : > { %637 = vmatpush1.bf16.msra.mxu0 %v920_v41 }
  0x37   : > { %638 = vmatprep.subr.bf16.mxu0 %v921_v42 }
  0x3a   : > { %639 = vmatpush1.bf16.msra.mxu0 %v923_v43 }
  0x3b   : > { %640 = vmatprep.subr.bf16.mxu0 %v924_v44 }
  0x3e   : > { %641 = vmatpush1.bf16.msra.mxu0 %v926_v45 }
  0x3f   : > { %642 = vmatprep.subr.bf16.mxu0 %v927_v46 }
  0x42   : > { %643 = vmatpush1.bf16.msra.mxu0 %v929_v47 }
  0x43   : > { %644 = vmatprep.subr.bf16.mxu0 %v930_v48 }
  0x46   : > { %645 = vmatpush1.bf16.msra.mxu0 %v932_v49 }
  0x47   : > { %646 = vmatprep.subr.bf16.mxu0 %v933_v50 }
  0x4a   : > { %647 = vmatpush1.bf16.msra.mxu0 %v935_v51 }
  0x4b   : > { %648 = vmatprep.subr.bf16.mxu0 %v936_v52 }
  0x4e   : > { %649 = vmatpush1.bf16.msra.mxu0 %v938_v53 }
  0x4f   : > { %650 = vmatprep.subr.bf16.mxu0 %v939_v54 }
  0x52   : > { %651 = vmatpush1.bf16.msra.mxu0 %v941_v55 }
  0x53   : > { %652 = vmatprep.subr.bf16.mxu0 %v942_v56 }
  0x56   : > { %653 = vmatpush1.bf16.msra.mxu0 %v944_v57 }
  0x57   : > { %654 = vmatprep.subr.bf16.mxu0 %v945_v58 }
  0x5a   : > { %655 = vmatpush1.bf16.msra.mxu0 %v947_v59 }
  0x5b   : > { %656 = vmatprep.subr.bf16.mxu0 %v948_v60 }
  0x5e   : > { %657 = vmatpush1.bf16.msra.mxu0 %v950_v61 }
  0x5f   : > { %658 = vmatprep.subr.bf16.mxu0 %v951_v62 }
  0x62   : > { %659 = vmatpush1.bf16.msra.mxu0 %v953_v63 }
  0x63   : > { %660 = vmatprep.subr.bf16.mxu0 %v954_v0 }
  0x66   : > { %661 = vmatpush1.bf16.msra.mxu0 %v956_v1 }
  0x69   : > { %663 = vmatmul.mubr.bf16.vlgmr.msra.gmra.mrb[0].mxu0 %v832_v2 }
 0x13c   : > { %v664_v10 = vpop.f32.mrb[0].mxu0 }
 0x13d   : > { %v692_v11 = vadd.f32 %v685_v8, %v664_v10  ;;  %v666_v12 = vpop.f32.mrb[1].mxu0 }
 0x13e   : > { %v693_v13 = vadd.f32 %v689_v9, %v666_v12  ;;  %v668_v14 = vpop.f32.mrb[2].mxu0 }
 0x13f   : > { %694 = vst [vmem:[%s420_s18] sm:$0xff] %v692_v11  ;;  %v669_v15 = vpop.f32.mrb[3].mxu0 }
 0x140   : > { %695 = vst [vmem:[%s420_s18 + $0x8] sm:$0xff] %v693_v13 }
 0x141 PF: > { %s13_s16 = sadd.s32 1, %s997_s16   ;;  %s1202_s12 = smov %s985_s13 }
 0x142   : > { %p10_p10 = scmp.ge.s32.totalorder %s13_s16, 4   ;;  %s1203_s13 = smov %s1054_s20 }
 0x143   : > { %s1204_s14 = smov %s993_s15  ;;  %s1205_s15 = smov %s1207_s17 }
 0x144   :  { %12 = sbr.rel (!%p10_p10) target bundleno = 3 (0x3), region = 119 }

// kernel: backbone_forward.40
= control target key start
LH: loop header
LB: loop body
LE: loop exit
PB: predicated region body
PF: predicated region fallthrough
CT: control target
= control target key end

     0   :  { %s2057_s15 = smov 0   ;;  %s2059_s16 = smov 0   ;;  %s2479_s0 = inlined_call_operand.vmem [shape: bf16[8,4608], index: 0, kind: input, shape index: {}]   ;;  %s2480_s1 = inlined_call_operand.vmem [shape: bf16[4608,512], index: 1, kind: input, shape index: {}]   ;;  %s2481_s2 = inlined_call_operand.vmem [shape: f32[1,512], index: 2, kind: input, shape index: {}]   ;;  %s2482_s3 = inlined_call_operand.vmem [shape: f32[8,512], index: 3, kind: input, shape index: {}]   ;;  %s2483_s4 = inlined_call_operand.vmem [shape: f32[8,512], index: 4, kind: output, shape index: {}]  }
   0x1   :  { %s2061_s17 = smov 0   ;;  %s2063_s18 = smov 0  }
   0x2   :  { %s2065_s19 = smov 0   ;;  %s2067_s20 = smov 0  }
   0x3   :  { %s2069_s21 = smov 0  }
   0x4 LB: > { %s26_s22 = sadd.s32 1, %s2021_s19  ;;  %s29_s23 = sadd.s32 1, %s2025_s20  ;;  %s2029_s21 = sphi %s2069_s21, %s14_s21   ;;  %s2025_s20 = sphi %s2067_s20, %s2489_s20   ;;  %s2021_s19 = sphi %s2065_s19, %s2488_s19   ;;  %s2017_s18 = sphi %s2063_s18, %s2487_s18   ;;  %s2013_s17 = sphi %s2061_s17, %s2486_s17   ;;  %s2009_s16 = sphi %s2059_s16, %s2485_s16   ;;  %s2005_s15 = sphi %s2057_s15, %s2484_s15  }
   0x5   : > { %p27_p0 = scmp.ge.s32.totalorder %s26_s22, 6  ;;  %p77_p1 = scmp.ne.s32.totalorder %s2009_s16, %s2005_s15 }
   0x6   : > { %p78_p2 = scmp.eq.s32.totalorder %s2029_s21, 0  ;;  %s70_s27 = sadd.s32 1, %s2009_s16 }
   0x7   : > { %s2491_s22 = smov (%p27_p0, %s26_s22), 0  ;;  %s2493_s23 = smov (!%p27_p0, %s29_s23), %s2025_s20 }
   0x8   : > { %p79_p3 = por %p78_p2, %p77_p1  ;;  %p31_p4 = scmp.ge.s32.totalorder %s2493_s23, 2 }
   0x9   : > { %s65_s24 = ssub.s32 %s2021_s19, %s2491_s22  ;;  %p1648_p6 = scmp.ge.s32.totalorder %s2029_s21, 12 }
   0xa   : > { %s2495_s23 = smov (%p31_p4, %s2493_s23), 0 }
   0xb   : > { %s66_s25 = ssub.s32 %s2025_s20, %s2495_s23  ;;  %185 = sbr.rel (%p1648_p6) target bundleno = 74 (0x4a), region = 16 }
   0xc   : > { %s67_s26 = sor.u32 %s66_s25, %s65_s24 }
   0xd   : > { %p68_p5 = scmp.eq.s32.totalorder %s67_s26, 0 }
   0xf   : > { %s2108_s28 = scalar_select %p68_p5, %s2009_s16, %s70_s27  }
  0x12   : > { %201 = sbr.rel (!%p79_p3) target bundleno = 74 (0x4a), region = 24  ;;  %s203_s29 = sand.u32 (%p79_p3), 1, %s2009_s16  }
  0x13   : > { %s1766_s30 = smul.u32 (%p79_p3), 768, %s203_s29  ;;  %s1649_s5 = sshll.u32 (%p79_p3), %s2025_s20, 1 }
  0x14   : > { %s1765_s6 = smul.u32 (%p79_p3), 384, %s2021_s19 }
  0x15   : > { %s2122_s12 = scalar_lea.vmem (%p79_p3), [#allocation3], %s1766_s30 }
  0x16   : > { %s209_s7 = sadd.s32 (%p79_p3), %s1765_s6, %s1649_s5 }
  0x17   : > { %s1651_s8 = sshll.u32 (%p79_p3), %s209_s7, 2 }
  0x18   : > { %s2117_s11 = scalar_lea.vmem (%p79_p3), %s2480_s1, %s1651_s8 }
  0x19   : > { %v429_v0 = vld [vmem:[%s2117_s11] sm:$0xff]  ;;  %v431_v1 = vld [vmem:[%s2117_s11 + $0x10] sm:$0xff] }
  0x1a   : > { %v433_v2 = vld [vmem:[%s2117_s11 + $0x20] sm:$0xff]  ;;  %430 = vst [vmem:[%s2122_s12] sm:$0xff] %v429_v0  ;;  %432 = vst [vmem:[%s2122_s12 + $0x8] sm:$0xff] %v431_v1  ;;  %v435_v3 = vld [vmem:[%s2117_s11 + $0x30] sm:$0xff] }
  0x1b   : > { %434 = vst [vmem:[%s2122_s12 + $0x10] sm:$0xff] %v433_v2  ;;  %v437_v4 = vld [vmem:[%s2117_s11 + $0x40] sm:$0xff]  ;;  %v439_v5 = vld [vmem:[%s2117_s11 + $0x50] sm:$0xff]  ;;  %436 = vst [vmem:[%s2122_s12 + $0x18] sm:$0xff] %v435_v3 }
  0x1c   : > { %438 = vst [vmem:[%s2122_s12 + $0x20] sm:$0xff] %v437_v4  ;;  %440 = vst [vmem:[%s2122_s12 + $0x28] sm:$0xff] %v439_v5  ;;  %v441_v6 = vld [vmem:[%s2117_s11 + $0x60] sm:$0xff]  ;;  %v443_v7 = vld [vmem:[%s2117_s11 + $0x70] sm:$0xff] }
  0x1d   : > { %v445_v8 = vld [vmem:[%s2117_s11 + $0x80] sm:$0xff]  ;;  %442 = vst [vmem:[%s2122_s12 + $0x30] sm:$0xff] %v441_v6  ;;  %444 = vst [vmem:[%s2122_s12 + $0x38] sm:$0xff] %v443_v7  ;;  %v447_v9 = vld [vmem:[%s2117_s11 + $0x90] sm:$0xff] }
  0x1e   : > { %446 = vst [vmem:[%s2122_s12 + $0x40] sm:$0xff] %v445_v8  ;;  %v449_v10 = vld [vmem:[%s2117_s11 + $0xa0] sm:$0xff]  ;;  %v451_v11 = vld [vmem:[%s2117_s11 + $0xb0] sm:$0xff]  ;;  %448 = vst [vmem:[%s2122_s12 + $0x48] sm:$0xff] %v447_v9 }
  0x1f   : > { %450 = vst [vmem:[%s2122_s12 + $0x50] sm:$0xff] %v449_v10  ;;  %452 = vst [vmem:[%s2122_s12 + $0x58] sm:$0xff] %v451_v11  ;;  %v453_v12 = vld [vmem:[%s2117_s11 + $0xc0] sm:$0xff]  ;;  %v455_v13 = vld [vmem:[%s2117_s11 + $0xd0] sm:$0xff] }
  0x20   : > { %v457_v14 = vld [vmem:[%s2117_s11 + $0xe0] sm:$0xff]  ;;  %454 = vst [vmem:[%s2122_s12 + $0x60] sm:$0xff] %v453_v12  ;;  %456 = vst [vmem:[%s2122_s12 + $0x68] sm:$0xff] %v455_v13  ;;  %v459_v15 = vld [vmem:[%s2117_s11 + $0xf0] sm:$0xff] }
  0x21   : > { %458 = vst [vmem:[%s2122_s12 + $0x70] sm:$0xff] %v457_v14  ;;  %v461_v16 = vld [vmem:[%s2117_s11 + $0x100] sm:$0xff]  ;;  %v463_v17 = vld [vmem:[%s2117_s11 + $0x110] sm:$0xff]  ;;  %460 = vst [vmem:[%s2122_s12 + $0x78] sm:$0xff] %v459_v15 }
  0x22   : > { %462 = vst [vmem:[%s2122_s12 + $0x80] sm:$0xff] %v461_v16  ;;  %464 = vst [vmem:[%s2122_s12 + $0x88] sm:$0xff] %v463_v17  ;;  %v465_v18 = vld [vmem:[%s2117_s11 + $0x120] sm:$0xff]  ;;  %v467_v19 = vld [vmem:[%s2117_s11 + $0x130] sm:$0xff] }
  0x23   : > { %v469_v20 = vld [vmem:[%s2117_s11 + $0x140] sm:$0xff]  ;;  %466 = vst [vmem:[%s2122_s12 + $0x90] sm:$0xff] %v465_v18  ;;  %468 = vst [vmem:[%s2122_s12 + $0x98] sm:$0xff] %v467_v19  ;;  %v471_v21 = vld [vmem:[%s2117_s11 + $0x150] sm:$0xff] }
  0x24   : > { %470 = vst [vmem:[%s2122_s12 + $0xa0] sm:$0xff] %v469_v20  ;;  %v473_v22 = vld [vmem:[%s2117_s11 + $0x160] sm:$0xff]  ;;  %v475_v23 = vld [vmem:[%s2117_s11 + $0x170] sm:$0xff]  ;;  %472 = vst [vmem:[%s2122_s12 + $0xa8] sm:$0xff] %v471_v21 }
  0x25   : > { %474 = vst [vmem:[%s2122_s12 + $0xb0] sm:$0xff] %v473_v22  ;;  %476 = vst [vmem:[%s2122_s12 + $0xb8] sm:$0xff] %v475_v23  ;;  %v477_v24 = vld [vmem:[%s2117_s11 + $0x180] sm:$0xff]  ;;  %v479_v25 = vld [vmem:[%s2117_s11 + $0x190] sm:$0xff] }
  0x26   : > { %v481_v26 = vld [vmem:[%s2117_s11 + $0x1a0] sm:$0xff]  ;;  %478 = vst [vmem:[%s2122_s12 + $0xc0] sm:$0xff] %v477_v24  ;;  %480 = vst [vmem:[%s2122_s12 + $0xc8] sm:$0xff] %v479_v25  ;;  %v483_v27 = vld [vmem:[%s2117_s11 + $0x1b0] sm:$0xff] }
  0x27   : > { %482 = vst [vmem:[%s2122_s12 + $0xd0] sm:$0xff] %v481_v26  ;;  %v485_v28 = vld [vmem:[%s2117_s11 + $0x1c0] sm:$0xff]  ;;  %v487_v29 = vld [vmem:[%s2117_s11 + $0x1d0] sm:$0xff]  ;;  %484 = vst [vmem:[%s2122_s12 + $0xd8] sm:$0xff] %v483_v27 }
  0x28   : > { %486 = vst [vmem:[%s2122_s12 + $0xe0] sm:$0xff] %v485_v28  ;;  %488 = vst [vmem:[%s2122_s12 + $0xe8] sm:$0xff] %v487_v29  ;;  %v489_v30 = vld [vmem:[%s2117_s11 + $0x1e0] sm:$0xff]  ;;  %v491_v31 = vld [vmem:[%s2117_s11 + $0x1f0] sm:$0xff] }
  0x29   : > { %v493_v32 = vld [vmem:[%s2117_s11 + $0x200] sm:$0xff]  ;;  %490 = vst [vmem:[%s2122_s12 + $0xf0] sm:$0xff] %v489_v30  ;;  %492 = vst [vmem:[%s2122_s12 + $0xf8] sm:$0xff] %v491_v31  ;;  %v495_v33 = vld [vmem:[%s2117_s11 + $0x210] sm:$0xff] }
  0x2a   : > { %494 = vst [vmem:[%s2122_s12 + $0x100] sm:$0xff] %v493_v32  ;;  %v497_v34 = vld [vmem:[%s2117_s11 + $0x220] sm:$0xff]  ;;  %v499_v35 = vld [vmem:[%s2117_s11 + $0x230] sm:$0xff]  ;;  %496 = vst [vmem:[%s2122_s12 + $0x108] sm:$0xff] %v495_v33 }
  0x2b   : > { %498 = vst [vmem:[%s2122_s12 + $0x110] sm:$0xff] %v497_v34  ;;  %500 = vst [vmem:[%s2122_s12 + $0x118] sm:$0xff] %v499_v35  ;;  %v501_v36 = vld [vmem:[%s2117_s11 + $0x240] sm:$0xff]  ;;  %v503_v37 = vld [vmem:[%s2117_s11 + $0x250] sm:$0xff] }
  0x2c   : > { %v505_v38 = vld [vmem:[%s2117_s11 + $0x260] sm:$0xff]  ;;  %502 = vst [vmem:[%s2122_s12 + $0x120] sm:$0xff] %v501_v36  ;;  %504 = vst [vmem:[%s2122_s12 + $0x128] sm:$0xff] %v503_v37  ;;  %v507_v39 = vld [vmem:[%s2117_s11 + $0x270] sm:$0xff] }
  0x2d   : > { %506 = vst [vmem:[%s2122_s12 + $0x130] sm:$0xff] %v505_v38  ;;  %v509_v40 = vld [vmem:[%s2117_s11 + $0x280] sm:$0xff]  ;;  %v511_v41 = vld [vmem:[%s2117_s11 + $0x290] sm:$0xff]  ;;  %508 = vst [vmem:[%s2122_s12 + $0x138] sm:$0xff] %v507_v39 }
  0x2e   : > { %510 = vst [vmem:[%s2122_s12 + $0x140] sm:$0xff] %v509_v40  ;;  %512 = vst [vmem:[%s2122_s12 + $0x148] sm:$0xff] %v511_v41  ;;  %v513_v42 = vld [vmem:[%s2117_s11 + $0x2a0] sm:$0xff]  ;;  %v515_v43 = vld [vmem:[%s2117_s11 + $0x2b0] sm:$0xff] }
  0x2f   : > { %v517_v44 = vld [vmem:[%s2117_s11 + $0x2c0] sm:$0xff]  ;;  %514 = vst [vmem:[%s2122_s12 + $0x150] sm:$0xff] %v513_v42  ;;  %516 = vst [vmem:[%s2122_s12 + $0x158] sm:$0xff] %v515_v43  ;;  %v519_v45 = vld [vmem:[%s2117_s11 + $0x2d0] sm:$0xff] }
  0x30   : > { %518 = vst [vmem:[%s2122_s12 + $0x160] sm:$0xff] %v517_v44  ;;  %v521_v46 = vld [vmem:[%s2117_s11 + $0x2e0] sm:$0xff]  ;;  %v523_v47 = vld [vmem:[%s2117_s11 + $0x2f0] sm:$0xff]  ;;  %520 = vst [vmem:[%s2122_s12 + $0x168] sm:$0xff] %v519_v45 }
  0x31   : > { %522 = vst [vmem:[%s2122_s12 + $0x170] sm:$0xff] %v521_v46  ;;  %524 = vst [vmem:[%s2122_s12 + $0x178] sm:$0xff] %v523_v47  ;;  %v525_v48 = vld [vmem:[%s2117_s11 + $0x300] sm:$0xff]  ;;  %v527_v49 = vld [vmem:[%s2117_s11 + $0x310] sm:$0xff] }
  0x32   : > { %v529_v50 = vld [vmem:[%s2117_s11 + $0x320] sm:$0xff]  ;;  %526 = vst [vmem:[%s2122_s12 + $0x180] sm:$0xff] %v525_v48  ;;  %528 = vst [vmem:[%s2122_s12 + $0x188] sm:$0xff] %v527_v49  ;;  %v531_v51 = vld [vmem:[%s2117_s11 + $0x330] sm:$0xff] }
  0x33   : > { %530 = vst [vmem:[%s2122_s12 + $0x190] sm:$0xff] %v529_v50  ;;  %v533_v52 = vld [vmem:[%s2117_s11 + $0x340] sm:$0xff]  ;;  %v535_v53 = vld [vmem:[%s2117_s11 + $0x350] sm:$0xff]  ;;  %532 = vst [vmem:[%s2122_s12 + $0x198] sm:$0xff] %v531_v51 }
  0x34   : > { %534 = vst [vmem:[%s2122_s12 + $0x1a0] sm:$0xff] %v533_v52  ;;  %536 = vst [vmem:[%s2122_s12 + $0x1a8] sm:$0xff] %v535_v53  ;;  %v537_v54 = vld [vmem:[%s2117_s11 + $0x360] sm:$0xff]  ;;  %v539_v55 = vld [vmem:[%s2117_s11 + $0x370] sm:$0xff] }
  0x35   : > { %v541_v56 = vld [vmem:[%s2117_s11 + $0x380] sm:$0xff]  ;;  %538 = vst [vmem:[%s2122_s12 + $0x1b0] sm:$0xff] %v537_v54  ;;  %540 = vst [vmem:[%s2122_s12 + $0x1b8] sm:$0xff] %v539_v55  ;;  %v543_v57 = vld [vmem:[%s2117_s11 + $0x390] sm:$0xff] }
  0x36   : > { %542 = vst [vmem:[%s2122_s12 + $0x1c0] sm:$0xff] %v541_v56  ;;  %v545_v58 = vld [vmem:[%s2117_s11 + $0x3a0] sm:$0xff]  ;;  %v547_v59 = vld [vmem:[%s2117_s11 + $0x3b0] sm:$0xff]  ;;  %544 = vst [vmem:[%s2122_s12 + $0x1c8] sm:$0xff] %v543_v57 }
  0x37   : > { %546 = vst [vmem:[%s2122_s12 + $0x1d0] sm:$0xff] %v545_v58  ;;  %548 = vst [vmem:[%s2122_s12 + $0x1d8] sm:$0xff] %v547_v59  ;;  %v549_v60 = vld [vmem:[%s2117_s11 + $0x3c0] sm:$0xff]  ;;  %v551_v61 = vld [vmem:[%s2117_s11 + $0x3d0] sm:$0xff] }
  0x38   : > { %v553_v62 = vld [vmem:[%s2117_s11 + $0x3e0] sm:$0xff]  ;;  %550 = vst [vmem:[%s2122_s12 + $0x1e0] sm:$0xff] %v549_v60  ;;  %552 = vst [vmem:[%s2122_s12 + $0x1e8] sm:$0xff] %v551_v61  ;;  %v555_v63 = vld [vmem:[%s2117_s11 + $0x3f0] sm:$0xff] }
  0x39   : > { %554 = vst [vmem:[%s2122_s12 + $0x1f0] sm:$0xff] %v553_v62  ;;  %v557_v0 = vld [vmem:[%s2117_s11 + $0x400] sm:$0xff]  ;;  %v559_v1 = vld [vmem:[%s2117_s11 + $0x410] sm:$0xff]  ;;  %556 = vst [vmem:[%s2122_s12 + $0x1f8] sm:$0xff] %v555_v63 }
  0x3a   : > { %558 = vst [vmem:[%s2122_s12 + $0x200] sm:$0xff] %v557_v0  ;;  %560 = vst [vmem:[%s2122_s12 + $0x208] sm:$0xff] %v559_v1  ;;  %v561_v2 = vld [vmem:[%s2117_s11 + $0x420] sm:$0xff]  ;;  %v563_v3 = vld [vmem:[%s2117_s11 + $0x430] sm:$0xff] }
  0x3b   : > { %v565_v4 = vld [vmem:[%s2117_s11 + $0x440] sm:$0xff]  ;;  %562 = vst [vmem:[%s2122_s12 + $0x210] sm:$0xff] %v561_v2  ;;  %564 = vst [vmem:[%s2122_s12 + $0x218] sm:$0xff] %v563_v3  ;;  %v567_v5 = vld [vmem:[%s2117_s11 + $0x450] sm:$0xff] }
  0x3c   : > { %566 = vst [vmem:[%s2122_s12 + $0x220] sm:$0xff] %v565_v4  ;;  %v569_v6 = vld [vmem:[%s2117_s11 + $0x460] sm:$0xff]  ;;  %v571_v7 = vld [vmem:[%s2117_s11 + $0x470] sm:$0xff]  ;;  %568 = vst [vmem:[%s2122_s12 + $0x228] sm:$0xff] %v567_v5 }
  0x3d   : > { %570 = vst [vmem:[%s2122_s12 + $0x230] sm:$0xff] %v569_v6  ;;  %572 = vst [vmem:[%s2122_s12 + $0x238] sm:$0xff] %v571_v7  ;;  %v573_v8 = vld [vmem:[%s2117_s11 + $0x480] sm:$0xff]  ;;  %v575_v9 = vld [vmem:[%s2117_s11 + $0x490] sm:$0xff] }
  0x3e   : > { %v577_v10 = vld [vmem:[%s2117_s11 + $0x4a0] sm:$0xff]  ;;  %574 = vst [vmem:[%s2122_s12 + $0x240] sm:$0xff] %v573_v8  ;;  %576 = vst [vmem:[%s2122_s12 + $0x248] sm:$0xff] %v575_v9  ;;  %v579_v11 = vld [vmem:[%s2117_s11 + $0x4b0] sm:$0xff] }
  0x3f   : > { %578 = vst [vmem:[%s2122_s12 + $0x250] sm:$0xff] %v577_v10  ;;  %v581_v12 = vld [vmem:[%s2117_s11 + $0x4c0] sm:$0xff]  ;;  %v583_v13 = vld [vmem:[%s2117_s11 + $0x4d0] sm:$0xff]  ;;  %580 = vst [vmem:[%s2122_s12 + $0x258] sm:$0xff] %v579_v11 }
  0x40   : > { %582 = vst [vmem:[%s2122_s12 + $0x260] sm:$0xff] %v581_v12  ;;  %584 = vst [vmem:[%s2122_s12 + $0x268] sm:$0xff] %v583_v13  ;;  %v585_v14 = vld [vmem:[%s2117_s11 + $0x4e0] sm:$0xff]  ;;  %v587_v15 = vld [vmem:[%s2117_s11 + $0x4f0] sm:$0xff] }
  0x41   : > { %v589_v16 = vld [vmem:[%s2117_s11 + $0x500] sm:$0xff]  ;;  %586 = vst [vmem:[%s2122_s12 + $0x270] sm:$0xff] %v585_v14  ;;  %588 = vst [vmem:[%s2122_s12 + $0x278] sm:$0xff] %v587_v15  ;;  %v591_v17 = vld [vmem:[%s2117_s11 + $0x510] sm:$0xff] }
  0x42   : > { %590 = vst [vmem:[%s2122_s12 + $0x280] sm:$0xff] %v589_v16  ;;  %v593_v18 = vld [vmem:[%s2117_s11 + $0x520] sm:$0xff]  ;;  %v595_v19 = vld [vmem:[%s2117_s11 + $0x530] sm:$0xff]  ;;  %592 = vst [vmem:[%s2122_s12 + $0x288] sm:$0xff] %v591_v17 }
  0x43   : > { %594 = vst [vmem:[%s2122_s12 + $0x290] sm:$0xff] %v593_v18  ;;  %596 = vst [vmem:[%s2122_s12 + $0x298] sm:$0xff] %v595_v19  ;;  %v597_v20 = vld [vmem:[%s2117_s11 + $0x540] sm:$0xff]  ;;  %v599_v21 = vld [vmem:[%s2117_s11 + $0x550] sm:$0xff] }
  0x44   : > { %v601_v22 = vld [vmem:[%s2117_s11 + $0x560] sm:$0xff]  ;;  %598 = vst [vmem:[%s2122_s12 + $0x2a0] sm:$0xff] %v597_v20  ;;  %600 = vst [vmem:[%s2122_s12 + $0x2a8] sm:$0xff] %v599_v21  ;;  %v603_v23 = vld [vmem:[%s2117_s11 + $0x570] sm:$0xff] }
  0x45   : > { %602 = vst [vmem:[%s2122_s12 + $0x2b0] sm:$0xff] %v601_v22  ;;  %v605_v24 = vld [vmem:[%s2117_s11 + $0x580] sm:$0xff]  ;;  %v607_v25 = vld [vmem:[%s2117_s11 + $0x590] sm:$0xff]  ;;  %604 = vst [vmem:[%s2122_s12 + $0x2b8] sm:$0xff] %v603_v23 }
  0x46   : > { %606 = vst [vmem:[%s2122_s12 + $0x2c0] sm:$0xff] %v605_v24  ;;  %608 = vst [vmem:[%s2122_s12 + $0x2c8] sm:$0xff] %v607_v25  ;;  %v609_v26 = vld [vmem:[%s2117_s11 + $0x5a0] sm:$0xff]  ;;  %v611_v27 = vld [vmem:[%s2117_s11 + $0x5b0] sm:$0xff] }
  0x47   : > { %v613_v28 = vld [vmem:[%s2117_s11 + $0x5c0] sm:$0xff]  ;;  %610 = vst [vmem:[%s2122_s12 + $0x2d0] sm:$0xff] %v609_v26  ;;  %612 = vst [vmem:[%s2122_s12 + $0x2d8] sm:$0xff] %v611_v27  ;;  %v615_v29 = vld [vmem:[%s2117_s11 + $0x5d0] sm:$0xff] }
  0x48   : > { %614 = vst [vmem:[%s2122_s12 + $0x2e0] sm:$0xff] %v613_v28  ;;  %v617_v30 = vld [vmem:[%s2117_s11 + $0x5e0] sm:$0xff]  ;;  %v619_v31 = vld [vmem:[%s2117_s11 + $0x5f0] sm:$0xff]  ;;  %616 = vst [vmem:[%s2122_s12 + $0x2e8] sm:$0xff] %v615_v29 }
  0x49   : > { %618 = vst [vmem:[%s2122_s12 + $0x2f0] sm:$0xff] %v617_v30  ;;  %620 = vst [vmem:[%s2122_s12 + $0x2f8] sm:$0xff] %v619_v31 }
  0x4a PF: > { %p1652_p7 = scmp.ge.s32.totalorder %s2029_s21, 1  ;;  %p646_p8 = scmp.lt.s32.totalorder %s2029_s21, 13 }
  0x4c   : > { %p647_p9 = pnand %p1652_p7, %p646_p8 }
  0x4d   : > { %s653_s13 = sand.u32 (!%p647_p9), 1, %s2005_s15   ;;  %s704_s14 = smul.u32 (!%p647_p9), 6, %s2013_s17 }
  0x4e   : > { %650 = sbr.rel (%p647_p9) target bundleno = 457 (0x1c9), region = 70  ;;  %s1654_s25 = sshll.u32 (!%p647_p9), %s2017_s18, 1 }
  0x4f   : > { %s1767_s24 = smul.u32 (!%p647_p9), 768, %s653_s13  ;;  %p707_p10 = scmp.lt.s32.totalorder (!%p647_p9), %s704_s14, 35 }
  0x50   : > { %p717_p11 = scmp.lt.s32.totalorder (!%p647_p9), %s1654_s25, 3  ;;  %p1659_p12 = scmp.ne.s32.totalorder (!%p647_p9), %s2013_s17, 0 }
  0x51   : > { %s2340_s13 = scalar_lea.vmem (!%p647_p9), [#allocation3], %s1767_s24 }
  0x55   : > { %s2497_s14 = smov (!%p707_p10, %s704_s14), 35  ;;  %s2499_s25 = smov (!%p717_p11, %s1654_s25), 3 }
  0x56   : > { %s1653_s26 = sshll.u32 %s2497_s14, 2  ;;  %s719_s15 = scalar_lea.vmem %s2481_s2, %s2499_s25  ;;  %v2031_v32 = vmov (!%p1659_p12), 0.0  }
  0x57   : > { %s2323_s30 = scalar_lea.vmem %s2479_s0, %s1653_s26  ;;  %s1656_s7 = sshll.u32 %s2499_s25, 3  ;;  %745 = vst [vmem:[#allocation2] sm:$0xff] (!%p1659_p12), %v2031_v32  ;;  %746 = vst [vmem:[#allocation2 + $0x8] sm:$0xff] (!%p1659_p12), %v2031_v32 }
  0x58   : > { %s2333_s9 = scalar_lea.vmem %s2482_s3, %s1656_s7  ;;  %s2338_s12 = scalar_lea.vmem %s2483_s4, %s1656_s7 }
  0x59   : > { %744 = sbr.rel (%p1659_p12) target bundleno = 96 (0x60), region = 78 }
  0x60 PF: > { %v1825_v33 = vld [vmem:[%s2340_s13 + $0x4] ss:$8 sps:$4 sm:$0xff]   ;;  %v1829_v35 = vld [vmem:[%s2340_s13] ss:$8 sps:$4 sm:$0xff]   ;;  %v1831_v37 = vld [vmem:[%s2340_s13 + $0x14] ss:$8 sps:$4 sm:$0xff]  }
  0x61   : > { %v1827_v34 = vld [vmem:[%s2340_s13 + $0x104] ss:$8 sps:$4 sm:$0xff]   ;;  %1349 = vmatprep.subr.bf16.mxu0 %v1825_v33  ;;  %v1830_v36 = vld [vmem:[%s2340_s13 + $0x100] ss:$8 sps:$4 sm:$0xff]   ;;  %v1833_v38 = vld [vmem:[%s2340_s13 + $0x114] ss:$8 sps:$4 sm:$0xff]  }
  0x62   : > { %1390 = vmatprep.subr.bf16.mxu1 %v1827_v34  ;;  %1350 = vmatpush1.bf16.msra.mxu0 %v1829_v35  ;;  %v1835_v39 = vld [vmem:[%s2340_s13 + $0x10] ss:$8 sps:$4 sm:$0xff]   ;;  %v1837_v41 = vld [vmem:[%s2340_s13 + $0x24] ss:$8 sps:$4 sm:$0xff]   ;;  %v1841_v43 = vld [vmem:[%s2340_s13 + $0x20] ss:$8 sps:$4 sm:$0xff]  }
  0x63   : > { %1391 = vmatpush1.bf16.msra.mxu1 %v1830_v36  ;;  %1351 = vmatprep.subr.bf16.mxu0 %v1831_v37  ;;  %v1836_v40 = vld [vmem:[%s2340_s13 + $0x110] ss:$8 sps:$4 sm:$0xff]   ;;  %v1839_v42 = vld [vmem:[%s2340_s13 + $0x124] ss:$8 sps:$4 sm:$0xff]   ;;  %v1842_v44 = vld [vmem:[%s2340_s13 + $0x120] ss:$8 sps:$4 sm:$0xff]  }
  0x64   : > { %1392 = vmatprep.subr.bf16.mxu1 %v1833_v38  ;;  %v1843_v45 = vld [vmem:[%s2340_s13 + $0x34] ss:$8 sps:$4 sm:$0xff]   ;;  %v1847_v47 = vld [vmem:[%s2340_s13 + $0x30] ss:$8 sps:$4 sm:$0xff]   ;;  %v1849_v49 = vld [vmem:[%s2340_s13 + $0x44] ss:$8 sps:$4 sm:$0xff]  }
  0x65   : > { %v1845_v46 = vld [vmem:[%s2340_s13 + $0x134] ss:$8 sps:$4 sm:$0xff]   ;;  %v1848_v48 = vld [vmem:[%s2340_s13 + $0x130] ss:$8 sps:$4 sm:$0xff]   ;;  %v1851_v50 = vld [vmem:[%s2340_s13 + $0x144] ss:$8 sps:$4 sm:$0xff]  }
  0x66   : > { %1352 = vmatpush1.bf16.msra.mxu0 %v1835_v39  ;;  %v1853_v51 = vld [vmem:[%s2340_s13 + $0x40] ss:$8 sps:$4 sm:$0xff]   ;;  %v1855_v53 = vld [vmem:[%s2340_s13 + $0x54] ss:$8 sps:$4 sm:$0xff]   ;;  %v1859_v55 = vld [vmem:[%s2340_s13 + $0x50] ss:$8 sps:$4 sm:$0xff]  }
  0x67   : > { %1393 = vmatpush1.bf16.msra.mxu1 %v1836_v40  ;;  %1353 = vmatprep.subr.bf16.mxu0 %v1837_v41  ;;  %v1854_v52 = vld [vmem:[%s2340_s13 + $0x140] ss:$8 sps:$4 sm:$0xff]   ;;  %v1857_v54 = vld [vmem:[%s2340_s13 + $0x154] ss:$8 sps:$4 sm:$0xff]   ;;  %v1860_v56 = vld [vmem:[%s2340_s13 + $0x150] ss:$8 sps:$4 sm:$0xff]  }
  0x68   : > { %1394 = vmatprep.subr.bf16.mxu1 %v1839_v42  ;;  %v1861_v57 = vld [vmem:[%s2340_s13 + $0x64] ss:$8 sps:$4 sm:$0xff]   ;;  %v1865_v59 = vld [vmem:[%s2340_s13 + $0x60] ss:$8 sps:$4 sm:$0xff]   ;;  %v1867_v61 = vld [vmem:[%s2340_s13 + $0x74] ss:$8 sps:$4 sm:$0xff]  }
  0x69   : > { %v1863_v58 = vld [vmem:[%s2340_s13 + $0x164] ss:$8 sps:$4 sm:$0xff]   ;;  %v1866_v60 = vld [vmem:[%s2340_s13 + $0x160] ss:$8 sps:$4 sm:$0xff]   ;;  %v1869_v62 = vld [vmem:[%s2340_s13 + $0x174] ss:$8 sps:$4 sm:$0xff]  }
  0x6a   : > { %1354 = vmatpush1.bf16.msra.mxu0 %v1841_v43  ;;  %v1871_v63 = vld [vmem:[%s2340_s13 + $0x70] ss:$8 sps:$4 sm:$0xff]   ;;  %v1873_v1 = vld [vmem:[%s2340_s13 + $0x84] ss:$8 sps:$4 sm:$0xff]   ;;  %v1877_v3 = vld [vmem:[%s2340_s13 + $0x80] ss:$8 sps:$4 sm:$0xff]  }
  0x6b   : > { %1395 = vmatpush1.bf16.msra.mxu1 %v1842_v44  ;;  %1355 = vmatprep.subr.bf16.mxu0 %v1843_v45  ;;  %v1872_v0 = vld [vmem:[%s2340_s13 + $0x170] ss:$8 sps:$4 sm:$0xff]   ;;  %v1875_v2 = vld [vmem:[%s2340_s13 + $0x184] ss:$8 sps:$4 sm:$0xff]   ;;  %v1878_v4 = vld [vmem:[%s2340_s13 + $0x180] ss:$8 sps:$4 sm:$0xff]  }
  0x6c   : > { %1396 = vmatprep.subr.bf16.mxu1 %v1845_v46  ;;  %v1879_v5 = vld [vmem:[%s2340_s13 + $0x94] ss:$8 sps:$4 sm:$0xff]   ;;  %v1883_v7 = vld [vmem:[%s2340_s13 + $0x90] ss:$8 sps:$4 sm:$0xff]   ;;  %v1885_v9 = vld [vmem:[%s2340_s13 + $0xa4] ss:$8 sps:$4 sm:$0xff]  }
  0x6d   : > { %v1881_v6 = vld [vmem:[%s2340_s13 + $0x194] ss:$8 sps:$4 sm:$0xff]   ;;  %v1884_v8 = vld [vmem:[%s2340_s13 + $0x190] ss:$8 sps:$4 sm:$0xff]   ;;  %v1887_v10 = vld [vmem:[%s2340_s13 + $0x1a4] ss:$8 sps:$4 sm:$0xff]  }
  0x6e   : > { %1356 = vmatpush1.bf16.msra.mxu0 %v1847_v47  ;;  %v1889_v11 = vld [vmem:[%s2340_s13 + $0xa0] ss:$8 sps:$4 sm:$0xff]   ;;  %v1891_v13 = vld [vmem:[%s2340_s13 + $0xb4] ss:$8 sps:$4 sm:$0xff]   ;;  %v1895_v18 = vld [vmem:[%s2340_s13 + $0xb0] ss:$8 sps:$4 sm:$0xff]  }
  0x6f   : > { %1397 = vmatpush1.bf16.msra.mxu1 %v1848_v48  ;;  %1357 = vmatprep.subr.bf16.mxu0 %v1849_v49  ;;  %v1890_v12 = vld [vmem:[%s2340_s13 + $0x1a0] ss:$8 sps:$4 sm:$0xff]   ;;  %v1893_v14 = vld [vmem:[%s2340_s13 + $0x1b4] ss:$8 sps:$4 sm:$0xff]   ;;  %v1896_v19 = vld [vmem:[%s2340_s13 + $0x1b0] ss:$8 sps:$4 sm:$0xff]  }
  0x70   : > { %1398 = vmatprep.subr.bf16.mxu1 %v1851_v50  ;;  %v749_v15 = vld [vmem:[%s2323_s30] sm:$0xff]  ;;  %v750_v17 = vld [vmem:[%s2323_s30 + $0x8] sm:$0xff]  ;;  %v1897_v21 = vld [vmem:[%s2340_s13 + $0xc4] ss:$8 sps:$4 sm:$0xff]   ;;  %p1762_p13 = scmp.ne.s32.totalorder %s2013_s17, 5 }
  0x71   : > { %v1661_v16 = vcombine.high %v749_v15, %v749_v15  ;;  %v1663_v20 = vcombine.high %v750_v17, %v750_v17  ;;  %v1899_v22 = vld [vmem:[%s2340_s13 + $0x1c4] ss:$8 sps:$4 sm:$0xff]   ;;  %v1901_v23 = vld [vmem:[%s2340_s13 + $0xc0] ss:$8 sps:$4 sm:$0xff]   ;;  %v1903_v25 = vld [vmem:[%s2340_s13 + $0xd4] ss:$8 sps:$4 sm:$0xff]   ;;  %v1660_v38 = vcombine.low %v749_v15, %v749_v15  ;;  %v1662_v39 = vcombine.low %v750_v17, %v750_v17 }
  0x72   : > { %1358 = vmatpush1.bf16.msra.mxu0 %v1853_v51  ;;  %v1902_v24 = vld [vmem:[%s2340_s13 + $0x1c0] ss:$8 sps:$4 sm:$0xff]   ;;  %v1905_v26 = vld [vmem:[%s2340_s13 + $0x1d4] ss:$8 sps:$4 sm:$0xff]   ;;  %v1907_v27 = vld [vmem:[%s2340_s13 + $0xd0] ss:$8 sps:$4 sm:$0xff]  }
  0x73   : > { %1399 = vmatpush1.bf16.msra.mxu1 %v1854_v52  ;;  %1359 = vmatprep.subr.bf16.mxu0 %v1855_v53  ;;  %v1908_v28 = vld [vmem:[%s2340_s13 + $0x1d0] ss:$8 sps:$4 sm:$0xff]   ;;  %v1909_v29 = vld [vmem:[%s2340_s13 + $0xe4] ss:$8 sps:$4 sm:$0xff]   ;;  %v1913_v31 = vld [vmem:[%s2340_s13 + $0xe0] ss:$8 sps:$4 sm:$0xff]  }
  0x74   : > { %1400 = vmatprep.subr.bf16.mxu1 %v1857_v54  ;;  %1381 = vmatprep.mubr.bf16.mxu0 %v1661_v16  ;;  %v1911_v30 = vld [vmem:[%s2340_s13 + $0x1e4] ss:$8 sps:$4 sm:$0xff]   ;;  %v1914_v32 = vld [vmem:[%s2340_s13 + $0x1e0] ss:$8 sps:$4 sm:$0xff]   ;;  %v1915_v33 = vld [vmem:[%s2340_s13 + $0xf4] ss:$8 sps:$4 sm:$0xff]  }
  0x75   : > { %1422 = vmatprep.mubr.bf16.mxu1 %v1663_v20  ;;  %v1917_v34 = vld [vmem:[%s2340_s13 + $0x1f4] ss:$8 sps:$4 sm:$0xff]   ;;  %v1919_v35 = vld [vmem:[%s2340_s13 + $0xf0] ss:$8 sps:$4 sm:$0xff]   ;;  %v1927_v37 = vld [vmem:[%s2340_s13 + $0x204] ss:$8 sps:$4 sm:$0xff]  }
  0x76   : > { %1360 = vmatpush1.bf16.msra.mxu0 %v1859_v55  ;;  %v1920_v36 = vld [vmem:[%s2340_s13 + $0x1f0] ss:$8 sps:$4 sm:$0xff]   ;;  %v1925_v40 = vld [vmem:[%s2340_s13 + $0x200] ss:$8 sps:$4 sm:$0xff]   ;;  %v1930_v42 = vld [vmem:[%s2340_s13 + $0x214] ss:$8 sps:$4 sm:$0xff]  }
  0x77   : > { %1401 = vmatpush1.bf16.msra.mxu1 %v1860_v56  ;;  %1361 = vmatprep.subr.bf16.mxu0 %v1861_v57  ;;  %v2412_v41 = vld [vmem:[%s2323_s30 + $0x10] sm:$0xff]  ;;  %v1928_v44 = vld [vmem:[%s2340_s13 + $0x210] ss:$8 sps:$4 sm:$0xff]   ;;  %v1936_v47 = vld [vmem:[%s2340_s13 + $0x234] ss:$8 sps:$4 sm:$0xff]  }
  0x78   : > { %1402 = vmatprep.subr.bf16.mxu1 %v1863_v58  ;;  %v1665_v43 = vcombine.high %v2412_v41, %v2412_v41  ;;  %v1933_v45 = vld [vmem:[%s2340_s13 + $0x224] ss:$8 sps:$4 sm:$0xff]   ;;  %v1931_v46 = vld [vmem:[%s2340_s13 + $0x220] ss:$8 sps:$4 sm:$0xff]   ;;  %v1934_v48 = vld [vmem:[%s2340_s13 + $0x230] ss:$8 sps:$4 sm:$0xff]  }
  0x79   : > { %v1939_v49 = vld [vmem:[%s2340_s13 + $0x244] ss:$8 sps:$4 sm:$0xff]   ;;  %v1937_v50 = vld [vmem:[%s2340_s13 + $0x240] ss:$8 sps:$4 sm:$0xff]   ;;  %v1942_v51 = vld [vmem:[%s2340_s13 + $0x254] ss:$8 sps:$4 sm:$0xff]  }
  0x7a   : > { %1362 = vmatpush1.bf16.msra.mxu0 %v1865_v59  ;;  %v1940_v52 = vld [vmem:[%s2340_s13 + $0x250] ss:$8 sps:$4 sm:$0xff]   ;;  %v1945_v53 = vld [vmem:[%s2340_s13 + $0x264] ss:$8 sps:$4 sm:$0xff]   ;;  %v1943_v54 = vld [vmem:[%s2340_s13 + $0x260] ss:$8 sps:$4 sm:$0xff]  }
  0x7b   : > { %1403 = vmatpush1.bf16.msra.mxu1 %v1866_v60  ;;  %1363 = vmatprep.subr.bf16.mxu0 %v1867_v61  ;;  %v1948_v55 = vld [vmem:[%s2340_s13 + $0x274] ss:$8 sps:$4 sm:$0xff]   ;;  %v1946_v56 = vld [vmem:[%s2340_s13 + $0x270] ss:$8 sps:$4 sm:$0xff]   ;;  %v1951_v57 = vld [vmem:[%s2340_s13 + $0x284] ss:$8 sps:$4 sm:$0xff]  }
  0x7c   : > { %1404 = vmatprep.subr.bf16.mxu1 %v1869_v62  ;;  %v1949_v58 = vld [vmem:[%s2340_s13 + $0x280] ss:$8 sps:$4 sm:$0xff]   ;;  %v1954_v59 = vld [vmem:[%s2340_s13 + $0x294] ss:$8 sps:$4 sm:$0xff]   ;;  %v1952_v60 = vld [vmem:[%s2340_s13 + $0x290] ss:$8 sps:$4 sm:$0xff]  }
  0x7d   : > { %v1957_v61 = vld [vmem:[%s2340_s13 + $0x2a4] ss:$8 sps:$4 sm:$0xff]   ;;  %v1955_v62 = vld [vmem:[%s2340_s13 + $0x2a0] ss:$8 sps:$4 sm:$0xff]   ;;  %v747_v20 = vld [vmem:[#allocation2] sm:$0xff] }
  0x7e   : > { %1364 = vmatpush1.bf16.msra.mxu0 %v1871_v63  ;;  %v1960_v63 = vld [vmem:[%s2340_s13 + $0x2b4] ss:$8 sps:$4 sm:$0xff]  }
  0x7f   : > { %1405 = vmatpush1.bf16.msra.mxu1 %v1872_v0  ;;  %1365 = vmatprep.subr.bf16.mxu0 %v1873_v1  ;;  %v1958_v0 = vld [vmem:[%s2340_s13 + $0x2b0] ss:$8 sps:$4 sm:$0xff]   ;;  %v1963_v1 = vld [vmem:[%s2340_s13 + $0x2c4] ss:$8 sps:$4 sm:$0xff]  }
  0x80   : > { %1406 = vmatprep.subr.bf16.mxu1 %v1875_v2  ;;  %v1961_v2 = vld [vmem:[%s2340_s13 + $0x2c0] ss:$8 sps:$4 sm:$0xff]  }
  0x82   : > { %1366 = vmatpush1.bf16.msra.mxu0 %v1877_v3  ;;  %v1966_v3 = vld [vmem:[%s2340_s13 + $0x2d4] ss:$8 sps:$4 sm:$0xff]  }
  0x83   : > { %1407 = vmatpush1.bf16.msra.mxu1 %v1878_v4  ;;  %1367 = vmatprep.subr.bf16.mxu0 %v1879_v5  ;;  %v1964_v4 = vld [vmem:[%s2340_s13 + $0x2d0] ss:$8 sps:$4 sm:$0xff]   ;;  %v1969_v5 = vld [vmem:[%s2340_s13 + $0x2e4] ss:$8 sps:$4 sm:$0xff]  }
  0x84   : > { %1408 = vmatprep.subr.bf16.mxu1 %v1881_v6  ;;  %v1967_v6 = vld [vmem:[%s2340_s13 + $0x2e0] ss:$8 sps:$4 sm:$0xff]  }
  0x86   : > { %1368 = vmatpush1.bf16.msra.mxu0 %v1883_v7  ;;  %v1972_v7 = vld [vmem:[%s2340_s13 + $0x2f4] ss:$8 sps:$4 sm:$0xff]  }
  0x87   : > { %1409 = vmatpush1.bf16.msra.mxu1 %v1884_v8  ;;  %1369 = vmatprep.subr.bf16.mxu0 %v1885_v9  ;;  %v1970_v8 = vld [vmem:[%s2340_s13 + $0x2f0] ss:$8 sps:$4 sm:$0xff]   ;;  %v1664_v9 = vcombine.low %v2412_v41, %v2412_v41 }
  0x88   : > { %1410 = vmatprep.subr.bf16.mxu1 %v1887_v10 }
  0x8a   : > { %1370 = vmatpush1.bf16.msra.mxu0 %v1889_v11 }
  0x8b   : > { %1411 = vmatpush1.bf16.msra.mxu1 %v1890_v12  ;;  %1371 = vmatprep.subr.bf16.mxu0 %v1891_v13 }
  0x8c   : > { %1412 = vmatprep.subr.bf16.mxu1 %v1893_v14 }
  0x8e   : > { %1372 = vmatpush1.bf16.msra.mxu0 %v1895_v18 }
  0x8f   : > { %1413 = vmatpush1.bf16.msra.mxu1 %v1896_v19  ;;  %1373 = vmatprep.subr.bf16.mxu0 %v1897_v21 }
  0x90   : > { %1414 = vmatprep.subr.bf16.mxu1 %v1899_v22 }
  0x92   : > { %1374 = vmatpush1.bf16.msra.mxu0 %v1901_v23  ;;  %v748_v23 = vld [vmem:[#allocation2 + $0x8] sm:$0xff] }
  0x93   : > { %1415 = vmatpush1.bf16.msra.mxu1 %v1902_v24  ;;  %1375 = vmatprep.subr.bf16.mxu0 %v1903_v25 }
  0x94   : > { %1416 = vmatprep.subr.bf16.mxu1 %v1905_v26 }
  0x96   : > { %1376 = vmatpush1.bf16.msra.mxu0 %v1907_v27 }
  0x97   : > { %1417 = vmatpush1.bf16.msra.mxu1 %v1908_v28  ;;  %1377 = vmatprep.subr.bf16.mxu0 %v1909_v29 }
  0x98   : > { %1418 = vmatprep.subr.bf16.mxu1 %v1911_v30  ;;  %v1484_v30 = vlaneseq (!%p1762_p13) }
  0x9a   : > { %1378 = vmatpush1.bf16.msra.mxu0 %v1913_v31  ;;  %v1485_v31 = vshrl.u32 (!%p1762_p13), %v1484_v30, 7 }
  0x9b   : > { %1419 = vmatpush1.bf16.msra.mxu1 %v1914_v32  ;;  %1379 = vmatprep.subr.bf16.mxu0 %v1915_v33  ;;  %v1482_v32 = vld [vmem:[%s719_s15] sm:$0x3] (!%p1762_p13) }
  0x9c   : > { %1420 = vmatprep.subr.bf16.mxu1 %v1917_v34  ;;  %v1486_v33 = vsub.s32 (!%p1762_p13), 0, %v1485_v31  ;;  %v1490_v34 = vsub.s32 (!%p1762_p13), 1, %v1485_v31 }
  0x9e   : > { %1380 = vmatpush1.bf16.msra.mxu0 %v1919_v35 }
  0x9f   : > { %1421 = vmatpush1.bf16.msra.mxu1 %v1920_v36  ;;  %1431 = vmatprep.subr.bf16.mxu0 %v1927_v37  ;;  %v1487_v37 = vrot.slane (!%p1762_p13), %v1482_v32, %v1486_v33 }
  0xa1   : > { %1382 = vmatmul.mubr.bf16.vlgmr.msra.gmra.mrb[0].mxu0 %v1660_v38  ;;  %v1491_v38 = vrot.slane (!%p1762_p13), %v1482_v32, %v1490_v34 }
  0xa2   : > { %1423 = vmatmul.mubr.bf16.vlgmr.msra.gmra.mrb[0].mxu1 %v1662_v39  ;;  %1432 = vmatpush1.bf16.msra.mxu0 %v1925_v40  ;;  %v1496_v39 = vld [vmem:[%s2333_s9] sm:$0xff] (!%p1762_p13)  ;;  %v1497_v40 = vld [vmem:[%s2333_s9 + $0x8] sm:$0xff] (!%p1762_p13) }
  0xa3   : > { %1463 = vmatprep.mubr.bf16.mxu0 %v1665_v43  ;;  %1433 = vmatprep.subr.bf16.mxu0 %v1930_v42 }
  0xa6   : > { %1434 = vmatpush1.bf16.msra.mxu0 %v1928_v44 }
  0xa7   : > { %1435 = vmatprep.subr.bf16.mxu0 %v1933_v45 }
  0xaa   : > { %1436 = vmatpush1.bf16.msra.mxu0 %v1931_v46 }
  0xab   : > { %1437 = vmatprep.subr.bf16.mxu0 %v1936_v47 }
  0xae   : > { %1438 = vmatpush1.bf16.msra.mxu0 %v1934_v48 }
  0xaf   : > { %1439 = vmatprep.subr.bf16.mxu0 %v1939_v49 }
  0xb2   : > { %1440 = vmatpush1.bf16.msra.mxu0 %v1937_v50 }
  0xb3   : > { %1441 = vmatprep.subr.bf16.mxu0 %v1942_v51 }
  0xb6   : > { %1442 = vmatpush1.bf16.msra.mxu0 %v1940_v52 }
  0xb7   : > { %1443 = vmatprep.subr.bf16.mxu0 %v1945_v53 }
  0xba   : > { %1444 = vmatpush1.bf16.msra.mxu0 %v1943_v54 }
  0xbb   : > { %1445 = vmatprep.subr.bf16.mxu0 %v1948_v55 }
  0xbe   : > { %1446 = vmatpush1.bf16.msra.mxu0 %v1946_v56 }
  0xbf   : > { %1447 = vmatprep.subr.bf16.mxu0 %v1951_v57 }
  0xc2   : > { %1448 = vmatpush1.bf16.msra.mxu0 %v1949_v58 }
  0xc3   : > { %1449 = vmatprep.subr.bf16.mxu0 %v1954_v59 }
  0xc6   : > { %1450 = vmatpush1.bf16.msra.mxu0 %v1952_v60 }
  0xc7   : > { %1451 = vmatprep.subr.bf16.mxu0 %v1957_v61 }
  0xca   : > { %1452 = vmatpush1.bf16.msra.mxu0 %v1955_v62 }
  0xcb   : > { %1453 = vmatprep.subr.bf16.mxu0 %v1960_v63 }
  0xce   : > { %1454 = vmatpush1.bf16.msra.mxu0 %v1958_v0 }
  0xcf   : > { %1455 = vmatprep.subr.bf16.mxu0 %v1963_v1 }
  0xd2   : > { %1456 = vmatpush1.bf16.msra.mxu0 %v1961_v2 }
  0xd3   : > { %1457 = vmatprep.subr.bf16.mxu0 %v1966_v3 }
  0xd6   : > { %1458 = vmatpush1.bf16.msra.mxu0 %v1964_v4 }
  0xd7   : > { %1459 = vmatprep.subr.bf16.mxu0 %v1969_v5 }
  0xda   : > { %1460 = vmatpush1.bf16.msra.mxu0 %v1967_v6 }
  0xdb   : > { %1461 = vmatprep.subr.bf16.mxu0 %v1972_v7 }
  0xde   : > { %1462 = vmatpush1.bf16.msra.mxu0 %v1970_v8 }
  0xe1   : > { %1464 = vmatmul.mubr.bf16.vlgmr.msra.gmra.mrb[4].mxu0 %v1664_v9 }
 0x174   : > { %v1383_v10 = vpop.f32.mrb[0].mxu0 }
 0x175   : > { %v1424_v11 = vpop.f32.mrb[0].mxu1  ;;  %v1385_v13 = vpop.f32.mrb[1].mxu0 }
 0x176   : > { %v1425_v12 = vadd.f32 %v1424_v11, %v1383_v10  ;;  %v1426_v14 = vpop.f32.mrb[1].mxu1  ;;  %v1387_v16 = vpop.f32.mrb[2].mxu0 }
 0x177   : > { %v1427_v15 = vadd.f32 %v1426_v14, %v1385_v13  ;;  %v1428_v17 = vpop.f32.mrb[2].mxu1  ;;  %v1388_v18 = vpop.f32.mrb[3].mxu0 }
 0x178   : > { %v1429_v19 = vpop.f32.mrb[3].mxu1 }
 0x1b4   : > { %v1465_v21 = vpop.f32.mrb[4].mxu0  ;;  %1479 = sbr.rel (%p1762_p13) target bundleno = 457 (0x1c9), region = 82 }
 0x1b5   : > { %v1466_v22 = vadd.f32 %v1465_v21, %v1425_v12  ;;  %v1467_v24 = vpop.f32.mrb[5].mxu0 }
 0x1b6   : > { %v1468_v25 = vadd.f32 %v1467_v24, %v1427_v15  ;;  %v1469_v26 = vpop.f32.mrb[6].mxu0 }
 0x1b7   : > { %v1472_v27 = vadd.f32 %v1466_v22, %v747_v20  ;;  %v1470_v28 = vpop.f32.mrb[7].mxu0 }
 0x1b8   : > { %v1473_v29 = vadd.f32 %v1468_v25, %v748_v23 }
 0x1b9   : > { %1474 = vst [vmem:[#allocation2] sm:$0xff] %v1472_v27 }
 0x1ba   : > { %1475 = vst [vmem:[#allocation2 + $0x8] sm:$0xff] %v1473_v29 }
 0x1c0   : > { %v1480_v35 = vld [vmem:[#allocation2] sm:$0xff] }
 0x1c1   : > { %v1481_v36 = vld [vmem:[#allocation2 + $0x8] sm:$0xff]  ;;  %v1494_v41 = vadd.f32 %v1487_v37, %v1480_v35 }
 0x1c2   : > { %v1495_v42 = vadd.f32 %v1491_v38, %v1481_v36 }
 0x1c3   : > { %v1498_v43 = vadd.f32 %v1496_v39, %v1494_v41 }
 0x1c4   : > { %v1499_v44 = vadd.f32 %v1497_v40, %v1495_v42 }
 0x1c5   : > { %v1500_v45 = vmax.f32 %v1498_v43, 0.0 }
 0x1c6   : > { %v1501_v46 = vmax.f32 %v1499_v44, 0.0 }
 0x1c7   : > { %1502 = vst [vmem:[%s2338_s12] sm:$0xff] %v1500_v45 }
 0x1c8   : > { %1503 = vst [vmem:[%s2338_s12 + $0x8] sm:$0xff] %v1501_v46 }
 0x1c9 PF: > { %s14_s21 = sadd.s32 1, %s2029_s21   ;;  %s2484_s15 = smov %s2009_s16 }
 0x1ca   : > { %p11_p0 = scmp.ge.s32.totalorder %s14_s21, 14   ;;  %s2485_s16 = smov %s2108_s28 }
 0x1cb   : > { %s2486_s17 = smov %s2021_s19  ;;  %s2487_s18 = smov %s2025_s20 }
 0x1cc   : > { %s2488_s19 = smov %s2491_s22  ;;  %s2489_s20 = smov %s2495_s23 }
 0x1cd   :  { %13 = sbr.rel (!%p11_p0) target bundleno = 4 (0x4), region = 126 }

// kernel: backbone_forward.41
= control target key start
LH: loop header
LB: loop body
LE: loop exit
PB: predicated region body
PF: predicated region fallthrough
CT: control target
= control target key end

     0   :  { %s1965_s12 = smov 0   ;;  %s1967_s13 = smov 0   ;;  %s2380_s0 = inlined_call_operand.vmem [shape: bf16[8,4608], index: 0, kind: input, shape index: {}]   ;;  %s2381_s1 = inlined_call_operand.vmem [shape: bf16[4608,512], index: 1, kind: input, shape index: {}]   ;;  %s2382_s2 = inlined_call_operand.vmem [shape: f32[1,512], index: 2, kind: input, shape index: {}]   ;;  %s2383_s3 = inlined_call_operand.vmem [shape: f32[8,512], index: 3, kind: output, shape index: {}]  }
   0x1   :  { %s1969_s14 = smov 0   ;;  %s1971_s15 = smov 0  }
   0x2   :  { %s1973_s16 = smov 0   ;;  %s1975_s17 = smov 0  }
   0x3   :  { %s1977_s18 = smov 0  }
   0x4 LB: > { %s25_s19 = sadd.s32 1, %s1934_s16  ;;  %s28_s20 = sadd.s32 1, %s1938_s17  ;;  %s1942_s18 = sphi %s1977_s18, %s13_s18   ;;  %s1938_s17 = sphi %s1975_s17, %s2389_s17   ;;  %s1934_s16 = sphi %s1973_s16, %s2388_s16   ;;  %s1930_s15 = sphi %s1971_s15, %s2387_s15   ;;  %s1926_s14 = sphi %s1969_s14, %s2386_s14   ;;  %s1922_s13 = sphi %s1967_s13, %s2385_s13   ;;  %s1918_s12 = sphi %s1965_s12, %s2384_s12  }
   0x5   : > { %p26_p0 = scmp.ge.s32.totalorder %s25_s19, 6  ;;  %p76_p1 = scmp.ne.s32.totalorder %s1922_s13, %s1918_s12 }
   0x6   : > { %p77_p2 = scmp.eq.s32.totalorder %s1942_s18, 0  ;;  %s69_s24 = sadd.s32 1, %s1922_s13 }
   0x7   : > { %s2391_s19 = smov (%p26_p0, %s25_s19), 0  ;;  %s2393_s20 = smov (!%p26_p0, %s28_s20), %s1938_s17 }
   0x8   : > { %p78_p3 = por %p77_p2, %p76_p1  ;;  %p30_p4 = scmp.ge.s32.totalorder %s2393_s20, 2 }
   0x9   : > { %s64_s21 = ssub.s32 %s1934_s16, %s2391_s19  ;;  %p1563_p6 = scmp.ge.s32.totalorder %s1942_s18, 12 }
   0xa   : > { %s2395_s20 = smov (%p30_p4, %s2393_s20), 0 }
   0xb   : > { %s65_s22 = ssub.s32 %s1938_s17, %s2395_s20  ;;  %156 = sbr.rel (%p1563_p6) target bundleno = 74 (0x4a), region = 16 }
   0xc   : > { %s66_s23 = sor.u32 %s65_s22, %s64_s21 }
   0xd   : > { %p67_p5 = scmp.eq.s32.totalorder %s66_s23, 0 }
   0xf   : > { %s2016_s25 = scalar_select %p67_p5, %s1922_s13, %s69_s24  }
  0x12   : > { %172 = sbr.rel (!%p78_p3) target bundleno = 74 (0x4a), region = 24  ;;  %s174_s26 = sand.u32 (%p78_p3), 1, %s1922_s13  }
  0x13   : > { %s1679_s27 = smul.u32 (%p78_p3), 768, %s174_s26  ;;  %s1564_s28 = sshll.u32 (%p78_p3), %s1938_s17, 1 }
  0x14   : > { %s1678_s29 = smul.u32 (%p78_p3), 384, %s1934_s16 }
  0x15   : > { %s2030_s8 = scalar_lea.vmem (%p78_p3), [#allocation3], %s1679_s27 }
  0x16   : > { %s180_s30 = sadd.s32 (%p78_p3), %s1678_s29, %s1564_s28 }
  0x17   : > { %s1566_s4 = sshll.u32 (%p78_p3), %s180_s30, 2 }
  0x18   : > { %s2025_s7 = scalar_lea.vmem (%p78_p3), %s2381_s1, %s1566_s4 }
  0x19   : > { %v400_v0 = vld [vmem:[%s2025_s7] sm:$0xff]  ;;  %v402_v1 = vld [vmem:[%s2025_s7 + $0x10] sm:$0xff] }
  0x1a   : > { %v404_v2 = vld [vmem:[%s2025_s7 + $0x20] sm:$0xff]  ;;  %401 = vst [vmem:[%s2030_s8] sm:$0xff] %v400_v0  ;;  %403 = vst [vmem:[%s2030_s8 + $0x8] sm:$0xff] %v402_v1  ;;  %v406_v3 = vld [vmem:[%s2025_s7 + $0x30] sm:$0xff] }
  0x1b   : > { %405 = vst [vmem:[%s2030_s8 + $0x10] sm:$0xff] %v404_v2  ;;  %v408_v4 = vld [vmem:[%s2025_s7 + $0x40] sm:$0xff]  ;;  %v410_v5 = vld [vmem:[%s2025_s7 + $0x50] sm:$0xff]  ;;  %407 = vst [vmem:[%s2030_s8 + $0x18] sm:$0xff] %v406_v3 }
  0x1c   : > { %409 = vst [vmem:[%s2030_s8 + $0x20] sm:$0xff] %v408_v4  ;;  %411 = vst [vmem:[%s2030_s8 + $0x28] sm:$0xff] %v410_v5  ;;  %v412_v6 = vld [vmem:[%s2025_s7 + $0x60] sm:$0xff]  ;;  %v414_v7 = vld [vmem:[%s2025_s7 + $0x70] sm:$0xff] }
  0x1d   : > { %v416_v8 = vld [vmem:[%s2025_s7 + $0x80] sm:$0xff]  ;;  %413 = vst [vmem:[%s2030_s8 + $0x30] sm:$0xff] %v412_v6  ;;  %415 = vst [vmem:[%s2030_s8 + $0x38] sm:$0xff] %v414_v7  ;;  %v418_v9 = vld [vmem:[%s2025_s7 + $0x90] sm:$0xff] }
  0x1e   : > { %417 = vst [vmem:[%s2030_s8 + $0x40] sm:$0xff] %v416_v8  ;;  %v420_v10 = vld [vmem:[%s2025_s7 + $0xa0] sm:$0xff]  ;;  %v422_v11 = vld [vmem:[%s2025_s7 + $0xb0] sm:$0xff]  ;;  %419 = vst [vmem:[%s2030_s8 + $0x48] sm:$0xff] %v418_v9 }
  0x1f   : > { %421 = vst [vmem:[%s2030_s8 + $0x50] sm:$0xff] %v420_v10  ;;  %423 = vst [vmem:[%s2030_s8 + $0x58] sm:$0xff] %v422_v11  ;;  %v424_v12 = vld [vmem:[%s2025_s7 + $0xc0] sm:$0xff]  ;;  %v426_v13 = vld [vmem:[%s2025_s7 + $0xd0] sm:$0xff] }
  0x20   : > { %v428_v14 = vld [vmem:[%s2025_s7 + $0xe0] sm:$0xff]  ;;  %425 = vst [vmem:[%s2030_s8 + $0x60] sm:$0xff] %v424_v12  ;;  %427 = vst [vmem:[%s2030_s8 + $0x68] sm:$0xff] %v426_v13  ;;  %v430_v15 = vld [vmem:[%s2025_s7 + $0xf0] sm:$0xff] }
  0x21   : > { %429 = vst [vmem:[%s2030_s8 + $0x70] sm:$0xff] %v428_v14  ;;  %v432_v16 = vld [vmem:[%s2025_s7 + $0x100] sm:$0xff]  ;;  %v434_v17 = vld [vmem:[%s2025_s7 + $0x110] sm:$0xff]  ;;  %431 = vst [vmem:[%s2030_s8 + $0x78] sm:$0xff] %v430_v15 }
  0x22   : > { %433 = vst [vmem:[%s2030_s8 + $0x80] sm:$0xff] %v432_v16  ;;  %435 = vst [vmem:[%s2030_s8 + $0x88] sm:$0xff] %v434_v17  ;;  %v436_v18 = vld [vmem:[%s2025_s7 + $0x120] sm:$0xff]  ;;  %v438_v19 = vld [vmem:[%s2025_s7 + $0x130] sm:$0xff] }
  0x23   : > { %v440_v20 = vld [vmem:[%s2025_s7 + $0x140] sm:$0xff]  ;;  %437 = vst [vmem:[%s2030_s8 + $0x90] sm:$0xff] %v436_v18  ;;  %439 = vst [vmem:[%s2030_s8 + $0x98] sm:$0xff] %v438_v19  ;;  %v442_v21 = vld [vmem:[%s2025_s7 + $0x150] sm:$0xff] }
  0x24   : > { %441 = vst [vmem:[%s2030_s8 + $0xa0] sm:$0xff] %v440_v20  ;;  %v444_v22 = vld [vmem:[%s2025_s7 + $0x160] sm:$0xff]  ;;  %v446_v23 = vld [vmem:[%s2025_s7 + $0x170] sm:$0xff]  ;;  %443 = vst [vmem:[%s2030_s8 + $0xa8] sm:$0xff] %v442_v21 }
  0x25   : > { %445 = vst [vmem:[%s2030_s8 + $0xb0] sm:$0xff] %v444_v22  ;;  %447 = vst [vmem:[%s2030_s8 + $0xb8] sm:$0xff] %v446_v23  ;;  %v448_v24 = vld [vmem:[%s2025_s7 + $0x180] sm:$0xff]  ;;  %v450_v25 = vld [vmem:[%s2025_s7 + $0x190] sm:$0xff] }
  0x26   : > { %v452_v26 = vld [vmem:[%s2025_s7 + $0x1a0] sm:$0xff]  ;;  %449 = vst [vmem:[%s2030_s8 + $0xc0] sm:$0xff] %v448_v24  ;;  %451 = vst [vmem:[%s2030_s8 + $0xc8] sm:$0xff] %v450_v25  ;;  %v454_v27 = vld [vmem:[%s2025_s7 + $0x1b0] sm:$0xff] }
  0x27   : > { %453 = vst [vmem:[%s2030_s8 + $0xd0] sm:$0xff] %v452_v26  ;;  %v456_v28 = vld [vmem:[%s2025_s7 + $0x1c0] sm:$0xff]  ;;  %v458_v29 = vld [vmem:[%s2025_s7 + $0x1d0] sm:$0xff]  ;;  %455 = vst [vmem:[%s2030_s8 + $0xd8] sm:$0xff] %v454_v27 }
  0x28   : > { %457 = vst [vmem:[%s2030_s8 + $0xe0] sm:$0xff] %v456_v28  ;;  %459 = vst [vmem:[%s2030_s8 + $0xe8] sm:$0xff] %v458_v29  ;;  %v460_v30 = vld [vmem:[%s2025_s7 + $0x1e0] sm:$0xff]  ;;  %v462_v31 = vld [vmem:[%s2025_s7 + $0x1f0] sm:$0xff] }
  0x29   : > { %v464_v32 = vld [vmem:[%s2025_s7 + $0x200] sm:$0xff]  ;;  %461 = vst [vmem:[%s2030_s8 + $0xf0] sm:$0xff] %v460_v30  ;;  %463 = vst [vmem:[%s2030_s8 + $0xf8] sm:$0xff] %v462_v31  ;;  %v466_v33 = vld [vmem:[%s2025_s7 + $0x210] sm:$0xff] }
  0x2a   : > { %465 = vst [vmem:[%s2030_s8 + $0x100] sm:$0xff] %v464_v32  ;;  %v468_v34 = vld [vmem:[%s2025_s7 + $0x220] sm:$0xff]  ;;  %v470_v35 = vld [vmem:[%s2025_s7 + $0x230] sm:$0xff]  ;;  %467 = vst [vmem:[%s2030_s8 + $0x108] sm:$0xff] %v466_v33 }
  0x2b   : > { %469 = vst [vmem:[%s2030_s8 + $0x110] sm:$0xff] %v468_v34  ;;  %471 = vst [vmem:[%s2030_s8 + $0x118] sm:$0xff] %v470_v35  ;;  %v472_v36 = vld [vmem:[%s2025_s7 + $0x240] sm:$0xff]  ;;  %v474_v37 = vld [vmem:[%s2025_s7 + $0x250] sm:$0xff] }
  0x2c   : > { %v476_v38 = vld [vmem:[%s2025_s7 + $0x260] sm:$0xff]  ;;  %473 = vst [vmem:[%s2030_s8 + $0x120] sm:$0xff] %v472_v36  ;;  %475 = vst [vmem:[%s2030_s8 + $0x128] sm:$0xff] %v474_v37  ;;  %v478_v39 = vld [vmem:[%s2025_s7 + $0x270] sm:$0xff] }
  0x2d   : > { %477 = vst [vmem:[%s2030_s8 + $0x130] sm:$0xff] %v476_v38  ;;  %v480_v40 = vld [vmem:[%s2025_s7 + $0x280] sm:$0xff]  ;;  %v482_v41 = vld [vmem:[%s2025_s7 + $0x290] sm:$0xff]  ;;  %479 = vst [vmem:[%s2030_s8 + $0x138] sm:$0xff] %v478_v39 }
  0x2e   : > { %481 = vst [vmem:[%s2030_s8 + $0x140] sm:$0xff] %v480_v40  ;;  %483 = vst [vmem:[%s2030_s8 + $0x148] sm:$0xff] %v482_v41  ;;  %v484_v42 = vld [vmem:[%s2025_s7 + $0x2a0] sm:$0xff]  ;;  %v486_v43 = vld [vmem:[%s2025_s7 + $0x2b0] sm:$0xff] }
  0x2f   : > { %v488_v44 = vld [vmem:[%s2025_s7 + $0x2c0] sm:$0xff]  ;;  %485 = vst [vmem:[%s2030_s8 + $0x150] sm:$0xff] %v484_v42  ;;  %487 = vst [vmem:[%s2030_s8 + $0x158] sm:$0xff] %v486_v43  ;;  %v490_v45 = vld [vmem:[%s2025_s7 + $0x2d0] sm:$0xff] }
  0x30   : > { %489 = vst [vmem:[%s2030_s8 + $0x160] sm:$0xff] %v488_v44  ;;  %v492_v46 = vld [vmem:[%s2025_s7 + $0x2e0] sm:$0xff]  ;;  %v494_v47 = vld [vmem:[%s2025_s7 + $0x2f0] sm:$0xff]  ;;  %491 = vst [vmem:[%s2030_s8 + $0x168] sm:$0xff] %v490_v45 }
  0x31   : > { %493 = vst [vmem:[%s2030_s8 + $0x170] sm:$0xff] %v492_v46  ;;  %495 = vst [vmem:[%s2030_s8 + $0x178] sm:$0xff] %v494_v47  ;;  %v496_v48 = vld [vmem:[%s2025_s7 + $0x300] sm:$0xff]  ;;  %v498_v49 = vld [vmem:[%s2025_s7 + $0x310] sm:$0xff] }
  0x32   : > { %v500_v50 = vld [vmem:[%s2025_s7 + $0x320] sm:$0xff]  ;;  %497 = vst [vmem:[%s2030_s8 + $0x180] sm:$0xff] %v496_v48  ;;  %499 = vst [vmem:[%s2030_s8 + $0x188] sm:$0xff] %v498_v49  ;;  %v502_v51 = vld [vmem:[%s2025_s7 + $0x330] sm:$0xff] }
  0x33   : > { %501 = vst [vmem:[%s2030_s8 + $0x190] sm:$0xff] %v500_v50  ;;  %v504_v52 = vld [vmem:[%s2025_s7 + $0x340] sm:$0xff]  ;;  %v506_v53 = vld [vmem:[%s2025_s7 + $0x350] sm:$0xff]  ;;  %503 = vst [vmem:[%s2030_s8 + $0x198] sm:$0xff] %v502_v51 }
  0x34   : > { %505 = vst [vmem:[%s2030_s8 + $0x1a0] sm:$0xff] %v504_v52  ;;  %507 = vst [vmem:[%s2030_s8 + $0x1a8] sm:$0xff] %v506_v53  ;;  %v508_v54 = vld [vmem:[%s2025_s7 + $0x360] sm:$0xff]  ;;  %v510_v55 = vld [vmem:[%s2025_s7 + $0x370] sm:$0xff] }
  0x35   : > { %v512_v56 = vld [vmem:[%s2025_s7 + $0x380] sm:$0xff]  ;;  %509 = vst [vmem:[%s2030_s8 + $0x1b0] sm:$0xff] %v508_v54  ;;  %511 = vst [vmem:[%s2030_s8 + $0x1b8] sm:$0xff] %v510_v55  ;;  %v514_v57 = vld [vmem:[%s2025_s7 + $0x390] sm:$0xff] }
  0x36   : > { %513 = vst [vmem:[%s2030_s8 + $0x1c0] sm:$0xff] %v512_v56  ;;  %v516_v58 = vld [vmem:[%s2025_s7 + $0x3a0] sm:$0xff]  ;;  %v518_v59 = vld [vmem:[%s2025_s7 + $0x3b0] sm:$0xff]  ;;  %515 = vst [vmem:[%s2030_s8 + $0x1c8] sm:$0xff] %v514_v57 }
  0x37   : > { %517 = vst [vmem:[%s2030_s8 + $0x1d0] sm:$0xff] %v516_v58  ;;  %519 = vst [vmem:[%s2030_s8 + $0x1d8] sm:$0xff] %v518_v59  ;;  %v520_v60 = vld [vmem:[%s2025_s7 + $0x3c0] sm:$0xff]  ;;  %v522_v61 = vld [vmem:[%s2025_s7 + $0x3d0] sm:$0xff] }
  0x38   : > { %v524_v62 = vld [vmem:[%s2025_s7 + $0x3e0] sm:$0xff]  ;;  %521 = vst [vmem:[%s2030_s8 + $0x1e0] sm:$0xff] %v520_v60  ;;  %523 = vst [vmem:[%s2030_s8 + $0x1e8] sm:$0xff] %v522_v61  ;;  %v526_v63 = vld [vmem:[%s2025_s7 + $0x3f0] sm:$0xff] }
  0x39   : > { %525 = vst [vmem:[%s2030_s8 + $0x1f0] sm:$0xff] %v524_v62  ;;  %v528_v0 = vld [vmem:[%s2025_s7 + $0x400] sm:$0xff]  ;;  %v530_v1 = vld [vmem:[%s2025_s7 + $0x410] sm:$0xff]  ;;  %527 = vst [vmem:[%s2030_s8 + $0x1f8] sm:$0xff] %v526_v63 }
  0x3a   : > { %529 = vst [vmem:[%s2030_s8 + $0x200] sm:$0xff] %v528_v0  ;;  %531 = vst [vmem:[%s2030_s8 + $0x208] sm:$0xff] %v530_v1  ;;  %v532_v2 = vld [vmem:[%s2025_s7 + $0x420] sm:$0xff]  ;;  %v534_v3 = vld [vmem:[%s2025_s7 + $0x430] sm:$0xff] }
  0x3b   : > { %v536_v4 = vld [vmem:[%s2025_s7 + $0x440] sm:$0xff]  ;;  %533 = vst [vmem:[%s2030_s8 + $0x210] sm:$0xff] %v532_v2  ;;  %535 = vst [vmem:[%s2030_s8 + $0x218] sm:$0xff] %v534_v3  ;;  %v538_v5 = vld [vmem:[%s2025_s7 + $0x450] sm:$0xff] }
  0x3c   : > { %537 = vst [vmem:[%s2030_s8 + $0x220] sm:$0xff] %v536_v4  ;;  %v540_v6 = vld [vmem:[%s2025_s7 + $0x460] sm:$0xff]  ;;  %v542_v7 = vld [vmem:[%s2025_s7 + $0x470] sm:$0xff]  ;;  %539 = vst [vmem:[%s2030_s8 + $0x228] sm:$0xff] %v538_v5 }
  0x3d   : > { %541 = vst [vmem:[%s2030_s8 + $0x230] sm:$0xff] %v540_v6  ;;  %543 = vst [vmem:[%s2030_s8 + $0x238] sm:$0xff] %v542_v7  ;;  %v544_v8 = vld [vmem:[%s2025_s7 + $0x480] sm:$0xff]  ;;  %v546_v9 = vld [vmem:[%s2025_s7 + $0x490] sm:$0xff] }
  0x3e   : > { %v548_v10 = vld [vmem:[%s2025_s7 + $0x4a0] sm:$0xff]  ;;  %545 = vst [vmem:[%s2030_s8 + $0x240] sm:$0xff] %v544_v8  ;;  %547 = vst [vmem:[%s2030_s8 + $0x248] sm:$0xff] %v546_v9  ;;  %v550_v11 = vld [vmem:[%s2025_s7 + $0x4b0] sm:$0xff] }
  0x3f   : > { %549 = vst [vmem:[%s2030_s8 + $0x250] sm:$0xff] %v548_v10  ;;  %v552_v12 = vld [vmem:[%s2025_s7 + $0x4c0] sm:$0xff]  ;;  %v554_v13 = vld [vmem:[%s2025_s7 + $0x4d0] sm:$0xff]  ;;  %551 = vst [vmem:[%s2030_s8 + $0x258] sm:$0xff] %v550_v11 }
  0x40   : > { %553 = vst [vmem:[%s2030_s8 + $0x260] sm:$0xff] %v552_v12  ;;  %555 = vst [vmem:[%s2030_s8 + $0x268] sm:$0xff] %v554_v13  ;;  %v556_v14 = vld [vmem:[%s2025_s7 + $0x4e0] sm:$0xff]  ;;  %v558_v15 = vld [vmem:[%s2025_s7 + $0x4f0] sm:$0xff] }
  0x41   : > { %v560_v16 = vld [vmem:[%s2025_s7 + $0x500] sm:$0xff]  ;;  %557 = vst [vmem:[%s2030_s8 + $0x270] sm:$0xff] %v556_v14  ;;  %559 = vst [vmem:[%s2030_s8 + $0x278] sm:$0xff] %v558_v15  ;;  %v562_v17 = vld [vmem:[%s2025_s7 + $0x510] sm:$0xff] }
  0x42   : > { %561 = vst [vmem:[%s2030_s8 + $0x280] sm:$0xff] %v560_v16  ;;  %v564_v18 = vld [vmem:[%s2025_s7 + $0x520] sm:$0xff]  ;;  %v566_v19 = vld [vmem:[%s2025_s7 + $0x530] sm:$0xff]  ;;  %563 = vst [vmem:[%s2030_s8 + $0x288] sm:$0xff] %v562_v17 }
  0x43   : > { %565 = vst [vmem:[%s2030_s8 + $0x290] sm:$0xff] %v564_v18  ;;  %567 = vst [vmem:[%s2030_s8 + $0x298] sm:$0xff] %v566_v19  ;;  %v568_v20 = vld [vmem:[%s2025_s7 + $0x540] sm:$0xff]  ;;  %v570_v21 = vld [vmem:[%s2025_s7 + $0x550] sm:$0xff] }
  0x44   : > { %v572_v22 = vld [vmem:[%s2025_s7 + $0x560] sm:$0xff]  ;;  %569 = vst [vmem:[%s2030_s8 + $0x2a0] sm:$0xff] %v568_v20  ;;  %571 = vst [vmem:[%s2030_s8 + $0x2a8] sm:$0xff] %v570_v21  ;;  %v574_v23 = vld [vmem:[%s2025_s7 + $0x570] sm:$0xff] }
  0x45   : > { %573 = vst [vmem:[%s2030_s8 + $0x2b0] sm:$0xff] %v572_v22  ;;  %v576_v24 = vld [vmem:[%s2025_s7 + $0x580] sm:$0xff]  ;;  %v578_v25 = vld [vmem:[%s2025_s7 + $0x590] sm:$0xff]  ;;  %575 = vst [vmem:[%s2030_s8 + $0x2b8] sm:$0xff] %v574_v23 }
  0x46   : > { %577 = vst [vmem:[%s2030_s8 + $0x2c0] sm:$0xff] %v576_v24  ;;  %579 = vst [vmem:[%s2030_s8 + $0x2c8] sm:$0xff] %v578_v25  ;;  %v580_v26 = vld [vmem:[%s2025_s7 + $0x5a0] sm:$0xff]  ;;  %v582_v27 = vld [vmem:[%s2025_s7 + $0x5b0] sm:$0xff] }
  0x47   : > { %v584_v28 = vld [vmem:[%s2025_s7 + $0x5c0] sm:$0xff]  ;;  %581 = vst [vmem:[%s2030_s8 + $0x2d0] sm:$0xff] %v580_v26  ;;  %583 = vst [vmem:[%s2030_s8 + $0x2d8] sm:$0xff] %v582_v27  ;;  %v586_v29 = vld [vmem:[%s2025_s7 + $0x5d0] sm:$0xff] }
  0x48   : > { %585 = vst [vmem:[%s2030_s8 + $0x2e0] sm:$0xff] %v584_v28  ;;  %v588_v30 = vld [vmem:[%s2025_s7 + $0x5e0] sm:$0xff]  ;;  %v590_v31 = vld [vmem:[%s2025_s7 + $0x5f0] sm:$0xff]  ;;  %587 = vst [vmem:[%s2030_s8 + $0x2e8] sm:$0xff] %v586_v29 }
  0x49   : > { %589 = vst [vmem:[%s2030_s8 + $0x2f0] sm:$0xff] %v588_v30  ;;  %591 = vst [vmem:[%s2030_s8 + $0x2f8] sm:$0xff] %v590_v31 }
  0x4a PF: > { %p1567_p7 = scmp.ge.s32.totalorder %s1942_s18, 1  ;;  %p604_p8 = scmp.lt.s32.totalorder %s1942_s18, 13 }
  0x4c   : > { %p605_p9 = pnand %p1567_p7, %p604_p8 }
  0x4d   : > { %s611_s9 = sand.u32 (!%p605_p9), 1, %s1918_s12   ;;  %s651_s10 = smul.u32 (!%p605_p9), 6, %s1926_s14 }
  0x4e   : > { %608 = sbr.rel (%p605_p9) target bundleno = 454 (0x1c6), region = 66  ;;  %s1569_s21 = sshll.u32 (!%p605_p9), %s1930_s15, 1 }
  0x4f   : > { %s1680_s11 = smul.u32 (!%p605_p9), 768, %s611_s9  ;;  %p654_p10 = scmp.lt.s32.totalorder (!%p605_p9), %s651_s10, 35 }
  0x50   : > { %p664_p11 = scmp.lt.s32.totalorder (!%p605_p9), %s1569_s21, 3  ;;  %p1572_p12 = scmp.ne.s32.totalorder (!%p605_p9), %s1926_s14, 0 }
  0x51   : > { %s2243_s5 = scalar_lea.vmem (!%p605_p9), [#allocation3], %s1680_s11 }
  0x55   : > { %s2397_s10 = smov (!%p654_p10, %s651_s10), 35  ;;  %s2399_s21 = smov (!%p664_p11, %s1569_s21), 3 }
  0x56   : > { %s1568_s22 = sshll.u32 %s2397_s10, 2  ;;  %s666_s12 = scalar_lea.vmem %s2382_s2, %s2399_s21  ;;  %v1944_v32 = vmov (!%p1572_p12), 0.0  }
  0x57   : > { %s2231_s26 = scalar_lea.vmem %s2380_s0, %s1568_s22  ;;  %s1571_s29 = sshll.u32 %s2399_s21, 3  ;;  %682 = vst [vmem:[#allocation2] sm:$0xff] (!%p1572_p12), %v1944_v32  ;;  %683 = vst [vmem:[#allocation2 + $0x8] sm:$0xff] (!%p1572_p12), %v1944_v32 }
  0x58   : > { %s2241_s4 = scalar_lea.vmem %s2383_s3, %s1571_s29  ;;  %681 = sbr.rel (%p1572_p12) target bundleno = 95 (0x5f), region = 74 }
  0x5f PF: > { %v1738_v33 = vld [vmem:[%s2243_s5 + $0x4] ss:$8 sps:$4 sm:$0xff]   ;;  %v1742_v35 = vld [vmem:[%s2243_s5] ss:$8 sps:$4 sm:$0xff]   ;;  %v1744_v37 = vld [vmem:[%s2243_s5 + $0x14] ss:$8 sps:$4 sm:$0xff]  }
  0x60   : > { %v1740_v34 = vld [vmem:[%s2243_s5 + $0x104] ss:$8 sps:$4 sm:$0xff]   ;;  %1286 = vmatprep.subr.bf16.mxu0 %v1738_v33  ;;  %v1743_v36 = vld [vmem:[%s2243_s5 + $0x100] ss:$8 sps:$4 sm:$0xff]   ;;  %v1746_v38 = vld [vmem:[%s2243_s5 + $0x114] ss:$8 sps:$4 sm:$0xff]  }
  0x61   : > { %1327 = vmatprep.subr.bf16.mxu1 %v1740_v34  ;;  %1287 = vmatpush1.bf16.msra.mxu0 %v1742_v35  ;;  %v1748_v39 = vld [vmem:[%s2243_s5 + $0x10] ss:$8 sps:$4 sm:$0xff]   ;;  %v1750_v41 = vld [vmem:[%s2243_s5 + $0x24] ss:$8 sps:$4 sm:$0xff]   ;;  %v1754_v43 = vld [vmem:[%s2243_s5 + $0x20] ss:$8 sps:$4 sm:$0xff]  }
  0x62   : > { %1328 = vmatpush1.bf16.msra.mxu1 %v1743_v36  ;;  %1288 = vmatprep.subr.bf16.mxu0 %v1744_v37  ;;  %v1749_v40 = vld [vmem:[%s2243_s5 + $0x110] ss:$8 sps:$4 sm:$0xff]   ;;  %v1752_v42 = vld [vmem:[%s2243_s5 + $0x124] ss:$8 sps:$4 sm:$0xff]   ;;  %v1755_v44 = vld [vmem:[%s2243_s5 + $0x120] ss:$8 sps:$4 sm:$0xff]  }
  0x63   : > { %1329 = vmatprep.subr.bf16.mxu1 %v1746_v38  ;;  %v1756_v45 = vld [vmem:[%s2243_s5 + $0x34] ss:$8 sps:$4 sm:$0xff]   ;;  %v1760_v47 = vld [vmem:[%s2243_s5 + $0x30] ss:$8 sps:$4 sm:$0xff]   ;;  %v1762_v49 = vld [vmem:[%s2243_s5 + $0x44] ss:$8 sps:$4 sm:$0xff]  }
  0x64   : > { %v1758_v46 = vld [vmem:[%s2243_s5 + $0x134] ss:$8 sps:$4 sm:$0xff]   ;;  %v1761_v48 = vld [vmem:[%s2243_s5 + $0x130] ss:$8 sps:$4 sm:$0xff]   ;;  %v1764_v50 = vld [vmem:[%s2243_s5 + $0x144] ss:$8 sps:$4 sm:$0xff]  }
  0x65   : > { %1289 = vmatpush1.bf16.msra.mxu0 %v1748_v39  ;;  %v1766_v51 = vld [vmem:[%s2243_s5 + $0x40] ss:$8 sps:$4 sm:$0xff]   ;;  %v1768_v53 = vld [vmem:[%s2243_s5 + $0x54] ss:$8 sps:$4 sm:$0xff]   ;;  %v1772_v55 = vld [vmem:[%s2243_s5 + $0x50] ss:$8 sps:$4 sm:$0xff]  }
  0x66   : > { %1330 = vmatpush1.bf16.msra.mxu1 %v1749_v40  ;;  %1290 = vmatprep.subr.bf16.mxu0 %v1750_v41  ;;  %v1767_v52 = vld [vmem:[%s2243_s5 + $0x140] ss:$8 sps:$4 sm:$0xff]   ;;  %v1770_v54 = vld [vmem:[%s2243_s5 + $0x154] ss:$8 sps:$4 sm:$0xff]   ;;  %v1773_v56 = vld [vmem:[%s2243_s5 + $0x150] ss:$8 sps:$4 sm:$0xff]  }
  0x67   : > { %1331 = vmatprep.subr.bf16.mxu1 %v1752_v42  ;;  %v1774_v57 = vld [vmem:[%s2243_s5 + $0x64] ss:$8 sps:$4 sm:$0xff]   ;;  %v1778_v59 = vld [vmem:[%s2243_s5 + $0x60] ss:$8 sps:$4 sm:$0xff]   ;;  %v1780_v61 = vld [vmem:[%s2243_s5 + $0x74] ss:$8 sps:$4 sm:$0xff]  }
  0x68   : > { %v1776_v58 = vld [vmem:[%s2243_s5 + $0x164] ss:$8 sps:$4 sm:$0xff]   ;;  %v1779_v60 = vld [vmem:[%s2243_s5 + $0x160] ss:$8 sps:$4 sm:$0xff]   ;;  %v1782_v62 = vld [vmem:[%s2243_s5 + $0x174] ss:$8 sps:$4 sm:$0xff]  }
  0x69   : > { %1291 = vmatpush1.bf16.msra.mxu0 %v1754_v43  ;;  %v1784_v63 = vld [vmem:[%s2243_s5 + $0x70] ss:$8 sps:$4 sm:$0xff]   ;;  %v1786_v1 = vld [vmem:[%s2243_s5 + $0x84] ss:$8 sps:$4 sm:$0xff]   ;;  %v1790_v3 = vld [vmem:[%s2243_s5 + $0x80] ss:$8 sps:$4 sm:$0xff]  }
  0x6a   : > { %1332 = vmatpush1.bf16.msra.mxu1 %v1755_v44  ;;  %1292 = vmatprep.subr.bf16.mxu0 %v1756_v45  ;;  %v1785_v0 = vld [vmem:[%s2243_s5 + $0x170] ss:$8 sps:$4 sm:$0xff]   ;;  %v1788_v2 = vld [vmem:[%s2243_s5 + $0x184] ss:$8 sps:$4 sm:$0xff]   ;;  %v1791_v4 = vld [vmem:[%s2243_s5 + $0x180] ss:$8 sps:$4 sm:$0xff]  }
  0x6b   : > { %1333 = vmatprep.subr.bf16.mxu1 %v1758_v46  ;;  %v1792_v5 = vld [vmem:[%s2243_s5 + $0x94] ss:$8 sps:$4 sm:$0xff]   ;;  %v1796_v7 = vld [vmem:[%s2243_s5 + $0x90] ss:$8 sps:$4 sm:$0xff]   ;;  %v1798_v9 = vld [vmem:[%s2243_s5 + $0xa4] ss:$8 sps:$4 sm:$0xff]  }
  0x6c   : > { %v1794_v6 = vld [vmem:[%s2243_s5 + $0x194] ss:$8 sps:$4 sm:$0xff]   ;;  %v1797_v8 = vld [vmem:[%s2243_s5 + $0x190] ss:$8 sps:$4 sm:$0xff]   ;;  %v1800_v10 = vld [vmem:[%s2243_s5 + $0x1a4] ss:$8 sps:$4 sm:$0xff]  }
  0x6d   : > { %1293 = vmatpush1.bf16.msra.mxu0 %v1760_v47  ;;  %v1802_v11 = vld [vmem:[%s2243_s5 + $0xa0] ss:$8 sps:$4 sm:$0xff]   ;;  %v1804_v13 = vld [vmem:[%s2243_s5 + $0xb4] ss:$8 sps:$4 sm:$0xff]   ;;  %v1808_v18 = vld [vmem:[%s2243_s5 + $0xb0] ss:$8 sps:$4 sm:$0xff]  }
  0x6e   : > { %1334 = vmatpush1.bf16.msra.mxu1 %v1761_v48  ;;  %1294 = vmatprep.subr.bf16.mxu0 %v1762_v49  ;;  %v1803_v12 = vld [vmem:[%s2243_s5 + $0x1a0] ss:$8 sps:$4 sm:$0xff]   ;;  %v1806_v14 = vld [vmem:[%s2243_s5 + $0x1b4] ss:$8 sps:$4 sm:$0xff]   ;;  %v1809_v19 = vld [vmem:[%s2243_s5 + $0x1b0] ss:$8 sps:$4 sm:$0xff]  }
  0x6f   : > { %1335 = vmatprep.subr.bf16.mxu1 %v1764_v50  ;;  %v686_v15 = vld [vmem:[%s2231_s26] sm:$0xff]  ;;  %v687_v17 = vld [vmem:[%s2231_s26 + $0x8] sm:$0xff]  ;;  %v1810_v21 = vld [vmem:[%s2243_s5 + $0xc4] ss:$8 sps:$4 sm:$0xff]   ;;  %p1675_p13 = scmp.ne.s32.totalorder %s1926_s14, 5 }
  0x70   : > { %v1574_v16 = vcombine.high %v686_v15, %v686_v15  ;;  %v1576_v20 = vcombine.high %v687_v17, %v687_v17  ;;  %v1812_v22 = vld [vmem:[%s2243_s5 + $0x1c4] ss:$8 sps:$4 sm:$0xff]   ;;  %v1814_v23 = vld [vmem:[%s2243_s5 + $0xc0] ss:$8 sps:$4 sm:$0xff]   ;;  %v1816_v25 = vld [vmem:[%s2243_s5 + $0xd4] ss:$8 sps:$4 sm:$0xff]   ;;  %v1573_v38 = vcombine.low %v686_v15, %v686_v15  ;;  %v1575_v39 = vcombine.low %v687_v17, %v687_v17 }
  0x71   : > { %1295 = vmatpush1.bf16.msra.mxu0 %v1766_v51  ;;  %v1815_v24 = vld [vmem:[%s2243_s5 + $0x1c0] ss:$8 sps:$4 sm:$0xff]   ;;  %v1818_v26 = vld [vmem:[%s2243_s5 + $0x1d4] ss:$8 sps:$4 sm:$0xff]   ;;  %v1820_v27 = vld [vmem:[%s2243_s5 + $0xd0] ss:$8 sps:$4 sm:$0xff]  }
  0x72   : > { %1336 = vmatpush1.bf16.msra.mxu1 %v1767_v52  ;;  %1296 = vmatprep.subr.bf16.mxu0 %v1768_v53  ;;  %v1821_v28 = vld [vmem:[%s2243_s5 + $0x1d0] ss:$8 sps:$4 sm:$0xff]   ;;  %v1822_v29 = vld [vmem:[%s2243_s5 + $0xe4] ss:$8 sps:$4 sm:$0xff]   ;;  %v1826_v31 = vld [vmem:[%s2243_s5 + $0xe0] ss:$8 sps:$4 sm:$0xff]  }
  0x73   : > { %1337 = vmatprep.subr.bf16.mxu1 %v1770_v54  ;;  %1318 = vmatprep.mubr.bf16.mxu0 %v1574_v16  ;;  %v1824_v30 = vld [vmem:[%s2243_s5 + $0x1e4] ss:$8 sps:$4 sm:$0xff]   ;;  %v1827_v32 = vld [vmem:[%s2243_s5 + $0x1e0] ss:$8 sps:$4 sm:$0xff]   ;;  %v1828_v33 = vld [vmem:[%s2243_s5 + $0xf4] ss:$8 sps:$4 sm:$0xff]  }
  0x74   : > { %1359 = vmatprep.mubr.bf16.mxu1 %v1576_v20  ;;  %v1830_v34 = vld [vmem:[%s2243_s5 + $0x1f4] ss:$8 sps:$4 sm:$0xff]   ;;  %v1832_v35 = vld [vmem:[%s2243_s5 + $0xf0] ss:$8 sps:$4 sm:$0xff]   ;;  %v1840_v37 = vld [vmem:[%s2243_s5 + $0x204] ss:$8 sps:$4 sm:$0xff]  }
  0x75   : > { %1297 = vmatpush1.bf16.msra.mxu0 %v1772_v55  ;;  %v1833_v36 = vld [vmem:[%s2243_s5 + $0x1f0] ss:$8 sps:$4 sm:$0xff]   ;;  %v1838_v40 = vld [vmem:[%s2243_s5 + $0x200] ss:$8 sps:$4 sm:$0xff]   ;;  %v1843_v42 = vld [vmem:[%s2243_s5 + $0x214] ss:$8 sps:$4 sm:$0xff]  }
  0x76   : > { %1338 = vmatpush1.bf16.msra.mxu1 %v1773_v56  ;;  %1298 = vmatprep.subr.bf16.mxu0 %v1774_v57  ;;  %v2315_v41 = vld [vmem:[%s2231_s26 + $0x10] sm:$0xff]  ;;  %v1841_v44 = vld [vmem:[%s2243_s5 + $0x210] ss:$8 sps:$4 sm:$0xff]   ;;  %v1849_v47 = vld [vmem:[%s2243_s5 + $0x234] ss:$8 sps:$4 sm:$0xff]  }
  0x77   : > { %1339 = vmatprep.subr.bf16.mxu1 %v1776_v58  ;;  %v1578_v43 = vcombine.high %v2315_v41, %v2315_v41  ;;  %v1846_v45 = vld [vmem:[%s2243_s5 + $0x224] ss:$8 sps:$4 sm:$0xff]   ;;  %v1844_v46 = vld [vmem:[%s2243_s5 + $0x220] ss:$8 sps:$4 sm:$0xff]   ;;  %v1847_v48 = vld [vmem:[%s2243_s5 + $0x230] ss:$8 sps:$4 sm:$0xff]  }
  0x78   : > { %v1852_v49 = vld [vmem:[%s2243_s5 + $0x244] ss:$8 sps:$4 sm:$0xff]   ;;  %v1850_v50 = vld [vmem:[%s2243_s5 + $0x240] ss:$8 sps:$4 sm:$0xff]   ;;  %v1855_v51 = vld [vmem:[%s2243_s5 + $0x254] ss:$8 sps:$4 sm:$0xff]  }
  0x79   : > { %1299 = vmatpush1.bf16.msra.mxu0 %v1778_v59  ;;  %v1853_v52 = vld [vmem:[%s2243_s5 + $0x250] ss:$8 sps:$4 sm:$0xff]   ;;  %v1858_v53 = vld [vmem:[%s2243_s5 + $0x264] ss:$8 sps:$4 sm:$0xff]   ;;  %v1856_v54 = vld [vmem:[%s2243_s5 + $0x260] ss:$8 sps:$4 sm:$0xff]  }
  0x7a   : > { %1340 = vmatpush1.bf16.msra.mxu1 %v1779_v60  ;;  %1300 = vmatprep.subr.bf16.mxu0 %v1780_v61  ;;  %v1861_v55 = vld [vmem:[%s2243_s5 + $0x274] ss:$8 sps:$4 sm:$0xff]   ;;  %v1859_v56 = vld [vmem:[%s2243_s5 + $0x270] ss:$8 sps:$4 sm:$0xff]   ;;  %v1864_v57 = vld [vmem:[%s2243_s5 + $0x284] ss:$8 sps:$4 sm:$0xff]  }
  0x7b   : > { %1341 = vmatprep.subr.bf16.mxu1 %v1782_v62  ;;  %v1862_v58 = vld [vmem:[%s2243_s5 + $0x280] ss:$8 sps:$4 sm:$0xff]   ;;  %v1867_v59 = vld [vmem:[%s2243_s5 + $0x294] ss:$8 sps:$4 sm:$0xff]   ;;  %v1865_v60 = vld [vmem:[%s2243_s5 + $0x290] ss:$8 sps:$4 sm:$0xff]  }
  0x7c   : > { %v1870_v61 = vld [vmem:[%s2243_s5 + $0x2a4] ss:$8 sps:$4 sm:$0xff]   ;;  %v1868_v62 = vld [vmem:[%s2243_s5 + $0x2a0] ss:$8 sps:$4 sm:$0xff]   ;;  %v684_v20 = vld [vmem:[#allocation2] sm:$0xff] }
  0x7d   : > { %1301 = vmatpush1.bf16.msra.mxu0 %v1784_v63  ;;  %v1873_v63 = vld [vmem:[%s2243_s5 + $0x2b4] ss:$8 sps:$4 sm:$0xff]  }
  0x7e   : > { %1342 = vmatpush1.bf16.msra.mxu1 %v1785_v0  ;;  %1302 = vmatprep.subr.bf16.mxu0 %v1786_v1  ;;  %v1871_v0 = vld [vmem:[%s2243_s5 + $0x2b0] ss:$8 sps:$4 sm:$0xff]   ;;  %v1876_v1 = vld [vmem:[%s2243_s5 + $0x2c4] ss:$8 sps:$4 sm:$0xff]  }
  0x7f   : > { %1343 = vmatprep.subr.bf16.mxu1 %v1788_v2  ;;  %v1874_v2 = vld [vmem:[%s2243_s5 + $0x2c0] ss:$8 sps:$4 sm:$0xff]  }
  0x81   : > { %1303 = vmatpush1.bf16.msra.mxu0 %v1790_v3  ;;  %v1879_v3 = vld [vmem:[%s2243_s5 + $0x2d4] ss:$8 sps:$4 sm:$0xff]  }
  0x82   : > { %1344 = vmatpush1.bf16.msra.mxu1 %v1791_v4  ;;  %1304 = vmatprep.subr.bf16.mxu0 %v1792_v5  ;;  %v1877_v4 = vld [vmem:[%s2243_s5 + $0x2d0] ss:$8 sps:$4 sm:$0xff]   ;;  %v1882_v5 = vld [vmem:[%s2243_s5 + $0x2e4] ss:$8 sps:$4 sm:$0xff]  }
  0x83   : > { %1345 = vmatprep.subr.bf16.mxu1 %v1794_v6  ;;  %v1880_v6 = vld [vmem:[%s2243_s5 + $0x2e0] ss:$8 sps:$4 sm:$0xff]  }
  0x85   : > { %1305 = vmatpush1.bf16.msra.mxu0 %v1796_v7  ;;  %v1885_v7 = vld [vmem:[%s2243_s5 + $0x2f4] ss:$8 sps:$4 sm:$0xff]  }
  0x86   : > { %1346 = vmatpush1.bf16.msra.mxu1 %v1797_v8  ;;  %1306 = vmatprep.subr.bf16.mxu0 %v1798_v9  ;;  %v1883_v8 = vld [vmem:[%s2243_s5 + $0x2f0] ss:$8 sps:$4 sm:$0xff]   ;;  %v1577_v9 = vcombine.low %v2315_v41, %v2315_v41 }
  0x87   : > { %1347 = vmatprep.subr.bf16.mxu1 %v1800_v10 }
  0x89   : > { %1307 = vmatpush1.bf16.msra.mxu0 %v1802_v11 }
  0x8a   : > { %1348 = vmatpush1.bf16.msra.mxu1 %v1803_v12  ;;  %1308 = vmatprep.subr.bf16.mxu0 %v1804_v13 }
  0x8b   : > { %1349 = vmatprep.subr.bf16.mxu1 %v1806_v14 }
  0x8d   : > { %1309 = vmatpush1.bf16.msra.mxu0 %v1808_v18 }
  0x8e   : > { %1350 = vmatpush1.bf16.msra.mxu1 %v1809_v19  ;;  %1310 = vmatprep.subr.bf16.mxu0 %v1810_v21 }
  0x8f   : > { %1351 = vmatprep.subr.bf16.mxu1 %v1812_v22 }
  0x91   : > { %1311 = vmatpush1.bf16.msra.mxu0 %v1814_v23  ;;  %v685_v23 = vld [vmem:[#allocation2 + $0x8] sm:$0xff] }
  0x92   : > { %1352 = vmatpush1.bf16.msra.mxu1 %v1815_v24  ;;  %1312 = vmatprep.subr.bf16.mxu0 %v1816_v25 }
  0x93   : > { %1353 = vmatprep.subr.bf16.mxu1 %v1818_v26 }
  0x95   : > { %1313 = vmatpush1.bf16.msra.mxu0 %v1820_v27 }
  0x96   : > { %1354 = vmatpush1.bf16.msra.mxu1 %v1821_v28  ;;  %1314 = vmatprep.subr.bf16.mxu0 %v1822_v29 }
  0x97   : > { %1355 = vmatprep.subr.bf16.mxu1 %v1824_v30  ;;  %v1421_v30 = vlaneseq (!%p1675_p13) }
  0x99   : > { %1315 = vmatpush1.bf16.msra.mxu0 %v1826_v31  ;;  %v1422_v31 = vshrl.u32 (!%p1675_p13), %v1421_v30, 7 }
  0x9a   : > { %1356 = vmatpush1.bf16.msra.mxu1 %v1827_v32  ;;  %1316 = vmatprep.subr.bf16.mxu0 %v1828_v33  ;;  %v1419_v32 = vld [vmem:[%s666_s12] sm:$0x3] (!%p1675_p13) }
  0x9b   : > { %1357 = vmatprep.subr.bf16.mxu1 %v1830_v34  ;;  %v1423_v33 = vsub.s32 (!%p1675_p13), 0, %v1422_v31  ;;  %v1427_v34 = vsub.s32 (!%p1675_p13), 1, %v1422_v31 }
  0x9d   : > { %1317 = vmatpush1.bf16.msra.mxu0 %v1832_v35 }
  0x9e   : > { %1358 = vmatpush1.bf16.msra.mxu1 %v1833_v36  ;;  %1368 = vmatprep.subr.bf16.mxu0 %v1840_v37  ;;  %v1424_v37 = vrot.slane (!%p1675_p13), %v1419_v32, %v1423_v33 }
  0xa0   : > { %1319 = vmatmul.mubr.bf16.vlgmr.msra.gmra.mrb[0].mxu0 %v1573_v38  ;;  %v1428_v38 = vrot.slane (!%p1675_p13), %v1419_v32, %v1427_v34 }
  0xa1   : > { %1360 = vmatmul.mubr.bf16.vlgmr.msra.gmra.mrb[0].mxu1 %v1575_v39  ;;  %1369 = vmatpush1.bf16.msra.mxu0 %v1838_v40 }
  0xa2   : > { %1400 = vmatprep.mubr.bf16.mxu0 %v1578_v43  ;;  %1370 = vmatprep.subr.bf16.mxu0 %v1843_v42 }
  0xa5   : > { %1371 = vmatpush1.bf16.msra.mxu0 %v1841_v44 }
  0xa6   : > { %1372 = vmatprep.subr.bf16.mxu0 %v1846_v45 }
  0xa9   : > { %1373 = vmatpush1.bf16.msra.mxu0 %v1844_v46 }
  0xaa   : > { %1374 = vmatprep.subr.bf16.mxu0 %v1849_v47 }
  0xad   : > { %1375 = vmatpush1.bf16.msra.mxu0 %v1847_v48 }
  0xae   : > { %1376 = vmatprep.subr.bf16.mxu0 %v1852_v49 }
  0xb1   : > { %1377 = vmatpush1.bf16.msra.mxu0 %v1850_v50 }
  0xb2   : > { %1378 = vmatprep.subr.bf16.mxu0 %v1855_v51 }
  0xb5   : > { %1379 = vmatpush1.bf16.msra.mxu0 %v1853_v52 }
  0xb6   : > { %1380 = vmatprep.subr.bf16.mxu0 %v1858_v53 }
  0xb9   : > { %1381 = vmatpush1.bf16.msra.mxu0 %v1856_v54 }
  0xba   : > { %1382 = vmatprep.subr.bf16.mxu0 %v1861_v55 }
  0xbd   : > { %1383 = vmatpush1.bf16.msra.mxu0 %v1859_v56 }
  0xbe   : > { %1384 = vmatprep.subr.bf16.mxu0 %v1864_v57 }
  0xc1   : > { %1385 = vmatpush1.bf16.msra.mxu0 %v1862_v58 }
  0xc2   : > { %1386 = vmatprep.subr.bf16.mxu0 %v1867_v59 }
  0xc5   : > { %1387 = vmatpush1.bf16.msra.mxu0 %v1865_v60 }
  0xc6   : > { %1388 = vmatprep.subr.bf16.mxu0 %v1870_v61 }
  0xc9   : > { %1389 = vmatpush1.bf16.msra.mxu0 %v1868_v62 }
  0xca   : > { %1390 = vmatprep.subr.bf16.mxu0 %v1873_v63 }
  0xcd   : > { %1391 = vmatpush1.bf16.msra.mxu0 %v1871_v0 }
  0xce   : > { %1392 = vmatprep.subr.bf16.mxu0 %v1876_v1 }
  0xd1   : > { %1393 = vmatpush1.bf16.msra.mxu0 %v1874_v2 }
  0xd2   : > { %1394 = vmatprep.subr.bf16.mxu0 %v1879_v3 }
  0xd5   : > { %1395 = vmatpush1.bf16.msra.mxu0 %v1877_v4 }
  0xd6   : > { %1396 = vmatprep.subr.bf16.mxu0 %v1882_v5 }
  0xd9   : > { %1397 = vmatpush1.bf16.msra.mxu0 %v1880_v6 }
  0xda   : > { %1398 = vmatprep.subr.bf16.mxu0 %v1885_v7 }
  0xdd   : > { %1399 = vmatpush1.bf16.msra.mxu0 %v1883_v8 }
  0xe0   : > { %1401 = vmatmul.mubr.bf16.vlgmr.msra.gmra.mrb[4].mxu0 %v1577_v9 }
 0x173   : > { %v1320_v10 = vpop.f32.mrb[0].mxu0 }
 0x174   : > { %v1361_v11 = vpop.f32.mrb[0].mxu1  ;;  %v1322_v13 = vpop.f32.mrb[1].mxu0 }
 0x175   : > { %v1362_v12 = vadd.f32 %v1361_v11, %v1320_v10  ;;  %v1363_v14 = vpop.f32.mrb[1].mxu1  ;;  %v1324_v16 = vpop.f32.mrb[2].mxu0 }
 0x176   : > { %v1364_v15 = vadd.f32 %v1363_v14, %v1322_v13  ;;  %v1365_v17 = vpop.f32.mrb[2].mxu1  ;;  %v1325_v18 = vpop.f32.mrb[3].mxu0 }
 0x177   : > { %v1366_v19 = vpop.f32.mrb[3].mxu1 }
 0x1b3   : > { %v1402_v21 = vpop.f32.mrb[4].mxu0  ;;  %1416 = sbr.rel (%p1675_p13) target bundleno = 454 (0x1c6), region = 78 }
 0x1b4   : > { %v1403_v22 = vadd.f32 %v1402_v21, %v1362_v12  ;;  %v1404_v24 = vpop.f32.mrb[5].mxu0 }
 0x1b5   : > { %v1405_v25 = vadd.f32 %v1404_v24, %v1364_v15  ;;  %v1406_v26 = vpop.f32.mrb[6].mxu0 }
 0x1b6   : > { %v1409_v27 = vadd.f32 %v1403_v22, %v684_v20  ;;  %v1407_v28 = vpop.f32.mrb[7].mxu0 }
 0x1b7   : > { %v1410_v29 = vadd.f32 %v1405_v25, %v685_v23 }
 0x1b8   : > { %1411 = vst [vmem:[#allocation2] sm:$0xff] %v1409_v27 }
 0x1b9   : > { %1412 = vst [vmem:[#allocation2 + $0x8] sm:$0xff] %v1410_v29 }
 0x1bf   : > { %v1417_v35 = vld [vmem:[#allocation2] sm:$0xff] }
 0x1c0   : > { %v1418_v36 = vld [vmem:[#allocation2 + $0x8] sm:$0xff]  ;;  %v1431_v39 = vadd.f32 %v1424_v37, %v1417_v35 }
 0x1c1   : > { %v1432_v40 = vadd.f32 %v1428_v38, %v1418_v36 }
 0x1c2   : > { %v1433_v41 = vmax.f32 %v1431_v39, 0.0 }
 0x1c3   : > { %v1434_v42 = vmax.f32 %v1432_v40, 0.0 }
 0x1c4   : > { %1435 = vst [vmem:[%s2241_s4] sm:$0xff] %v1433_v41 }
 0x1c5   : > { %1436 = vst [vmem:[%s2241_s4 + $0x8] sm:$0xff] %v1434_v42 }
 0x1c6 PF: > { %s13_s18 = sadd.s32 1, %s1942_s18   ;;  %s2384_s12 = smov %s1922_s13 }
 0x1c7   : > { %p10_p0 = scmp.ge.s32.totalorder %s13_s18, 14   ;;  %s2385_s13 = smov %s2016_s25 }
 0x1c8   : > { %s2386_s14 = smov %s1934_s16  ;;  %s2387_s15 = smov %s1938_s17 }
 0x1c9   : > { %s2388_s16 = smov %s2391_s19  ;;  %s2389_s17 = smov %s2395_s20 }
 0x1ca   :  { %12 = sbr.rel (!%p10_p0) target bundleno = 4 (0x4), region = 119 }

// kernel: backbone_forward.43
= control target key start
LH: loop header
LB: loop body
LE: loop exit
PB: predicated region body
PF: predicated region fallthrough
CT: control target
= control target key end

     0   :  { %s92_s0 = inlined_call_operand.vmem [shape: f32[2,1,512], index: 0, kind: input, shape index: {}]   ;;  %s93_s1 = inlined_call_operand.hbm [shape: f32[2,512], index: 1, kind: output, shape index: {}]  }
   0x1   :  { %v41_v0 = vld [vmem:[%s92_s0] sm:$0xff]  }
   0x2   :  { %6 = vsyncpa [#allocation3], 0  ;;  %s66_s8 = smov [#allocation2]   ;;  %39 = vst.sshfl [vmem:[#allocation2] sm:$0xff pattern:$0x75316420] %v41_v0 }
   0x3   :  { %s31_s9 = sshll.u32 %s66_s8, 4  ;;  %s32_s9 = int_to_ptr.vmem [resolvable:$true] %s31_s9 }
   0x4   :  { %s42_s10 = scalar_lea.vmem %s32_s9, 128  ;;  %p47_p1 = scmp.lt.s32.totalorder %s32_s9, %s32_s9 }
   0x5   :  { %p43_p0 = scmp.ne.s32.totalorder %s32_s9, %s42_s10  ;;  %p48_p2 = scmp.lt.s32.totalorder %s42_s10, %s42_s10 }
   0x7   :  { %p49_p3 = por %p48_p2, %p47_p1 }
   0x9   :  { %p50_p4 = pnand %p49_p3, %p43_p0 }
   0xb   :  { %53 = shalt.err (!%p50_p4)
}
   0xc   :  { %s54_s13 = scalar_lea.hbm %s93_s1, 128 }
   0xd   :  { %p55_p5 = scmp.ne.s32.totalorder %s93_s1, %s54_s13  ;;  %p58_p6 = scmp.lt.u32.totalorder %s54_s13, %s93_s1 }
   0xf   :  { %p60_p7 = pnand %p58_p6, %p55_p5 }
  0x11   :  { %63 = shalt.err (!%p60_p7)
}
  0x12   :  { %34 = dma.vmem_to_hbm [thread:$0]  %s32_s9, 128, %s93_s1, [#allocation3]  }
  0x13   :  { %64 = dma.done.wait [#allocation3], 128  }
  0x14   :  { %65 = vsyncadd [#allocation3], 4294967168 }
  0x15   :  { %38 = vsyncpa [#allocation3], 1 }

</bundles_post_ra>
